<compile_context>
chip_gen: v5e
topology: v5e:2x2
jax: 0.10.0
libtpu: 0.0.40
codegen_flags: <defaults>
</compile_context>

<pallas_src>
import functools

import jax
import jax.numpy as jnp
from jax.experimental import pallas as pl
from jax.experimental.pallas import tpu as pltpu


# ---------------------------------------------------------------------------
# The fused per-image kernel.
# ---------------------------------------------------------------------------
def _cir_kernel(theta_ref, xee_ref, xeop_ref, xoep_ref, rgb_ref, out_ref,
                sA, sB, sC, sM, *, ch, C, H, W, off):
    """Whole CIR forward for one batch image.

    theta_ref : 1-D f32 SMEM ref holding every scalar parameter (see pack_theta).
    xee/xeop/xoep : stride-2 phase decomposition of input_enhance, (ch, H, W[+1]).
    rgb_ref   : (C, H, W) input_rgb slab.
    sA/sB/sC/sM : zero-padded VMEM scratch for the stride-1 conv taps.
    """
    th = lambda i: theta_ref[i]

    def relu(x):
        return jnp.maximum(x, 0.0)

    def mix(taps, w_off, b_off, cin, cout):
        """Channel-mixing conv as unrolled scalar-broadcast VPU FMAs.
        taps[ci][t] is the (H, W) slab of input channel ci for tap t; weight
        flat layout is PyTorch (cout, cin, kh, kw) row-major."""
        ntaps = len(taps[0])
        outs = []
        for co in range(cout):
            acc = None
            for ci in range(cin):
                for t in range(ntaps):
                    term = th(w_off + (co * cin + ci) * ntaps + t) * taps[ci][t]
                    acc = term if acc is None else acc + term
            if b_off is not None:
                acc = acc + th(b_off + co)
            outs.append(acc)
        return outs

    # Zero the padded scratch (only borders matter; full clear is cheap & simple).
    sA[...] = jnp.zeros_like(sA)
    sB[...] = jnp.zeros_like(sB)
    sC[...] = jnp.zeros_like(sC)
    sM[...] = jnp.zeros_like(sM)

    # --- path A: conv1x3 (1x3, stride 2, pad (0,1)) -------------------------
    # kx=0 -> x[2h, 2w-1] = x_eo[h, w-1];  kx=1 -> x_ee[h, w];  kx=2 -> x_eo[h, w]
    tapsA = [[xeop_ref[ci, :, 0:W], xee_ref[ci], xeop_ref[ci, :, 1:W + 1]]
             for ci in range(ch)]
    rgbd1x3 = mix(tapsA, off["conv1x3_w"], off["conv1x3_b"], ch, ch)
    for co in range(ch):
        sA[co, 1:H + 1, :] = rgbd1x3[co]          # rows 0 / H+1 stay zero (pad)

    # conv3x1 (3x1, stride 1, pad (1,0)) -> SECOND channel half of rgbd1331
    tapsA2 = [[sA[ci, ky:ky + H, :] for ky in range(3)] for ci in range(ch)]
    rgbd3x1 = mix(tapsA2, off["conv3x1_w"], off["conv3x1_b"], ch, ch)
    for co in range(ch):
        sC[ch + co, 1:H + 1, 1:W + 1] = rgbd3x1[co]

    # --- path B: conv3x1_2 (3x1, stride 2, pad (1,0)) ------------------------
    # ky=0 -> x[2h-1, 2w] = x_oe[h-1, w];  ky=1 -> x_ee[h, w];  ky=2 -> x_oe[h, w]
    tapsB = [[xoep_ref[ci, 0:H, :], xee_ref[ci], xoep_ref[ci, 1:H + 1, :]]
             for ci in range(ch)]
    rgbdd3x1 = mix(tapsB, off["conv3x1_2_w"], off["conv3x1_2_b"], ch, ch)
    for co in range(ch):
        sB[co, :, 1:W + 1] = rgbdd3x1[co]         # cols 0 / W+1 stay zero (pad)

    # conv1x3_2 (1x3, stride 1, pad (0,1)) -> FIRST channel half of rgbd1331
    tapsB2 = [[sB[ci, :, kx:kx + W] for kx in range(3)] for ci in range(ch)]
    rgbdd1x3 = mix(tapsB2, off["conv1x3_2_w"], off["conv1x3_2_b"], ch, ch)
    for co in range(ch):
        sC[co, 1:H + 1, 1:W + 1] = rgbdd1x3[co]
    # sC interior == rgbd1331 = torch.cat([rgbdd1x3, rgbd3x1], dim=1).

    # --- CBR = DSConv3x3(C, C) then BN + ReLU ---------------------------------
    dw = []
    for c in range(C):                             # depthwise 3x3 + BN + ReLU
        acc = None
        for ky in range(3):
            for kx in range(3):
                term = th(off["cbr_dw_w"] + c * 9 + ky * 3 + kx) * sC[c, ky:ky + H, kx:kx + W]
                acc = term if acc is None else acc + term
        dw.append(relu(acc * th(off["cbr_dw_scale"] + c) + th(off["cbr_dw_shift"] + c)))
    rgbd_cbr = []
    for co in range(C):                            # pointwise 1x1 + BN + ReLU, CBR tail BN + ReLU
        acc = None
        for ci in range(C):
            term = th(off["cbr_pw_w"] + co * C + ci) * dw[ci]
            acc = term if acc is None else acc + term
        y = relu(acc * th(off["cbr_pw_scale"] + co) + th(off["cbr_pw_shift"] + co))
        y = relu(y * th(off["cbr_bn_scale"] + co) + th(off["cbr_bn_shift"] + co))
        rgbd_cbr.append(y)

    # --- spatial mask branch: channel max -> 7x7 conv -> 7x7 conv -> sigmoid ---
    rgb = rgb_ref[...]                             # (C, H, W)
    cmax = jnp.max(rgb, axis=0)                    # (H, W)
    sM[0, 3:3 + H, 3:3 + W] = cmax
    m = None
    for ky in range(7):
        for kx in range(7):
            term = th(off["conv1_w"] + ky * 7 + kx) * sM[0, ky:ky + H, kx:kx + W]
            m = term if m is None else m + term
    sM[0, 3:3 + H, 3:3 + W] = m                    # borders of sM are still zero
    m2 = None
    for ky in range(7):
        for kx in range(7):
            term = th(off["conv2_w"] + ky * 7 + kx) * sM[0, ky:ky + H, kx:kx + W]
            m2 = term if m2 is None else m2 + term
    mask = jax.nn.sigmoid(m2)                      # (H, W), broadcast over channels

    # --- global channel branch: GAP -> DSConv3x3 -> sigmoid (folded in here) ---
    # On a 1x1 spatial input with pad 1 only the centre depthwise tap contributes.
    inv_hw = 1.0 / float(H * W)
    g1 = []
    for c in range(C):
        g = jnp.sum(rgb[c], keepdims=True) * inv_hw                     # (1, 1)
        g = g * th(off["avg_dw_w"] + c * 9 + 4)
        g1.append(relu(g * th(off["avg_dw_scale"] + c) + th(off["avg_dw_shift"] + c)))
    gave = []
    for co in range(C):
        acc = None
        for ci in range(C):
            term = th(off["avg_pw_w"] + co * C + ci) * g1[ci]
            acc = term if acc is None else acc + term
        y = relu(acc * th(off["avg_pw_scale"] + co) + th(off["avg_pw_shift"] + co))
        gave.append(jax.nn.sigmoid(y))                                  # (1, 1)

    # --- fuse: rgbd1331*mask + rgbd1331*globalAve + input_rgb -------------------
    for c in range(C):
        out_ref[c] = rgbd_cbr[c] * mask + rgbd_cbr[c] * gave[c] + rgb[c]


# ---------------------------------------------------------------------------
# Parameter packing / wrapper.
# ---------------------------------------------------------------------------
def pack_theta(p):
    """Flatten all scalar params into one 1-D f32 array (read from SMEM).
    Offsets are static Python ints (derived from shapes only)."""
    items = [
        ("conv1x3_w", p["conv1x3_w"]), ("conv1x3_b", p["conv1x3_b"]),
        ("conv3x1_w", p["conv3x1_w"]), ("conv3x1_b", p["conv3x1_b"]),
        ("conv3x1_2_w", p["conv3x1_2_w"]), ("conv3x1_2_b", p["conv3x1_2_b"]),
        ("conv1x3_2_w", p["conv1x3_2_w"]), ("conv1x3_2_b", p["conv1x3_2_b"]),
        ("conv1_w", p["conv1_w"]), ("conv2_w", p["conv2_w"]),
        ("cbr_dw_w", p["cbr_ds"]["dw_w"]),
        ("cbr_dw_scale", p["cbr_ds"]["dw_scale"]), ("cbr_dw_shift", p["cbr_ds"]["dw_shift"]),
        ("cbr_pw_w", p["cbr_ds"]["pw_w"]),
        ("cbr_pw_scale", p["cbr_ds"]["pw_scale"]), ("cbr_pw_shift", p["cbr_ds"]["pw_shift"]),
        ("cbr_bn_scale", p["cbr_bn_scale"]), ("cbr_bn_shift", p["cbr_bn_shift"]),
        ("avg_dw_w", p["avg_ds"]["dw_w"]),
        ("avg_dw_scale", p["avg_ds"]["dw_scale"]), ("avg_dw_shift", p["avg_ds"]["dw_shift"]),
        ("avg_pw_w", p["avg_ds"]["pw_w"]),
        ("avg_pw_scale", p["avg_ds"]["pw_scale"]), ("avg_pw_shift", p["avg_ds"]["pw_shift"]),
    ]
    off, flats, cur = {}, [], 0
    for name, arr in items:
        off[name] = cur
        flat = jnp.asarray(arr, jnp.float32).reshape(-1)
        flats.append(flat)
        cur += flat.shape[0]
    return jnp.concatenate(flats, axis=0), off


def cir_forward(params, input_enhance, input_rgb):
    """
    input_enhance: (N, channel//2, H, W)      NCHW (as in PyTorch)
    input_rgb:     (N, channel, H//2, W//2)   NCHW
    returns:       (N, channel, H//2, W//2)
    """
    N, ch, H, W = input_enhance.shape
    _, C, HO, WO = input_rgb.shape
    assert C == 2 * ch and HO == H // 2 and WO == W // 2
    assert H % 2 == 0 and W % 2 == 0

    # Even/odd phase decomposition (pure XLA relayout, no im2col blow-up):
    # the stride-2 1x3 / 3x1 convs become unit-shift taps on these phases.
    x_ee = input_enhance[:, :, 0::2, 0::2]                                  # (N, ch, HO, WO)
    x_eo_p = jnp.pad(input_enhance[:, :, 0::2, 1::2],
                     ((0, 0), (0, 0), (0, 0), (1, 0)))                      # (N, ch, HO, WO+1)
    x_oe_p = jnp.pad(input_enhance[:, :, 1::2, 0::2],
                     ((0, 0), (0, 0), (1, 0), (0, 0)))                      # (N, ch, HO+1, WO)

    theta, off = pack_theta(params)
    kernel = functools.partial(_cir_kernel, ch=ch, C=C, H=HO, W=WO, off=off)

    grid_spec = pltpu.PrefetchScalarGridSpec(
        num_scalar_prefetch=1,                       # theta -> SMEM scalars
        grid=(N,),                                   # one image per grid step
        in_specs=[
            pl.BlockSpec((None, ch, HO, WO), lambda n, _s: (n, 0, 0, 0)),
            pl.BlockSpec((None, ch, HO, WO + 1), lambda n, _s: (n, 0, 0, 0)),
            pl.BlockSpec((None, ch, HO + 1, WO), lambda n, _s: (n, 0, 0, 0)),
            pl.BlockSpec((None, C, HO, WO), lambda n, _s: (n, 0, 0, 0)),
        ],
        out_specs=pl.BlockSpec((None, C, HO, WO), lambda n, _s: (n, 0, 0, 0)),
        scratch_shapes=[
            pltpu.VMEM((ch, HO + 2, WO), jnp.float32),      # path A pad-H buffer
            pltpu.VMEM((ch, HO, WO + 2), jnp.float32),      # path B pad-W buffer
            pltpu.VMEM((C, HO + 2, WO + 2), jnp.float32),   # rgbd1331 pad-HW buffer
            pltpu.VMEM((1, HO + 6, WO + 6), jnp.float32),   # 7x7 mask-conv buffer
        ],
    )
    # TODO(synk): for production-size H/W additionally tile the spatial rows
    # (grid over H with halo rows); at these sizes one image fits VMEM easily.
    return pl.pallas_call(
        kernel,
        out_shape=jax.ShapeDtypeStruct((N, C, HO, WO), jnp.float32),
        grid_spec=grid_spec,
        compiler_params=pltpu.CompilerParams(
            dimension_semantics=("parallel",),       # batch shards across TCs (v7x)
            vmem_limit_bytes=32 * 1024 * 1024,
        ),
    )(theta, x_ee, x_eo_p, x_oe_p, input_rgb)


# ---------------------------------------------------------------------------
# Synthetic parameters (deterministic; PyTorch weight layouts).
# ---------------------------------------------------------------------------
def bn_fold(gamma, beta, mean, var, eps=1e-5):
    scale = gamma / jnp.sqrt(var + eps)
    return scale, beta - mean * scale


def init_params(key, channel):
    ch = channel // 2
    keys = iter(jax.random.split(key, 48))

    def nrm(shape, s=0.1):
        return s * jax.random.normal(next(keys), shape, dtype=jnp.float32)

    def bn(c):
        gamma = 1.0 + 0.1 * jax.random.normal(next(keys), (c,), dtype=jnp.float32)
        beta = 0.1 * jax.random.normal(next(keys), (c,), dtype=jnp.float32)
        mean = 0.1 * jax.random.normal(next(keys), (c,), dtype=jnp.float32)
        var = jnp.abs(1.0 + 0.1 * jax.random.normal(next(keys), (c,), dtype=jnp.float32))
        return bn_fold(gamma, beta, mean, var)

    def ds(cin, cout):
        dws, dsh = bn(cin)
        pws, psh = bn(cout)
        return dict(dw_w=nrm((cin, 1, 3, 3)), dw_scale=dws, dw_shift=dsh,
                    pw_w=nrm((cout, cin, 1, 1)), pw_scale=pws, pw_shift=psh)

    p = {}
    p["conv1x3_w"] = nrm((ch, ch, 1, 3));   p["conv1x3_b"] = nrm((ch,), 0.05)
    p["conv3x1_w"] = nrm((ch, ch, 3, 1));   p["conv3x1_b"] = nrm((ch,), 0.05)
    p["conv3x1_2_w"] = nrm((ch, ch, 3, 1)); p["conv3x1_2_b"] = nrm((ch,), 0.05)
    p["conv1x3_2_w"] = nrm((ch, ch, 1, 3)); p["conv1x3_2_b"] = nrm((ch,), 0.05)
    p["conv1_w"] = nrm((1, 1, 7, 7))        # Conv2d(1, 1, 7, padding=3, bias=False)
    p["conv2_w"] = nrm((1, 1, 7, 7))
    p["cbr_ds"] = ds(channel, channel)
    p["cbr_bn_scale"], p["cbr_bn_shift"] = bn(channel)
    p["avg_ds"] = ds(channel, channel)
    return p


if __name__ == "__main__":
    channel = 8
    N, H, W = 2, 16, 16
    key = jax.random.PRNGKey(0)
    kp, ke, kr = jax.random.split(key, 3)
    params = init_params(kp, channel)
    input_enhance = jax.random.normal(ke, (N, channel // 2, H, W), dtype=jnp.float32)
    input_rgb = jax.random.normal(kr, (N, channel, H // 2, W // 2), dtype=jnp.float32)
    out = jax.jit(cir_forward)(params, input_enhance, input_rgb)
    out = jax.block_until_ready(out)
    assert out.shape == (N, channel, H // 2, W // 2) and out.dtype == jnp.float32
    assert bool(jnp.isfinite(out).all())
    print("KERNEL_OK")
</pallas_src>

<mosaic_0001>
module attributes {stable_mosaic.version = 11 : i64} {
  func.func @_cir_kernel(%arg0: i32, %arg1: memref<658xf32, #tpu.memory_space<smem>>, %arg2: memref<1x4x8x8xf32, #tpu.memory_space<vmem>>, %arg3: memref<1x4x8x9xf32, #tpu.memory_space<vmem>>, %arg4: memref<1x4x9x8xf32, #tpu.memory_space<vmem>>, %arg5: memref<1x8x8x8xf32, #tpu.memory_space<vmem>>, %arg6: memref<1x8x8x8xf32, #tpu.memory_space<vmem>>, %arg7: memref<4x10x8xf32, #tpu.memory_space<vmem>>, %arg8: memref<4x8x10xf32, #tpu.memory_space<vmem>>, %arg9: memref<8x10x10xf32, #tpu.memory_space<vmem>>, %arg10: memref<1x14x14xf32, #tpu.memory_space<vmem>>) attributes {dimension_semantics = [#tpu.dimension_semantics<parallel>], iteration_bounds = array<i64: 2>, scalar_prefetch = 1 : i64, scratch_operands = 4 : i64, tpu.core_type = #tpu.core_type<tc>, window_params = [{transform_indices = @transform_0, window_bounds = array<i64: 1, 4, 8, 8>}, {transform_indices = @transform_1, window_bounds = array<i64: 1, 4, 8, 9>}, {transform_indices = @transform_2, window_bounds = array<i64: 1, 4, 9, 8>}, {transform_indices = @transform_3, window_bounds = array<i64: 1, 8, 8, 8>}, {transform_indices = @transform_4, window_bounds = array<i64: 1, 8, 8, 8>}]} {
    %cst = arith.constant 0.000000e+00 : f32
    %0 = vector.broadcast %cst : f32 to vector<4x10x8xf32>
    %c0 = arith.constant 0 : index
    %c0_0 = arith.constant 0 : index
    %c0_1 = arith.constant 0 : index
    %1 = vector.load %arg7[%c0, %c0_0, %c0_1] : memref<4x10x8xf32, #tpu.memory_space<vmem>>, vector<4x10x8xf32>
    tpu.vector_store %arg7[%c0, %c0_0, %c0_1], %0 {strides = array<i32>} : memref<4x10x8xf32, #tpu.memory_space<vmem>>, vector<4x10x8xf32>,
    %cst_2 = arith.constant 0.000000e+00 : f32
    %2 = vector.broadcast %cst_2 : f32 to vector<4x8x10xf32>
    %c0_3 = arith.constant 0 : index
    %c0_4 = arith.constant 0 : index
    %c0_5 = arith.constant 0 : index
    %3 = vector.load %arg8[%c0_3, %c0_4, %c0_5] : memref<4x8x10xf32, #tpu.memory_space<vmem>>, vector<4x8x10xf32>
    tpu.vector_store %arg8[%c0_3, %c0_4, %c0_5], %2 {strides = array<i32>} : memref<4x8x10xf32, #tpu.memory_space<vmem>>, vector<4x8x10xf32>,
    %cst_6 = arith.constant 0.000000e+00 : f32
    %4 = vector.broadcast %cst_6 : f32 to vector<8x10x10xf32>
    %c0_7 = arith.constant 0 : index
    %c0_8 = arith.constant 0 : index
    %c0_9 = arith.constant 0 : index
    %5 = vector.load %arg9[%c0_7, %c0_8, %c0_9] : memref<8x10x10xf32, #tpu.memory_space<vmem>>, vector<8x10x10xf32>
    tpu.vector_store %arg9[%c0_7, %c0_8, %c0_9], %4 {strides = array<i32>} : memref<8x10x10xf32, #tpu.memory_space<vmem>>, vector<8x10x10xf32>,
    %cst_10 = arith.constant 0.000000e+00 : f32
    %6 = vector.broadcast %cst_10 : f32 to vector<1x14x14xf32>
    %c0_11 = arith.constant 0 : index
    %c0_12 = arith.constant 0 : index
    %c0_13 = arith.constant 0 : index
    %7 = vector.load %arg10[%c0_11, %c0_12, %c0_13] : memref<1x14x14xf32, #tpu.memory_space<vmem>>, vector<1x14x14xf32>
    tpu.vector_store %arg10[%c0_11, %c0_12, %c0_13], %6 {strides = array<i32>} : memref<1x14x14xf32, #tpu.memory_space<vmem>>, vector<1x14x14xf32>,
    %c0_14 = arith.constant 0 : index
    %c0_15 = arith.constant 0 : index
    %c0_16 = arith.constant 0 : index
    %c0_17 = arith.constant 0 : index
    %8 = vector.load %arg3[%c0_14, %c0_15, %c0_16, %c0_17] : memref<1x4x8x9xf32, #tpu.memory_space<vmem>>, vector<1x1x8x8xf32>
    %9 = vector.shape_cast %8 : vector<1x1x8x8xf32> to vector<8x8xf32>
    %c0_18 = arith.constant 0 : index
    %c0_19 = arith.constant 0 : index
    %c0_20 = arith.constant 0 : index
    %c0_21 = arith.constant 0 : index
    %10 = vector.load %arg2[%c0_18, %c0_19, %c0_20, %c0_21] : memref<1x4x8x8xf32, #tpu.memory_space<vmem>>, vector<1x1x8x8xf32>
    %11 = vector.shape_cast %10 : vector<1x1x8x8xf32> to vector<8x8xf32>
    %c0_22 = arith.constant 0 : index
    %c0_23 = arith.constant 0 : index
    %c0_24 = arith.constant 0 : index
    %c1 = arith.constant 1 : index
    %12 = vector.load %arg3[%c0_22, %c0_23, %c0_24, %c1] : memref<1x4x8x9xf32, #tpu.memory_space<vmem>>, vector<1x1x8x8xf32>
    %13 = vector.shape_cast %12 : vector<1x1x8x8xf32> to vector<8x8xf32>
    %c0_25 = arith.constant 0 : index
    %c1_26 = arith.constant 1 : index
    %c0_27 = arith.constant 0 : index
    %c0_28 = arith.constant 0 : index
    %14 = vector.load %arg3[%c0_25, %c1_26, %c0_27, %c0_28] : memref<1x4x8x9xf32, #tpu.memory_space<vmem>>, vector<1x1x8x8xf32>
    %15 = vector.shape_cast %14 : vector<1x1x8x8xf32> to vector<8x8xf32>
    %c0_29 = arith.constant 0 : index
    %c1_30 = arith.constant 1 : index
    %c0_31 = arith.constant 0 : index
    %c0_32 = arith.constant 0 : index
    %16 = vector.load %arg2[%c0_29, %c1_30, %c0_31, %c0_32] : memref<1x4x8x8xf32, #tpu.memory_space<vmem>>, vector<1x1x8x8xf32>
    %17 = vector.shape_cast %16 : vector<1x1x8x8xf32> to vector<8x8xf32>
    %c0_33 = arith.constant 0 : index
    %c1_34 = arith.constant 1 : index
    %c0_35 = arith.constant 0 : index
    %c1_36 = arith.constant 1 : index
    %18 = vector.load %arg3[%c0_33, %c1_34, %c0_35, %c1_36] : memref<1x4x8x9xf32, #tpu.memory_space<vmem>>, vector<1x1x8x8xf32>
    %19 = vector.shape_cast %18 : vector<1x1x8x8xf32> to vector<8x8xf32>
    %c0_37 = arith.constant 0 : index
    %c2 = arith.constant 2 : index
    %c0_38 = arith.constant 0 : index
    %c0_39 = arith.constant 0 : index
    %20 = vector.load %arg3[%c0_37, %c2, %c0_38, %c0_39] : memref<1x4x8x9xf32, #tpu.memory_space<vmem>>, vector<1x1x8x8xf32>
    %21 = vector.shape_cast %20 : vector<1x1x8x8xf32> to vector<8x8xf32>
    %c0_40 = arith.constant 0 : index
    %c2_41 = arith.constant 2 : index
    %c0_42 = arith.constant 0 : index
    %c0_43 = arith.constant 0 : index
    %22 = vector.load %arg2[%c0_40, %c2_41, %c0_42, %c0_43] : memref<1x4x8x8xf32, #tpu.memory_space<vmem>>, vector<1x1x8x8xf32>
    %23 = vector.shape_cast %22 : vector<1x1x8x8xf32> to vector<8x8xf32>
    %c0_44 = arith.constant 0 : index
    %c2_45 = arith.constant 2 : index
    %c0_46 = arith.constant 0 : index
    %c1_47 = arith.constant 1 : index
    %24 = vector.load %arg3[%c0_44, %c2_45, %c0_46, %c1_47] : memref<1x4x8x9xf32, #tpu.memory_space<vmem>>, vector<1x1x8x8xf32>
    %25 = vector.shape_cast %24 : vector<1x1x8x8xf32> to vector<8x8xf32>
    %c0_48 = arith.constant 0 : index
    %c3 = arith.constant 3 : index
    %c0_49 = arith.constant 0 : index
    %c0_50 = arith.constant 0 : index
    %26 = vector.load %arg3[%c0_48, %c3, %c0_49, %c0_50] : memref<1x4x8x9xf32, #tpu.memory_space<vmem>>, vector<1x1x8x8xf32>
    %27 = vector.shape_cast %26 : vector<1x1x8x8xf32> to vector<8x8xf32>
    %c0_51 = arith.constant 0 : index
    %c3_52 = arith.constant 3 : index
    %c0_53 = arith.constant 0 : index
    %c0_54 = arith.constant 0 : index
    %28 = vector.load %arg2[%c0_51, %c3_52, %c0_53, %c0_54] : memref<1x4x8x8xf32, #tpu.memory_space<vmem>>, vector<1x1x8x8xf32>
    %29 = vector.shape_cast %28 : vector<1x1x8x8xf32> to vector<8x8xf32>
    %c0_55 = arith.constant 0 : index
    %c3_56 = arith.constant 3 : index
    %c0_57 = arith.constant 0 : index
    %c1_58 = arith.constant 1 : index
    %30 = vector.load %arg3[%c0_55, %c3_56, %c0_57, %c1_58] : memref<1x4x8x9xf32, #tpu.memory_space<vmem>>, vector<1x1x8x8xf32>
    %31 = vector.shape_cast %30 : vector<1x1x8x8xf32> to vector<8x8xf32>
    %c0_59 = arith.constant 0 : index
    %32 = memref.load %arg1[%c0_59] : memref<658xf32, #tpu.memory_space<smem>>
    %33 = vector.broadcast %32 : f32 to vector<8x8xf32>
    %34 = arith.mulf %33, %9 : vector<8x8xf32>
    %c1_60 = arith.constant 1 : index
    %35 = memref.load %arg1[%c1_60] : memref<658xf32, #tpu.memory_space<smem>>
    %36 = vector.broadcast %35 : f32 to vector<8x8xf32>
    %37 = arith.mulf %36, %11 : vector<8x8xf32>
    %38 = arith.addf %34, %37 : vector<8x8xf32>
    %c2_61 = arith.constant 2 : index
    %39 = memref.load %arg1[%c2_61] : memref<658xf32, #tpu.memory_space<smem>>
    %40 = vector.broadcast %39 : f32 to vector<8x8xf32>
    %41 = arith.mulf %40, %13 : vector<8x8xf32>
    %42 = arith.addf %38, %41 : vector<8x8xf32>
    %c3_62 = arith.constant 3 : index
    %43 = memref.load %arg1[%c3_62] : memref<658xf32, #tpu.memory_space<smem>>
    %44 = vector.broadcast %43 : f32 to vector<8x8xf32>
    %45 = arith.mulf %44, %15 : vector<8x8xf32>
    %46 = arith.addf %42, %45 : vector<8x8xf32>
    %c4 = arith.constant 4 : index
    %47 = memref.load %arg1[%c4] : memref<658xf32, #tpu.memory_space<smem>>
    %48 = vector.broadcast %47 : f32 to vector<8x8xf32>
    %49 = arith.mulf %48, %17 : vector<8x8xf32>
    %50 = arith.addf %46, %49 : vector<8x8xf32>
    %c5 = arith.constant 5 : index
    %51 = memref.load %arg1[%c5] : memref<658xf32, #tpu.memory_space<smem>>
    %52 = vector.broadcast %51 : f32 to vector<8x8xf32>
    %53 = arith.mulf %52, %19 : vector<8x8xf32>
    %54 = arith.addf %50, %53 : vector<8x8xf32>
    %c6 = arith.constant 6 : index
    %55 = memref.load %arg1[%c6] : memref<658xf32, #tpu.memory_space<smem>>
    %56 = vector.broadcast %55 : f32 to vector<8x8xf32>
    %57 = arith.mulf %56, %21 : vector<8x8xf32>
    %58 = arith.addf %54, %57 : vector<8x8xf32>
    %c7 = arith.constant 7 : index
    %59 = memref.load %arg1[%c7] : memref<658xf32, #tpu.memory_space<smem>>
    %60 = vector.broadcast %59 : f32 to vector<8x8xf32>
    %61 = arith.mulf %60, %23 : vector<8x8xf32>
    %62 = arith.addf %58, %61 : vector<8x8xf32>
    %c8 = arith.constant 8 : index
    %63 = memref.load %arg1[%c8] : memref<658xf32, #tpu.memory_space<smem>>
    %64 = vector.broadcast %63 : f32 to vector<8x8xf32>
    %65 = arith.mulf %64, %25 : vector<8x8xf32>
    %66 = arith.addf %62, %65 : vector<8x8xf32>
    %c9 = arith.constant 9 : index
    %67 = memref.load %arg1[%c9] : memref<658xf32, #tpu.memory_space<smem>>
    %68 = vector.broadcast %67 : f32 to vector<8x8xf32>
    %69 = arith.mulf %68, %27 : vector<8x8xf32>
    %70 = arith.addf %66, %69 : vector<8x8xf32>
    %c10 = arith.constant 10 : index
    %71 = memref.load %arg1[%c10] : memref<658xf32, #tpu.memory_space<smem>>
    %72 = vector.broadcast %71 : f32 to vector<8x8xf32>
    %73 = arith.mulf %72, %29 : vector<8x8xf32>
    %74 = arith.addf %70, %73 : vector<8x8xf32>
    %c11 = arith.constant 11 : index
    %75 = memref.load %arg1[%c11] : memref<658xf32, #tpu.memory_space<smem>>
    %76 = vector.broadcast %75 : f32 to vector<8x8xf32>
    %77 = arith.mulf %76, %31 : vector<8x8xf32>
    %78 = arith.addf %74, %77 : vector<8x8xf32>
    %c48 = arith.constant 48 : index
    %79 = memref.load %arg1[%c48] : memref<658xf32, #tpu.memory_space<smem>>
    %80 = vector.broadcast %79 : f32 to vector<8x8xf32>
    %81 = arith.addf %78, %80 : vector<8x8xf32>
    %c12 = arith.constant 12 : index
    %82 = memref.load %arg1[%c12] : memref<658xf32, #tpu.memory_space<smem>>
    %83 = vector.broadcast %82 : f32 to vector<8x8xf32>
    %84 = arith.mulf %83, %9 : vector<8x8xf32>
    %c13 = arith.constant 13 : index
    %85 = memref.load %arg1[%c13] : memref<658xf32, #tpu.memory_space<smem>>
    %86 = vector.broadcast %85 : f32 to vector<8x8xf32>
    %87 = arith.mulf %86, %11 : vector<8x8xf32>
    %88 = arith.addf %84, %87 : vector<8x8xf32>
    %c14 = arith.constant 14 : index
    %89 = memref.load %arg1[%c14] : memref<658xf32, #tpu.memory_space<smem>>
    %90 = vector.broadcast %89 : f32 to vector<8x8xf32>
    %91 = arith.mulf %90, %13 : vector<8x8xf32>
    %92 = arith.addf %88, %91 : vector<8x8xf32>
    %c15 = arith.constant 15 : index
    %93 = memref.load %arg1[%c15] : memref<658xf32, #tpu.memory_space<smem>>
    %94 = vector.broadcast %93 : f32 to vector<8x8xf32>
    %95 = arith.mulf %94, %15 : vector<8x8xf32>
    %96 = arith.addf %92, %95 : vector<8x8xf32>
    %c16 = arith.constant 16 : index
    %97 = memref.load %arg1[%c16] : memref<658xf32, #tpu.memory_space<smem>>
    %98 = vector.broadcast %97 : f32 to vector<8x8xf32>
    %99 = arith.mulf %98, %17 : vector<8x8xf32>
    %100 = arith.addf %96, %99 : vector<8x8xf32>
    %c17 = arith.constant 17 : index
    %101 = memref.load %arg1[%c17] : memref<658xf32, #tpu.memory_space<smem>>
    %102 = vector.broadcast %101 : f32 to vector<8x8xf32>
    %103 = arith.mulf %102, %19 : vector<8x8xf32>
    %104 = arith.addf %100, %103 : vector<8x8xf32>
    %c18 = arith.constant 18 : index
    %105 = memref.load %arg1[%c18] : memref<658xf32, #tpu.memory_space<smem>>
    %106 = vector.broadcast %105 : f32 to vector<8x8xf32>
    %107 = arith.mulf %106, %21 : vector<8x8xf32>
    %108 = arith.addf %104, %107 : vector<8x8xf32>
    %c19 = arith.constant 19 : index
    %109 = memref.load %arg1[%c19] : memref<658xf32, #tpu.memory_space<smem>>
    %110 = vector.broadcast %109 : f32 to vector<8x8xf32>
    %111 = arith.mulf %110, %23 : vector<8x8xf32>
    %112 = arith.addf %108, %111 : vector<8x8xf32>
    %c20 = arith.constant 20 : index
    %113 = memref.load %arg1[%c20] : memref<658xf32, #tpu.memory_space<smem>>
    %114 = vector.broadcast %113 : f32 to vector<8x8xf32>
    %115 = arith.mulf %114, %25 : vector<8x8xf32>
    %116 = arith.addf %112, %115 : vector<8x8xf32>
    %c21 = arith.constant 21 : index
    %117 = memref.load %arg1[%c21] : memref<658xf32, #tpu.memory_space<smem>>
    %118 = vector.broadcast %117 : f32 to vector<8x8xf32>
    %119 = arith.mulf %118, %27 : vector<8x8xf32>
    %120 = arith.addf %116, %119 : vector<8x8xf32>
    %c22 = arith.constant 22 : index
    %121 = memref.load %arg1[%c22] : memref<658xf32, #tpu.memory_space<smem>>
    %122 = vector.broadcast %121 : f32 to vector<8x8xf32>
    %123 = arith.mulf %122, %29 : vector<8x8xf32>
    %124 = arith.addf %120, %123 : vector<8x8xf32>
    %c23 = arith.constant 23 : index
    %125 = memref.load %arg1[%c23] : memref<658xf32, #tpu.memory_space<smem>>
    %126 = vector.broadcast %125 : f32 to vector<8x8xf32>
    %127 = arith.mulf %126, %31 : vector<8x8xf32>
    %128 = arith.addf %124, %127 : vector<8x8xf32>
    %c49 = arith.constant 49 : index
    %129 = memref.load %arg1[%c49] : memref<658xf32, #tpu.memory_space<smem>>
    %130 = vector.broadcast %129 : f32 to vector<8x8xf32>
    %131 = arith.addf %128, %130 : vector<8x8xf32>
    %c24 = arith.constant 24 : index
    %132 = memref.load %arg1[%c24] : memref<658xf32, #tpu.memory_space<smem>>
    %133 = vector.broadcast %132 : f32 to vector<8x8xf32>
    %134 = arith.mulf %133, %9 : vector<8x8xf32>
    %c25 = arith.constant 25 : index
    %135 = memref.load %arg1[%c25] : memref<658xf32, #tpu.memory_space<smem>>
    %136 = vector.broadcast %135 : f32 to vector<8x8xf32>
    %137 = arith.mulf %136, %11 : vector<8x8xf32>
    %138 = arith.addf %134, %137 : vector<8x8xf32>
    %c26 = arith.constant 26 : index
    %139 = memref.load %arg1[%c26] : memref<658xf32, #tpu.memory_space<smem>>
    %140 = vector.broadcast %139 : f32 to vector<8x8xf32>
    %141 = arith.mulf %140, %13 : vector<8x8xf32>
    %142 = arith.addf %138, %141 : vector<8x8xf32>
    %c27 = arith.constant 27 : index
    %143 = memref.load %arg1[%c27] : memref<658xf32, #tpu.memory_space<smem>>
    %144 = vector.broadcast %143 : f32 to vector<8x8xf32>
    %145 = arith.mulf %144, %15 : vector<8x8xf32>
    %146 = arith.addf %142, %145 : vector<8x8xf32>
    %c28 = arith.constant 28 : index
    %147 = memref.load %arg1[%c28] : memref<658xf32, #tpu.memory_space<smem>>
    %148 = vector.broadcast %147 : f32 to vector<8x8xf32>
    %149 = arith.mulf %148, %17 : vector<8x8xf32>
    %150 = arith.addf %146, %149 : vector<8x8xf32>
    %c29 = arith.constant 29 : index
    %151 = memref.load %arg1[%c29] : memref<658xf32, #tpu.memory_space<smem>>
    %152 = vector.broadcast %151 : f32 to vector<8x8xf32>
    %153 = arith.mulf %152, %19 : vector<8x8xf32>
    %154 = arith.addf %150, %153 : vector<8x8xf32>
    %c30 = arith.constant 30 : index
    %155 = memref.load %arg1[%c30] : memref<658xf32, #tpu.memory_space<smem>>
    %156 = vector.broadcast %155 : f32 to vector<8x8xf32>
    %157 = arith.mulf %156, %21 : vector<8x8xf32>
    %158 = arith.addf %154, %157 : vector<8x8xf32>
    %c31 = arith.constant 31 : index
    %159 = memref.load %arg1[%c31] : memref<658xf32, #tpu.memory_space<smem>>
    %160 = vector.broadcast %159 : f32 to vector<8x8xf32>
    %161 = arith.mulf %160, %23 : vector<8x8xf32>
    %162 = arith.addf %158, %161 : vector<8x8xf32>
    %c32 = arith.constant 32 : index
    %163 = memref.load %arg1[%c32] : memref<658xf32, #tpu.memory_space<smem>>
    %164 = vector.broadcast %163 : f32 to vector<8x8xf32>
    %165 = arith.mulf %164, %25 : vector<8x8xf32>
    %166 = arith.addf %162, %165 : vector<8x8xf32>
    %c33 = arith.constant 33 : index
    %167 = memref.load %arg1[%c33] : memref<658xf32, #tpu.memory_space<smem>>
    %168 = vector.broadcast %167 : f32 to vector<8x8xf32>
    %169 = arith.mulf %168, %27 : vector<8x8xf32>
    %170 = arith.addf %166, %169 : vector<8x8xf32>
    %c34 = arith.constant 34 : index
    %171 = memref.load %arg1[%c34] : memref<658xf32, #tpu.memory_space<smem>>
    %172 = vector.broadcast %171 : f32 to vector<8x8xf32>
    %173 = arith.mulf %172, %29 : vector<8x8xf32>
    %174 = arith.addf %170, %173 : vector<8x8xf32>
    %c35 = arith.constant 35 : index
    %175 = memref.load %arg1[%c35] : memref<658xf32, #tpu.memory_space<smem>>
    %176 = vector.broadcast %175 : f32 to vector<8x8xf32>
    %177 = arith.mulf %176, %31 : vector<8x8xf32>
    %178 = arith.addf %174, %177 : vector<8x8xf32>
    %c50 = arith.constant 50 : index
    %179 = memref.load %arg1[%c50] : memref<658xf32, #tpu.memory_space<smem>>
    %180 = vector.broadcast %179 : f32 to vector<8x8xf32>
    %181 = arith.addf %178, %180 : vector<8x8xf32>
    %c36 = arith.constant 36 : index
    %182 = memref.load %arg1[%c36] : memref<658xf32, #tpu.memory_space<smem>>
    %183 = vector.broadcast %182 : f32 to vector<8x8xf32>
    %184 = arith.mulf %183, %9 : vector<8x8xf32>
    %c37 = arith.constant 37 : index
    %185 = memref.load %arg1[%c37] : memref<658xf32, #tpu.memory_space<smem>>
    %186 = vector.broadcast %185 : f32 to vector<8x8xf32>
    %187 = arith.mulf %186, %11 : vector<8x8xf32>
    %188 = arith.addf %184, %187 : vector<8x8xf32>
    %c38 = arith.constant 38 : index
    %189 = memref.load %arg1[%c38] : memref<658xf32, #tpu.memory_space<smem>>
    %190 = vector.broadcast %189 : f32 to vector<8x8xf32>
    %191 = arith.mulf %190, %13 : vector<8x8xf32>
    %192 = arith.addf %188, %191 : vector<8x8xf32>
    %c39 = arith.constant 39 : index
    %193 = memref.load %arg1[%c39] : memref<658xf32, #tpu.memory_space<smem>>
    %194 = vector.broadcast %193 : f32 to vector<8x8xf32>
    %195 = arith.mulf %194, %15 : vector<8x8xf32>
    %196 = arith.addf %192, %195 : vector<8x8xf32>
    %c40 = arith.constant 40 : index
    %197 = memref.load %arg1[%c40] : memref<658xf32, #tpu.memory_space<smem>>
    %198 = vector.broadcast %197 : f32 to vector<8x8xf32>
    %199 = arith.mulf %198, %17 : vector<8x8xf32>
    %200 = arith.addf %196, %199 : vector<8x8xf32>
    %c41 = arith.constant 41 : index
    %201 = memref.load %arg1[%c41] : memref<658xf32, #tpu.memory_space<smem>>
    %202 = vector.broadcast %201 : f32 to vector<8x8xf32>
    %203 = arith.mulf %202, %19 : vector<8x8xf32>
    %204 = arith.addf %200, %203 : vector<8x8xf32>
    %c42 = arith.constant 42 : index
    %205 = memref.load %arg1[%c42] : memref<658xf32, #tpu.memory_space<smem>>
    %206 = vector.broadcast %205 : f32 to vector<8x8xf32>
    %207 = arith.mulf %206, %21 : vector<8x8xf32>
    %208 = arith.addf %204, %207 : vector<8x8xf32>
    %c43 = arith.constant 43 : index
    %209 = memref.load %arg1[%c43] : memref<658xf32, #tpu.memory_space<smem>>
    %210 = vector.broadcast %209 : f32 to vector<8x8xf32>
    %211 = arith.mulf %210, %23 : vector<8x8xf32>
    %212 = arith.addf %208, %211 : vector<8x8xf32>
    %c44 = arith.constant 44 : index
    %213 = memref.load %arg1[%c44] : memref<658xf32, #tpu.memory_space<smem>>
    %214 = vector.broadcast %213 : f32 to vector<8x8xf32>
    %215 = arith.mulf %214, %25 : vector<8x8xf32>
    %216 = arith.addf %212, %215 : vector<8x8xf32>
    %c45 = arith.constant 45 : index
    %217 = memref.load %arg1[%c45] : memref<658xf32, #tpu.memory_space<smem>>
    %218 = vector.broadcast %217 : f32 to vector<8x8xf32>
    %219 = arith.mulf %218, %27 : vector<8x8xf32>
    %220 = arith.addf %216, %219 : vector<8x8xf32>
    %c46 = arith.constant 46 : index
    %221 = memref.load %arg1[%c46] : memref<658xf32, #tpu.memory_space<smem>>
    %222 = vector.broadcast %221 : f32 to vector<8x8xf32>
    %223 = arith.mulf %222, %29 : vector<8x8xf32>
    %224 = arith.addf %220, %223 : vector<8x8xf32>
    %c47 = arith.constant 47 : index
    %225 = memref.load %arg1[%c47] : memref<658xf32, #tpu.memory_space<smem>>
    %226 = vector.broadcast %225 : f32 to vector<8x8xf32>
    %227 = arith.mulf %226, %31 : vector<8x8xf32>
    %228 = arith.addf %224, %227 : vector<8x8xf32>
    %c51 = arith.constant 51 : index
    %229 = memref.load %arg1[%c51] : memref<658xf32, #tpu.memory_space<smem>>
    %230 = vector.broadcast %229 : f32 to vector<8x8xf32>
    %231 = arith.addf %228, %230 : vector<8x8xf32>
    %c0_63 = arith.constant 0 : index
    %c1_64 = arith.constant 1 : index
    %c0_65 = arith.constant 0 : index
    %232 = vector.load %arg7[%c0_63, %c1_64, %c0_65] : memref<4x10x8xf32, #tpu.memory_space<vmem>>, vector<1x8x8xf32>
    %233 = vector.shape_cast %232 : vector<1x8x8xf32> to vector<8x8xf32>
    %234 = vector.shape_cast %81 : vector<8x8xf32> to vector<1x8x8xf32>
    tpu.vector_store %arg7[%c0_63, %c1_64, %c0_65], %234 {strides = array<i32>} : memref<4x10x8xf32, #tpu.memory_space<vmem>>, vector<1x8x8xf32>,
    %c1_66 = arith.constant 1 : index
    %c1_67 = arith.constant 1 : index
    %c0_68 = arith.constant 0 : index
    %235 = vector.load %arg7[%c1_66, %c1_67, %c0_68] : memref<4x10x8xf32, #tpu.memory_space<vmem>>, vector<1x8x8xf32>
    %236 = vector.shape_cast %235 : vector<1x8x8xf32> to vector<8x8xf32>
    %237 = vector.shape_cast %131 : vector<8x8xf32> to vector<1x8x8xf32>
    tpu.vector_store %arg7[%c1_66, %c1_67, %c0_68], %237 {strides = array<i32>} : memref<4x10x8xf32, #tpu.memory_space<vmem>>, vector<1x8x8xf32>,
    %c2_69 = arith.constant 2 : index
    %c1_70 = arith.constant 1 : index
    %c0_71 = arith.constant 0 : index
    %238 = vector.load %arg7[%c2_69, %c1_70, %c0_71] : memref<4x10x8xf32, #tpu.memory_space<vmem>>, vector<1x8x8xf32>
    %239 = vector.shape_cast %238 : vector<1x8x8xf32> to vector<8x8xf32>
    %240 = vector.shape_cast %181 : vector<8x8xf32> to vector<1x8x8xf32>
    tpu.vector_store %arg7[%c2_69, %c1_70, %c0_71], %240 {strides = array<i32>} : memref<4x10x8xf32, #tpu.memory_space<vmem>>, vector<1x8x8xf32>,
    %c3_72 = arith.constant 3 : index
    %c1_73 = arith.constant 1 : index
    %c0_74 = arith.constant 0 : index
    %241 = vector.load %arg7[%c3_72, %c1_73, %c0_74] : memref<4x10x8xf32, #tpu.memory_space<vmem>>, vector<1x8x8xf32>
    %242 = vector.shape_cast %241 : vector<1x8x8xf32> to vector<8x8xf32>
    %243 = vector.shape_cast %231 : vector<8x8xf32> to vector<1x8x8xf32>
    tpu.vector_store %arg7[%c3_72, %c1_73, %c0_74], %243 {strides = array<i32>} : memref<4x10x8xf32, #tpu.memory_space<vmem>>, vector<1x8x8xf32>,
    %c0_75 = arith.constant 0 : index
    %c0_76 = arith.constant 0 : index
    %c0_77 = arith.constant 0 : index
    %244 = vector.load %arg7[%c0_75, %c0_76, %c0_77] : memref<4x10x8xf32, #tpu.memory_space<vmem>>, vector<1x8x8xf32>
    %245 = vector.shape_cast %244 : vector<1x8x8xf32> to vector<8x8xf32>
    %c0_78 = arith.constant 0 : index
    %c1_79 = arith.constant 1 : index
    %c0_80 = arith.constant 0 : index
    %246 = vector.load %arg7[%c0_78, %c1_79, %c0_80] : memref<4x10x8xf32, #tpu.memory_space<vmem>>, vector<1x8x8xf32>
    %247 = vector.shape_cast %246 : vector<1x8x8xf32> to vector<8x8xf32>
    %c0_81 = arith.constant 0 : index
    %c2_82 = arith.constant 2 : index
    %c0_83 = arith.constant 0 : index
    %248 = vector.load %arg7[%c0_81, %c2_82, %c0_83] : memref<4x10x8xf32, #tpu.memory_space<vmem>>, vector<1x8x8xf32>
    %249 = vector.shape_cast %248 : vector<1x8x8xf32> to vector<8x8xf32>
    %c1_84 = arith.constant 1 : index
    %c0_85 = arith.constant 0 : index
    %c0_86 = arith.constant 0 : index
    %250 = vector.load %arg7[%c1_84, %c0_85, %c0_86] : memref<4x10x8xf32, #tpu.memory_space<vmem>>, vector<1x8x8xf32>
    %251 = vector.shape_cast %250 : vector<1x8x8xf32> to vector<8x8xf32>
    %c1_87 = arith.constant 1 : index
    %c1_88 = arith.constant 1 : index
    %c0_89 = arith.constant 0 : index
    %252 = vector.load %arg7[%c1_87, %c1_88, %c0_89] : memref<4x10x8xf32, #tpu.memory_space<vmem>>, vector<1x8x8xf32>
    %253 = vector.shape_cast %252 : vector<1x8x8xf32> to vector<8x8xf32>
    %c1_90 = arith.constant 1 : index
    %c2_91 = arith.constant 2 : index
    %c0_92 = arith.constant 0 : index
    %254 = vector.load %arg7[%c1_90, %c2_91, %c0_92] : memref<4x10x8xf32, #tpu.memory_space<vmem>>, vector<1x8x8xf32>
    %255 = vector.shape_cast %254 : vector<1x8x8xf32> to vector<8x8xf32>
    %c2_93 = arith.constant 2 : index
    %c0_94 = arith.constant 0 : index
    %c0_95 = arith.constant 0 : index
    %256 = vector.load %arg7[%c2_93, %c0_94, %c0_95] : memref<4x10x8xf32, #tpu.memory_space<vmem>>, vector<1x8x8xf32>
    %257 = vector.shape_cast %256 : vector<1x8x8xf32> to vector<8x8xf32>
    %c2_96 = arith.constant 2 : index
    %c1_97 = arith.constant 1 : index
    %c0_98 = arith.constant 0 : index
    %258 = vector.load %arg7[%c2_96, %c1_97, %c0_98] : memref<4x10x8xf32, #tpu.memory_space<vmem>>, vector<1x8x8xf32>
    %259 = vector.shape_cast %258 : vector<1x8x8xf32> to vector<8x8xf32>
    %c2_99 = arith.constant 2 : index
    %c2_100 = arith.constant 2 : index
    %c0_101 = arith.constant 0 : index
    %260 = vector.load %arg7[%c2_99, %c2_100, %c0_101] : memref<4x10x8xf32, #tpu.memory_space<vmem>>, vector<1x8x8xf32>
    %261 = vector.shape_cast %260 : vector<1x8x8xf32> to vector<8x8xf32>
    %c3_102 = arith.constant 3 : index
    %c0_103 = arith.constant 0 : index
    %c0_104 = arith.constant 0 : index
    %262 = vector.load %arg7[%c3_102, %c0_103, %c0_104] : memref<4x10x8xf32, #tpu.memory_space<vmem>>, vector<1x8x8xf32>
    %263 = vector.shape_cast %262 : vector<1x8x8xf32> to vector<8x8xf32>
    %c3_105 = arith.constant 3 : index
    %c1_106 = arith.constant 1 : index
    %c0_107 = arith.constant 0 : index
    %264 = vector.load %arg7[%c3_105, %c1_106, %c0_107] : memref<4x10x8xf32, #tpu.memory_space<vmem>>, vector<1x8x8xf32>
    %265 = vector.shape_cast %264 : vector<1x8x8xf32> to vector<8x8xf32>
    %c3_108 = arith.constant 3 : index
    %c2_109 = arith.constant 2 : index
    %c0_110 = arith.constant 0 : index
    %266 = vector.load %arg7[%c3_108, %c2_109, %c0_110] : memref<4x10x8xf32, #tpu.memory_space<vmem>>, vector<1x8x8xf32>
    %267 = vector.shape_cast %266 : vector<1x8x8xf32> to vector<8x8xf32>
    %c52 = arith.constant 52 : index
    %268 = memref.load %arg1[%c52] : memref<658xf32, #tpu.memory_space<smem>>
    %269 = vector.broadcast %268 : f32 to vector<8x8xf32>
    %270 = arith.mulf %269, %245 : vector<8x8xf32>
    %c53 = arith.constant 53 : index
    %271 = memref.load %arg1[%c53] : memref<658xf32, #tpu.memory_space<smem>>
    %272 = vector.broadcast %271 : f32 to vector<8x8xf32>
    %273 = arith.mulf %272, %247 : vector<8x8xf32>
    %274 = arith.addf %270, %273 : vector<8x8xf32>
    %c54 = arith.constant 54 : index
    %275 = memref.load %arg1[%c54] : memref<658xf32, #tpu.memory_space<smem>>
    %276 = vector.broadcast %275 : f32 to vector<8x8xf32>
    %277 = arith.mulf %276, %249 : vector<8x8xf32>
    %278 = arith.addf %274, %277 : vector<8x8xf32>
    %c55 = arith.constant 55 : index
    %279 = memref.load %arg1[%c55] : memref<658xf32, #tpu.memory_space<smem>>
    %280 = vector.broadcast %279 : f32 to vector<8x8xf32>
    %281 = arith.mulf %280, %251 : vector<8x8xf32>
    %282 = arith.addf %278, %281 : vector<8x8xf32>
    %c56 = arith.constant 56 : index
    %283 = memref.load %arg1[%c56] : memref<658xf32, #tpu.memory_space<smem>>
    %284 = vector.broadcast %283 : f32 to vector<8x8xf32>
    %285 = arith.mulf %284, %253 : vector<8x8xf32>
    %286 = arith.addf %282, %285 : vector<8x8xf32>
    %c57 = arith.constant 57 : index
    %287 = memref.load %arg1[%c57] : memref<658xf32, #tpu.memory_space<smem>>
    %288 = vector.broadcast %287 : f32 to vector<8x8xf32>
    %289 = arith.mulf %288, %255 : vector<8x8xf32>
    %290 = arith.addf %286, %289 : vector<8x8xf32>
    %c58 = arith.constant 58 : index
    %291 = memref.load %arg1[%c58] : memref<658xf32, #tpu.memory_space<smem>>
    %292 = vector.broadcast %291 : f32 to vector<8x8xf32>
    %293 = arith.mulf %292, %257 : vector<8x8xf32>
    %294 = arith.addf %290, %293 : vector<8x8xf32>
    %c59 = arith.constant 59 : index
    %295 = memref.load %arg1[%c59] : memref<658xf32, #tpu.memory_space<smem>>
    %296 = vector.broadcast %295 : f32 to vector<8x8xf32>
    %297 = arith.mulf %296, %259 : vector<8x8xf32>
    %298 = arith.addf %294, %297 : vector<8x8xf32>
    %c60 = arith.constant 60 : index
    %299 = memref.load %arg1[%c60] : memref<658xf32, #tpu.memory_space<smem>>
    %300 = vector.broadcast %299 : f32 to vector<8x8xf32>
    %301 = arith.mulf %300, %261 : vector<8x8xf32>
    %302 = arith.addf %298, %301 : vector<8x8xf32>
    %c61 = arith.constant 61 : index
    %303 = memref.load %arg1[%c61] : memref<658xf32, #tpu.memory_space<smem>>
    %304 = vector.broadcast %303 : f32 to vector<8x8xf32>
    %305 = arith.mulf %304, %263 : vector<8x8xf32>
    %306 = arith.addf %302, %305 : vector<8x8xf32>
    %c62 = arith.constant 62 : index
    %307 = memref.load %arg1[%c62] : memref<658xf32, #tpu.memory_space<smem>>
    %308 = vector.broadcast %307 : f32 to vector<8x8xf32>
    %309 = arith.mulf %308, %265 : vector<8x8xf32>
    %310 = arith.addf %306, %309 : vector<8x8xf32>
    %c63 = arith.constant 63 : index
    %311 = memref.load %arg1[%c63] : memref<658xf32, #tpu.memory_space<smem>>
    %312 = vector.broadcast %311 : f32 to vector<8x8xf32>
    %313 = arith.mulf %312, %267 : vector<8x8xf32>
    %314 = arith.addf %310, %313 : vector<8x8xf32>
    %c100 = arith.constant 100 : index
    %315 = memref.load %arg1[%c100] : memref<658xf32, #tpu.memory_space<smem>>
    %316 = vector.broadcast %315 : f32 to vector<8x8xf32>
    %317 = arith.addf %314, %316 : vector<8x8xf32>
    %c64 = arith.constant 64 : index
    %318 = memref.load %arg1[%c64] : memref<658xf32, #tpu.memory_space<smem>>
    %319 = vector.broadcast %318 : f32 to vector<8x8xf32>
    %320 = arith.mulf %319, %245 : vector<8x8xf32>
    %c65 = arith.constant 65 : index
    %321 = memref.load %arg1[%c65] : memref<658xf32, #tpu.memory_space<smem>>
    %322 = vector.broadcast %321 : f32 to vector<8x8xf32>
    %323 = arith.mulf %322, %247 : vector<8x8xf32>
    %324 = arith.addf %320, %323 : vector<8x8xf32>
    %c66 = arith.constant 66 : index
    %325 = memref.load %arg1[%c66] : memref<658xf32, #tpu.memory_space<smem>>
    %326 = vector.broadcast %325 : f32 to vector<8x8xf32>
    %327 = arith.mulf %326, %249 : vector<8x8xf32>
    %328 = arith.addf %324, %327 : vector<8x8xf32>
    %c67 = arith.constant 67 : index
    %329 = memref.load %arg1[%c67] : memref<658xf32, #tpu.memory_space<smem>>
    %330 = vector.broadcast %329 : f32 to vector<8x8xf32>
    %331 = arith.mulf %330, %251 : vector<8x8xf32>
    %332 = arith.addf %328, %331 : vector<8x8xf32>
    %c68 = arith.constant 68 : index
    %333 = memref.load %arg1[%c68] : memref<658xf32, #tpu.memory_space<smem>>
    %334 = vector.broadcast %333 : f32 to vector<8x8xf32>
    %335 = arith.mulf %334, %253 : vector<8x8xf32>
    %336 = arith.addf %332, %335 : vector<8x8xf32>
    %c69 = arith.constant 69 : index
    %337 = memref.load %arg1[%c69] : memref<658xf32, #tpu.memory_space<smem>>
    %338 = vector.broadcast %337 : f32 to vector<8x8xf32>
    %339 = arith.mulf %338, %255 : vector<8x8xf32>
    %340 = arith.addf %336, %339 : vector<8x8xf32>
    %c70 = arith.constant 70 : index
    %341 = memref.load %arg1[%c70] : memref<658xf32, #tpu.memory_space<smem>>
    %342 = vector.broadcast %341 : f32 to vector<8x8xf32>
    %343 = arith.mulf %342, %257 : vector<8x8xf32>
    %344 = arith.addf %340, %343 : vector<8x8xf32>
    %c71 = arith.constant 71 : index
    %345 = memref.load %arg1[%c71] : memref<658xf32, #tpu.memory_space<smem>>
    %346 = vector.broadcast %345 : f32 to vector<8x8xf32>
    %347 = arith.mulf %346, %259 : vector<8x8xf32>
    %348 = arith.addf %344, %347 : vector<8x8xf32>
    %c72 = arith.constant 72 : index
    %349 = memref.load %arg1[%c72] : memref<658xf32, #tpu.memory_space<smem>>
    %350 = vector.broadcast %349 : f32 to vector<8x8xf32>
    %351 = arith.mulf %350, %261 : vector<8x8xf32>
    %352 = arith.addf %348, %351 : vector<8x8xf32>
    %c73 = arith.constant 73 : index
    %353 = memref.load %arg1[%c73] : memref<658xf32, #tpu.memory_space<smem>>
    %354 = vector.broadcast %353 : f32 to vector<8x8xf32>
    %355 = arith.mulf %354, %263 : vector<8x8xf32>
    %356 = arith.addf %352, %355 : vector<8x8xf32>
    %c74 = arith.constant 74 : index
    %357 = memref.load %arg1[%c74] : memref<658xf32, #tpu.memory_space<smem>>
    %358 = vector.broadcast %357 : f32 to vector<8x8xf32>
    %359 = arith.mulf %358, %265 : vector<8x8xf32>
    %360 = arith.addf %356, %359 : vector<8x8xf32>
    %c75 = arith.constant 75 : index
    %361 = memref.load %arg1[%c75] : memref<658xf32, #tpu.memory_space<smem>>
    %362 = vector.broadcast %361 : f32 to vector<8x8xf32>
    %363 = arith.mulf %362, %267 : vector<8x8xf32>
    %364 = arith.addf %360, %363 : vector<8x8xf32>
    %c101 = arith.constant 101 : index
    %365 = memref.load %arg1[%c101] : memref<658xf32, #tpu.memory_space<smem>>
    %366 = vector.broadcast %365 : f32 to vector<8x8xf32>
    %367 = arith.addf %364, %366 : vector<8x8xf32>
    %c76 = arith.constant 76 : index
    %368 = memref.load %arg1[%c76] : memref<658xf32, #tpu.memory_space<smem>>
    %369 = vector.broadcast %368 : f32 to vector<8x8xf32>
    %370 = arith.mulf %369, %245 : vector<8x8xf32>
    %c77 = arith.constant 77 : index
    %371 = memref.load %arg1[%c77] : memref<658xf32, #tpu.memory_space<smem>>
    %372 = vector.broadcast %371 : f32 to vector<8x8xf32>
    %373 = arith.mulf %372, %247 : vector<8x8xf32>
    %374 = arith.addf %370, %373 : vector<8x8xf32>
    %c78 = arith.constant 78 : index
    %375 = memref.load %arg1[%c78] : memref<658xf32, #tpu.memory_space<smem>>
    %376 = vector.broadcast %375 : f32 to vector<8x8xf32>
    %377 = arith.mulf %376, %249 : vector<8x8xf32>
    %378 = arith.addf %374, %377 : vector<8x8xf32>
    %c79 = arith.constant 79 : index
    %379 = memref.load %arg1[%c79] : memref<658xf32, #tpu.memory_space<smem>>
    %380 = vector.broadcast %379 : f32 to vector<8x8xf32>
    %381 = arith.mulf %380, %251 : vector<8x8xf32>
    %382 = arith.addf %378, %381 : vector<8x8xf32>
    %c80 = arith.constant 80 : index
    %383 = memref.load %arg1[%c80] : memref<658xf32, #tpu.memory_space<smem>>
    %384 = vector.broadcast %383 : f32 to vector<8x8xf32>
    %385 = arith.mulf %384, %253 : vector<8x8xf32>
    %386 = arith.addf %382, %385 : vector<8x8xf32>
    %c81 = arith.constant 81 : index
    %387 = memref.load %arg1[%c81] : memref<658xf32, #tpu.memory_space<smem>>
    %388 = vector.broadcast %387 : f32 to vector<8x8xf32>
    %389 = arith.mulf %388, %255 : vector<8x8xf32>
    %390 = arith.addf %386, %389 : vector<8x8xf32>
    %c82 = arith.constant 82 : index
    %391 = memref.load %arg1[%c82] : memref<658xf32, #tpu.memory_space<smem>>
    %392 = vector.broadcast %391 : f32 to vector<8x8xf32>
    %393 = arith.mulf %392, %257 : vector<8x8xf32>
    %394 = arith.addf %390, %393 : vector<8x8xf32>
    %c83 = arith.constant 83 : index
    %395 = memref.load %arg1[%c83] : memref<658xf32, #tpu.memory_space<smem>>
    %396 = vector.broadcast %395 : f32 to vector<8x8xf32>
    %397 = arith.mulf %396, %259 : vector<8x8xf32>
    %398 = arith.addf %394, %397 : vector<8x8xf32>
    %c84 = arith.constant 84 : index
    %399 = memref.load %arg1[%c84] : memref<658xf32, #tpu.memory_space<smem>>
    %400 = vector.broadcast %399 : f32 to vector<8x8xf32>
    %401 = arith.mulf %400, %261 : vector<8x8xf32>
    %402 = arith.addf %398, %401 : vector<8x8xf32>
    %c85 = arith.constant 85 : index
    %403 = memref.load %arg1[%c85] : memref<658xf32, #tpu.memory_space<smem>>
    %404 = vector.broadcast %403 : f32 to vector<8x8xf32>
    %405 = arith.mulf %404, %263 : vector<8x8xf32>
    %406 = arith.addf %402, %405 : vector<8x8xf32>
    %c86 = arith.constant 86 : index
    %407 = memref.load %arg1[%c86] : memref<658xf32, #tpu.memory_space<smem>>
    %408 = vector.broadcast %407 : f32 to vector<8x8xf32>
    %409 = arith.mulf %408, %265 : vector<8x8xf32>
    %410 = arith.addf %406, %409 : vector<8x8xf32>
    %c87 = arith.constant 87 : index
    %411 = memref.load %arg1[%c87] : memref<658xf32, #tpu.memory_space<smem>>
    %412 = vector.broadcast %411 : f32 to vector<8x8xf32>
    %413 = arith.mulf %412, %267 : vector<8x8xf32>
    %414 = arith.addf %410, %413 : vector<8x8xf32>
    %c102 = arith.constant 102 : index
    %415 = memref.load %arg1[%c102] : memref<658xf32, #tpu.memory_space<smem>>
    %416 = vector.broadcast %415 : f32 to vector<8x8xf32>
    %417 = arith.addf %414, %416 : vector<8x8xf32>
    %c88 = arith.constant 88 : index
    %418 = memref.load %arg1[%c88] : memref<658xf32, #tpu.memory_space<smem>>
    %419 = vector.broadcast %418 : f32 to vector<8x8xf32>
    %420 = arith.mulf %419, %245 : vector<8x8xf32>
    %c89 = arith.constant 89 : index
    %421 = memref.load %arg1[%c89] : memref<658xf32, #tpu.memory_space<smem>>
    %422 = vector.broadcast %421 : f32 to vector<8x8xf32>
    %423 = arith.mulf %422, %247 : vector<8x8xf32>
    %424 = arith.addf %420, %423 : vector<8x8xf32>
    %c90 = arith.constant 90 : index
    %425 = memref.load %arg1[%c90] : memref<658xf32, #tpu.memory_space<smem>>
    %426 = vector.broadcast %425 : f32 to vector<8x8xf32>
    %427 = arith.mulf %426, %249 : vector<8x8xf32>
    %428 = arith.addf %424, %427 : vector<8x8xf32>
    %c91 = arith.constant 91 : index
    %429 = memref.load %arg1[%c91] : memref<658xf32, #tpu.memory_space<smem>>
    %430 = vector.broadcast %429 : f32 to vector<8x8xf32>
    %431 = arith.mulf %430, %251 : vector<8x8xf32>
    %432 = arith.addf %428, %431 : vector<8x8xf32>
    %c92 = arith.constant 92 : index
    %433 = memref.load %arg1[%c92] : memref<658xf32, #tpu.memory_space<smem>>
    %434 = vector.broadcast %433 : f32 to vector<8x8xf32>
    %435 = arith.mulf %434, %253 : vector<8x8xf32>
    %436 = arith.addf %432, %435 : vector<8x8xf32>
    %c93 = arith.constant 93 : index
    %437 = memref.load %arg1[%c93] : memref<658xf32, #tpu.memory_space<smem>>
    %438 = vector.broadcast %437 : f32 to vector<8x8xf32>
    %439 = arith.mulf %438, %255 : vector<8x8xf32>
    %440 = arith.addf %436, %439 : vector<8x8xf32>
    %c94 = arith.constant 94 : index
    %441 = memref.load %arg1[%c94] : memref<658xf32, #tpu.memory_space<smem>>
    %442 = vector.broadcast %441 : f32 to vector<8x8xf32>
    %443 = arith.mulf %442, %257 : vector<8x8xf32>
    %444 = arith.addf %440, %443 : vector<8x8xf32>
    %c95 = arith.constant 95 : index
    %445 = memref.load %arg1[%c95] : memref<658xf32, #tpu.memory_space<smem>>
    %446 = vector.broadcast %445 : f32 to vector<8x8xf32>
    %447 = arith.mulf %446, %259 : vector<8x8xf32>
    %448 = arith.addf %444, %447 : vector<8x8xf32>
    %c96 = arith.constant 96 : index
    %449 = memref.load %arg1[%c96] : memref<658xf32, #tpu.memory_space<smem>>
    %450 = vector.broadcast %449 : f32 to vector<8x8xf32>
    %451 = arith.mulf %450, %261 : vector<8x8xf32>
    %452 = arith.addf %448, %451 : vector<8x8xf32>
    %c97 = arith.constant 97 : index
    %453 = memref.load %arg1[%c97] : memref<658xf32, #tpu.memory_space<smem>>
    %454 = vector.broadcast %453 : f32 to vector<8x8xf32>
    %455 = arith.mulf %454, %263 : vector<8x8xf32>
    %456 = arith.addf %452, %455 : vector<8x8xf32>
    %c98 = arith.constant 98 : index
    %457 = memref.load %arg1[%c98] : memref<658xf32, #tpu.memory_space<smem>>
    %458 = vector.broadcast %457 : f32 to vector<8x8xf32>
    %459 = arith.mulf %458, %265 : vector<8x8xf32>
    %460 = arith.addf %456, %459 : vector<8x8xf32>
    %c99 = arith.constant 99 : index
    %461 = memref.load %arg1[%c99] : memref<658xf32, #tpu.memory_space<smem>>
    %462 = vector.broadcast %461 : f32 to vector<8x8xf32>
    %463 = arith.mulf %462, %267 : vector<8x8xf32>
    %464 = arith.addf %460, %463 : vector<8x8xf32>
    %c103 = arith.constant 103 : index
    %465 = memref.load %arg1[%c103] : memref<658xf32, #tpu.memory_space<smem>>
    %466 = vector.broadcast %465 : f32 to vector<8x8xf32>
    %467 = arith.addf %464, %466 : vector<8x8xf32>
    %c4_111 = arith.constant 4 : index
    %c1_112 = arith.constant 1 : index
    %c1_113 = arith.constant 1 : index
    %468 = vector.load %arg9[%c4_111, %c1_112, %c1_113] : memref<8x10x10xf32, #tpu.memory_space<vmem>>, vector<1x8x8xf32>
    %469 = vector.shape_cast %468 : vector<1x8x8xf32> to vector<8x8xf32>
    %470 = vector.shape_cast %317 : vector<8x8xf32> to vector<1x8x8xf32>
    tpu.vector_store %arg9[%c4_111, %c1_112, %c1_113], %470 {strides = array<i32>} : memref<8x10x10xf32, #tpu.memory_space<vmem>>, vector<1x8x8xf32>,
    %c5_114 = arith.constant 5 : index
    %c1_115 = arith.constant 1 : index
    %c1_116 = arith.constant 1 : index
    %471 = vector.load %arg9[%c5_114, %c1_115, %c1_116] : memref<8x10x10xf32, #tpu.memory_space<vmem>>, vector<1x8x8xf32>
    %472 = vector.shape_cast %471 : vector<1x8x8xf32> to vector<8x8xf32>
    %473 = vector.shape_cast %367 : vector<8x8xf32> to vector<1x8x8xf32>
    tpu.vector_store %arg9[%c5_114, %c1_115, %c1_116], %473 {strides = array<i32>} : memref<8x10x10xf32, #tpu.memory_space<vmem>>, vector<1x8x8xf32>,
    %c6_117 = arith.constant 6 : index
    %c1_118 = arith.constant 1 : index
    %c1_119 = arith.constant 1 : index
    %474 = vector.load %arg9[%c6_117, %c1_118, %c1_119] : memref<8x10x10xf32, #tpu.memory_space<vmem>>, vector<1x8x8xf32>
    %475 = vector.shape_cast %474 : vector<1x8x8xf32> to vector<8x8xf32>
    %476 = vector.shape_cast %417 : vector<8x8xf32> to vector<1x8x8xf32>
    tpu.vector_store %arg9[%c6_117, %c1_118, %c1_119], %476 {strides = array<i32>} : memref<8x10x10xf32, #tpu.memory_space<vmem>>, vector<1x8x8xf32>,
    %c7_120 = arith.constant 7 : index
    %c1_121 = arith.constant 1 : index
    %c1_122 = arith.constant 1 : index
    %477 = vector.load %arg9[%c7_120, %c1_121, %c1_122] : memref<8x10x10xf32, #tpu.memory_space<vmem>>, vector<1x8x8xf32>
    %478 = vector.shape_cast %477 : vector<1x8x8xf32> to vector<8x8xf32>
    %479 = vector.shape_cast %467 : vector<8x8xf32> to vector<1x8x8xf32>
    tpu.vector_store %arg9[%c7_120, %c1_121, %c1_122], %479 {strides = array<i32>} : memref<8x10x10xf32, #tpu.memory_space<vmem>>, vector<1x8x8xf32>,
    %c0_123 = arith.constant 0 : index
    %c0_124 = arith.constant 0 : index
    %c0_125 = arith.constant 0 : index
    %c0_126 = arith.constant 0 : index
    %480 = vector.load %arg4[%c0_123, %c0_124, %c0_125, %c0_126] : memref<1x4x9x8xf32, #tpu.memory_space<vmem>>, vector<1x1x8x8xf32>
    %481 = vector.shape_cast %480 : vector<1x1x8x8xf32> to vector<8x8xf32>
    %c0_127 = arith.constant 0 : index
    %c0_128 = arith.constant 0 : index
    %c0_129 = arith.constant 0 : index
    %c0_130 = arith.constant 0 : index
    %482 = vector.load %arg2[%c0_127, %c0_128, %c0_129, %c0_130] : memref<1x4x8x8xf32, #tpu.memory_space<vmem>>, vector<1x1x8x8xf32>
    %483 = vector.shape_cast %482 : vector<1x1x8x8xf32> to vector<8x8xf32>
    %c0_131 = arith.constant 0 : index
    %c0_132 = arith.constant 0 : index
    %c1_133 = arith.constant 1 : index
    %c0_134 = arith.constant 0 : index
    %484 = vector.load %arg4[%c0_131, %c0_132, %c1_133, %c0_134] : memref<1x4x9x8xf32, #tpu.memory_space<vmem>>, vector<1x1x8x8xf32>
    %485 = vector.shape_cast %484 : vector<1x1x8x8xf32> to vector<8x8xf32>
    %c0_135 = arith.constant 0 : index
    %c1_136 = arith.constant 1 : index
    %c0_137 = arith.constant 0 : index
    %c0_138 = arith.constant 0 : index
    %486 = vector.load %arg4[%c0_135, %c1_136, %c0_137, %c0_138] : memref<1x4x9x8xf32, #tpu.memory_space<vmem>>, vector<1x1x8x8xf32>
    %487 = vector.shape_cast %486 : vector<1x1x8x8xf32> to vector<8x8xf32>
    %c0_139 = arith.constant 0 : index
    %c1_140 = arith.constant 1 : index
    %c0_141 = arith.constant 0 : index
    %c0_142 = arith.constant 0 : index
    %488 = vector.load %arg2[%c0_139, %c1_140, %c0_141, %c0_142] : memref<1x4x8x8xf32, #tpu.memory_space<vmem>>, vector<1x1x8x8xf32>
    %489 = vector.shape_cast %488 : vector<1x1x8x8xf32> to vector<8x8xf32>
    %c0_143 = arith.constant 0 : index
    %c1_144 = arith.constant 1 : index
    %c1_145 = arith.constant 1 : index
    %c0_146 = arith.constant 0 : index
    %490 = vector.load %arg4[%c0_143, %c1_144, %c1_145, %c0_146] : memref<1x4x9x8xf32, #tpu.memory_space<vmem>>, vector<1x1x8x8xf32>
    %491 = vector.shape_cast %490 : vector<1x1x8x8xf32> to vector<8x8xf32>
    %c0_147 = arith.constant 0 : index
    %c2_148 = arith.constant 2 : index
    %c0_149 = arith.constant 0 : index
    %c0_150 = arith.constant 0 : index
    %492 = vector.load %arg4[%c0_147, %c2_148, %c0_149, %c0_150] : memref<1x4x9x8xf32, #tpu.memory_space<vmem>>, vector<1x1x8x8xf32>
    %493 = vector.shape_cast %492 : vector<1x1x8x8xf32> to vector<8x8xf32>
    %c0_151 = arith.constant 0 : index
    %c2_152 = arith.constant 2 : index
    %c0_153 = arith.constant 0 : index
    %c0_154 = arith.constant 0 : index
    %494 = vector.load %arg2[%c0_151, %c2_152, %c0_153, %c0_154] : memref<1x4x8x8xf32, #tpu.memory_space<vmem>>, vector<1x1x8x8xf32>
    %495 = vector.shape_cast %494 : vector<1x1x8x8xf32> to vector<8x8xf32>
    %c0_155 = arith.constant 0 : index
    %c2_156 = arith.constant 2 : index
    %c1_157 = arith.constant 1 : index
    %c0_158 = arith.constant 0 : index
    %496 = vector.load %arg4[%c0_155, %c2_156, %c1_157, %c0_158] : memref<1x4x9x8xf32, #tpu.memory_space<vmem>>, vector<1x1x8x8xf32>
    %497 = vector.shape_cast %496 : vector<1x1x8x8xf32> to vector<8x8xf32>
    %c0_159 = arith.constant 0 : index
    %c3_160 = arith.constant 3 : index
    %c0_161 = arith.constant 0 : index
    %c0_162 = arith.constant 0 : index
    %498 = vector.load %arg4[%c0_159, %c3_160, %c0_161, %c0_162] : memref<1x4x9x8xf32, #tpu.memory_space<vmem>>, vector<1x1x8x8xf32>
    %499 = vector.shape_cast %498 : vector<1x1x8x8xf32> to vector<8x8xf32>
    %c0_163 = arith.constant 0 : index
    %c3_164 = arith.constant 3 : index
    %c0_165 = arith.constant 0 : index
    %c0_166 = arith.constant 0 : index
    %500 = vector.load %arg2[%c0_163, %c3_164, %c0_165, %c0_166] : memref<1x4x8x8xf32, #tpu.memory_space<vmem>>, vector<1x1x8x8xf32>
    %501 = vector.shape_cast %500 : vector<1x1x8x8xf32> to vector<8x8xf32>
    %c0_167 = arith.constant 0 : index
    %c3_168 = arith.constant 3 : index
    %c1_169 = arith.constant 1 : index
    %c0_170 = arith.constant 0 : index
    %502 = vector.load %arg4[%c0_167, %c3_168, %c1_169, %c0_170] : memref<1x4x9x8xf32, #tpu.memory_space<vmem>>, vector<1x1x8x8xf32>
    %503 = vector.shape_cast %502 : vector<1x1x8x8xf32> to vector<8x8xf32>
    %c104 = arith.constant 104 : index
    %504 = memref.load %arg1[%c104] : memref<658xf32, #tpu.memory_space<smem>>
    %505 = vector.broadcast %504 : f32 to vector<8x8xf32>
    %506 = arith.mulf %505, %481 : vector<8x8xf32>
    %c105 = arith.constant 105 : index
    %507 = memref.load %arg1[%c105] : memref<658xf32, #tpu.memory_space<smem>>
    %508 = vector.broadcast %507 : f32 to vector<8x8xf32>
    %509 = arith.mulf %508, %483 : vector<8x8xf32>
    %510 = arith.addf %506, %509 : vector<8x8xf32>
    %c106 = arith.constant 106 : index
    %511 = memref.load %arg1[%c106] : memref<658xf32, #tpu.memory_space<smem>>
    %512 = vector.broadcast %511 : f32 to vector<8x8xf32>
    %513 = arith.mulf %512, %485 : vector<8x8xf32>
    %514 = arith.addf %510, %513 : vector<8x8xf32>
    %c107 = arith.constant 107 : index
    %515 = memref.load %arg1[%c107] : memref<658xf32, #tpu.memory_space<smem>>
    %516 = vector.broadcast %515 : f32 to vector<8x8xf32>
    %517 = arith.mulf %516, %487 : vector<8x8xf32>
    %518 = arith.addf %514, %517 : vector<8x8xf32>
    %c108 = arith.constant 108 : index
    %519 = memref.load %arg1[%c108] : memref<658xf32, #tpu.memory_space<smem>>
    %520 = vector.broadcast %519 : f32 to vector<8x8xf32>
    %521 = arith.mulf %520, %489 : vector<8x8xf32>
    %522 = arith.addf %518, %521 : vector<8x8xf32>
    %c109 = arith.constant 109 : index
    %523 = memref.load %arg1[%c109] : memref<658xf32, #tpu.memory_space<smem>>
    %524 = vector.broadcast %523 : f32 to vector<8x8xf32>
    %525 = arith.mulf %524, %491 : vector<8x8xf32>
    %526 = arith.addf %522, %525 : vector<8x8xf32>
    %c110 = arith.constant 110 : index
    %527 = memref.load %arg1[%c110] : memref<658xf32, #tpu.memory_space<smem>>
    %528 = vector.broadcast %527 : f32 to vector<8x8xf32>
    %529 = arith.mulf %528, %493 : vector<8x8xf32>
    %530 = arith.addf %526, %529 : vector<8x8xf32>
    %c111 = arith.constant 111 : index
    %531 = memref.load %arg1[%c111] : memref<658xf32, #tpu.memory_space<smem>>
    %532 = vector.broadcast %531 : f32 to vector<8x8xf32>
    %533 = arith.mulf %532, %495 : vector<8x8xf32>
    %534 = arith.addf %530, %533 : vector<8x8xf32>
    %c112 = arith.constant 112 : index
    %535 = memref.load %arg1[%c112] : memref<658xf32, #tpu.memory_space<smem>>
    %536 = vector.broadcast %535 : f32 to vector<8x8xf32>
    %537 = arith.mulf %536, %497 : vector<8x8xf32>
    %538 = arith.addf %534, %537 : vector<8x8xf32>
    %c113 = arith.constant 113 : index
    %539 = memref.load %arg1[%c113] : memref<658xf32, #tpu.memory_space<smem>>
    %540 = vector.broadcast %539 : f32 to vector<8x8xf32>
    %541 = arith.mulf %540, %499 : vector<8x8xf32>
    %542 = arith.addf %538, %541 : vector<8x8xf32>
    %c114 = arith.constant 114 : index
    %543 = memref.load %arg1[%c114] : memref<658xf32, #tpu.memory_space<smem>>
    %544 = vector.broadcast %543 : f32 to vector<8x8xf32>
    %545 = arith.mulf %544, %501 : vector<8x8xf32>
    %546 = arith.addf %542, %545 : vector<8x8xf32>
    %c115 = arith.constant 115 : index
    %547 = memref.load %arg1[%c115] : memref<658xf32, #tpu.memory_space<smem>>
    %548 = vector.broadcast %547 : f32 to vector<8x8xf32>
    %549 = arith.mulf %548, %503 : vector<8x8xf32>
    %550 = arith.addf %546, %549 : vector<8x8xf32>
    %c152 = arith.constant 152 : index
    %551 = memref.load %arg1[%c152] : memref<658xf32, #tpu.memory_space<smem>>
    %552 = vector.broadcast %551 : f32 to vector<8x8xf32>
    %553 = arith.addf %550, %552 : vector<8x8xf32>
    %c116 = arith.constant 116 : index
    %554 = memref.load %arg1[%c116] : memref<658xf32, #tpu.memory_space<smem>>
    %555 = vector.broadcast %554 : f32 to vector<8x8xf32>
    %556 = arith.mulf %555, %481 : vector<8x8xf32>
    %c117 = arith.constant 117 : index
    %557 = memref.load %arg1[%c117] : memref<658xf32, #tpu.memory_space<smem>>
    %558 = vector.broadcast %557 : f32 to vector<8x8xf32>
    %559 = arith.mulf %558, %483 : vector<8x8xf32>
    %560 = arith.addf %556, %559 : vector<8x8xf32>
    %c118 = arith.constant 118 : index
    %561 = memref.load %arg1[%c118] : memref<658xf32, #tpu.memory_space<smem>>
    %562 = vector.broadcast %561 : f32 to vector<8x8xf32>
    %563 = arith.mulf %562, %485 : vector<8x8xf32>
    %564 = arith.addf %560, %563 : vector<8x8xf32>
    %c119 = arith.constant 119 : index
    %565 = memref.load %arg1[%c119] : memref<658xf32, #tpu.memory_space<smem>>
    %566 = vector.broadcast %565 : f32 to vector<8x8xf32>
    %567 = arith.mulf %566, %487 : vector<8x8xf32>
    %568 = arith.addf %564, %567 : vector<8x8xf32>
    %c120 = arith.constant 120 : index
    %569 = memref.load %arg1[%c120] : memref<658xf32, #tpu.memory_space<smem>>
    %570 = vector.broadcast %569 : f32 to vector<8x8xf32>
    %571 = arith.mulf %570, %489 : vector<8x8xf32>
    %572 = arith.addf %568, %571 : vector<8x8xf32>
    %c121 = arith.constant 121 : index
    %573 = memref.load %arg1[%c121] : memref<658xf32, #tpu.memory_space<smem>>
    %574 = vector.broadcast %573 : f32 to vector<8x8xf32>
    %575 = arith.mulf %574, %491 : vector<8x8xf32>
    %576 = arith.addf %572, %575 : vector<8x8xf32>
    %c122 = arith.constant 122 : index
    %577 = memref.load %arg1[%c122] : memref<658xf32, #tpu.memory_space<smem>>
    %578 = vector.broadcast %577 : f32 to vector<8x8xf32>
    %579 = arith.mulf %578, %493 : vector<8x8xf32>
    %580 = arith.addf %576, %579 : vector<8x8xf32>
    %c123 = arith.constant 123 : index
    %581 = memref.load %arg1[%c123] : memref<658xf32, #tpu.memory_space<smem>>
    %582 = vector.broadcast %581 : f32 to vector<8x8xf32>
    %583 = arith.mulf %582, %495 : vector<8x8xf32>
    %584 = arith.addf %580, %583 : vector<8x8xf32>
    %c124 = arith.constant 124 : index
    %585 = memref.load %arg1[%c124] : memref<658xf32, #tpu.memory_space<smem>>
    %586 = vector.broadcast %585 : f32 to vector<8x8xf32>
    %587 = arith.mulf %586, %497 : vector<8x8xf32>
    %588 = arith.addf %584, %587 : vector<8x8xf32>
    %c125 = arith.constant 125 : index
    %589 = memref.load %arg1[%c125] : memref<658xf32, #tpu.memory_space<smem>>
    %590 = vector.broadcast %589 : f32 to vector<8x8xf32>
    %591 = arith.mulf %590, %499 : vector<8x8xf32>
    %592 = arith.addf %588, %591 : vector<8x8xf32>
    %c126 = arith.constant 126 : index
    %593 = memref.load %arg1[%c126] : memref<658xf32, #tpu.memory_space<smem>>
    %594 = vector.broadcast %593 : f32 to vector<8x8xf32>
    %595 = arith.mulf %594, %501 : vector<8x8xf32>
    %596 = arith.addf %592, %595 : vector<8x8xf32>
    %c127 = arith.constant 127 : index
    %597 = memref.load %arg1[%c127] : memref<658xf32, #tpu.memory_space<smem>>
    %598 = vector.broadcast %597 : f32 to vector<8x8xf32>
    %599 = arith.mulf %598, %503 : vector<8x8xf32>
    %600 = arith.addf %596, %599 : vector<8x8xf32>
    %c153 = arith.constant 153 : index
    %601 = memref.load %arg1[%c153] : memref<658xf32, #tpu.memory_space<smem>>
    %602 = vector.broadcast %601 : f32 to vector<8x8xf32>
    %603 = arith.addf %600, %602 : vector<8x8xf32>
    %c128 = arith.constant 128 : index
    %604 = memref.load %arg1[%c128] : memref<658xf32, #tpu.memory_space<smem>>
    %605 = vector.broadcast %604 : f32 to vector<8x8xf32>
    %606 = arith.mulf %605, %481 : vector<8x8xf32>
    %c129 = arith.constant 129 : index
    %607 = memref.load %arg1[%c129] : memref<658xf32, #tpu.memory_space<smem>>
    %608 = vector.broadcast %607 : f32 to vector<8x8xf32>
    %609 = arith.mulf %608, %483 : vector<8x8xf32>
    %610 = arith.addf %606, %609 : vector<8x8xf32>
    %c130 = arith.constant 130 : index
    %611 = memref.load %arg1[%c130] : memref<658xf32, #tpu.memory_space<smem>>
    %612 = vector.broadcast %611 : f32 to vector<8x8xf32>
    %613 = arith.mulf %612, %485 : vector<8x8xf32>
    %614 = arith.addf %610, %613 : vector<8x8xf32>
    %c131 = arith.constant 131 : index
    %615 = memref.load %arg1[%c131] : memref<658xf32, #tpu.memory_space<smem>>
    %616 = vector.broadcast %615 : f32 to vector<8x8xf32>
    %617 = arith.mulf %616, %487 : vector<8x8xf32>
    %618 = arith.addf %614, %617 : vector<8x8xf32>
    %c132 = arith.constant 132 : index
    %619 = memref.load %arg1[%c132] : memref<658xf32, #tpu.memory_space<smem>>
    %620 = vector.broadcast %619 : f32 to vector<8x8xf32>
    %621 = arith.mulf %620, %489 : vector<8x8xf32>
    %622 = arith.addf %618, %621 : vector<8x8xf32>
    %c133 = arith.constant 133 : index
    %623 = memref.load %arg1[%c133] : memref<658xf32, #tpu.memory_space<smem>>
    %624 = vector.broadcast %623 : f32 to vector<8x8xf32>
    %625 = arith.mulf %624, %491 : vector<8x8xf32>
    %626 = arith.addf %622, %625 : vector<8x8xf32>
    %c134 = arith.constant 134 : index
    %627 = memref.load %arg1[%c134] : memref<658xf32, #tpu.memory_space<smem>>
    %628 = vector.broadcast %627 : f32 to vector<8x8xf32>
    %629 = arith.mulf %628, %493 : vector<8x8xf32>
    %630 = arith.addf %626, %629 : vector<8x8xf32>
    %c135 = arith.constant 135 : index
    %631 = memref.load %arg1[%c135] : memref<658xf32, #tpu.memory_space<smem>>
    %632 = vector.broadcast %631 : f32 to vector<8x8xf32>
    %633 = arith.mulf %632, %495 : vector<8x8xf32>
    %634 = arith.addf %630, %633 : vector<8x8xf32>
    %c136 = arith.constant 136 : index
    %635 = memref.load %arg1[%c136] : memref<658xf32, #tpu.memory_space<smem>>
    %636 = vector.broadcast %635 : f32 to vector<8x8xf32>
    %637 = arith.mulf %636, %497 : vector<8x8xf32>
    %638 = arith.addf %634, %637 : vector<8x8xf32>
    %c137 = arith.constant 137 : index
    %639 = memref.load %arg1[%c137] : memref<658xf32, #tpu.memory_space<smem>>
    %640 = vector.broadcast %639 : f32 to vector<8x8xf32>
    %641 = arith.mulf %640, %499 : vector<8x8xf32>
    %642 = arith.addf %638, %641 : vector<8x8xf32>
    %c138 = arith.constant 138 : index
    %643 = memref.load %arg1[%c138] : memref<658xf32, #tpu.memory_space<smem>>
    %644 = vector.broadcast %643 : f32 to vector<8x8xf32>
    %645 = arith.mulf %644, %501 : vector<8x8xf32>
    %646 = arith.addf %642, %645 : vector<8x8xf32>
    %c139 = arith.constant 139 : index
    %647 = memref.load %arg1[%c139] : memref<658xf32, #tpu.memory_space<smem>>
    %648 = vector.broadcast %647 : f32 to vector<8x8xf32>
    %649 = arith.mulf %648, %503 : vector<8x8xf32>
    %650 = arith.addf %646, %649 : vector<8x8xf32>
    %c154 = arith.constant 154 : index
    %651 = memref.load %arg1[%c154] : memref<658xf32, #tpu.memory_space<smem>>
    %652 = vector.broadcast %651 : f32 to vector<8x8xf32>
    %653 = arith.addf %650, %652 : vector<8x8xf32>
    %c140 = arith.constant 140 : index
    %654 = memref.load %arg1[%c140] : memref<658xf32, #tpu.memory_space<smem>>
    %655 = vector.broadcast %654 : f32 to vector<8x8xf32>
    %656 = arith.mulf %655, %481 : vector<8x8xf32>
    %c141 = arith.constant 141 : index
    %657 = memref.load %arg1[%c141] : memref<658xf32, #tpu.memory_space<smem>>
    %658 = vector.broadcast %657 : f32 to vector<8x8xf32>
    %659 = arith.mulf %658, %483 : vector<8x8xf32>
    %660 = arith.addf %656, %659 : vector<8x8xf32>
    %c142 = arith.constant 142 : index
    %661 = memref.load %arg1[%c142] : memref<658xf32, #tpu.memory_space<smem>>
    %662 = vector.broadcast %661 : f32 to vector<8x8xf32>
    %663 = arith.mulf %662, %485 : vector<8x8xf32>
    %664 = arith.addf %660, %663 : vector<8x8xf32>
    %c143 = arith.constant 143 : index
    %665 = memref.load %arg1[%c143] : memref<658xf32, #tpu.memory_space<smem>>
    %666 = vector.broadcast %665 : f32 to vector<8x8xf32>
    %667 = arith.mulf %666, %487 : vector<8x8xf32>
    %668 = arith.addf %664, %667 : vector<8x8xf32>
    %c144 = arith.constant 144 : index
    %669 = memref.load %arg1[%c144] : memref<658xf32, #tpu.memory_space<smem>>
    %670 = vector.broadcast %669 : f32 to vector<8x8xf32>
    %671 = arith.mulf %670, %489 : vector<8x8xf32>
    %672 = arith.addf %668, %671 : vector<8x8xf32>
    %c145 = arith.constant 145 : index
    %673 = memref.load %arg1[%c145] : memref<658xf32, #tpu.memory_space<smem>>
    %674 = vector.broadcast %673 : f32 to vector<8x8xf32>
    %675 = arith.mulf %674, %491 : vector<8x8xf32>
    %676 = arith.addf %672, %675 : vector<8x8xf32>
    %c146 = arith.constant 146 : index
    %677 = memref.load %arg1[%c146] : memref<658xf32, #tpu.memory_space<smem>>
    %678 = vector.broadcast %677 : f32 to vector<8x8xf32>
    %679 = arith.mulf %678, %493 : vector<8x8xf32>
    %680 = arith.addf %676, %679 : vector<8x8xf32>
    %c147 = arith.constant 147 : index
    %681 = memref.load %arg1[%c147] : memref<658xf32, #tpu.memory_space<smem>>
    %682 = vector.broadcast %681 : f32 to vector<8x8xf32>
    %683 = arith.mulf %682, %495 : vector<8x8xf32>
    %684 = arith.addf %680, %683 : vector<8x8xf32>
    %c148 = arith.constant 148 : index
    %685 = memref.load %arg1[%c148] : memref<658xf32, #tpu.memory_space<smem>>
    %686 = vector.broadcast %685 : f32 to vector<8x8xf32>
    %687 = arith.mulf %686, %497 : vector<8x8xf32>
    %688 = arith.addf %684, %687 : vector<8x8xf32>
    %c149 = arith.constant 149 : index
    %689 = memref.load %arg1[%c149] : memref<658xf32, #tpu.memory_space<smem>>
    %690 = vector.broadcast %689 : f32 to vector<8x8xf32>
    %691 = arith.mulf %690, %499 : vector<8x8xf32>
    %692 = arith.addf %688, %691 : vector<8x8xf32>
    %c150 = arith.constant 150 : index
    %693 = memref.load %arg1[%c150] : memref<658xf32, #tpu.memory_space<smem>>
    %694 = vector.broadcast %693 : f32 to vector<8x8xf32>
    %695 = arith.mulf %694, %501 : vector<8x8xf32>
    %696 = arith.addf %692, %695 : vector<8x8xf32>
    %c151 = arith.constant 151 : index
    %697 = memref.load %arg1[%c151] : memref<658xf32, #tpu.memory_space<smem>>
    %698 = vector.broadcast %697 : f32 to vector<8x8xf32>
    %699 = arith.mulf %698, %503 : vector<8x8xf32>
    %700 = arith.addf %696, %699 : vector<8x8xf32>
    %c155 = arith.constant 155 : index
    %701 = memref.load %arg1[%c155] : memref<658xf32, #tpu.memory_space<smem>>
    %702 = vector.broadcast %701 : f32 to vector<8x8xf32>
    %703 = arith.addf %700, %702 : vector<8x8xf32>
    %c0_171 = arith.constant 0 : index
    %c0_172 = arith.constant 0 : index
    %c1_173 = arith.constant 1 : index
    %704 = vector.load %arg8[%c0_171, %c0_172, %c1_173] : memref<4x8x10xf32, #tpu.memory_space<vmem>>, vector<1x8x8xf32>
    %705 = vector.shape_cast %704 : vector<1x8x8xf32> to vector<8x8xf32>
    %706 = vector.shape_cast %553 : vector<8x8xf32> to vector<1x8x8xf32>
    tpu.vector_store %arg8[%c0_171, %c0_172, %c1_173], %706 {strides = array<i32>} : memref<4x8x10xf32, #tpu.memory_space<vmem>>, vector<1x8x8xf32>,
    %c1_174 = arith.constant 1 : index
    %c0_175 = arith.constant 0 : index
    %c1_176 = arith.constant 1 : index
    %707 = vector.load %arg8[%c1_174, %c0_175, %c1_176] : memref<4x8x10xf32, #tpu.memory_space<vmem>>, vector<1x8x8xf32>
    %708 = vector.shape_cast %707 : vector<1x8x8xf32> to vector<8x8xf32>
    %709 = vector.shape_cast %603 : vector<8x8xf32> to vector<1x8x8xf32>
    tpu.vector_store %arg8[%c1_174, %c0_175, %c1_176], %709 {strides = array<i32>} : memref<4x8x10xf32, #tpu.memory_space<vmem>>, vector<1x8x8xf32>,
    %c2_177 = arith.constant 2 : index
    %c0_178 = arith.constant 0 : index
    %c1_179 = arith.constant 1 : index
    %710 = vector.load %arg8[%c2_177, %c0_178, %c1_179] : memref<4x8x10xf32, #tpu.memory_space<vmem>>, vector<1x8x8xf32>
    %711 = vector.shape_cast %710 : vector<1x8x8xf32> to vector<8x8xf32>
    %712 = vector.shape_cast %653 : vector<8x8xf32> to vector<1x8x8xf32>
    tpu.vector_store %arg8[%c2_177, %c0_178, %c1_179], %712 {strides = array<i32>} : memref<4x8x10xf32, #tpu.memory_space<vmem>>, vector<1x8x8xf32>,
    %c3_180 = arith.constant 3 : index
    %c0_181 = arith.constant 0 : index
    %c1_182 = arith.constant 1 : index
    %713 = vector.load %arg8[%c3_180, %c0_181, %c1_182] : memref<4x8x10xf32, #tpu.memory_space<vmem>>, vector<1x8x8xf32>
    %714 = vector.shape_cast %713 : vector<1x8x8xf32> to vector<8x8xf32>
    %715 = vector.shape_cast %703 : vector<8x8xf32> to vector<1x8x8xf32>
    tpu.vector_store %arg8[%c3_180, %c0_181, %c1_182], %715 {strides = array<i32>} : memref<4x8x10xf32, #tpu.memory_space<vmem>>, vector<1x8x8xf32>,
    %c0_183 = arith.constant 0 : index
    %c0_184 = arith.constant 0 : index
    %c0_185 = arith.constant 0 : index
    %716 = vector.load %arg8[%c0_183, %c0_184, %c0_185] : memref<4x8x10xf32, #tpu.memory_space<vmem>>, vector<1x8x8xf32>
    %717 = vector.shape_cast %716 : vector<1x8x8xf32> to vector<8x8xf32>
    %c0_186 = arith.constant 0 : index
    %c0_187 = arith.constant 0 : index
    %c1_188 = arith.constant 1 : index
    %718 = vector.load %arg8[%c0_186, %c0_187, %c1_188] : memref<4x8x10xf32, #tpu.memory_space<vmem>>, vector<1x8x8xf32>
    %719 = vector.shape_cast %718 : vector<1x8x8xf32> to vector<8x8xf32>
    %c0_189 = arith.constant 0 : index
    %c0_190 = arith.constant 0 : index
    %c2_191 = arith.constant 2 : index
    %720 = vector.load %arg8[%c0_189, %c0_190, %c2_191] : memref<4x8x10xf32, #tpu.memory_space<vmem>>, vector<1x8x8xf32>
    %721 = vector.shape_cast %720 : vector<1x8x8xf32> to vector<8x8xf32>
    %c1_192 = arith.constant 1 : index
    %c0_193 = arith.constant 0 : index
    %c0_194 = arith.constant 0 : index
    %722 = vector.load %arg8[%c1_192, %c0_193, %c0_194] : memref<4x8x10xf32, #tpu.memory_space<vmem>>, vector<1x8x8xf32>
    %723 = vector.shape_cast %722 : vector<1x8x8xf32> to vector<8x8xf32>
    %c1_195 = arith.constant 1 : index
    %c0_196 = arith.constant 0 : index
    %c1_197 = arith.constant 1 : index
    %724 = vector.load %arg8[%c1_195, %c0_196, %c1_197] : memref<4x8x10xf32, #tpu.memory_space<vmem>>, vector<1x8x8xf32>
    %725 = vector.shape_cast %724 : vector<1x8x8xf32> to vector<8x8xf32>
    %c1_198 = arith.constant 1 : index
    %c0_199 = arith.constant 0 : index
    %c2_200 = arith.constant 2 : index
    %726 = vector.load %arg8[%c1_198, %c0_199, %c2_200] : memref<4x8x10xf32, #tpu.memory_space<vmem>>, vector<1x8x8xf32>
    %727 = vector.shape_cast %726 : vector<1x8x8xf32> to vector<8x8xf32>
    %c2_201 = arith.constant 2 : index
    %c0_202 = arith.constant 0 : index
    %c0_203 = arith.constant 0 : index
    %728 = vector.load %arg8[%c2_201, %c0_202, %c0_203] : memref<4x8x10xf32, #tpu.memory_space<vmem>>, vector<1x8x8xf32>
    %729 = vector.shape_cast %728 : vector<1x8x8xf32> to vector<8x8xf32>
    %c2_204 = arith.constant 2 : index
    %c0_205 = arith.constant 0 : index
    %c1_206 = arith.constant 1 : index
    %730 = vector.load %arg8[%c2_204, %c0_205, %c1_206] : memref<4x8x10xf32, #tpu.memory_space<vmem>>, vector<1x8x8xf32>
    %731 = vector.shape_cast %730 : vector<1x8x8xf32> to vector<8x8xf32>
    %c2_207 = arith.constant 2 : index
    %c0_208 = arith.constant 0 : index
    %c2_209 = arith.constant 2 : index
    %732 = vector.load %arg8[%c2_207, %c0_208, %c2_209] : memref<4x8x10xf32, #tpu.memory_space<vmem>>, vector<1x8x8xf32>
    %733 = vector.shape_cast %732 : vector<1x8x8xf32> to vector<8x8xf32>
    %c3_210 = arith.constant 3 : index
    %c0_211 = arith.constant 0 : index
    %c0_212 = arith.constant 0 : index
    %734 = vector.load %arg8[%c3_210, %c0_211, %c0_212] : memref<4x8x10xf32, #tpu.memory_space<vmem>>, vector<1x8x8xf32>
    %735 = vector.shape_cast %734 : vector<1x8x8xf32> to vector<8x8xf32>
    %c3_213 = arith.constant 3 : index
    %c0_214 = arith.constant 0 : index
    %c1_215 = arith.constant 1 : index
    %736 = vector.load %arg8[%c3_213, %c0_214, %c1_215] : memref<4x8x10xf32, #tpu.memory_space<vmem>>, vector<1x8x8xf32>
    %737 = vector.shape_cast %736 : vector<1x8x8xf32> to vector<8x8xf32>
    %c3_216 = arith.constant 3 : index
    %c0_217 = arith.constant 0 : index
    %c2_218 = arith.constant 2 : index
    %738 = vector.load %arg8[%c3_216, %c0_217, %c2_218] : memref<4x8x10xf32, #tpu.memory_space<vmem>>, vector<1x8x8xf32>
    %739 = vector.shape_cast %738 : vector<1x8x8xf32> to vector<8x8xf32>
    %c156 = arith.constant 156 : index
    %740 = memref.load %arg1[%c156] : memref<658xf32, #tpu.memory_space<smem>>
    %741 = vector.broadcast %740 : f32 to vector<8x8xf32>
    %742 = arith.mulf %741, %717 : vector<8x8xf32>
    %c157 = arith.constant 157 : index
    %743 = memref.load %arg1[%c157] : memref<658xf32, #tpu.memory_space<smem>>
    %744 = vector.broadcast %743 : f32 to vector<8x8xf32>
    %745 = arith.mulf %744, %719 : vector<8x8xf32>
    %746 = arith.addf %742, %745 : vector<8x8xf32>
    %c158 = arith.constant 158 : index
    %747 = memref.load %arg1[%c158] : memref<658xf32, #tpu.memory_space<smem>>
    %748 = vector.broadcast %747 : f32 to vector<8x8xf32>
    %749 = arith.mulf %748, %721 : vector<8x8xf32>
    %750 = arith.addf %746, %749 : vector<8x8xf32>
    %c159 = arith.constant 159 : index
    %751 = memref.load %arg1[%c159] : memref<658xf32, #tpu.memory_space<smem>>
    %752 = vector.broadcast %751 : f32 to vector<8x8xf32>
    %753 = arith.mulf %752, %723 : vector<8x8xf32>
    %754 = arith.addf %750, %753 : vector<8x8xf32>
    %c160 = arith.constant 160 : index
    %755 = memref.load %arg1[%c160] : memref<658xf32, #tpu.memory_space<smem>>
    %756 = vector.broadcast %755 : f32 to vector<8x8xf32>
    %757 = arith.mulf %756, %725 : vector<8x8xf32>
    %758 = arith.addf %754, %757 : vector<8x8xf32>
    %c161 = arith.constant 161 : index
    %759 = memref.load %arg1[%c161] : memref<658xf32, #tpu.memory_space<smem>>
    %760 = vector.broadcast %759 : f32 to vector<8x8xf32>
    %761 = arith.mulf %760, %727 : vector<8x8xf32>
    %762 = arith.addf %758, %761 : vector<8x8xf32>
    %c162 = arith.constant 162 : index
    %763 = memref.load %arg1[%c162] : memref<658xf32, #tpu.memory_space<smem>>
    %764 = vector.broadcast %763 : f32 to vector<8x8xf32>
    %765 = arith.mulf %764, %729 : vector<8x8xf32>
    %766 = arith.addf %762, %765 : vector<8x8xf32>
    %c163 = arith.constant 163 : index
    %767 = memref.load %arg1[%c163] : memref<658xf32, #tpu.memory_space<smem>>
    %768 = vector.broadcast %767 : f32 to vector<8x8xf32>
    %769 = arith.mulf %768, %731 : vector<8x8xf32>
    %770 = arith.addf %766, %769 : vector<8x8xf32>
    %c164 = arith.constant 164 : index
    %771 = memref.load %arg1[%c164] : memref<658xf32, #tpu.memory_space<smem>>
    %772 = vector.broadcast %771 : f32 to vector<8x8xf32>
    %773 = arith.mulf %772, %733 : vector<8x8xf32>
    %774 = arith.addf %770, %773 : vector<8x8xf32>
    %c165 = arith.constant 165 : index
    %775 = memref.load %arg1[%c165] : memref<658xf32, #tpu.memory_space<smem>>
    %776 = vector.broadcast %775 : f32 to vector<8x8xf32>
    %777 = arith.mulf %776, %735 : vector<8x8xf32>
    %778 = arith.addf %774, %777 : vector<8x8xf32>
    %c166 = arith.constant 166 : index
    %779 = memref.load %arg1[%c166] : memref<658xf32, #tpu.memory_space<smem>>
    %780 = vector.broadcast %779 : f32 to vector<8x8xf32>
    %781 = arith.mulf %780, %737 : vector<8x8xf32>
    %782 = arith.addf %778, %781 : vector<8x8xf32>
    %c167 = arith.constant 167 : index
    %783 = memref.load %arg1[%c167] : memref<658xf32, #tpu.memory_space<smem>>
    %784 = vector.broadcast %783 : f32 to vector<8x8xf32>
    %785 = arith.mulf %784, %739 : vector<8x8xf32>
    %786 = arith.addf %782, %785 : vector<8x8xf32>
    %c204 = arith.constant 204 : index
    %787 = memref.load %arg1[%c204] : memref<658xf32, #tpu.memory_space<smem>>
    %788 = vector.broadcast %787 : f32 to vector<8x8xf32>
    %789 = arith.addf %786, %788 : vector<8x8xf32>
    %c168 = arith.constant 168 : index
    %790 = memref.load %arg1[%c168] : memref<658xf32, #tpu.memory_space<smem>>
    %791 = vector.broadcast %790 : f32 to vector<8x8xf32>
    %792 = arith.mulf %791, %717 : vector<8x8xf32>
    %c169 = arith.constant 169 : index
    %793 = memref.load %arg1[%c169] : memref<658xf32, #tpu.memory_space<smem>>
    %794 = vector.broadcast %793 : f32 to vector<8x8xf32>
    %795 = arith.mulf %794, %719 : vector<8x8xf32>
    %796 = arith.addf %792, %795 : vector<8x8xf32>
    %c170 = arith.constant 170 : index
    %797 = memref.load %arg1[%c170] : memref<658xf32, #tpu.memory_space<smem>>
    %798 = vector.broadcast %797 : f32 to vector<8x8xf32>
    %799 = arith.mulf %798, %721 : vector<8x8xf32>
    %800 = arith.addf %796, %799 : vector<8x8xf32>
    %c171 = arith.constant 171 : index
    %801 = memref.load %arg1[%c171] : memref<658xf32, #tpu.memory_space<smem>>
    %802 = vector.broadcast %801 : f32 to vector<8x8xf32>
    %803 = arith.mulf %802, %723 : vector<8x8xf32>
    %804 = arith.addf %800, %803 : vector<8x8xf32>
    %c172 = arith.constant 172 : index
    %805 = memref.load %arg1[%c172] : memref<658xf32, #tpu.memory_space<smem>>
    %806 = vector.broadcast %805 : f32 to vector<8x8xf32>
    %807 = arith.mulf %806, %725 : vector<8x8xf32>
    %808 = arith.addf %804, %807 : vector<8x8xf32>
    %c173 = arith.constant 173 : index
    %809 = memref.load %arg1[%c173] : memref<658xf32, #tpu.memory_space<smem>>
    %810 = vector.broadcast %809 : f32 to vector<8x8xf32>
    %811 = arith.mulf %810, %727 : vector<8x8xf32>
    %812 = arith.addf %808, %811 : vector<8x8xf32>
    %c174 = arith.constant 174 : index
    %813 = memref.load %arg1[%c174] : memref<658xf32, #tpu.memory_space<smem>>
    %814 = vector.broadcast %813 : f32 to vector<8x8xf32>
    %815 = arith.mulf %814, %729 : vector<8x8xf32>
    %816 = arith.addf %812, %815 : vector<8x8xf32>
    %c175 = arith.constant 175 : index
    %817 = memref.load %arg1[%c175] : memref<658xf32, #tpu.memory_space<smem>>
    %818 = vector.broadcast %817 : f32 to vector<8x8xf32>
    %819 = arith.mulf %818, %731 : vector<8x8xf32>
    %820 = arith.addf %816, %819 : vector<8x8xf32>
    %c176 = arith.constant 176 : index
    %821 = memref.load %arg1[%c176] : memref<658xf32, #tpu.memory_space<smem>>
    %822 = vector.broadcast %821 : f32 to vector<8x8xf32>
    %823 = arith.mulf %822, %733 : vector<8x8xf32>
    %824 = arith.addf %820, %823 : vector<8x8xf32>
    %c177 = arith.constant 177 : index
    %825 = memref.load %arg1[%c177] : memref<658xf32, #tpu.memory_space<smem>>
    %826 = vector.broadcast %825 : f32 to vector<8x8xf32>
    %827 = arith.mulf %826, %735 : vector<8x8xf32>
    %828 = arith.addf %824, %827 : vector<8x8xf32>
    %c178 = arith.constant 178 : index
    %829 = memref.load %arg1[%c178] : memref<658xf32, #tpu.memory_space<smem>>
    %830 = vector.broadcast %829 : f32 to vector<8x8xf32>
    %831 = arith.mulf %830, %737 : vector<8x8xf32>
    %832 = arith.addf %828, %831 : vector<8x8xf32>
    %c179 = arith.constant 179 : index
    %833 = memref.load %arg1[%c179] : memref<658xf32, #tpu.memory_space<smem>>
    %834 = vector.broadcast %833 : f32 to vector<8x8xf32>
    %835 = arith.mulf %834, %739 : vector<8x8xf32>
    %836 = arith.addf %832, %835 : vector<8x8xf32>
    %c205 = arith.constant 205 : index
    %837 = memref.load %arg1[%c205] : memref<658xf32, #tpu.memory_space<smem>>
    %838 = vector.broadcast %837 : f32 to vector<8x8xf32>
    %839 = arith.addf %836, %838 : vector<8x8xf32>
    %c180 = arith.constant 180 : index
    %840 = memref.load %arg1[%c180] : memref<658xf32, #tpu.memory_space<smem>>
    %841 = vector.broadcast %840 : f32 to vector<8x8xf32>
    %842 = arith.mulf %841, %717 : vector<8x8xf32>
    %c181 = arith.constant 181 : index
    %843 = memref.load %arg1[%c181] : memref<658xf32, #tpu.memory_space<smem>>
    %844 = vector.broadcast %843 : f32 to vector<8x8xf32>
    %845 = arith.mulf %844, %719 : vector<8x8xf32>
    %846 = arith.addf %842, %845 : vector<8x8xf32>
    %c182 = arith.constant 182 : index
    %847 = memref.load %arg1[%c182] : memref<658xf32, #tpu.memory_space<smem>>
    %848 = vector.broadcast %847 : f32 to vector<8x8xf32>
    %849 = arith.mulf %848, %721 : vector<8x8xf32>
    %850 = arith.addf %846, %849 : vector<8x8xf32>
    %c183 = arith.constant 183 : index
    %851 = memref.load %arg1[%c183] : memref<658xf32, #tpu.memory_space<smem>>
    %852 = vector.broadcast %851 : f32 to vector<8x8xf32>
    %853 = arith.mulf %852, %723 : vector<8x8xf32>
    %854 = arith.addf %850, %853 : vector<8x8xf32>
    %c184 = arith.constant 184 : index
    %855 = memref.load %arg1[%c184] : memref<658xf32, #tpu.memory_space<smem>>
    %856 = vector.broadcast %855 : f32 to vector<8x8xf32>
    %857 = arith.mulf %856, %725 : vector<8x8xf32>
    %858 = arith.addf %854, %857 : vector<8x8xf32>
    %c185 = arith.constant 185 : index
    %859 = memref.load %arg1[%c185] : memref<658xf32, #tpu.memory_space<smem>>
    %860 = vector.broadcast %859 : f32 to vector<8x8xf32>
    %861 = arith.mulf %860, %727 : vector<8x8xf32>
    %862 = arith.addf %858, %861 : vector<8x8xf32>
    %c186 = arith.constant 186 : index
    %863 = memref.load %arg1[%c186] : memref<658xf32, #tpu.memory_space<smem>>
    %864 = vector.broadcast %863 : f32 to vector<8x8xf32>
    %865 = arith.mulf %864, %729 : vector<8x8xf32>
    %866 = arith.addf %862, %865 : vector<8x8xf32>
    %c187 = arith.constant 187 : index
    %867 = memref.load %arg1[%c187] : memref<658xf32, #tpu.memory_space<smem>>
    %868 = vector.broadcast %867 : f32 to vector<8x8xf32>
    %869 = arith.mulf %868, %731 : vector<8x8xf32>
    %870 = arith.addf %866, %869 : vector<8x8xf32>
    %c188 = arith.constant 188 : index
    %871 = memref.load %arg1[%c188] : memref<658xf32, #tpu.memory_space<smem>>
    %872 = vector.broadcast %871 : f32 to vector<8x8xf32>
    %873 = arith.mulf %872, %733 : vector<8x8xf32>
    %874 = arith.addf %870, %873 : vector<8x8xf32>
    %c189 = arith.constant 189 : index
    %875 = memref.load %arg1[%c189] : memref<658xf32, #tpu.memory_space<smem>>
    %876 = vector.broadcast %875 : f32 to vector<8x8xf32>
    %877 = arith.mulf %876, %735 : vector<8x8xf32>
    %878 = arith.addf %874, %877 : vector<8x8xf32>
    %c190 = arith.constant 190 : index
    %879 = memref.load %arg1[%c190] : memref<658xf32, #tpu.memory_space<smem>>
    %880 = vector.broadcast %879 : f32 to vector<8x8xf32>
    %881 = arith.mulf %880, %737 : vector<8x8xf32>
    %882 = arith.addf %878, %881 : vector<8x8xf32>
    %c191 = arith.constant 191 : index
    %883 = memref.load %arg1[%c191] : memref<658xf32, #tpu.memory_space<smem>>
    %884 = vector.broadcast %883 : f32 to vector<8x8xf32>
    %885 = arith.mulf %884, %739 : vector<8x8xf32>
    %886 = arith.addf %882, %885 : vector<8x8xf32>
    %c206 = arith.constant 206 : index
    %887 = memref.load %arg1[%c206] : memref<658xf32, #tpu.memory_space<smem>>
    %888 = vector.broadcast %887 : f32 to vector<8x8xf32>
    %889 = arith.addf %886, %888 : vector<8x8xf32>
    %c192 = arith.constant 192 : index
    %890 = memref.load %arg1[%c192] : memref<658xf32, #tpu.memory_space<smem>>
    %891 = vector.broadcast %890 : f32 to vector<8x8xf32>
    %892 = arith.mulf %891, %717 : vector<8x8xf32>
    %c193 = arith.constant 193 : index
    %893 = memref.load %arg1[%c193] : memref<658xf32, #tpu.memory_space<smem>>
    %894 = vector.broadcast %893 : f32 to vector<8x8xf32>
    %895 = arith.mulf %894, %719 : vector<8x8xf32>
    %896 = arith.addf %892, %895 : vector<8x8xf32>
    %c194 = arith.constant 194 : index
    %897 = memref.load %arg1[%c194] : memref<658xf32, #tpu.memory_space<smem>>
    %898 = vector.broadcast %897 : f32 to vector<8x8xf32>
    %899 = arith.mulf %898, %721 : vector<8x8xf32>
    %900 = arith.addf %896, %899 : vector<8x8xf32>
    %c195 = arith.constant 195 : index
    %901 = memref.load %arg1[%c195] : memref<658xf32, #tpu.memory_space<smem>>
    %902 = vector.broadcast %901 : f32 to vector<8x8xf32>
    %903 = arith.mulf %902, %723 : vector<8x8xf32>
    %904 = arith.addf %900, %903 : vector<8x8xf32>
    %c196 = arith.constant 196 : index
    %905 = memref.load %arg1[%c196] : memref<658xf32, #tpu.memory_space<smem>>
    %906 = vector.broadcast %905 : f32 to vector<8x8xf32>
    %907 = arith.mulf %906, %725 : vector<8x8xf32>
    %908 = arith.addf %904, %907 : vector<8x8xf32>
    %c197 = arith.constant 197 : index
    %909 = memref.load %arg1[%c197] : memref<658xf32, #tpu.memory_space<smem>>
    %910 = vector.broadcast %909 : f32 to vector<8x8xf32>
    %911 = arith.mulf %910, %727 : vector<8x8xf32>
    %912 = arith.addf %908, %911 : vector<8x8xf32>
    %c198 = arith.constant 198 : index
    %913 = memref.load %arg1[%c198] : memref<658xf32, #tpu.memory_space<smem>>
    %914 = vector.broadcast %913 : f32 to vector<8x8xf32>
    %915 = arith.mulf %914, %729 : vector<8x8xf32>
    %916 = arith.addf %912, %915 : vector<8x8xf32>
    %c199 = arith.constant 199 : index
    %917 = memref.load %arg1[%c199] : memref<658xf32, #tpu.memory_space<smem>>
    %918 = vector.broadcast %917 : f32 to vector<8x8xf32>
    %919 = arith.mulf %918, %731 : vector<8x8xf32>
    %920 = arith.addf %916, %919 : vector<8x8xf32>
    %c200 = arith.constant 200 : index
    %921 = memref.load %arg1[%c200] : memref<658xf32, #tpu.memory_space<smem>>
    %922 = vector.broadcast %921 : f32 to vector<8x8xf32>
    %923 = arith.mulf %922, %733 : vector<8x8xf32>
    %924 = arith.addf %920, %923 : vector<8x8xf32>
    %c201 = arith.constant 201 : index
    %925 = memref.load %arg1[%c201] : memref<658xf32, #tpu.memory_space<smem>>
    %926 = vector.broadcast %925 : f32 to vector<8x8xf32>
    %927 = arith.mulf %926, %735 : vector<8x8xf32>
    %928 = arith.addf %924, %927 : vector<8x8xf32>
    %c202 = arith.constant 202 : index
    %929 = memref.load %arg1[%c202] : memref<658xf32, #tpu.memory_space<smem>>
    %930 = vector.broadcast %929 : f32 to vector<8x8xf32>
    %931 = arith.mulf %930, %737 : vector<8x8xf32>
    %932 = arith.addf %928, %931 : vector<8x8xf32>
    %c203 = arith.constant 203 : index
    %933 = memref.load %arg1[%c203] : memref<658xf32, #tpu.memory_space<smem>>
    %934 = vector.broadcast %933 : f32 to vector<8x8xf32>
    %935 = arith.mulf %934, %739 : vector<8x8xf32>
    %936 = arith.addf %932, %935 : vector<8x8xf32>
    %c207 = arith.constant 207 : index
    %937 = memref.load %arg1[%c207] : memref<658xf32, #tpu.memory_space<smem>>
    %938 = vector.broadcast %937 : f32 to vector<8x8xf32>
    %939 = arith.addf %936, %938 : vector<8x8xf32>
    %c0_219 = arith.constant 0 : index
    %c1_220 = arith.constant 1 : index
    %c1_221 = arith.constant 1 : index
    %940 = vector.load %arg9[%c0_219, %c1_220, %c1_221] : memref<8x10x10xf32, #tpu.memory_space<vmem>>, vector<1x8x8xf32>
    %941 = vector.shape_cast %940 : vector<1x8x8xf32> to vector<8x8xf32>
    %942 = vector.shape_cast %789 : vector<8x8xf32> to vector<1x8x8xf32>
    tpu.vector_store %arg9[%c0_219, %c1_220, %c1_221], %942 {strides = array<i32>} : memref<8x10x10xf32, #tpu.memory_space<vmem>>, vector<1x8x8xf32>,
    %c1_222 = arith.constant 1 : index
    %c1_223 = arith.constant 1 : index
    %c1_224 = arith.constant 1 : index
    %943 = vector.load %arg9[%c1_222, %c1_223, %c1_224] : memref<8x10x10xf32, #tpu.memory_space<vmem>>, vector<1x8x8xf32>
    %944 = vector.shape_cast %943 : vector<1x8x8xf32> to vector<8x8xf32>
    %945 = vector.shape_cast %839 : vector<8x8xf32> to vector<1x8x8xf32>
    tpu.vector_store %arg9[%c1_222, %c1_223, %c1_224], %945 {strides = array<i32>} : memref<8x10x10xf32, #tpu.memory_space<vmem>>, vector<1x8x8xf32>,
    %c2_225 = arith.constant 2 : index
    %c1_226 = arith.constant 1 : index
    %c1_227 = arith.constant 1 : index
    %946 = vector.load %arg9[%c2_225, %c1_226, %c1_227] : memref<8x10x10xf32, #tpu.memory_space<vmem>>, vector<1x8x8xf32>
    %947 = vector.shape_cast %946 : vector<1x8x8xf32> to vector<8x8xf32>
    %948 = vector.shape_cast %889 : vector<8x8xf32> to vector<1x8x8xf32>
    tpu.vector_store %arg9[%c2_225, %c1_226, %c1_227], %948 {strides = array<i32>} : memref<8x10x10xf32, #tpu.memory_space<vmem>>, vector<1x8x8xf32>,
    %c3_228 = arith.constant 3 : index
    %c1_229 = arith.constant 1 : index
    %c1_230 = arith.constant 1 : index
    %949 = vector.load %arg9[%c3_228, %c1_229, %c1_230] : memref<8x10x10xf32, #tpu.memory_space<vmem>>, vector<1x8x8xf32>
    %950 = vector.shape_cast %949 : vector<1x8x8xf32> to vector<8x8xf32>
    %951 = vector.shape_cast %939 : vector<8x8xf32> to vector<1x8x8xf32>
    tpu.vector_store %arg9[%c3_228, %c1_229, %c1_230], %951 {strides = array<i32>} : memref<8x10x10xf32, #tpu.memory_space<vmem>>, vector<1x8x8xf32>,
    %c306 = arith.constant 306 : index
    %952 = memref.load %arg1[%c306] : memref<658xf32, #tpu.memory_space<smem>>
    %c0_231 = arith.constant 0 : index
    %c0_232 = arith.constant 0 : index
    %c0_233 = arith.constant 0 : index
    %953 = vector.load %arg9[%c0_231, %c0_232, %c0_233] : memref<8x10x10xf32, #tpu.memory_space<vmem>>, vector<1x8x8xf32>
    %954 = vector.shape_cast %953 : vector<1x8x8xf32> to vector<8x8xf32>
    %955 = vector.broadcast %952 : f32 to vector<8x8xf32>
    %956 = arith.mulf %955, %954 : vector<8x8xf32>
    %c307 = arith.constant 307 : index
    %957 = memref.load %arg1[%c307] : memref<658xf32, #tpu.memory_space<smem>>
    %c0_234 = arith.constant 0 : index
    %c0_235 = arith.constant 0 : index
    %c1_236 = arith.constant 1 : index
    %958 = vector.load %arg9[%c0_234, %c0_235, %c1_236] : memref<8x10x10xf32, #tpu.memory_space<vmem>>, vector<1x8x8xf32>
    %959 = vector.shape_cast %958 : vector<1x8x8xf32> to vector<8x8xf32>
    %960 = vector.broadcast %957 : f32 to vector<8x8xf32>
    %961 = arith.mulf %960, %959 : vector<8x8xf32>
    %962 = arith.addf %956, %961 : vector<8x8xf32>
    %c308 = arith.constant 308 : index
    %963 = memref.load %arg1[%c308] : memref<658xf32, #tpu.memory_space<smem>>
    %c0_237 = arith.constant 0 : index
    %c0_238 = arith.constant 0 : index
    %c2_239 = arith.constant 2 : index
    %964 = vector.load %arg9[%c0_237, %c0_238, %c2_239] : memref<8x10x10xf32, #tpu.memory_space<vmem>>, vector<1x8x8xf32>
    %965 = vector.shape_cast %964 : vector<1x8x8xf32> to vector<8x8xf32>
    %966 = vector.broadcast %963 : f32 to vector<8x8xf32>
    %967 = arith.mulf %966, %965 : vector<8x8xf32>
    %968 = arith.addf %962, %967 : vector<8x8xf32>
    %c309 = arith.constant 309 : index
    %969 = memref.load %arg1[%c309] : memref<658xf32, #tpu.memory_space<smem>>
    %c0_240 = arith.constant 0 : index
    %c1_241 = arith.constant 1 : index
    %c0_242 = arith.constant 0 : index
    %970 = vector.load %arg9[%c0_240, %c1_241, %c0_242] : memref<8x10x10xf32, #tpu.memory_space<vmem>>, vector<1x8x8xf32>
    %971 = vector.shape_cast %970 : vector<1x8x8xf32> to vector<8x8xf32>
    %972 = vector.broadcast %969 : f32 to vector<8x8xf32>
    %973 = arith.mulf %972, %971 : vector<8x8xf32>
    %974 = arith.addf %968, %973 : vector<8x8xf32>
    %c310 = arith.constant 310 : index
    %975 = memref.load %arg1[%c310] : memref<658xf32, #tpu.memory_space<smem>>
    %c0_243 = arith.constant 0 : index
    %c1_244 = arith.constant 1 : index
    %c1_245 = arith.constant 1 : index
    %976 = vector.load %arg9[%c0_243, %c1_244, %c1_245] : memref<8x10x10xf32, #tpu.memory_space<vmem>>, vector<1x8x8xf32>
    %977 = vector.shape_cast %976 : vector<1x8x8xf32> to vector<8x8xf32>
    %978 = vector.broadcast %975 : f32 to vector<8x8xf32>
    %979 = arith.mulf %978, %977 : vector<8x8xf32>
    %980 = arith.addf %974, %979 : vector<8x8xf32>
    %c311 = arith.constant 311 : index
    %981 = memref.load %arg1[%c311] : memref<658xf32, #tpu.memory_space<smem>>
    %c0_246 = arith.constant 0 : index
    %c1_247 = arith.constant 1 : index
    %c2_248 = arith.constant 2 : index
    %982 = vector.load %arg9[%c0_246, %c1_247, %c2_248] : memref<8x10x10xf32, #tpu.memory_space<vmem>>, vector<1x8x8xf32>
    %983 = vector.shape_cast %982 : vector<1x8x8xf32> to vector<8x8xf32>
    %984 = vector.broadcast %981 : f32 to vector<8x8xf32>
    %985 = arith.mulf %984, %983 : vector<8x8xf32>
    %986 = arith.addf %980, %985 : vector<8x8xf32>
    %c312 = arith.constant 312 : index
    %987 = memref.load %arg1[%c312] : memref<658xf32, #tpu.memory_space<smem>>
    %c0_249 = arith.constant 0 : index
    %c2_250 = arith.constant 2 : index
    %c0_251 = arith.constant 0 : index
    %988 = vector.load %arg9[%c0_249, %c2_250, %c0_251] : memref<8x10x10xf32, #tpu.memory_space<vmem>>, vector<1x8x8xf32>
    %989 = vector.shape_cast %988 : vector<1x8x8xf32> to vector<8x8xf32>
    %990 = vector.broadcast %987 : f32 to vector<8x8xf32>
    %991 = arith.mulf %990, %989 : vector<8x8xf32>
    %992 = arith.addf %986, %991 : vector<8x8xf32>
    %c313 = arith.constant 313 : index
    %993 = memref.load %arg1[%c313] : memref<658xf32, #tpu.memory_space<smem>>
    %c0_252 = arith.constant 0 : index
    %c2_253 = arith.constant 2 : index
    %c1_254 = arith.constant 1 : index
    %994 = vector.load %arg9[%c0_252, %c2_253, %c1_254] : memref<8x10x10xf32, #tpu.memory_space<vmem>>, vector<1x8x8xf32>
    %995 = vector.shape_cast %994 : vector<1x8x8xf32> to vector<8x8xf32>
    %996 = vector.broadcast %993 : f32 to vector<8x8xf32>
    %997 = arith.mulf %996, %995 : vector<8x8xf32>
    %998 = arith.addf %992, %997 : vector<8x8xf32>
    %c314 = arith.constant 314 : index
    %999 = memref.load %arg1[%c314] : memref<658xf32, #tpu.memory_space<smem>>
    %c0_255 = arith.constant 0 : index
    %c2_256 = arith.constant 2 : index
    %c2_257 = arith.constant 2 : index
    %1000 = vector.load %arg9[%c0_255, %c2_256, %c2_257] : memref<8x10x10xf32, #tpu.memory_space<vmem>>, vector<1x8x8xf32>
    %1001 = vector.shape_cast %1000 : vector<1x8x8xf32> to vector<8x8xf32>
    %1002 = vector.broadcast %999 : f32 to vector<8x8xf32>
    %1003 = arith.mulf %1002, %1001 : vector<8x8xf32>
    %1004 = arith.addf %998, %1003 : vector<8x8xf32>
    %c378 = arith.constant 378 : index
    %1005 = memref.load %arg1[%c378] : memref<658xf32, #tpu.memory_space<smem>>
    %1006 = vector.broadcast %1005 : f32 to vector<8x8xf32>
    %1007 = arith.mulf %1004, %1006 : vector<8x8xf32>
    %c386 = arith.constant 386 : index
    %1008 = memref.load %arg1[%c386] : memref<658xf32, #tpu.memory_space<smem>>
    %1009 = vector.broadcast %1008 : f32 to vector<8x8xf32>
    %1010 = arith.addf %1007, %1009 : vector<8x8xf32>
    %cst_258 = arith.constant 0.000000e+00 : f32
    %1011 = vector.broadcast %cst_258 : f32 to vector<8x8xf32>
    %1012 = arith.maximumf %1010, %1011 : vector<8x8xf32>
    %c315 = arith.constant 315 : index
    %1013 = memref.load %arg1[%c315] : memref<658xf32, #tpu.memory_space<smem>>
    %c1_259 = arith.constant 1 : index
    %c0_260 = arith.constant 0 : index
    %c0_261 = arith.constant 0 : index
    %1014 = vector.load %arg9[%c1_259, %c0_260, %c0_261] : memref<8x10x10xf32, #tpu.memory_space<vmem>>, vector<1x8x8xf32>
    %1015 = vector.shape_cast %1014 : vector<1x8x8xf32> to vector<8x8xf32>
    %1016 = vector.broadcast %1013 : f32 to vector<8x8xf32>
    %1017 = arith.mulf %1016, %1015 : vector<8x8xf32>
    %c316 = arith.constant 316 : index
    %1018 = memref.load %arg1[%c316] : memref<658xf32, #tpu.memory_space<smem>>
    %c1_262 = arith.constant 1 : index
    %c0_263 = arith.constant 0 : index
    %c1_264 = arith.constant 1 : index
    %1019 = vector.load %arg9[%c1_262, %c0_263, %c1_264] : memref<8x10x10xf32, #tpu.memory_space<vmem>>, vector<1x8x8xf32>
    %1020 = vector.shape_cast %1019 : vector<1x8x8xf32> to vector<8x8xf32>
    %1021 = vector.broadcast %1018 : f32 to vector<8x8xf32>
    %1022 = arith.mulf %1021, %1020 : vector<8x8xf32>
    %1023 = arith.addf %1017, %1022 : vector<8x8xf32>
    %c317 = arith.constant 317 : index
    %1024 = memref.load %arg1[%c317] : memref<658xf32, #tpu.memory_space<smem>>
    %c1_265 = arith.constant 1 : index
    %c0_266 = arith.constant 0 : index
    %c2_267 = arith.constant 2 : index
    %1025 = vector.load %arg9[%c1_265, %c0_266, %c2_267] : memref<8x10x10xf32, #tpu.memory_space<vmem>>, vector<1x8x8xf32>
    %1026 = vector.shape_cast %1025 : vector<1x8x8xf32> to vector<8x8xf32>
    %1027 = vector.broadcast %1024 : f32 to vector<8x8xf32>
    %1028 = arith.mulf %1027, %1026 : vector<8x8xf32>
    %1029 = arith.addf %1023, %1028 : vector<8x8xf32>
    %c318 = arith.constant 318 : index
    %1030 = memref.load %arg1[%c318] : memref<658xf32, #tpu.memory_space<smem>>
    %c1_268 = arith.constant 1 : index
    %c1_269 = arith.constant 1 : index
    %c0_270 = arith.constant 0 : index
    %1031 = vector.load %arg9[%c1_268, %c1_269, %c0_270] : memref<8x10x10xf32, #tpu.memory_space<vmem>>, vector<1x8x8xf32>
    %1032 = vector.shape_cast %1031 : vector<1x8x8xf32> to vector<8x8xf32>
    %1033 = vector.broadcast %1030 : f32 to vector<8x8xf32>
    %1034 = arith.mulf %1033, %1032 : vector<8x8xf32>
    %1035 = arith.addf %1029, %1034 : vector<8x8xf32>
    %c319 = arith.constant 319 : index
    %1036 = memref.load %arg1[%c319] : memref<658xf32, #tpu.memory_space<smem>>
    %c1_271 = arith.constant 1 : index
    %c1_272 = arith.constant 1 : index
    %c1_273 = arith.constant 1 : index
    %1037 = vector.load %arg9[%c1_271, %c1_272, %c1_273] : memref<8x10x10xf32, #tpu.memory_space<vmem>>, vector<1x8x8xf32>
    %1038 = vector.shape_cast %1037 : vector<1x8x8xf32> to vector<8x8xf32>
    %1039 = vector.broadcast %1036 : f32 to vector<8x8xf32>
    %1040 = arith.mulf %1039, %1038 : vector<8x8xf32>
    %1041 = arith.addf %1035, %1040 : vector<8x8xf32>
    %c320 = arith.constant 320 : index
    %1042 = memref.load %arg1[%c320] : memref<658xf32, #tpu.memory_space<smem>>
    %c1_274 = arith.constant 1 : index
    %c1_275 = arith.constant 1 : index
    %c2_276 = arith.constant 2 : index
    %1043 = vector.load %arg9[%c1_274, %c1_275, %c2_276] : memref<8x10x10xf32, #tpu.memory_space<vmem>>, vector<1x8x8xf32>
    %1044 = vector.shape_cast %1043 : vector<1x8x8xf32> to vector<8x8xf32>
    %1045 = vector.broadcast %1042 : f32 to vector<8x8xf32>
    %1046 = arith.mulf %1045, %1044 : vector<8x8xf32>
    %1047 = arith.addf %1041, %1046 : vector<8x8xf32>
    %c321 = arith.constant 321 : index
    %1048 = memref.load %arg1[%c321] : memref<658xf32, #tpu.memory_space<smem>>
    %c1_277 = arith.constant 1 : index
    %c2_278 = arith.constant 2 : index
    %c0_279 = arith.constant 0 : index
    %1049 = vector.load %arg9[%c1_277, %c2_278, %c0_279] : memref<8x10x10xf32, #tpu.memory_space<vmem>>, vector<1x8x8xf32>
    %1050 = vector.shape_cast %1049 : vector<1x8x8xf32> to vector<8x8xf32>
    %1051 = vector.broadcast %1048 : f32 to vector<8x8xf32>
    %1052 = arith.mulf %1051, %1050 : vector<8x8xf32>
    %1053 = arith.addf %1047, %1052 : vector<8x8xf32>
    %c322 = arith.constant 322 : index
    %1054 = memref.load %arg1[%c322] : memref<658xf32, #tpu.memory_space<smem>>
    %c1_280 = arith.constant 1 : index
    %c2_281 = arith.constant 2 : index
    %c1_282 = arith.constant 1 : index
    %1055 = vector.load %arg9[%c1_280, %c2_281, %c1_282] : memref<8x10x10xf32, #tpu.memory_space<vmem>>, vector<1x8x8xf32>
    %1056 = vector.shape_cast %1055 : vector<1x8x8xf32> to vector<8x8xf32>
    %1057 = vector.broadcast %1054 : f32 to vector<8x8xf32>
    %1058 = arith.mulf %1057, %1056 : vector<8x8xf32>
    %1059 = arith.addf %1053, %1058 : vector<8x8xf32>
    %c323 = arith.constant 323 : index
    %1060 = memref.load %arg1[%c323] : memref<658xf32, #tpu.memory_space<smem>>
    %c1_283 = arith.constant 1 : index
    %c2_284 = arith.constant 2 : index
    %c2_285 = arith.constant 2 : index
    %1061 = vector.load %arg9[%c1_283, %c2_284, %c2_285] : memref<8x10x10xf32, #tpu.memory_space<vmem>>, vector<1x8x8xf32>
    %1062 = vector.shape_cast %1061 : vector<1x8x8xf32> to vector<8x8xf32>
    %1063 = vector.broadcast %1060 : f32 to vector<8x8xf32>
    %1064 = arith.mulf %1063, %1062 : vector<8x8xf32>
    %1065 = arith.addf %1059, %1064 : vector<8x8xf32>
    %c379 = arith.constant 379 : index
    %1066 = memref.load %arg1[%c379] : memref<658xf32, #tpu.memory_space<smem>>
    %1067 = vector.broadcast %1066 : f32 to vector<8x8xf32>
    %1068 = arith.mulf %1065, %1067 : vector<8x8xf32>
    %c387 = arith.constant 387 : index
    %1069 = memref.load %arg1[%c387] : memref<658xf32, #tpu.memory_space<smem>>
    %1070 = vector.broadcast %1069 : f32 to vector<8x8xf32>
    %1071 = arith.addf %1068, %1070 : vector<8x8xf32>
    %cst_286 = arith.constant 0.000000e+00 : f32
    %1072 = vector.broadcast %cst_286 : f32 to vector<8x8xf32>
    %1073 = arith.maximumf %1071, %1072 : vector<8x8xf32>
    %c324 = arith.constant 324 : index
    %1074 = memref.load %arg1[%c324] : memref<658xf32, #tpu.memory_space<smem>>
    %c2_287 = arith.constant 2 : index
    %c0_288 = arith.constant 0 : index
    %c0_289 = arith.constant 0 : index
    %1075 = vector.load %arg9[%c2_287, %c0_288, %c0_289] : memref<8x10x10xf32, #tpu.memory_space<vmem>>, vector<1x8x8xf32>
    %1076 = vector.shape_cast %1075 : vector<1x8x8xf32> to vector<8x8xf32>
    %1077 = vector.broadcast %1074 : f32 to vector<8x8xf32>
    %1078 = arith.mulf %1077, %1076 : vector<8x8xf32>
    %c325 = arith.constant 325 : index
    %1079 = memref.load %arg1[%c325] : memref<658xf32, #tpu.memory_space<smem>>
    %c2_290 = arith.constant 2 : index
    %c0_291 = arith.constant 0 : index
    %c1_292 = arith.constant 1 : index
    %1080 = vector.load %arg9[%c2_290, %c0_291, %c1_292] : memref<8x10x10xf32, #tpu.memory_space<vmem>>, vector<1x8x8xf32>
    %1081 = vector.shape_cast %1080 : vector<1x8x8xf32> to vector<8x8xf32>
    %1082 = vector.broadcast %1079 : f32 to vector<8x8xf32>
    %1083 = arith.mulf %1082, %1081 : vector<8x8xf32>
    %1084 = arith.addf %1078, %1083 : vector<8x8xf32>
    %c326 = arith.constant 326 : index
    %1085 = memref.load %arg1[%c326] : memref<658xf32, #tpu.memory_space<smem>>
    %c2_293 = arith.constant 2 : index
    %c0_294 = arith.constant 0 : index
    %c2_295 = arith.constant 2 : index
    %1086 = vector.load %arg9[%c2_293, %c0_294, %c2_295] : memref<8x10x10xf32, #tpu.memory_space<vmem>>, vector<1x8x8xf32>
    %1087 = vector.shape_cast %1086 : vector<1x8x8xf32> to vector<8x8xf32>
    %1088 = vector.broadcast %1085 : f32 to vector<8x8xf32>
    %1089 = arith.mulf %1088, %1087 : vector<8x8xf32>
    %1090 = arith.addf %1084, %1089 : vector<8x8xf32>
    %c327 = arith.constant 327 : index
    %1091 = memref.load %arg1[%c327] : memref<658xf32, #tpu.memory_space<smem>>
    %c2_296 = arith.constant 2 : index
    %c1_297 = arith.constant 1 : index
    %c0_298 = arith.constant 0 : index
    %1092 = vector.load %arg9[%c2_296, %c1_297, %c0_298] : memref<8x10x10xf32, #tpu.memory_space<vmem>>, vector<1x8x8xf32>
    %1093 = vector.shape_cast %1092 : vector<1x8x8xf32> to vector<8x8xf32>
    %1094 = vector.broadcast %1091 : f32 to vector<8x8xf32>
    %1095 = arith.mulf %1094, %1093 : vector<8x8xf32>
    %1096 = arith.addf %1090, %1095 : vector<8x8xf32>
    %c328 = arith.constant 328 : index
    %1097 = memref.load %arg1[%c328] : memref<658xf32, #tpu.memory_space<smem>>
    %c2_299 = arith.constant 2 : index
    %c1_300 = arith.constant 1 : index
    %c1_301 = arith.constant 1 : index
    %1098 = vector.load %arg9[%c2_299, %c1_300, %c1_301] : memref<8x10x10xf32, #tpu.memory_space<vmem>>, vector<1x8x8xf32>
    %1099 = vector.shape_cast %1098 : vector<1x8x8xf32> to vector<8x8xf32>
    %1100 = vector.broadcast %1097 : f32 to vector<8x8xf32>
    %1101 = arith.mulf %1100, %1099 : vector<8x8xf32>
    %1102 = arith.addf %1096, %1101 : vector<8x8xf32>
    %c329 = arith.constant 329 : index
    %1103 = memref.load %arg1[%c329] : memref<658xf32, #tpu.memory_space<smem>>
    %c2_302 = arith.constant 2 : index
    %c1_303 = arith.constant 1 : index
    %c2_304 = arith.constant 2 : index
    %1104 = vector.load %arg9[%c2_302, %c1_303, %c2_304] : memref<8x10x10xf32, #tpu.memory_space<vmem>>, vector<1x8x8xf32>
    %1105 = vector.shape_cast %1104 : vector<1x8x8xf32> to vector<8x8xf32>
    %1106 = vector.broadcast %1103 : f32 to vector<8x8xf32>
    %1107 = arith.mulf %1106, %1105 : vector<8x8xf32>
    %1108 = arith.addf %1102, %1107 : vector<8x8xf32>
    %c330 = arith.constant 330 : index
    %1109 = memref.load %arg1[%c330] : memref<658xf32, #tpu.memory_space<smem>>
    %c2_305 = arith.constant 2 : index
    %c2_306 = arith.constant 2 : index
    %c0_307 = arith.constant 0 : index
    %1110 = vector.load %arg9[%c2_305, %c2_306, %c0_307] : memref<8x10x10xf32, #tpu.memory_space<vmem>>, vector<1x8x8xf32>
    %1111 = vector.shape_cast %1110 : vector<1x8x8xf32> to vector<8x8xf32>
    %1112 = vector.broadcast %1109 : f32 to vector<8x8xf32>
    %1113 = arith.mulf %1112, %1111 : vector<8x8xf32>
    %1114 = arith.addf %1108, %1113 : vector<8x8xf32>
    %c331 = arith.constant 331 : index
    %1115 = memref.load %arg1[%c331] : memref<658xf32, #tpu.memory_space<smem>>
    %c2_308 = arith.constant 2 : index
    %c2_309 = arith.constant 2 : index
    %c1_310 = arith.constant 1 : index
    %1116 = vector.load %arg9[%c2_308, %c2_309, %c1_310] : memref<8x10x10xf32, #tpu.memory_space<vmem>>, vector<1x8x8xf32>
    %1117 = vector.shape_cast %1116 : vector<1x8x8xf32> to vector<8x8xf32>
    %1118 = vector.broadcast %1115 : f32 to vector<8x8xf32>
    %1119 = arith.mulf %1118, %1117 : vector<8x8xf32>
    %1120 = arith.addf %1114, %1119 : vector<8x8xf32>
    %c332 = arith.constant 332 : index
    %1121 = memref.load %arg1[%c332] : memref<658xf32, #tpu.memory_space<smem>>
    %c2_311 = arith.constant 2 : index
    %c2_312 = arith.constant 2 : index
    %c2_313 = arith.constant 2 : index
    %1122 = vector.load %arg9[%c2_311, %c2_312, %c2_313] : memref<8x10x10xf32, #tpu.memory_space<vmem>>, vector<1x8x8xf32>
    %1123 = vector.shape_cast %1122 : vector<1x8x8xf32> to vector<8x8xf32>
    %1124 = vector.broadcast %1121 : f32 to vector<8x8xf32>
    %1125 = arith.mulf %1124, %1123 : vector<8x8xf32>
    %1126 = arith.addf %1120, %1125 : vector<8x8xf32>
    %c380 = arith.constant 380 : index
    %1127 = memref.load %arg1[%c380] : memref<658xf32, #tpu.memory_space<smem>>
    %1128 = vector.broadcast %1127 : f32 to vector<8x8xf32>
    %1129 = arith.mulf %1126, %1128 : vector<8x8xf32>
    %c388 = arith.constant 388 : index
    %1130 = memref.load %arg1[%c388] : memref<658xf32, #tpu.memory_space<smem>>
    %1131 = vector.broadcast %1130 : f32 to vector<8x8xf32>
    %1132 = arith.addf %1129, %1131 : vector<8x8xf32>
    %cst_314 = arith.constant 0.000000e+00 : f32
    %1133 = vector.broadcast %cst_314 : f32 to vector<8x8xf32>
    %1134 = arith.maximumf %1132, %1133 : vector<8x8xf32>
    %c333 = arith.constant 333 : index
    %1135 = memref.load %arg1[%c333] : memref<658xf32, #tpu.memory_space<smem>>
    %c3_315 = arith.constant 3 : index
    %c0_316 = arith.constant 0 : index
    %c0_317 = arith.constant 0 : index
    %1136 = vector.load %arg9[%c3_315, %c0_316, %c0_317] : memref<8x10x10xf32, #tpu.memory_space<vmem>>, vector<1x8x8xf32>
    %1137 = vector.shape_cast %1136 : vector<1x8x8xf32> to vector<8x8xf32>
    %1138 = vector.broadcast %1135 : f32 to vector<8x8xf32>
    %1139 = arith.mulf %1138, %1137 : vector<8x8xf32>
    %c334 = arith.constant 334 : index
    %1140 = memref.load %arg1[%c334] : memref<658xf32, #tpu.memory_space<smem>>
    %c3_318 = arith.constant 3 : index
    %c0_319 = arith.constant 0 : index
    %c1_320 = arith.constant 1 : index
    %1141 = vector.load %arg9[%c3_318, %c0_319, %c1_320] : memref<8x10x10xf32, #tpu.memory_space<vmem>>, vector<1x8x8xf32>
    %1142 = vector.shape_cast %1141 : vector<1x8x8xf32> to vector<8x8xf32>
    %1143 = vector.broadcast %1140 : f32 to vector<8x8xf32>
    %1144 = arith.mulf %1143, %1142 : vector<8x8xf32>
    %1145 = arith.addf %1139, %1144 : vector<8x8xf32>
    %c335 = arith.constant 335 : index
    %1146 = memref.load %arg1[%c335] : memref<658xf32, #tpu.memory_space<smem>>
    %c3_321 = arith.constant 3 : index
    %c0_322 = arith.constant 0 : index
    %c2_323 = arith.constant 2 : index
    %1147 = vector.load %arg9[%c3_321, %c0_322, %c2_323] : memref<8x10x10xf32, #tpu.memory_space<vmem>>, vector<1x8x8xf32>
    %1148 = vector.shape_cast %1147 : vector<1x8x8xf32> to vector<8x8xf32>
    %1149 = vector.broadcast %1146 : f32 to vector<8x8xf32>
    %1150 = arith.mulf %1149, %1148 : vector<8x8xf32>
    %1151 = arith.addf %1145, %1150 : vector<8x8xf32>
    %c336 = arith.constant 336 : index
    %1152 = memref.load %arg1[%c336] : memref<658xf32, #tpu.memory_space<smem>>
    %c3_324 = arith.constant 3 : index
    %c1_325 = arith.constant 1 : index
    %c0_326 = arith.constant 0 : index
    %1153 = vector.load %arg9[%c3_324, %c1_325, %c0_326] : memref<8x10x10xf32, #tpu.memory_space<vmem>>, vector<1x8x8xf32>
    %1154 = vector.shape_cast %1153 : vector<1x8x8xf32> to vector<8x8xf32>
    %1155 = vector.broadcast %1152 : f32 to vector<8x8xf32>
    %1156 = arith.mulf %1155, %1154 : vector<8x8xf32>
    %1157 = arith.addf %1151, %1156 : vector<8x8xf32>
    %c337 = arith.constant 337 : index
    %1158 = memref.load %arg1[%c337] : memref<658xf32, #tpu.memory_space<smem>>
    %c3_327 = arith.constant 3 : index
    %c1_328 = arith.constant 1 : index
    %c1_329 = arith.constant 1 : index
    %1159 = vector.load %arg9[%c3_327, %c1_328, %c1_329] : memref<8x10x10xf32, #tpu.memory_space<vmem>>, vector<1x8x8xf32>
    %1160 = vector.shape_cast %1159 : vector<1x8x8xf32> to vector<8x8xf32>
    %1161 = vector.broadcast %1158 : f32 to vector<8x8xf32>
    %1162 = arith.mulf %1161, %1160 : vector<8x8xf32>
    %1163 = arith.addf %1157, %1162 : vector<8x8xf32>
    %c338 = arith.constant 338 : index
    %1164 = memref.load %arg1[%c338] : memref<658xf32, #tpu.memory_space<smem>>
    %c3_330 = arith.constant 3 : index
    %c1_331 = arith.constant 1 : index
    %c2_332 = arith.constant 2 : index
    %1165 = vector.load %arg9[%c3_330, %c1_331, %c2_332] : memref<8x10x10xf32, #tpu.memory_space<vmem>>, vector<1x8x8xf32>
    %1166 = vector.shape_cast %1165 : vector<1x8x8xf32> to vector<8x8xf32>
    %1167 = vector.broadcast %1164 : f32 to vector<8x8xf32>
    %1168 = arith.mulf %1167, %1166 : vector<8x8xf32>
    %1169 = arith.addf %1163, %1168 : vector<8x8xf32>
    %c339 = arith.constant 339 : index
    %1170 = memref.load %arg1[%c339] : memref<658xf32, #tpu.memory_space<smem>>
    %c3_333 = arith.constant 3 : index
    %c2_334 = arith.constant 2 : index
    %c0_335 = arith.constant 0 : index
    %1171 = vector.load %arg9[%c3_333, %c2_334, %c0_335] : memref<8x10x10xf32, #tpu.memory_space<vmem>>, vector<1x8x8xf32>
    %1172 = vector.shape_cast %1171 : vector<1x8x8xf32> to vector<8x8xf32>
    %1173 = vector.broadcast %1170 : f32 to vector<8x8xf32>
    %1174 = arith.mulf %1173, %1172 : vector<8x8xf32>
    %1175 = arith.addf %1169, %1174 : vector<8x8xf32>
    %c340 = arith.constant 340 : index
    %1176 = memref.load %arg1[%c340] : memref<658xf32, #tpu.memory_space<smem>>
    %c3_336 = arith.constant 3 : index
    %c2_337 = arith.constant 2 : index
    %c1_338 = arith.constant 1 : index
    %1177 = vector.load %arg9[%c3_336, %c2_337, %c1_338] : memref<8x10x10xf32, #tpu.memory_space<vmem>>, vector<1x8x8xf32>
    %1178 = vector.shape_cast %1177 : vector<1x8x8xf32> to vector<8x8xf32>
    %1179 = vector.broadcast %1176 : f32 to vector<8x8xf32>
    %1180 = arith.mulf %1179, %1178 : vector<8x8xf32>
    %1181 = arith.addf %1175, %1180 : vector<8x8xf32>
    %c341 = arith.constant 341 : index
    %1182 = memref.load %arg1[%c341] : memref<658xf32, #tpu.memory_space<smem>>
    %c3_339 = arith.constant 3 : index
    %c2_340 = arith.constant 2 : index
    %c2_341 = arith.constant 2 : index
    %1183 = vector.load %arg9[%c3_339, %c2_340, %c2_341] : memref<8x10x10xf32, #tpu.memory_space<vmem>>, vector<1x8x8xf32>
    %1184 = vector.shape_cast %1183 : vector<1x8x8xf32> to vector<8x8xf32>
    %1185 = vector.broadcast %1182 : f32 to vector<8x8xf32>
    %1186 = arith.mulf %1185, %1184 : vector<8x8xf32>
    %1187 = arith.addf %1181, %1186 : vector<8x8xf32>
    %c381 = arith.constant 381 : index
    %1188 = memref.load %arg1[%c381] : memref<658xf32, #tpu.memory_space<smem>>
    %1189 = vector.broadcast %1188 : f32 to vector<8x8xf32>
    %1190 = arith.mulf %1187, %1189 : vector<8x8xf32>
    %c389 = arith.constant 389 : index
    %1191 = memref.load %arg1[%c389] : memref<658xf32, #tpu.memory_space<smem>>
    %1192 = vector.broadcast %1191 : f32 to vector<8x8xf32>
    %1193 = arith.addf %1190, %1192 : vector<8x8xf32>
    %cst_342 = arith.constant 0.000000e+00 : f32
    %1194 = vector.broadcast %cst_342 : f32 to vector<8x8xf32>
    %1195 = arith.maximumf %1193, %1194 : vector<8x8xf32>
    %c342 = arith.constant 342 : index
    %1196 = memref.load %arg1[%c342] : memref<658xf32, #tpu.memory_space<smem>>
    %c4_343 = arith.constant 4 : index
    %c0_344 = arith.constant 0 : index
    %c0_345 = arith.constant 0 : index
    %1197 = vector.load %arg9[%c4_343, %c0_344, %c0_345] : memref<8x10x10xf32, #tpu.memory_space<vmem>>, vector<1x8x8xf32>
    %1198 = vector.shape_cast %1197 : vector<1x8x8xf32> to vector<8x8xf32>
    %1199 = vector.broadcast %1196 : f32 to vector<8x8xf32>
    %1200 = arith.mulf %1199, %1198 : vector<8x8xf32>
    %c343 = arith.constant 343 : index
    %1201 = memref.load %arg1[%c343] : memref<658xf32, #tpu.memory_space<smem>>
    %c4_346 = arith.constant 4 : index
    %c0_347 = arith.constant 0 : index
    %c1_348 = arith.constant 1 : index
    %1202 = vector.load %arg9[%c4_346, %c0_347, %c1_348] : memref<8x10x10xf32, #tpu.memory_space<vmem>>, vector<1x8x8xf32>
    %1203 = vector.shape_cast %1202 : vector<1x8x8xf32> to vector<8x8xf32>
    %1204 = vector.broadcast %1201 : f32 to vector<8x8xf32>
    %1205 = arith.mulf %1204, %1203 : vector<8x8xf32>
    %1206 = arith.addf %1200, %1205 : vector<8x8xf32>
    %c344 = arith.constant 344 : index
    %1207 = memref.load %arg1[%c344] : memref<658xf32, #tpu.memory_space<smem>>
    %c4_349 = arith.constant 4 : index
    %c0_350 = arith.constant 0 : index
    %c2_351 = arith.constant 2 : index
    %1208 = vector.load %arg9[%c4_349, %c0_350, %c2_351] : memref<8x10x10xf32, #tpu.memory_space<vmem>>, vector<1x8x8xf32>
    %1209 = vector.shape_cast %1208 : vector<1x8x8xf32> to vector<8x8xf32>
    %1210 = vector.broadcast %1207 : f32 to vector<8x8xf32>
    %1211 = arith.mulf %1210, %1209 : vector<8x8xf32>
    %1212 = arith.addf %1206, %1211 : vector<8x8xf32>
    %c345 = arith.constant 345 : index
    %1213 = memref.load %arg1[%c345] : memref<658xf32, #tpu.memory_space<smem>>
    %c4_352 = arith.constant 4 : index
    %c1_353 = arith.constant 1 : index
    %c0_354 = arith.constant 0 : index
    %1214 = vector.load %arg9[%c4_352, %c1_353, %c0_354] : memref<8x10x10xf32, #tpu.memory_space<vmem>>, vector<1x8x8xf32>
    %1215 = vector.shape_cast %1214 : vector<1x8x8xf32> to vector<8x8xf32>
    %1216 = vector.broadcast %1213 : f32 to vector<8x8xf32>
    %1217 = arith.mulf %1216, %1215 : vector<8x8xf32>
    %1218 = arith.addf %1212, %1217 : vector<8x8xf32>
    %c346 = arith.constant 346 : index
    %1219 = memref.load %arg1[%c346] : memref<658xf32, #tpu.memory_space<smem>>
    %c4_355 = arith.constant 4 : index
    %c1_356 = arith.constant 1 : index
    %c1_357 = arith.constant 1 : index
    %1220 = vector.load %arg9[%c4_355, %c1_356, %c1_357] : memref<8x10x10xf32, #tpu.memory_space<vmem>>, vector<1x8x8xf32>
    %1221 = vector.shape_cast %1220 : vector<1x8x8xf32> to vector<8x8xf32>
    %1222 = vector.broadcast %1219 : f32 to vector<8x8xf32>
    %1223 = arith.mulf %1222, %1221 : vector<8x8xf32>
    %1224 = arith.addf %1218, %1223 : vector<8x8xf32>
    %c347 = arith.constant 347 : index
    %1225 = memref.load %arg1[%c347] : memref<658xf32, #tpu.memory_space<smem>>
    %c4_358 = arith.constant 4 : index
    %c1_359 = arith.constant 1 : index
    %c2_360 = arith.constant 2 : index
    %1226 = vector.load %arg9[%c4_358, %c1_359, %c2_360] : memref<8x10x10xf32, #tpu.memory_space<vmem>>, vector<1x8x8xf32>
    %1227 = vector.shape_cast %1226 : vector<1x8x8xf32> to vector<8x8xf32>
    %1228 = vector.broadcast %1225 : f32 to vector<8x8xf32>
    %1229 = arith.mulf %1228, %1227 : vector<8x8xf32>
    %1230 = arith.addf %1224, %1229 : vector<8x8xf32>
    %c348 = arith.constant 348 : index
    %1231 = memref.load %arg1[%c348] : memref<658xf32, #tpu.memory_space<smem>>
    %c4_361 = arith.constant 4 : index
    %c2_362 = arith.constant 2 : index
    %c0_363 = arith.constant 0 : index
    %1232 = vector.load %arg9[%c4_361, %c2_362, %c0_363] : memref<8x10x10xf32, #tpu.memory_space<vmem>>, vector<1x8x8xf32>
    %1233 = vector.shape_cast %1232 : vector<1x8x8xf32> to vector<8x8xf32>
    %1234 = vector.broadcast %1231 : f32 to vector<8x8xf32>
    %1235 = arith.mulf %1234, %1233 : vector<8x8xf32>
    %1236 = arith.addf %1230, %1235 : vector<8x8xf32>
    %c349 = arith.constant 349 : index
    %1237 = memref.load %arg1[%c349] : memref<658xf32, #tpu.memory_space<smem>>
    %c4_364 = arith.constant 4 : index
    %c2_365 = arith.constant 2 : index
    %c1_366 = arith.constant 1 : index
    %1238 = vector.load %arg9[%c4_364, %c2_365, %c1_366] : memref<8x10x10xf32, #tpu.memory_space<vmem>>, vector<1x8x8xf32>
    %1239 = vector.shape_cast %1238 : vector<1x8x8xf32> to vector<8x8xf32>
    %1240 = vector.broadcast %1237 : f32 to vector<8x8xf32>
    %1241 = arith.mulf %1240, %1239 : vector<8x8xf32>
    %1242 = arith.addf %1236, %1241 : vector<8x8xf32>
    %c350 = arith.constant 350 : index
    %1243 = memref.load %arg1[%c350] : memref<658xf32, #tpu.memory_space<smem>>
    %c4_367 = arith.constant 4 : index
    %c2_368 = arith.constant 2 : index
    %c2_369 = arith.constant 2 : index
    %1244 = vector.load %arg9[%c4_367, %c2_368, %c2_369] : memref<8x10x10xf32, #tpu.memory_space<vmem>>, vector<1x8x8xf32>
    %1245 = vector.shape_cast %1244 : vector<1x8x8xf32> to vector<8x8xf32>
    %1246 = vector.broadcast %1243 : f32 to vector<8x8xf32>
    %1247 = arith.mulf %1246, %1245 : vector<8x8xf32>
    %1248 = arith.addf %1242, %1247 : vector<8x8xf32>
    %c382 = arith.constant 382 : index
    %1249 = memref.load %arg1[%c382] : memref<658xf32, #tpu.memory_space<smem>>
    %1250 = vector.broadcast %1249 : f32 to vector<8x8xf32>
    %1251 = arith.mulf %1248, %1250 : vector<8x8xf32>
    %c390 = arith.constant 390 : index
    %1252 = memref.load %arg1[%c390] : memref<658xf32, #tpu.memory_space<smem>>
    %1253 = vector.broadcast %1252 : f32 to vector<8x8xf32>
    %1254 = arith.addf %1251, %1253 : vector<8x8xf32>
    %cst_370 = arith.constant 0.000000e+00 : f32
    %1255 = vector.broadcast %cst_370 : f32 to vector<8x8xf32>
    %1256 = arith.maximumf %1254, %1255 : vector<8x8xf32>
    %c351 = arith.constant 351 : index
    %1257 = memref.load %arg1[%c351] : memref<658xf32, #tpu.memory_space<smem>>
    %c5_371 = arith.constant 5 : index
    %c0_372 = arith.constant 0 : index
    %c0_373 = arith.constant 0 : index
    %1258 = vector.load %arg9[%c5_371, %c0_372, %c0_373] : memref<8x10x10xf32, #tpu.memory_space<vmem>>, vector<1x8x8xf32>
    %1259 = vector.shape_cast %1258 : vector<1x8x8xf32> to vector<8x8xf32>
    %1260 = vector.broadcast %1257 : f32 to vector<8x8xf32>
    %1261 = arith.mulf %1260, %1259 : vector<8x8xf32>
    %c352 = arith.constant 352 : index
    %1262 = memref.load %arg1[%c352] : memref<658xf32, #tpu.memory_space<smem>>
    %c5_374 = arith.constant 5 : index
    %c0_375 = arith.constant 0 : index
    %c1_376 = arith.constant 1 : index
    %1263 = vector.load %arg9[%c5_374, %c0_375, %c1_376] : memref<8x10x10xf32, #tpu.memory_space<vmem>>, vector<1x8x8xf32>
    %1264 = vector.shape_cast %1263 : vector<1x8x8xf32> to vector<8x8xf32>
    %1265 = vector.broadcast %1262 : f32 to vector<8x8xf32>
    %1266 = arith.mulf %1265, %1264 : vector<8x8xf32>
    %1267 = arith.addf %1261, %1266 : vector<8x8xf32>
    %c353 = arith.constant 353 : index
    %1268 = memref.load %arg1[%c353] : memref<658xf32, #tpu.memory_space<smem>>
    %c5_377 = arith.constant 5 : index
    %c0_378 = arith.constant 0 : index
    %c2_379 = arith.constant 2 : index
    %1269 = vector.load %arg9[%c5_377, %c0_378, %c2_379] : memref<8x10x10xf32, #tpu.memory_space<vmem>>, vector<1x8x8xf32>
    %1270 = vector.shape_cast %1269 : vector<1x8x8xf32> to vector<8x8xf32>
    %1271 = vector.broadcast %1268 : f32 to vector<8x8xf32>
    %1272 = arith.mulf %1271, %1270 : vector<8x8xf32>
    %1273 = arith.addf %1267, %1272 : vector<8x8xf32>
    %c354 = arith.constant 354 : index
    %1274 = memref.load %arg1[%c354] : memref<658xf32, #tpu.memory_space<smem>>
    %c5_380 = arith.constant 5 : index
    %c1_381 = arith.constant 1 : index
    %c0_382 = arith.constant 0 : index
    %1275 = vector.load %arg9[%c5_380, %c1_381, %c0_382] : memref<8x10x10xf32, #tpu.memory_space<vmem>>, vector<1x8x8xf32>
    %1276 = vector.shape_cast %1275 : vector<1x8x8xf32> to vector<8x8xf32>
    %1277 = vector.broadcast %1274 : f32 to vector<8x8xf32>
    %1278 = arith.mulf %1277, %1276 : vector<8x8xf32>
    %1279 = arith.addf %1273, %1278 : vector<8x8xf32>
    %c355 = arith.constant 355 : index
    %1280 = memref.load %arg1[%c355] : memref<658xf32, #tpu.memory_space<smem>>
    %c5_383 = arith.constant 5 : index
    %c1_384 = arith.constant 1 : index
    %c1_385 = arith.constant 1 : index
    %1281 = vector.load %arg9[%c5_383, %c1_384, %c1_385] : memref<8x10x10xf32, #tpu.memory_space<vmem>>, vector<1x8x8xf32>
    %1282 = vector.shape_cast %1281 : vector<1x8x8xf32> to vector<8x8xf32>
    %1283 = vector.broadcast %1280 : f32 to vector<8x8xf32>
    %1284 = arith.mulf %1283, %1282 : vector<8x8xf32>
    %1285 = arith.addf %1279, %1284 : vector<8x8xf32>
    %c356 = arith.constant 356 : index
    %1286 = memref.load %arg1[%c356] : memref<658xf32, #tpu.memory_space<smem>>
    %c5_386 = arith.constant 5 : index
    %c1_387 = arith.constant 1 : index
    %c2_388 = arith.constant 2 : index
    %1287 = vector.load %arg9[%c5_386, %c1_387, %c2_388] : memref<8x10x10xf32, #tpu.memory_space<vmem>>, vector<1x8x8xf32>
    %1288 = vector.shape_cast %1287 : vector<1x8x8xf32> to vector<8x8xf32>
    %1289 = vector.broadcast %1286 : f32 to vector<8x8xf32>
    %1290 = arith.mulf %1289, %1288 : vector<8x8xf32>
    %1291 = arith.addf %1285, %1290 : vector<8x8xf32>
    %c357 = arith.constant 357 : index
    %1292 = memref.load %arg1[%c357] : memref<658xf32, #tpu.memory_space<smem>>
    %c5_389 = arith.constant 5 : index
    %c2_390 = arith.constant 2 : index
    %c0_391 = arith.constant 0 : index
    %1293 = vector.load %arg9[%c5_389, %c2_390, %c0_391] : memref<8x10x10xf32, #tpu.memory_space<vmem>>, vector<1x8x8xf32>
    %1294 = vector.shape_cast %1293 : vector<1x8x8xf32> to vector<8x8xf32>
    %1295 = vector.broadcast %1292 : f32 to vector<8x8xf32>
    %1296 = arith.mulf %1295, %1294 : vector<8x8xf32>
    %1297 = arith.addf %1291, %1296 : vector<8x8xf32>
    %c358 = arith.constant 358 : index
    %1298 = memref.load %arg1[%c358] : memref<658xf32, #tpu.memory_space<smem>>
    %c5_392 = arith.constant 5 : index
    %c2_393 = arith.constant 2 : index
    %c1_394 = arith.constant 1 : index
    %1299 = vector.load %arg9[%c5_392, %c2_393, %c1_394] : memref<8x10x10xf32, #tpu.memory_space<vmem>>, vector<1x8x8xf32>
    %1300 = vector.shape_cast %1299 : vector<1x8x8xf32> to vector<8x8xf32>
    %1301 = vector.broadcast %1298 : f32 to vector<8x8xf32>
    %1302 = arith.mulf %1301, %1300 : vector<8x8xf32>
    %1303 = arith.addf %1297, %1302 : vector<8x8xf32>
    %c359 = arith.constant 359 : index
    %1304 = memref.load %arg1[%c359] : memref<658xf32, #tpu.memory_space<smem>>
    %c5_395 = arith.constant 5 : index
    %c2_396 = arith.constant 2 : index
    %c2_397 = arith.constant 2 : index
    %1305 = vector.load %arg9[%c5_395, %c2_396, %c2_397] : memref<8x10x10xf32, #tpu.memory_space<vmem>>, vector<1x8x8xf32>
    %1306 = vector.shape_cast %1305 : vector<1x8x8xf32> to vector<8x8xf32>
    %1307 = vector.broadcast %1304 : f32 to vector<8x8xf32>
    %1308 = arith.mulf %1307, %1306 : vector<8x8xf32>
    %1309 = arith.addf %1303, %1308 : vector<8x8xf32>
    %c383 = arith.constant 383 : index
    %1310 = memref.load %arg1[%c383] : memref<658xf32, #tpu.memory_space<smem>>
    %1311 = vector.broadcast %1310 : f32 to vector<8x8xf32>
    %1312 = arith.mulf %1309, %1311 : vector<8x8xf32>
    %c391 = arith.constant 391 : index
    %1313 = memref.load %arg1[%c391] : memref<658xf32, #tpu.memory_space<smem>>
    %1314 = vector.broadcast %1313 : f32 to vector<8x8xf32>
    %1315 = arith.addf %1312, %1314 : vector<8x8xf32>
    %cst_398 = arith.constant 0.000000e+00 : f32
    %1316 = vector.broadcast %cst_398 : f32 to vector<8x8xf32>
    %1317 = arith.maximumf %1315, %1316 : vector<8x8xf32>
    %c360 = arith.constant 360 : index
    %1318 = memref.load %arg1[%c360] : memref<658xf32, #tpu.memory_space<smem>>
    %c6_399 = arith.constant 6 : index
    %c0_400 = arith.constant 0 : index
    %c0_401 = arith.constant 0 : index
    %1319 = vector.load %arg9[%c6_399, %c0_400, %c0_401] : memref<8x10x10xf32, #tpu.memory_space<vmem>>, vector<1x8x8xf32>
    %1320 = vector.shape_cast %1319 : vector<1x8x8xf32> to vector<8x8xf32>
    %1321 = vector.broadcast %1318 : f32 to vector<8x8xf32>
    %1322 = arith.mulf %1321, %1320 : vector<8x8xf32>
    %c361 = arith.constant 361 : index
    %1323 = memref.load %arg1[%c361] : memref<658xf32, #tpu.memory_space<smem>>
    %c6_402 = arith.constant 6 : index
    %c0_403 = arith.constant 0 : index
    %c1_404 = arith.constant 1 : index
    %1324 = vector.load %arg9[%c6_402, %c0_403, %c1_404] : memref<8x10x10xf32, #tpu.memory_space<vmem>>, vector<1x8x8xf32>
    %1325 = vector.shape_cast %1324 : vector<1x8x8xf32> to vector<8x8xf32>
    %1326 = vector.broadcast %1323 : f32 to vector<8x8xf32>
    %1327 = arith.mulf %1326, %1325 : vector<8x8xf32>
    %1328 = arith.addf %1322, %1327 : vector<8x8xf32>
    %c362 = arith.constant 362 : index
    %1329 = memref.load %arg1[%c362] : memref<658xf32, #tpu.memory_space<smem>>
    %c6_405 = arith.constant 6 : index
    %c0_406 = arith.constant 0 : index
    %c2_407 = arith.constant 2 : index
    %1330 = vector.load %arg9[%c6_405, %c0_406, %c2_407] : memref<8x10x10xf32, #tpu.memory_space<vmem>>, vector<1x8x8xf32>
    %1331 = vector.shape_cast %1330 : vector<1x8x8xf32> to vector<8x8xf32>
    %1332 = vector.broadcast %1329 : f32 to vector<8x8xf32>
    %1333 = arith.mulf %1332, %1331 : vector<8x8xf32>
    %1334 = arith.addf %1328, %1333 : vector<8x8xf32>
    %c363 = arith.constant 363 : index
    %1335 = memref.load %arg1[%c363] : memref<658xf32, #tpu.memory_space<smem>>
    %c6_408 = arith.constant 6 : index
    %c1_409 = arith.constant 1 : index
    %c0_410 = arith.constant 0 : index
    %1336 = vector.load %arg9[%c6_408, %c1_409, %c0_410] : memref<8x10x10xf32, #tpu.memory_space<vmem>>, vector<1x8x8xf32>
    %1337 = vector.shape_cast %1336 : vector<1x8x8xf32> to vector<8x8xf32>
    %1338 = vector.broadcast %1335 : f32 to vector<8x8xf32>
    %1339 = arith.mulf %1338, %1337 : vector<8x8xf32>
    %1340 = arith.addf %1334, %1339 : vector<8x8xf32>
    %c364 = arith.constant 364 : index
    %1341 = memref.load %arg1[%c364] : memref<658xf32, #tpu.memory_space<smem>>
    %c6_411 = arith.constant 6 : index
    %c1_412 = arith.constant 1 : index
    %c1_413 = arith.constant 1 : index
    %1342 = vector.load %arg9[%c6_411, %c1_412, %c1_413] : memref<8x10x10xf32, #tpu.memory_space<vmem>>, vector<1x8x8xf32>
    %1343 = vector.shape_cast %1342 : vector<1x8x8xf32> to vector<8x8xf32>
    %1344 = vector.broadcast %1341 : f32 to vector<8x8xf32>
    %1345 = arith.mulf %1344, %1343 : vector<8x8xf32>
    %1346 = arith.addf %1340, %1345 : vector<8x8xf32>
    %c365 = arith.constant 365 : index
    %1347 = memref.load %arg1[%c365] : memref<658xf32, #tpu.memory_space<smem>>
    %c6_414 = arith.constant 6 : index
    %c1_415 = arith.constant 1 : index
    %c2_416 = arith.constant 2 : index
    %1348 = vector.load %arg9[%c6_414, %c1_415, %c2_416] : memref<8x10x10xf32, #tpu.memory_space<vmem>>, vector<1x8x8xf32>
    %1349 = vector.shape_cast %1348 : vector<1x8x8xf32> to vector<8x8xf32>
    %1350 = vector.broadcast %1347 : f32 to vector<8x8xf32>
    %1351 = arith.mulf %1350, %1349 : vector<8x8xf32>
    %1352 = arith.addf %1346, %1351 : vector<8x8xf32>
    %c366 = arith.constant 366 : index
    %1353 = memref.load %arg1[%c366] : memref<658xf32, #tpu.memory_space<smem>>
    %c6_417 = arith.constant 6 : index
    %c2_418 = arith.constant 2 : index
    %c0_419 = arith.constant 0 : index
    %1354 = vector.load %arg9[%c6_417, %c2_418, %c0_419] : memref<8x10x10xf32, #tpu.memory_space<vmem>>, vector<1x8x8xf32>
    %1355 = vector.shape_cast %1354 : vector<1x8x8xf32> to vector<8x8xf32>
    %1356 = vector.broadcast %1353 : f32 to vector<8x8xf32>
    %1357 = arith.mulf %1356, %1355 : vector<8x8xf32>
    %1358 = arith.addf %1352, %1357 : vector<8x8xf32>
    %c367 = arith.constant 367 : index
    %1359 = memref.load %arg1[%c367] : memref<658xf32, #tpu.memory_space<smem>>
    %c6_420 = arith.constant 6 : index
    %c2_421 = arith.constant 2 : index
    %c1_422 = arith.constant 1 : index
    %1360 = vector.load %arg9[%c6_420, %c2_421, %c1_422] : memref<8x10x10xf32, #tpu.memory_space<vmem>>, vector<1x8x8xf32>
    %1361 = vector.shape_cast %1360 : vector<1x8x8xf32> to vector<8x8xf32>
    %1362 = vector.broadcast %1359 : f32 to vector<8x8xf32>
    %1363 = arith.mulf %1362, %1361 : vector<8x8xf32>
    %1364 = arith.addf %1358, %1363 : vector<8x8xf32>
    %c368 = arith.constant 368 : index
    %1365 = memref.load %arg1[%c368] : memref<658xf32, #tpu.memory_space<smem>>
    %c6_423 = arith.constant 6 : index
    %c2_424 = arith.constant 2 : index
    %c2_425 = arith.constant 2 : index
    %1366 = vector.load %arg9[%c6_423, %c2_424, %c2_425] : memref<8x10x10xf32, #tpu.memory_space<vmem>>, vector<1x8x8xf32>
    %1367 = vector.shape_cast %1366 : vector<1x8x8xf32> to vector<8x8xf32>
    %1368 = vector.broadcast %1365 : f32 to vector<8x8xf32>
    %1369 = arith.mulf %1368, %1367 : vector<8x8xf32>
    %1370 = arith.addf %1364, %1369 : vector<8x8xf32>
    %c384 = arith.constant 384 : index
    %1371 = memref.load %arg1[%c384] : memref<658xf32, #tpu.memory_space<smem>>
    %1372 = vector.broadcast %1371 : f32 to vector<8x8xf32>
    %1373 = arith.mulf %1370, %1372 : vector<8x8xf32>
    %c392 = arith.constant 392 : index
    %1374 = memref.load %arg1[%c392] : memref<658xf32, #tpu.memory_space<smem>>
    %1375 = vector.broadcast %1374 : f32 to vector<8x8xf32>
    %1376 = arith.addf %1373, %1375 : vector<8x8xf32>
    %cst_426 = arith.constant 0.000000e+00 : f32
    %1377 = vector.broadcast %cst_426 : f32 to vector<8x8xf32>
    %1378 = arith.maximumf %1376, %1377 : vector<8x8xf32>
    %c369 = arith.constant 369 : index
    %1379 = memref.load %arg1[%c369] : memref<658xf32, #tpu.memory_space<smem>>
    %c7_427 = arith.constant 7 : index
    %c0_428 = arith.constant 0 : index
    %c0_429 = arith.constant 0 : index
    %1380 = vector.load %arg9[%c7_427, %c0_428, %c0_429] : memref<8x10x10xf32, #tpu.memory_space<vmem>>, vector<1x8x8xf32>
    %1381 = vector.shape_cast %1380 : vector<1x8x8xf32> to vector<8x8xf32>
    %1382 = vector.broadcast %1379 : f32 to vector<8x8xf32>
    %1383 = arith.mulf %1382, %1381 : vector<8x8xf32>
    %c370 = arith.constant 370 : index
    %1384 = memref.load %arg1[%c370] : memref<658xf32, #tpu.memory_space<smem>>
    %c7_430 = arith.constant 7 : index
    %c0_431 = arith.constant 0 : index
    %c1_432 = arith.constant 1 : index
    %1385 = vector.load %arg9[%c7_430, %c0_431, %c1_432] : memref<8x10x10xf32, #tpu.memory_space<vmem>>, vector<1x8x8xf32>
    %1386 = vector.shape_cast %1385 : vector<1x8x8xf32> to vector<8x8xf32>
    %1387 = vector.broadcast %1384 : f32 to vector<8x8xf32>
    %1388 = arith.mulf %1387, %1386 : vector<8x8xf32>
    %1389 = arith.addf %1383, %1388 : vector<8x8xf32>
    %c371 = arith.constant 371 : index
    %1390 = memref.load %arg1[%c371] : memref<658xf32, #tpu.memory_space<smem>>
    %c7_433 = arith.constant 7 : index
    %c0_434 = arith.constant 0 : index
    %c2_435 = arith.constant 2 : index
    %1391 = vector.load %arg9[%c7_433, %c0_434, %c2_435] : memref<8x10x10xf32, #tpu.memory_space<vmem>>, vector<1x8x8xf32>
    %1392 = vector.shape_cast %1391 : vector<1x8x8xf32> to vector<8x8xf32>
    %1393 = vector.broadcast %1390 : f32 to vector<8x8xf32>
    %1394 = arith.mulf %1393, %1392 : vector<8x8xf32>
    %1395 = arith.addf %1389, %1394 : vector<8x8xf32>
    %c372 = arith.constant 372 : index
    %1396 = memref.load %arg1[%c372] : memref<658xf32, #tpu.memory_space<smem>>
    %c7_436 = arith.constant 7 : index
    %c1_437 = arith.constant 1 : index
    %c0_438 = arith.constant 0 : index
    %1397 = vector.load %arg9[%c7_436, %c1_437, %c0_438] : memref<8x10x10xf32, #tpu.memory_space<vmem>>, vector<1x8x8xf32>
    %1398 = vector.shape_cast %1397 : vector<1x8x8xf32> to vector<8x8xf32>
    %1399 = vector.broadcast %1396 : f32 to vector<8x8xf32>
    %1400 = arith.mulf %1399, %1398 : vector<8x8xf32>
    %1401 = arith.addf %1395, %1400 : vector<8x8xf32>
    %c373 = arith.constant 373 : index
    %1402 = memref.load %arg1[%c373] : memref<658xf32, #tpu.memory_space<smem>>
    %c7_439 = arith.constant 7 : index
    %c1_440 = arith.constant 1 : index
    %c1_441 = arith.constant 1 : index
    %1403 = vector.load %arg9[%c7_439, %c1_440, %c1_441] : memref<8x10x10xf32, #tpu.memory_space<vmem>>, vector<1x8x8xf32>
    %1404 = vector.shape_cast %1403 : vector<1x8x8xf32> to vector<8x8xf32>
    %1405 = vector.broadcast %1402 : f32 to vector<8x8xf32>
    %1406 = arith.mulf %1405, %1404 : vector<8x8xf32>
    %1407 = arith.addf %1401, %1406 : vector<8x8xf32>
    %c374 = arith.constant 374 : index
    %1408 = memref.load %arg1[%c374] : memref<658xf32, #tpu.memory_space<smem>>
    %c7_442 = arith.constant 7 : index
    %c1_443 = arith.constant 1 : index
    %c2_444 = arith.constant 2 : index
    %1409 = vector.load %arg9[%c7_442, %c1_443, %c2_444] : memref<8x10x10xf32, #tpu.memory_space<vmem>>, vector<1x8x8xf32>
    %1410 = vector.shape_cast %1409 : vector<1x8x8xf32> to vector<8x8xf32>
    %1411 = vector.broadcast %1408 : f32 to vector<8x8xf32>
    %1412 = arith.mulf %1411, %1410 : vector<8x8xf32>
    %1413 = arith.addf %1407, %1412 : vector<8x8xf32>
    %c375 = arith.constant 375 : index
    %1414 = memref.load %arg1[%c375] : memref<658xf32, #tpu.memory_space<smem>>
    %c7_445 = arith.constant 7 : index
    %c2_446 = arith.constant 2 : index
    %c0_447 = arith.constant 0 : index
    %1415 = vector.load %arg9[%c7_445, %c2_446, %c0_447] : memref<8x10x10xf32, #tpu.memory_space<vmem>>, vector<1x8x8xf32>
    %1416 = vector.shape_cast %1415 : vector<1x8x8xf32> to vector<8x8xf32>
    %1417 = vector.broadcast %1414 : f32 to vector<8x8xf32>
    %1418 = arith.mulf %1417, %1416 : vector<8x8xf32>
    %1419 = arith.addf %1413, %1418 : vector<8x8xf32>
    %c376 = arith.constant 376 : index
    %1420 = memref.load %arg1[%c376] : memref<658xf32, #tpu.memory_space<smem>>
    %c7_448 = arith.constant 7 : index
    %c2_449 = arith.constant 2 : index
    %c1_450 = arith.constant 1 : index
    %1421 = vector.load %arg9[%c7_448, %c2_449, %c1_450] : memref<8x10x10xf32, #tpu.memory_space<vmem>>, vector<1x8x8xf32>
    %1422 = vector.shape_cast %1421 : vector<1x8x8xf32> to vector<8x8xf32>
    %1423 = vector.broadcast %1420 : f32 to vector<8x8xf32>
    %1424 = arith.mulf %1423, %1422 : vector<8x8xf32>
    %1425 = arith.addf %1419, %1424 : vector<8x8xf32>
    %c377 = arith.constant 377 : index
    %1426 = memref.load %arg1[%c377] : memref<658xf32, #tpu.memory_space<smem>>
    %c7_451 = arith.constant 7 : index
    %c2_452 = arith.constant 2 : index
    %c2_453 = arith.constant 2 : index
    %1427 = vector.load %arg9[%c7_451, %c2_452, %c2_453] : memref<8x10x10xf32, #tpu.memory_space<vmem>>, vector<1x8x8xf32>
    %1428 = vector.shape_cast %1427 : vector<1x8x8xf32> to vector<8x8xf32>
    %1429 = vector.broadcast %1426 : f32 to vector<8x8xf32>
    %1430 = arith.mulf %1429, %1428 : vector<8x8xf32>
    %1431 = arith.addf %1425, %1430 : vector<8x8xf32>
    %c385 = arith.constant 385 : index
    %1432 = memref.load %arg1[%c385] : memref<658xf32, #tpu.memory_space<smem>>
    %1433 = vector.broadcast %1432 : f32 to vector<8x8xf32>
    %1434 = arith.mulf %1431, %1433 : vector<8x8xf32>
    %c393 = arith.constant 393 : index
    %1435 = memref.load %arg1[%c393] : memref<658xf32, #tpu.memory_space<smem>>
    %1436 = vector.broadcast %1435 : f32 to vector<8x8xf32>
    %1437 = arith.addf %1434, %1436 : vector<8x8xf32>
    %cst_454 = arith.constant 0.000000e+00 : f32
    %1438 = vector.broadcast %cst_454 : f32 to vector<8x8xf32>
    %1439 = arith.maximumf %1437, %1438 : vector<8x8xf32>
    %c394 = arith.constant 394 : index
    %1440 = memref.load %arg1[%c394] : memref<658xf32, #tpu.memory_space<smem>>
    %1441 = vector.broadcast %1440 : f32 to vector<8x8xf32>
    %1442 = arith.mulf %1441, %1012 : vector<8x8xf32>
    %c395 = arith.constant 395 : index
    %1443 = memref.load %arg1[%c395] : memref<658xf32, #tpu.memory_space<smem>>
    %1444 = vector.broadcast %1443 : f32 to vector<8x8xf32>
    %1445 = arith.mulf %1444, %1073 : vector<8x8xf32>
    %1446 = arith.addf %1442, %1445 : vector<8x8xf32>
    %c396 = arith.constant 396 : index
    %1447 = memref.load %arg1[%c396] : memref<658xf32, #tpu.memory_space<smem>>
    %1448 = vector.broadcast %1447 : f32 to vector<8x8xf32>
    %1449 = arith.mulf %1448, %1134 : vector<8x8xf32>
    %1450 = arith.addf %1446, %1449 : vector<8x8xf32>
    %c397 = arith.constant 397 : index
    %1451 = memref.load %arg1[%c397] : memref<658xf32, #tpu.memory_space<smem>>
    %1452 = vector.broadcast %1451 : f32 to vector<8x8xf32>
    %1453 = arith.mulf %1452, %1195 : vector<8x8xf32>
    %1454 = arith.addf %1450, %1453 : vector<8x8xf32>
    %c398 = arith.constant 398 : index
    %1455 = memref.load %arg1[%c398] : memref<658xf32, #tpu.memory_space<smem>>
    %1456 = vector.broadcast %1455 : f32 to vector<8x8xf32>
    %1457 = arith.mulf %1456, %1256 : vector<8x8xf32>
    %1458 = arith.addf %1454, %1457 : vector<8x8xf32>
    %c399 = arith.constant 399 : index
    %1459 = memref.load %arg1[%c399] : memref<658xf32, #tpu.memory_space<smem>>
    %1460 = vector.broadcast %1459 : f32 to vector<8x8xf32>
    %1461 = arith.mulf %1460, %1317 : vector<8x8xf32>
    %1462 = arith.addf %1458, %1461 : vector<8x8xf32>
    %c400 = arith.constant 400 : index
    %1463 = memref.load %arg1[%c400] : memref<658xf32, #tpu.memory_space<smem>>
    %1464 = vector.broadcast %1463 : f32 to vector<8x8xf32>
    %1465 = arith.mulf %1464, %1378 : vector<8x8xf32>
    %1466 = arith.addf %1462, %1465 : vector<8x8xf32>
    %c401 = arith.constant 401 : index
    %1467 = memref.load %arg1[%c401] : memref<658xf32, #tpu.memory_space<smem>>
    %1468 = vector.broadcast %1467 : f32 to vector<8x8xf32>
    %1469 = arith.mulf %1468, %1439 : vector<8x8xf32>
    %1470 = arith.addf %1466, %1469 : vector<8x8xf32>
    %c458 = arith.constant 458 : index
    %1471 = memref.load %arg1[%c458] : memref<658xf32, #tpu.memory_space<smem>>
    %1472 = vector.broadcast %1471 : f32 to vector<8x8xf32>
    %1473 = arith.mulf %1470, %1472 : vector<8x8xf32>
    %c466 = arith.constant 466 : index
    %1474 = memref.load %arg1[%c466] : memref<658xf32, #tpu.memory_space<smem>>
    %1475 = vector.broadcast %1474 : f32 to vector<8x8xf32>
    %1476 = arith.addf %1473, %1475 : vector<8x8xf32>
    %cst_455 = arith.constant 0.000000e+00 : f32
    %1477 = vector.broadcast %cst_455 : f32 to vector<8x8xf32>
    %1478 = arith.maximumf %1476, %1477 : vector<8x8xf32>
    %c474 = arith.constant 474 : index
    %1479 = memref.load %arg1[%c474] : memref<658xf32, #tpu.memory_space<smem>>
    %1480 = vector.broadcast %1479 : f32 to vector<8x8xf32>
    %1481 = arith.mulf %1478, %1480 : vector<8x8xf32>
    %c482 = arith.constant 482 : index
    %1482 = memref.load %arg1[%c482] : memref<658xf32, #tpu.memory_space<smem>>
    %1483 = vector.broadcast %1482 : f32 to vector<8x8xf32>
    %1484 = arith.addf %1481, %1483 : vector<8x8xf32>
    %cst_456 = arith.constant 0.000000e+00 : f32
    %1485 = vector.broadcast %cst_456 : f32 to vector<8x8xf32>
    %1486 = arith.maximumf %1484, %1485 : vector<8x8xf32>
    %c402 = arith.constant 402 : index
    %1487 = memref.load %arg1[%c402] : memref<658xf32, #tpu.memory_space<smem>>
    %1488 = vector.broadcast %1487 : f32 to vector<8x8xf32>
    %1489 = arith.mulf %1488, %1012 : vector<8x8xf32>
    %c403 = arith.constant 403 : index
    %1490 = memref.load %arg1[%c403] : memref<658xf32, #tpu.memory_space<smem>>
    %1491 = vector.broadcast %1490 : f32 to vector<8x8xf32>
    %1492 = arith.mulf %1491, %1073 : vector<8x8xf32>
    %1493 = arith.addf %1489, %1492 : vector<8x8xf32>
    %c404 = arith.constant 404 : index
    %1494 = memref.load %arg1[%c404] : memref<658xf32, #tpu.memory_space<smem>>
    %1495 = vector.broadcast %1494 : f32 to vector<8x8xf32>
    %1496 = arith.mulf %1495, %1134 : vector<8x8xf32>
    %1497 = arith.addf %1493, %1496 : vector<8x8xf32>
    %c405 = arith.constant 405 : index
    %1498 = memref.load %arg1[%c405] : memref<658xf32, #tpu.memory_space<smem>>
    %1499 = vector.broadcast %1498 : f32 to vector<8x8xf32>
    %1500 = arith.mulf %1499, %1195 : vector<8x8xf32>
    %1501 = arith.addf %1497, %1500 : vector<8x8xf32>
    %c406 = arith.constant 406 : index
    %1502 = memref.load %arg1[%c406] : memref<658xf32, #tpu.memory_space<smem>>
    %1503 = vector.broadcast %1502 : f32 to vector<8x8xf32>
    %1504 = arith.mulf %1503, %1256 : vector<8x8xf32>
    %1505 = arith.addf %1501, %1504 : vector<8x8xf32>
    %c407 = arith.constant 407 : index
    %1506 = memref.load %arg1[%c407] : memref<658xf32, #tpu.memory_space<smem>>
    %1507 = vector.broadcast %1506 : f32 to vector<8x8xf32>
    %1508 = arith.mulf %1507, %1317 : vector<8x8xf32>
    %1509 = arith.addf %1505, %1508 : vector<8x8xf32>
    %c408 = arith.constant 408 : index
    %1510 = memref.load %arg1[%c408] : memref<658xf32, #tpu.memory_space<smem>>
    %1511 = vector.broadcast %1510 : f32 to vector<8x8xf32>
    %1512 = arith.mulf %1511, %1378 : vector<8x8xf32>
    %1513 = arith.addf %1509, %1512 : vector<8x8xf32>
    %c409 = arith.constant 409 : index
    %1514 = memref.load %arg1[%c409] : memref<658xf32, #tpu.memory_space<smem>>
    %1515 = vector.broadcast %1514 : f32 to vector<8x8xf32>
    %1516 = arith.mulf %1515, %1439 : vector<8x8xf32>
    %1517 = arith.addf %1513, %1516 : vector<8x8xf32>
    %c459 = arith.constant 459 : index
    %1518 = memref.load %arg1[%c459] : memref<658xf32, #tpu.memory_space<smem>>
    %1519 = vector.broadcast %1518 : f32 to vector<8x8xf32>
    %1520 = arith.mulf %1517, %1519 : vector<8x8xf32>
    %c467 = arith.constant 467 : index
    %1521 = memref.load %arg1[%c467] : memref<658xf32, #tpu.memory_space<smem>>
    %1522 = vector.broadcast %1521 : f32 to vector<8x8xf32>
    %1523 = arith.addf %1520, %1522 : vector<8x8xf32>
    %cst_457 = arith.constant 0.000000e+00 : f32
    %1524 = vector.broadcast %cst_457 : f32 to vector<8x8xf32>
    %1525 = arith.maximumf %1523, %1524 : vector<8x8xf32>
    %c475 = arith.constant 475 : index
    %1526 = memref.load %arg1[%c475] : memref<658xf32, #tpu.memory_space<smem>>
    %1527 = vector.broadcast %1526 : f32 to vector<8x8xf32>
    %1528 = arith.mulf %1525, %1527 : vector<8x8xf32>
    %c483 = arith.constant 483 : index
    %1529 = memref.load %arg1[%c483] : memref<658xf32, #tpu.memory_space<smem>>
    %1530 = vector.broadcast %1529 : f32 to vector<8x8xf32>
    %1531 = arith.addf %1528, %1530 : vector<8x8xf32>
    %cst_458 = arith.constant 0.000000e+00 : f32
    %1532 = vector.broadcast %cst_458 : f32 to vector<8x8xf32>
    %1533 = arith.maximumf %1531, %1532 : vector<8x8xf32>
    %c410 = arith.constant 410 : index
    %1534 = memref.load %arg1[%c410] : memref<658xf32, #tpu.memory_space<smem>>
    %1535 = vector.broadcast %1534 : f32 to vector<8x8xf32>
    %1536 = arith.mulf %1535, %1012 : vector<8x8xf32>
    %c411 = arith.constant 411 : index
    %1537 = memref.load %arg1[%c411] : memref<658xf32, #tpu.memory_space<smem>>
    %1538 = vector.broadcast %1537 : f32 to vector<8x8xf32>
    %1539 = arith.mulf %1538, %1073 : vector<8x8xf32>
    %1540 = arith.addf %1536, %1539 : vector<8x8xf32>
    %c412 = arith.constant 412 : index
    %1541 = memref.load %arg1[%c412] : memref<658xf32, #tpu.memory_space<smem>>
    %1542 = vector.broadcast %1541 : f32 to vector<8x8xf32>
    %1543 = arith.mulf %1542, %1134 : vector<8x8xf32>
    %1544 = arith.addf %1540, %1543 : vector<8x8xf32>
    %c413 = arith.constant 413 : index
    %1545 = memref.load %arg1[%c413] : memref<658xf32, #tpu.memory_space<smem>>
    %1546 = vector.broadcast %1545 : f32 to vector<8x8xf32>
    %1547 = arith.mulf %1546, %1195 : vector<8x8xf32>
    %1548 = arith.addf %1544, %1547 : vector<8x8xf32>
    %c414 = arith.constant 414 : index
    %1549 = memref.load %arg1[%c414] : memref<658xf32, #tpu.memory_space<smem>>
    %1550 = vector.broadcast %1549 : f32 to vector<8x8xf32>
    %1551 = arith.mulf %1550, %1256 : vector<8x8xf32>
    %1552 = arith.addf %1548, %1551 : vector<8x8xf32>
    %c415 = arith.constant 415 : index
    %1553 = memref.load %arg1[%c415] : memref<658xf32, #tpu.memory_space<smem>>
    %1554 = vector.broadcast %1553 : f32 to vector<8x8xf32>
    %1555 = arith.mulf %1554, %1317 : vector<8x8xf32>
    %1556 = arith.addf %1552, %1555 : vector<8x8xf32>
    %c416 = arith.constant 416 : index
    %1557 = memref.load %arg1[%c416] : memref<658xf32, #tpu.memory_space<smem>>
    %1558 = vector.broadcast %1557 : f32 to vector<8x8xf32>
    %1559 = arith.mulf %1558, %1378 : vector<8x8xf32>
    %1560 = arith.addf %1556, %1559 : vector<8x8xf32>
    %c417 = arith.constant 417 : index
    %1561 = memref.load %arg1[%c417] : memref<658xf32, #tpu.memory_space<smem>>
    %1562 = vector.broadcast %1561 : f32 to vector<8x8xf32>
    %1563 = arith.mulf %1562, %1439 : vector<8x8xf32>
    %1564 = arith.addf %1560, %1563 : vector<8x8xf32>
    %c460 = arith.constant 460 : index
    %1565 = memref.load %arg1[%c460] : memref<658xf32, #tpu.memory_space<smem>>
    %1566 = vector.broadcast %1565 : f32 to vector<8x8xf32>
    %1567 = arith.mulf %1564, %1566 : vector<8x8xf32>
    %c468 = arith.constant 468 : index
    %1568 = memref.load %arg1[%c468] : memref<658xf32, #tpu.memory_space<smem>>
    %1569 = vector.broadcast %1568 : f32 to vector<8x8xf32>
    %1570 = arith.addf %1567, %1569 : vector<8x8xf32>
    %cst_459 = arith.constant 0.000000e+00 : f32
    %1571 = vector.broadcast %cst_459 : f32 to vector<8x8xf32>
    %1572 = arith.maximumf %1570, %1571 : vector<8x8xf32>
    %c476 = arith.constant 476 : index
    %1573 = memref.load %arg1[%c476] : memref<658xf32, #tpu.memory_space<smem>>
    %1574 = vector.broadcast %1573 : f32 to vector<8x8xf32>
    %1575 = arith.mulf %1572, %1574 : vector<8x8xf32>
    %c484 = arith.constant 484 : index
    %1576 = memref.load %arg1[%c484] : memref<658xf32, #tpu.memory_space<smem>>
    %1577 = vector.broadcast %1576 : f32 to vector<8x8xf32>
    %1578 = arith.addf %1575, %1577 : vector<8x8xf32>
    %cst_460 = arith.constant 0.000000e+00 : f32
    %1579 = vector.broadcast %cst_460 : f32 to vector<8x8xf32>
    %1580 = arith.maximumf %1578, %1579 : vector<8x8xf32>
    %c418 = arith.constant 418 : index
    %1581 = memref.load %arg1[%c418] : memref<658xf32, #tpu.memory_space<smem>>
    %1582 = vector.broadcast %1581 : f32 to vector<8x8xf32>
    %1583 = arith.mulf %1582, %1012 : vector<8x8xf32>
    %c419 = arith.constant 419 : index
    %1584 = memref.load %arg1[%c419] : memref<658xf32, #tpu.memory_space<smem>>
    %1585 = vector.broadcast %1584 : f32 to vector<8x8xf32>
    %1586 = arith.mulf %1585, %1073 : vector<8x8xf32>
    %1587 = arith.addf %1583, %1586 : vector<8x8xf32>
    %c420 = arith.constant 420 : index
    %1588 = memref.load %arg1[%c420] : memref<658xf32, #tpu.memory_space<smem>>
    %1589 = vector.broadcast %1588 : f32 to vector<8x8xf32>
    %1590 = arith.mulf %1589, %1134 : vector<8x8xf32>
    %1591 = arith.addf %1587, %1590 : vector<8x8xf32>
    %c421 = arith.constant 421 : index
    %1592 = memref.load %arg1[%c421] : memref<658xf32, #tpu.memory_space<smem>>
    %1593 = vector.broadcast %1592 : f32 to vector<8x8xf32>
    %1594 = arith.mulf %1593, %1195 : vector<8x8xf32>
    %1595 = arith.addf %1591, %1594 : vector<8x8xf32>
    %c422 = arith.constant 422 : index
    %1596 = memref.load %arg1[%c422] : memref<658xf32, #tpu.memory_space<smem>>
    %1597 = vector.broadcast %1596 : f32 to vector<8x8xf32>
    %1598 = arith.mulf %1597, %1256 : vector<8x8xf32>
    %1599 = arith.addf %1595, %1598 : vector<8x8xf32>
    %c423 = arith.constant 423 : index
    %1600 = memref.load %arg1[%c423] : memref<658xf32, #tpu.memory_space<smem>>
    %1601 = vector.broadcast %1600 : f32 to vector<8x8xf32>
    %1602 = arith.mulf %1601, %1317 : vector<8x8xf32>
    %1603 = arith.addf %1599, %1602 : vector<8x8xf32>
    %c424 = arith.constant 424 : index
    %1604 = memref.load %arg1[%c424] : memref<658xf32, #tpu.memory_space<smem>>
    %1605 = vector.broadcast %1604 : f32 to vector<8x8xf32>
    %1606 = arith.mulf %1605, %1378 : vector<8x8xf32>
    %1607 = arith.addf %1603, %1606 : vector<8x8xf32>
    %c425 = arith.constant 425 : index
    %1608 = memref.load %arg1[%c425] : memref<658xf32, #tpu.memory_space<smem>>
    %1609 = vector.broadcast %1608 : f32 to vector<8x8xf32>
    %1610 = arith.mulf %1609, %1439 : vector<8x8xf32>
    %1611 = arith.addf %1607, %1610 : vector<8x8xf32>
    %c461 = arith.constant 461 : index
    %1612 = memref.load %arg1[%c461] : memref<658xf32, #tpu.memory_space<smem>>
    %1613 = vector.broadcast %1612 : f32 to vector<8x8xf32>
    %1614 = arith.mulf %1611, %1613 : vector<8x8xf32>
    %c469 = arith.constant 469 : index
    %1615 = memref.load %arg1[%c469] : memref<658xf32, #tpu.memory_space<smem>>
    %1616 = vector.broadcast %1615 : f32 to vector<8x8xf32>
    %1617 = arith.addf %1614, %1616 : vector<8x8xf32>
    %cst_461 = arith.constant 0.000000e+00 : f32
    %1618 = vector.broadcast %cst_461 : f32 to vector<8x8xf32>
    %1619 = arith.maximumf %1617, %1618 : vector<8x8xf32>
    %c477 = arith.constant 477 : index
    %1620 = memref.load %arg1[%c477] : memref<658xf32, #tpu.memory_space<smem>>
    %1621 = vector.broadcast %1620 : f32 to vector<8x8xf32>
    %1622 = arith.mulf %1619, %1621 : vector<8x8xf32>
    %c485 = arith.constant 485 : index
    %1623 = memref.load %arg1[%c485] : memref<658xf32, #tpu.memory_space<smem>>
    %1624 = vector.broadcast %1623 : f32 to vector<8x8xf32>
    %1625 = arith.addf %1622, %1624 : vector<8x8xf32>
    %cst_462 = arith.constant 0.000000e+00 : f32
    %1626 = vector.broadcast %cst_462 : f32 to vector<8x8xf32>
    %1627 = arith.maximumf %1625, %1626 : vector<8x8xf32>
    %c426 = arith.constant 426 : index
    %1628 = memref.load %arg1[%c426] : memref<658xf32, #tpu.memory_space<smem>>
    %1629 = vector.broadcast %1628 : f32 to vector<8x8xf32>
    %1630 = arith.mulf %1629, %1012 : vector<8x8xf32>
    %c427 = arith.constant 427 : index
    %1631 = memref.load %arg1[%c427] : memref<658xf32, #tpu.memory_space<smem>>
    %1632 = vector.broadcast %1631 : f32 to vector<8x8xf32>
    %1633 = arith.mulf %1632, %1073 : vector<8x8xf32>
    %1634 = arith.addf %1630, %1633 : vector<8x8xf32>
    %c428 = arith.constant 428 : index
    %1635 = memref.load %arg1[%c428] : memref<658xf32, #tpu.memory_space<smem>>
    %1636 = vector.broadcast %1635 : f32 to vector<8x8xf32>
    %1637 = arith.mulf %1636, %1134 : vector<8x8xf32>
    %1638 = arith.addf %1634, %1637 : vector<8x8xf32>
    %c429 = arith.constant 429 : index
    %1639 = memref.load %arg1[%c429] : memref<658xf32, #tpu.memory_space<smem>>
    %1640 = vector.broadcast %1639 : f32 to vector<8x8xf32>
    %1641 = arith.mulf %1640, %1195 : vector<8x8xf32>
    %1642 = arith.addf %1638, %1641 : vector<8x8xf32>
    %c430 = arith.constant 430 : index
    %1643 = memref.load %arg1[%c430] : memref<658xf32, #tpu.memory_space<smem>>
    %1644 = vector.broadcast %1643 : f32 to vector<8x8xf32>
    %1645 = arith.mulf %1644, %1256 : vector<8x8xf32>
    %1646 = arith.addf %1642, %1645 : vector<8x8xf32>
    %c431 = arith.constant 431 : index
    %1647 = memref.load %arg1[%c431] : memref<658xf32, #tpu.memory_space<smem>>
    %1648 = vector.broadcast %1647 : f32 to vector<8x8xf32>
    %1649 = arith.mulf %1648, %1317 : vector<8x8xf32>
    %1650 = arith.addf %1646, %1649 : vector<8x8xf32>
    %c432 = arith.constant 432 : index
    %1651 = memref.load %arg1[%c432] : memref<658xf32, #tpu.memory_space<smem>>
    %1652 = vector.broadcast %1651 : f32 to vector<8x8xf32>
    %1653 = arith.mulf %1652, %1378 : vector<8x8xf32>
    %1654 = arith.addf %1650, %1653 : vector<8x8xf32>
    %c433 = arith.constant 433 : index
    %1655 = memref.load %arg1[%c433] : memref<658xf32, #tpu.memory_space<smem>>
    %1656 = vector.broadcast %1655 : f32 to vector<8x8xf32>
    %1657 = arith.mulf %1656, %1439 : vector<8x8xf32>
    %1658 = arith.addf %1654, %1657 : vector<8x8xf32>
    %c462 = arith.constant 462 : index
    %1659 = memref.load %arg1[%c462] : memref<658xf32, #tpu.memory_space<smem>>
    %1660 = vector.broadcast %1659 : f32 to vector<8x8xf32>
    %1661 = arith.mulf %1658, %1660 : vector<8x8xf32>
    %c470 = arith.constant 470 : index
    %1662 = memref.load %arg1[%c470] : memref<658xf32, #tpu.memory_space<smem>>
    %1663 = vector.broadcast %1662 : f32 to vector<8x8xf32>
    %1664 = arith.addf %1661, %1663 : vector<8x8xf32>
    %cst_463 = arith.constant 0.000000e+00 : f32
    %1665 = vector.broadcast %cst_463 : f32 to vector<8x8xf32>
    %1666 = arith.maximumf %1664, %1665 : vector<8x8xf32>
    %c478 = arith.constant 478 : index
    %1667 = memref.load %arg1[%c478] : memref<658xf32, #tpu.memory_space<smem>>
    %1668 = vector.broadcast %1667 : f32 to vector<8x8xf32>
    %1669 = arith.mulf %1666, %1668 : vector<8x8xf32>
    %c486 = arith.constant 486 : index
    %1670 = memref.load %arg1[%c486] : memref<658xf32, #tpu.memory_space<smem>>
    %1671 = vector.broadcast %1670 : f32 to vector<8x8xf32>
    %1672 = arith.addf %1669, %1671 : vector<8x8xf32>
    %cst_464 = arith.constant 0.000000e+00 : f32
    %1673 = vector.broadcast %cst_464 : f32 to vector<8x8xf32>
    %1674 = arith.maximumf %1672, %1673 : vector<8x8xf32>
    %c434 = arith.constant 434 : index
    %1675 = memref.load %arg1[%c434] : memref<658xf32, #tpu.memory_space<smem>>
    %1676 = vector.broadcast %1675 : f32 to vector<8x8xf32>
    %1677 = arith.mulf %1676, %1012 : vector<8x8xf32>
    %c435 = arith.constant 435 : index
    %1678 = memref.load %arg1[%c435] : memref<658xf32, #tpu.memory_space<smem>>
    %1679 = vector.broadcast %1678 : f32 to vector<8x8xf32>
    %1680 = arith.mulf %1679, %1073 : vector<8x8xf32>
    %1681 = arith.addf %1677, %1680 : vector<8x8xf32>
    %c436 = arith.constant 436 : index
    %1682 = memref.load %arg1[%c436] : memref<658xf32, #tpu.memory_space<smem>>
    %1683 = vector.broadcast %1682 : f32 to vector<8x8xf32>
    %1684 = arith.mulf %1683, %1134 : vector<8x8xf32>
    %1685 = arith.addf %1681, %1684 : vector<8x8xf32>
    %c437 = arith.constant 437 : index
    %1686 = memref.load %arg1[%c437] : memref<658xf32, #tpu.memory_space<smem>>
    %1687 = vector.broadcast %1686 : f32 to vector<8x8xf32>
    %1688 = arith.mulf %1687, %1195 : vector<8x8xf32>
    %1689 = arith.addf %1685, %1688 : vector<8x8xf32>
    %c438 = arith.constant 438 : index
    %1690 = memref.load %arg1[%c438] : memref<658xf32, #tpu.memory_space<smem>>
    %1691 = vector.broadcast %1690 : f32 to vector<8x8xf32>
    %1692 = arith.mulf %1691, %1256 : vector<8x8xf32>
    %1693 = arith.addf %1689, %1692 : vector<8x8xf32>
    %c439 = arith.constant 439 : index
    %1694 = memref.load %arg1[%c439] : memref<658xf32, #tpu.memory_space<smem>>
    %1695 = vector.broadcast %1694 : f32 to vector<8x8xf32>
    %1696 = arith.mulf %1695, %1317 : vector<8x8xf32>
    %1697 = arith.addf %1693, %1696 : vector<8x8xf32>
    %c440 = arith.constant 440 : index
    %1698 = memref.load %arg1[%c440] : memref<658xf32, #tpu.memory_space<smem>>
    %1699 = vector.broadcast %1698 : f32 to vector<8x8xf32>
    %1700 = arith.mulf %1699, %1378 : vector<8x8xf32>
    %1701 = arith.addf %1697, %1700 : vector<8x8xf32>
    %c441 = arith.constant 441 : index
    %1702 = memref.load %arg1[%c441] : memref<658xf32, #tpu.memory_space<smem>>
    %1703 = vector.broadcast %1702 : f32 to vector<8x8xf32>
    %1704 = arith.mulf %1703, %1439 : vector<8x8xf32>
    %1705 = arith.addf %1701, %1704 : vector<8x8xf32>
    %c463 = arith.constant 463 : index
    %1706 = memref.load %arg1[%c463] : memref<658xf32, #tpu.memory_space<smem>>
    %1707 = vector.broadcast %1706 : f32 to vector<8x8xf32>
    %1708 = arith.mulf %1705, %1707 : vector<8x8xf32>
    %c471 = arith.constant 471 : index
    %1709 = memref.load %arg1[%c471] : memref<658xf32, #tpu.memory_space<smem>>
    %1710 = vector.broadcast %1709 : f32 to vector<8x8xf32>
    %1711 = arith.addf %1708, %1710 : vector<8x8xf32>
    %cst_465 = arith.constant 0.000000e+00 : f32
    %1712 = vector.broadcast %cst_465 : f32 to vector<8x8xf32>
    %1713 = arith.maximumf %1711, %1712 : vector<8x8xf32>
    %c479 = arith.constant 479 : index
    %1714 = memref.load %arg1[%c479] : memref<658xf32, #tpu.memory_space<smem>>
    %1715 = vector.broadcast %1714 : f32 to vector<8x8xf32>
    %1716 = arith.mulf %1713, %1715 : vector<8x8xf32>
    %c487 = arith.constant 487 : index
    %1717 = memref.load %arg1[%c487] : memref<658xf32, #tpu.memory_space<smem>>
    %1718 = vector.broadcast %1717 : f32 to vector<8x8xf32>
    %1719 = arith.addf %1716, %1718 : vector<8x8xf32>
    %cst_466 = arith.constant 0.000000e+00 : f32
    %1720 = vector.broadcast %cst_466 : f32 to vector<8x8xf32>
    %1721 = arith.maximumf %1719, %1720 : vector<8x8xf32>
    %c442 = arith.constant 442 : index
    %1722 = memref.load %arg1[%c442] : memref<658xf32, #tpu.memory_space<smem>>
    %1723 = vector.broadcast %1722 : f32 to vector<8x8xf32>
    %1724 = arith.mulf %1723, %1012 : vector<8x8xf32>
    %c443 = arith.constant 443 : index
    %1725 = memref.load %arg1[%c443] : memref<658xf32, #tpu.memory_space<smem>>
    %1726 = vector.broadcast %1725 : f32 to vector<8x8xf32>
    %1727 = arith.mulf %1726, %1073 : vector<8x8xf32>
    %1728 = arith.addf %1724, %1727 : vector<8x8xf32>
    %c444 = arith.constant 444 : index
    %1729 = memref.load %arg1[%c444] : memref<658xf32, #tpu.memory_space<smem>>
    %1730 = vector.broadcast %1729 : f32 to vector<8x8xf32>
    %1731 = arith.mulf %1730, %1134 : vector<8x8xf32>
    %1732 = arith.addf %1728, %1731 : vector<8x8xf32>
    %c445 = arith.constant 445 : index
    %1733 = memref.load %arg1[%c445] : memref<658xf32, #tpu.memory_space<smem>>
    %1734 = vector.broadcast %1733 : f32 to vector<8x8xf32>
    %1735 = arith.mulf %1734, %1195 : vector<8x8xf32>
    %1736 = arith.addf %1732, %1735 : vector<8x8xf32>
    %c446 = arith.constant 446 : index
    %1737 = memref.load %arg1[%c446] : memref<658xf32, #tpu.memory_space<smem>>
    %1738 = vector.broadcast %1737 : f32 to vector<8x8xf32>
    %1739 = arith.mulf %1738, %1256 : vector<8x8xf32>
    %1740 = arith.addf %1736, %1739 : vector<8x8xf32>
    %c447 = arith.constant 447 : index
    %1741 = memref.load %arg1[%c447] : memref<658xf32, #tpu.memory_space<smem>>
    %1742 = vector.broadcast %1741 : f32 to vector<8x8xf32>
    %1743 = arith.mulf %1742, %1317 : vector<8x8xf32>
    %1744 = arith.addf %1740, %1743 : vector<8x8xf32>
    %c448 = arith.constant 448 : index
    %1745 = memref.load %arg1[%c448] : memref<658xf32, #tpu.memory_space<smem>>
    %1746 = vector.broadcast %1745 : f32 to vector<8x8xf32>
    %1747 = arith.mulf %1746, %1378 : vector<8x8xf32>
    %1748 = arith.addf %1744, %1747 : vector<8x8xf32>
    %c449 = arith.constant 449 : index
    %1749 = memref.load %arg1[%c449] : memref<658xf32, #tpu.memory_space<smem>>
    %1750 = vector.broadcast %1749 : f32 to vector<8x8xf32>
    %1751 = arith.mulf %1750, %1439 : vector<8x8xf32>
    %1752 = arith.addf %1748, %1751 : vector<8x8xf32>
    %c464 = arith.constant 464 : index
    %1753 = memref.load %arg1[%c464] : memref<658xf32, #tpu.memory_space<smem>>
    %1754 = vector.broadcast %1753 : f32 to vector<8x8xf32>
    %1755 = arith.mulf %1752, %1754 : vector<8x8xf32>
    %c472 = arith.constant 472 : index
    %1756 = memref.load %arg1[%c472] : memref<658xf32, #tpu.memory_space<smem>>
    %1757 = vector.broadcast %1756 : f32 to vector<8x8xf32>
    %1758 = arith.addf %1755, %1757 : vector<8x8xf32>
    %cst_467 = arith.constant 0.000000e+00 : f32
    %1759 = vector.broadcast %cst_467 : f32 to vector<8x8xf32>
    %1760 = arith.maximumf %1758, %1759 : vector<8x8xf32>
    %c480 = arith.constant 480 : index
    %1761 = memref.load %arg1[%c480] : memref<658xf32, #tpu.memory_space<smem>>
    %1762 = vector.broadcast %1761 : f32 to vector<8x8xf32>
    %1763 = arith.mulf %1760, %1762 : vector<8x8xf32>
    %c488 = arith.constant 488 : index
    %1764 = memref.load %arg1[%c488] : memref<658xf32, #tpu.memory_space<smem>>
    %1765 = vector.broadcast %1764 : f32 to vector<8x8xf32>
    %1766 = arith.addf %1763, %1765 : vector<8x8xf32>
    %cst_468 = arith.constant 0.000000e+00 : f32
    %1767 = vector.broadcast %cst_468 : f32 to vector<8x8xf32>
    %1768 = arith.maximumf %1766, %1767 : vector<8x8xf32>
    %c450 = arith.constant 450 : index
    %1769 = memref.load %arg1[%c450] : memref<658xf32, #tpu.memory_space<smem>>
    %1770 = vector.broadcast %1769 : f32 to vector<8x8xf32>
    %1771 = arith.mulf %1770, %1012 : vector<8x8xf32>
    %c451 = arith.constant 451 : index
    %1772 = memref.load %arg1[%c451] : memref<658xf32, #tpu.memory_space<smem>>
    %1773 = vector.broadcast %1772 : f32 to vector<8x8xf32>
    %1774 = arith.mulf %1773, %1073 : vector<8x8xf32>
    %1775 = arith.addf %1771, %1774 : vector<8x8xf32>
    %c452 = arith.constant 452 : index
    %1776 = memref.load %arg1[%c452] : memref<658xf32, #tpu.memory_space<smem>>
    %1777 = vector.broadcast %1776 : f32 to vector<8x8xf32>
    %1778 = arith.mulf %1777, %1134 : vector<8x8xf32>
    %1779 = arith.addf %1775, %1778 : vector<8x8xf32>
    %c453 = arith.constant 453 : index
    %1780 = memref.load %arg1[%c453] : memref<658xf32, #tpu.memory_space<smem>>
    %1781 = vector.broadcast %1780 : f32 to vector<8x8xf32>
    %1782 = arith.mulf %1781, %1195 : vector<8x8xf32>
    %1783 = arith.addf %1779, %1782 : vector<8x8xf32>
    %c454 = arith.constant 454 : index
    %1784 = memref.load %arg1[%c454] : memref<658xf32, #tpu.memory_space<smem>>
    %1785 = vector.broadcast %1784 : f32 to vector<8x8xf32>
    %1786 = arith.mulf %1785, %1256 : vector<8x8xf32>
    %1787 = arith.addf %1783, %1786 : vector<8x8xf32>
    %c455 = arith.constant 455 : index
    %1788 = memref.load %arg1[%c455] : memref<658xf32, #tpu.memory_space<smem>>
    %1789 = vector.broadcast %1788 : f32 to vector<8x8xf32>
    %1790 = arith.mulf %1789, %1317 : vector<8x8xf32>
    %1791 = arith.addf %1787, %1790 : vector<8x8xf32>
    %c456 = arith.constant 456 : index
    %1792 = memref.load %arg1[%c456] : memref<658xf32, #tpu.memory_space<smem>>
    %1793 = vector.broadcast %1792 : f32 to vector<8x8xf32>
    %1794 = arith.mulf %1793, %1378 : vector<8x8xf32>
    %1795 = arith.addf %1791, %1794 : vector<8x8xf32>
    %c457 = arith.constant 457 : index
    %1796 = memref.load %arg1[%c457] : memref<658xf32, #tpu.memory_space<smem>>
    %1797 = vector.broadcast %1796 : f32 to vector<8x8xf32>
    %1798 = arith.mulf %1797, %1439 : vector<8x8xf32>
    %1799 = arith.addf %1795, %1798 : vector<8x8xf32>
    %c465 = arith.constant 465 : index
    %1800 = memref.load %arg1[%c465] : memref<658xf32, #tpu.memory_space<smem>>
    %1801 = vector.broadcast %1800 : f32 to vector<8x8xf32>
    %1802 = arith.mulf %1799, %1801 : vector<8x8xf32>
    %c473 = arith.constant 473 : index
    %1803 = memref.load %arg1[%c473] : memref<658xf32, #tpu.memory_space<smem>>
    %1804 = vector.broadcast %1803 : f32 to vector<8x8xf32>
    %1805 = arith.addf %1802, %1804 : vector<8x8xf32>
    %cst_469 = arith.constant 0.000000e+00 : f32
    %1806 = vector.broadcast %cst_469 : f32 to vector<8x8xf32>
    %1807 = arith.maximumf %1805, %1806 : vector<8x8xf32>
    %c481 = arith.constant 481 : index
    %1808 = memref.load %arg1[%c481] : memref<658xf32, #tpu.memory_space<smem>>
    %1809 = vector.broadcast %1808 : f32 to vector<8x8xf32>
    %1810 = arith.mulf %1807, %1809 : vector<8x8xf32>
    %c489 = arith.constant 489 : index
    %1811 = memref.load %arg1[%c489] : memref<658xf32, #tpu.memory_space<smem>>
    %1812 = vector.broadcast %1811 : f32 to vector<8x8xf32>
    %1813 = arith.addf %1810, %1812 : vector<8x8xf32>
    %cst_470 = arith.constant 0.000000e+00 : f32
    %1814 = vector.broadcast %cst_470 : f32 to vector<8x8xf32>
    %1815 = arith.maximumf %1813, %1814 : vector<8x8xf32>
    %c0_471 = arith.constant 0 : index
    %c0_472 = arith.constant 0 : index
    %c0_473 = arith.constant 0 : index
    %c0_474 = arith.constant 0 : index
    %1816 = vector.load %arg5[%c0_471, %c0_472, %c0_473, %c0_474] : memref<1x8x8x8xf32, #tpu.memory_space<vmem>>, vector<1x8x8x8xf32>
    %1817 = vector.shape_cast %1816 : vector<1x8x8x8xf32> to vector<8x8x8xf32>
    %cst_475 = arith.constant dense<0xFF800000> : vector<8x8xf32>
    %1818 = vector.multi_reduction <maximumf>, %1817, %cst_475 [0] : vector<8x8x8xf32> to vector<8x8xf32>
    %c0_476 = arith.constant 0 : index
    %c3_477 = arith.constant 3 : index
    %c3_478 = arith.constant 3 : index
    %1819 = vector.load %arg10[%c0_476, %c3_477, %c3_478] : memref<1x14x14xf32, #tpu.memory_space<vmem>>, vector<1x8x8xf32>
    %1820 = vector.shape_cast %1819 : vector<1x8x8xf32> to vector<8x8xf32>
    %1821 = vector.shape_cast %1818 : vector<8x8xf32> to vector<1x8x8xf32>
    tpu.vector_store %arg10[%c0_476, %c3_477, %c3_478], %1821 {strides = array<i32>} : memref<1x14x14xf32, #tpu.memory_space<vmem>>, vector<1x8x8xf32>,
    %c208 = arith.constant 208 : index
    %1822 = memref.load %arg1[%c208] : memref<658xf32, #tpu.memory_space<smem>>
    %c0_479 = arith.constant 0 : index
    %c0_480 = arith.constant 0 : index
    %c0_481 = arith.constant 0 : index
    %1823 = vector.load %arg10[%c0_479, %c0_480, %c0_481] : memref<1x14x14xf32, #tpu.memory_space<vmem>>, vector<1x8x8xf32>
    %1824 = vector.shape_cast %1823 : vector<1x8x8xf32> to vector<8x8xf32>
    %1825 = vector.broadcast %1822 : f32 to vector<8x8xf32>
    %1826 = arith.mulf %1825, %1824 : vector<8x8xf32>
    %c209 = arith.constant 209 : index
    %1827 = memref.load %arg1[%c209] : memref<658xf32, #tpu.memory_space<smem>>
    %c0_482 = arith.constant 0 : index
    %c0_483 = arith.constant 0 : index
    %c1_484 = arith.constant 1 : index
    %1828 = vector.load %arg10[%c0_482, %c0_483, %c1_484] : memref<1x14x14xf32, #tpu.memory_space<vmem>>, vector<1x8x8xf32>
    %1829 = vector.shape_cast %1828 : vector<1x8x8xf32> to vector<8x8xf32>
    %1830 = vector.broadcast %1827 : f32 to vector<8x8xf32>
    %1831 = arith.mulf %1830, %1829 : vector<8x8xf32>
    %1832 = arith.addf %1826, %1831 : vector<8x8xf32>
    %c210 = arith.constant 210 : index
    %1833 = memref.load %arg1[%c210] : memref<658xf32, #tpu.memory_space<smem>>
    %c0_485 = arith.constant 0 : index
    %c0_486 = arith.constant 0 : index
    %c2_487 = arith.constant 2 : index
    %1834 = vector.load %arg10[%c0_485, %c0_486, %c2_487] : memref<1x14x14xf32, #tpu.memory_space<vmem>>, vector<1x8x8xf32>
    %1835 = vector.shape_cast %1834 : vector<1x8x8xf32> to vector<8x8xf32>
    %1836 = vector.broadcast %1833 : f32 to vector<8x8xf32>
    %1837 = arith.mulf %1836, %1835 : vector<8x8xf32>
    %1838 = arith.addf %1832, %1837 : vector<8x8xf32>
    %c211 = arith.constant 211 : index
    %1839 = memref.load %arg1[%c211] : memref<658xf32, #tpu.memory_space<smem>>
    %c0_488 = arith.constant 0 : index
    %c0_489 = arith.constant 0 : index
    %c3_490 = arith.constant 3 : index
    %1840 = vector.load %arg10[%c0_488, %c0_489, %c3_490] : memref<1x14x14xf32, #tpu.memory_space<vmem>>, vector<1x8x8xf32>
    %1841 = vector.shape_cast %1840 : vector<1x8x8xf32> to vector<8x8xf32>
    %1842 = vector.broadcast %1839 : f32 to vector<8x8xf32>
    %1843 = arith.mulf %1842, %1841 : vector<8x8xf32>
    %1844 = arith.addf %1838, %1843 : vector<8x8xf32>
    %c212 = arith.constant 212 : index
    %1845 = memref.load %arg1[%c212] : memref<658xf32, #tpu.memory_space<smem>>
    %c0_491 = arith.constant 0 : index
    %c0_492 = arith.constant 0 : index
    %c4_493 = arith.constant 4 : index
    %1846 = vector.load %arg10[%c0_491, %c0_492, %c4_493] : memref<1x14x14xf32, #tpu.memory_space<vmem>>, vector<1x8x8xf32>
    %1847 = vector.shape_cast %1846 : vector<1x8x8xf32> to vector<8x8xf32>
    %1848 = vector.broadcast %1845 : f32 to vector<8x8xf32>
    %1849 = arith.mulf %1848, %1847 : vector<8x8xf32>
    %1850 = arith.addf %1844, %1849 : vector<8x8xf32>
    %c213 = arith.constant 213 : index
    %1851 = memref.load %arg1[%c213] : memref<658xf32, #tpu.memory_space<smem>>
    %c0_494 = arith.constant 0 : index
    %c0_495 = arith.constant 0 : index
    %c5_496 = arith.constant 5 : index
    %1852 = vector.load %arg10[%c0_494, %c0_495, %c5_496] : memref<1x14x14xf32, #tpu.memory_space<vmem>>, vector<1x8x8xf32>
    %1853 = vector.shape_cast %1852 : vector<1x8x8xf32> to vector<8x8xf32>
    %1854 = vector.broadcast %1851 : f32 to vector<8x8xf32>
    %1855 = arith.mulf %1854, %1853 : vector<8x8xf32>
    %1856 = arith.addf %1850, %1855 : vector<8x8xf32>
    %c214 = arith.constant 214 : index
    %1857 = memref.load %arg1[%c214] : memref<658xf32, #tpu.memory_space<smem>>
    %c0_497 = arith.constant 0 : index
    %c0_498 = arith.constant 0 : index
    %c6_499 = arith.constant 6 : index
    %1858 = vector.load %arg10[%c0_497, %c0_498, %c6_499] : memref<1x14x14xf32, #tpu.memory_space<vmem>>, vector<1x8x8xf32>
    %1859 = vector.shape_cast %1858 : vector<1x8x8xf32> to vector<8x8xf32>
    %1860 = vector.broadcast %1857 : f32 to vector<8x8xf32>
    %1861 = arith.mulf %1860, %1859 : vector<8x8xf32>
    %1862 = arith.addf %1856, %1861 : vector<8x8xf32>
    %c215 = arith.constant 215 : index
    %1863 = memref.load %arg1[%c215] : memref<658xf32, #tpu.memory_space<smem>>
    %c0_500 = arith.constant 0 : index
    %c1_501 = arith.constant 1 : index
    %c0_502 = arith.constant 0 : index
    %1864 = vector.load %arg10[%c0_500, %c1_501, %c0_502] : memref<1x14x14xf32, #tpu.memory_space<vmem>>, vector<1x8x8xf32>
    %1865 = vector.shape_cast %1864 : vector<1x8x8xf32> to vector<8x8xf32>
    %1866 = vector.broadcast %1863 : f32 to vector<8x8xf32>
    %1867 = arith.mulf %1866, %1865 : vector<8x8xf32>
    %1868 = arith.addf %1862, %1867 : vector<8x8xf32>
    %c216 = arith.constant 216 : index
    %1869 = memref.load %arg1[%c216] : memref<658xf32, #tpu.memory_space<smem>>
    %c0_503 = arith.constant 0 : index
    %c1_504 = arith.constant 1 : index
    %c1_505 = arith.constant 1 : index
    %1870 = vector.load %arg10[%c0_503, %c1_504, %c1_505] : memref<1x14x14xf32, #tpu.memory_space<vmem>>, vector<1x8x8xf32>
    %1871 = vector.shape_cast %1870 : vector<1x8x8xf32> to vector<8x8xf32>
    %1872 = vector.broadcast %1869 : f32 to vector<8x8xf32>
    %1873 = arith.mulf %1872, %1871 : vector<8x8xf32>
    %1874 = arith.addf %1868, %1873 : vector<8x8xf32>
    %c217 = arith.constant 217 : index
    %1875 = memref.load %arg1[%c217] : memref<658xf32, #tpu.memory_space<smem>>
    %c0_506 = arith.constant 0 : index
    %c1_507 = arith.constant 1 : index
    %c2_508 = arith.constant 2 : index
    %1876 = vector.load %arg10[%c0_506, %c1_507, %c2_508] : memref<1x14x14xf32, #tpu.memory_space<vmem>>, vector<1x8x8xf32>
    %1877 = vector.shape_cast %1876 : vector<1x8x8xf32> to vector<8x8xf32>
    %1878 = vector.broadcast %1875 : f32 to vector<8x8xf32>
    %1879 = arith.mulf %1878, %1877 : vector<8x8xf32>
    %1880 = arith.addf %1874, %1879 : vector<8x8xf32>
    %c218 = arith.constant 218 : index
    %1881 = memref.load %arg1[%c218] : memref<658xf32, #tpu.memory_space<smem>>
    %c0_509 = arith.constant 0 : index
    %c1_510 = arith.constant 1 : index
    %c3_511 = arith.constant 3 : index
    %1882 = vector.load %arg10[%c0_509, %c1_510, %c3_511] : memref<1x14x14xf32, #tpu.memory_space<vmem>>, vector<1x8x8xf32>
    %1883 = vector.shape_cast %1882 : vector<1x8x8xf32> to vector<8x8xf32>
    %1884 = vector.broadcast %1881 : f32 to vector<8x8xf32>
    %1885 = arith.mulf %1884, %1883 : vector<8x8xf32>
    %1886 = arith.addf %1880, %1885 : vector<8x8xf32>
    %c219 = arith.constant 219 : index
    %1887 = memref.load %arg1[%c219] : memref<658xf32, #tpu.memory_space<smem>>
    %c0_512 = arith.constant 0 : index
    %c1_513 = arith.constant 1 : index
    %c4_514 = arith.constant 4 : index
    %1888 = vector.load %arg10[%c0_512, %c1_513, %c4_514] : memref<1x14x14xf32, #tpu.memory_space<vmem>>, vector<1x8x8xf32>
    %1889 = vector.shape_cast %1888 : vector<1x8x8xf32> to vector<8x8xf32>
    %1890 = vector.broadcast %1887 : f32 to vector<8x8xf32>
    %1891 = arith.mulf %1890, %1889 : vector<8x8xf32>
    %1892 = arith.addf %1886, %1891 : vector<8x8xf32>
    %c220 = arith.constant 220 : index
    %1893 = memref.load %arg1[%c220] : memref<658xf32, #tpu.memory_space<smem>>
    %c0_515 = arith.constant 0 : index
    %c1_516 = arith.constant 1 : index
    %c5_517 = arith.constant 5 : index
    %1894 = vector.load %arg10[%c0_515, %c1_516, %c5_517] : memref<1x14x14xf32, #tpu.memory_space<vmem>>, vector<1x8x8xf32>
    %1895 = vector.shape_cast %1894 : vector<1x8x8xf32> to vector<8x8xf32>
    %1896 = vector.broadcast %1893 : f32 to vector<8x8xf32>
    %1897 = arith.mulf %1896, %1895 : vector<8x8xf32>
    %1898 = arith.addf %1892, %1897 : vector<8x8xf32>
    %c221 = arith.constant 221 : index
    %1899 = memref.load %arg1[%c221] : memref<658xf32, #tpu.memory_space<smem>>
    %c0_518 = arith.constant 0 : index
    %c1_519 = arith.constant 1 : index
    %c6_520 = arith.constant 6 : index
    %1900 = vector.load %arg10[%c0_518, %c1_519, %c6_520] : memref<1x14x14xf32, #tpu.memory_space<vmem>>, vector<1x8x8xf32>
    %1901 = vector.shape_cast %1900 : vector<1x8x8xf32> to vector<8x8xf32>
    %1902 = vector.broadcast %1899 : f32 to vector<8x8xf32>
    %1903 = arith.mulf %1902, %1901 : vector<8x8xf32>
    %1904 = arith.addf %1898, %1903 : vector<8x8xf32>
    %c222 = arith.constant 222 : index
    %1905 = memref.load %arg1[%c222] : memref<658xf32, #tpu.memory_space<smem>>
    %c0_521 = arith.constant 0 : index
    %c2_522 = arith.constant 2 : index
    %c0_523 = arith.constant 0 : index
    %1906 = vector.load %arg10[%c0_521, %c2_522, %c0_523] : memref<1x14x14xf32, #tpu.memory_space<vmem>>, vector<1x8x8xf32>
    %1907 = vector.shape_cast %1906 : vector<1x8x8xf32> to vector<8x8xf32>
    %1908 = vector.broadcast %1905 : f32 to vector<8x8xf32>
    %1909 = arith.mulf %1908, %1907 : vector<8x8xf32>
    %1910 = arith.addf %1904, %1909 : vector<8x8xf32>
    %c223 = arith.constant 223 : index
    %1911 = memref.load %arg1[%c223] : memref<658xf32, #tpu.memory_space<smem>>
    %c0_524 = arith.constant 0 : index
    %c2_525 = arith.constant 2 : index
    %c1_526 = arith.constant 1 : index
    %1912 = vector.load %arg10[%c0_524, %c2_525, %c1_526] : memref<1x14x14xf32, #tpu.memory_space<vmem>>, vector<1x8x8xf32>
    %1913 = vector.shape_cast %1912 : vector<1x8x8xf32> to vector<8x8xf32>
    %1914 = vector.broadcast %1911 : f32 to vector<8x8xf32>
    %1915 = arith.mulf %1914, %1913 : vector<8x8xf32>
    %1916 = arith.addf %1910, %1915 : vector<8x8xf32>
    %c224 = arith.constant 224 : index
    %1917 = memref.load %arg1[%c224] : memref<658xf32, #tpu.memory_space<smem>>
    %c0_527 = arith.constant 0 : index
    %c2_528 = arith.constant 2 : index
    %c2_529 = arith.constant 2 : index
    %1918 = vector.load %arg10[%c0_527, %c2_528, %c2_529] : memref<1x14x14xf32, #tpu.memory_space<vmem>>, vector<1x8x8xf32>
    %1919 = vector.shape_cast %1918 : vector<1x8x8xf32> to vector<8x8xf32>
    %1920 = vector.broadcast %1917 : f32 to vector<8x8xf32>
    %1921 = arith.mulf %1920, %1919 : vector<8x8xf32>
    %1922 = arith.addf %1916, %1921 : vector<8x8xf32>
    %c225 = arith.constant 225 : index
    %1923 = memref.load %arg1[%c225] : memref<658xf32, #tpu.memory_space<smem>>
    %c0_530 = arith.constant 0 : index
    %c2_531 = arith.constant 2 : index
    %c3_532 = arith.constant 3 : index
    %1924 = vector.load %arg10[%c0_530, %c2_531, %c3_532] : memref<1x14x14xf32, #tpu.memory_space<vmem>>, vector<1x8x8xf32>
    %1925 = vector.shape_cast %1924 : vector<1x8x8xf32> to vector<8x8xf32>
    %1926 = vector.broadcast %1923 : f32 to vector<8x8xf32>
    %1927 = arith.mulf %1926, %1925 : vector<8x8xf32>
    %1928 = arith.addf %1922, %1927 : vector<8x8xf32>
    %c226 = arith.constant 226 : index
    %1929 = memref.load %arg1[%c226] : memref<658xf32, #tpu.memory_space<smem>>
    %c0_533 = arith.constant 0 : index
    %c2_534 = arith.constant 2 : index
    %c4_535 = arith.constant 4 : index
    %1930 = vector.load %arg10[%c0_533, %c2_534, %c4_535] : memref<1x14x14xf32, #tpu.memory_space<vmem>>, vector<1x8x8xf32>
    %1931 = vector.shape_cast %1930 : vector<1x8x8xf32> to vector<8x8xf32>
    %1932 = vector.broadcast %1929 : f32 to vector<8x8xf32>
    %1933 = arith.mulf %1932, %1931 : vector<8x8xf32>
    %1934 = arith.addf %1928, %1933 : vector<8x8xf32>
    %c227 = arith.constant 227 : index
    %1935 = memref.load %arg1[%c227] : memref<658xf32, #tpu.memory_space<smem>>
    %c0_536 = arith.constant 0 : index
    %c2_537 = arith.constant 2 : index
    %c5_538 = arith.constant 5 : index
    %1936 = vector.load %arg10[%c0_536, %c2_537, %c5_538] : memref<1x14x14xf32, #tpu.memory_space<vmem>>, vector<1x8x8xf32>
    %1937 = vector.shape_cast %1936 : vector<1x8x8xf32> to vector<8x8xf32>
    %1938 = vector.broadcast %1935 : f32 to vector<8x8xf32>
    %1939 = arith.mulf %1938, %1937 : vector<8x8xf32>
    %1940 = arith.addf %1934, %1939 : vector<8x8xf32>
    %c228 = arith.constant 228 : index
    %1941 = memref.load %arg1[%c228] : memref<658xf32, #tpu.memory_space<smem>>
    %c0_539 = arith.constant 0 : index
    %c2_540 = arith.constant 2 : index
    %c6_541 = arith.constant 6 : index
    %1942 = vector.load %arg10[%c0_539, %c2_540, %c6_541] : memref<1x14x14xf32, #tpu.memory_space<vmem>>, vector<1x8x8xf32>
    %1943 = vector.shape_cast %1942 : vector<1x8x8xf32> to vector<8x8xf32>
    %1944 = vector.broadcast %1941 : f32 to vector<8x8xf32>
    %1945 = arith.mulf %1944, %1943 : vector<8x8xf32>
    %1946 = arith.addf %1940, %1945 : vector<8x8xf32>
    %c229 = arith.constant 229 : index
    %1947 = memref.load %arg1[%c229] : memref<658xf32, #tpu.memory_space<smem>>
    %c0_542 = arith.constant 0 : index
    %c3_543 = arith.constant 3 : index
    %c0_544 = arith.constant 0 : index
    %1948 = vector.load %arg10[%c0_542, %c3_543, %c0_544] : memref<1x14x14xf32, #tpu.memory_space<vmem>>, vector<1x8x8xf32>
    %1949 = vector.shape_cast %1948 : vector<1x8x8xf32> to vector<8x8xf32>
    %1950 = vector.broadcast %1947 : f32 to vector<8x8xf32>
    %1951 = arith.mulf %1950, %1949 : vector<8x8xf32>
    %1952 = arith.addf %1946, %1951 : vector<8x8xf32>
    %c230 = arith.constant 230 : index
    %1953 = memref.load %arg1[%c230] : memref<658xf32, #tpu.memory_space<smem>>
    %c0_545 = arith.constant 0 : index
    %c3_546 = arith.constant 3 : index
    %c1_547 = arith.constant 1 : index
    %1954 = vector.load %arg10[%c0_545, %c3_546, %c1_547] : memref<1x14x14xf32, #tpu.memory_space<vmem>>, vector<1x8x8xf32>
    %1955 = vector.shape_cast %1954 : vector<1x8x8xf32> to vector<8x8xf32>
    %1956 = vector.broadcast %1953 : f32 to vector<8x8xf32>
    %1957 = arith.mulf %1956, %1955 : vector<8x8xf32>
    %1958 = arith.addf %1952, %1957 : vector<8x8xf32>
    %c231 = arith.constant 231 : index
    %1959 = memref.load %arg1[%c231] : memref<658xf32, #tpu.memory_space<smem>>
    %c0_548 = arith.constant 0 : index
    %c3_549 = arith.constant 3 : index
    %c2_550 = arith.constant 2 : index
    %1960 = vector.load %arg10[%c0_548, %c3_549, %c2_550] : memref<1x14x14xf32, #tpu.memory_space<vmem>>, vector<1x8x8xf32>
    %1961 = vector.shape_cast %1960 : vector<1x8x8xf32> to vector<8x8xf32>
    %1962 = vector.broadcast %1959 : f32 to vector<8x8xf32>
    %1963 = arith.mulf %1962, %1961 : vector<8x8xf32>
    %1964 = arith.addf %1958, %1963 : vector<8x8xf32>
    %c232 = arith.constant 232 : index
    %1965 = memref.load %arg1[%c232] : memref<658xf32, #tpu.memory_space<smem>>
    %c0_551 = arith.constant 0 : index
    %c3_552 = arith.constant 3 : index
    %c3_553 = arith.constant 3 : index
    %1966 = vector.load %arg10[%c0_551, %c3_552, %c3_553] : memref<1x14x14xf32, #tpu.memory_space<vmem>>, vector<1x8x8xf32>
    %1967 = vector.shape_cast %1966 : vector<1x8x8xf32> to vector<8x8xf32>
    %1968 = vector.broadcast %1965 : f32 to vector<8x8xf32>
    %1969 = arith.mulf %1968, %1967 : vector<8x8xf32>
    %1970 = arith.addf %1964, %1969 : vector<8x8xf32>
    %c233 = arith.constant 233 : index
    %1971 = memref.load %arg1[%c233] : memref<658xf32, #tpu.memory_space<smem>>
    %c0_554 = arith.constant 0 : index
    %c3_555 = arith.constant 3 : index
    %c4_556 = arith.constant 4 : index
    %1972 = vector.load %arg10[%c0_554, %c3_555, %c4_556] : memref<1x14x14xf32, #tpu.memory_space<vmem>>, vector<1x8x8xf32>
    %1973 = vector.shape_cast %1972 : vector<1x8x8xf32> to vector<8x8xf32>
    %1974 = vector.broadcast %1971 : f32 to vector<8x8xf32>
    %1975 = arith.mulf %1974, %1973 : vector<8x8xf32>
    %1976 = arith.addf %1970, %1975 : vector<8x8xf32>
    %c234 = arith.constant 234 : index
    %1977 = memref.load %arg1[%c234] : memref<658xf32, #tpu.memory_space<smem>>
    %c0_557 = arith.constant 0 : index
    %c3_558 = arith.constant 3 : index
    %c5_559 = arith.constant 5 : index
    %1978 = vector.load %arg10[%c0_557, %c3_558, %c5_559] : memref<1x14x14xf32, #tpu.memory_space<vmem>>, vector<1x8x8xf32>
    %1979 = vector.shape_cast %1978 : vector<1x8x8xf32> to vector<8x8xf32>
    %1980 = vector.broadcast %1977 : f32 to vector<8x8xf32>
    %1981 = arith.mulf %1980, %1979 : vector<8x8xf32>
    %1982 = arith.addf %1976, %1981 : vector<8x8xf32>
    %c235 = arith.constant 235 : index
    %1983 = memref.load %arg1[%c235] : memref<658xf32, #tpu.memory_space<smem>>
    %c0_560 = arith.constant 0 : index
    %c3_561 = arith.constant 3 : index
    %c6_562 = arith.constant 6 : index
    %1984 = vector.load %arg10[%c0_560, %c3_561, %c6_562] : memref<1x14x14xf32, #tpu.memory_space<vmem>>, vector<1x8x8xf32>
    %1985 = vector.shape_cast %1984 : vector<1x8x8xf32> to vector<8x8xf32>
    %1986 = vector.broadcast %1983 : f32 to vector<8x8xf32>
    %1987 = arith.mulf %1986, %1985 : vector<8x8xf32>
    %1988 = arith.addf %1982, %1987 : vector<8x8xf32>
    %c236 = arith.constant 236 : index
    %1989 = memref.load %arg1[%c236] : memref<658xf32, #tpu.memory_space<smem>>
    %c0_563 = arith.constant 0 : index
    %c4_564 = arith.constant 4 : index
    %c0_565 = arith.constant 0 : index
    %1990 = vector.load %arg10[%c0_563, %c4_564, %c0_565] : memref<1x14x14xf32, #tpu.memory_space<vmem>>, vector<1x8x8xf32>
    %1991 = vector.shape_cast %1990 : vector<1x8x8xf32> to vector<8x8xf32>
    %1992 = vector.broadcast %1989 : f32 to vector<8x8xf32>
    %1993 = arith.mulf %1992, %1991 : vector<8x8xf32>
    %1994 = arith.addf %1988, %1993 : vector<8x8xf32>
    %c237 = arith.constant 237 : index
    %1995 = memref.load %arg1[%c237] : memref<658xf32, #tpu.memory_space<smem>>
    %c0_566 = arith.constant 0 : index
    %c4_567 = arith.constant 4 : index
    %c1_568 = arith.constant 1 : index
    %1996 = vector.load %arg10[%c0_566, %c4_567, %c1_568] : memref<1x14x14xf32, #tpu.memory_space<vmem>>, vector<1x8x8xf32>
    %1997 = vector.shape_cast %1996 : vector<1x8x8xf32> to vector<8x8xf32>
    %1998 = vector.broadcast %1995 : f32 to vector<8x8xf32>
    %1999 = arith.mulf %1998, %1997 : vector<8x8xf32>
    %2000 = arith.addf %1994, %1999 : vector<8x8xf32>
    %c238 = arith.constant 238 : index
    %2001 = memref.load %arg1[%c238] : memref<658xf32, #tpu.memory_space<smem>>
    %c0_569 = arith.constant 0 : index
    %c4_570 = arith.constant 4 : index
    %c2_571 = arith.constant 2 : index
    %2002 = vector.load %arg10[%c0_569, %c4_570, %c2_571] : memref<1x14x14xf32, #tpu.memory_space<vmem>>, vector<1x8x8xf32>
    %2003 = vector.shape_cast %2002 : vector<1x8x8xf32> to vector<8x8xf32>
    %2004 = vector.broadcast %2001 : f32 to vector<8x8xf32>
    %2005 = arith.mulf %2004, %2003 : vector<8x8xf32>
    %2006 = arith.addf %2000, %2005 : vector<8x8xf32>
    %c239 = arith.constant 239 : index
    %2007 = memref.load %arg1[%c239] : memref<658xf32, #tpu.memory_space<smem>>
    %c0_572 = arith.constant 0 : index
    %c4_573 = arith.constant 4 : index
    %c3_574 = arith.constant 3 : index
    %2008 = vector.load %arg10[%c0_572, %c4_573, %c3_574] : memref<1x14x14xf32, #tpu.memory_space<vmem>>, vector<1x8x8xf32>
    %2009 = vector.shape_cast %2008 : vector<1x8x8xf32> to vector<8x8xf32>
    %2010 = vector.broadcast %2007 : f32 to vector<8x8xf32>
    %2011 = arith.mulf %2010, %2009 : vector<8x8xf32>
    %2012 = arith.addf %2006, %2011 : vector<8x8xf32>
    %c240 = arith.constant 240 : index
    %2013 = memref.load %arg1[%c240] : memref<658xf32, #tpu.memory_space<smem>>
    %c0_575 = arith.constant 0 : index
    %c4_576 = arith.constant 4 : index
    %c4_577 = arith.constant 4 : index
    %2014 = vector.load %arg10[%c0_575, %c4_576, %c4_577] : memref<1x14x14xf32, #tpu.memory_space<vmem>>, vector<1x8x8xf32>
    %2015 = vector.shape_cast %2014 : vector<1x8x8xf32> to vector<8x8xf32>
    %2016 = vector.broadcast %2013 : f32 to vector<8x8xf32>
    %2017 = arith.mulf %2016, %2015 : vector<8x8xf32>
    %2018 = arith.addf %2012, %2017 : vector<8x8xf32>
    %c241 = arith.constant 241 : index
    %2019 = memref.load %arg1[%c241] : memref<658xf32, #tpu.memory_space<smem>>
    %c0_578 = arith.constant 0 : index
    %c4_579 = arith.constant 4 : index
    %c5_580 = arith.constant 5 : index
    %2020 = vector.load %arg10[%c0_578, %c4_579, %c5_580] : memref<1x14x14xf32, #tpu.memory_space<vmem>>, vector<1x8x8xf32>
    %2021 = vector.shape_cast %2020 : vector<1x8x8xf32> to vector<8x8xf32>
    %2022 = vector.broadcast %2019 : f32 to vector<8x8xf32>
    %2023 = arith.mulf %2022, %2021 : vector<8x8xf32>
    %2024 = arith.addf %2018, %2023 : vector<8x8xf32>
    %c242 = arith.constant 242 : index
    %2025 = memref.load %arg1[%c242] : memref<658xf32, #tpu.memory_space<smem>>
    %c0_581 = arith.constant 0 : index
    %c4_582 = arith.constant 4 : index
    %c6_583 = arith.constant 6 : index
    %2026 = vector.load %arg10[%c0_581, %c4_582, %c6_583] : memref<1x14x14xf32, #tpu.memory_space<vmem>>, vector<1x8x8xf32>
    %2027 = vector.shape_cast %2026 : vector<1x8x8xf32> to vector<8x8xf32>
    %2028 = vector.broadcast %2025 : f32 to vector<8x8xf32>
    %2029 = arith.mulf %2028, %2027 : vector<8x8xf32>
    %2030 = arith.addf %2024, %2029 : vector<8x8xf32>
    %c243 = arith.constant 243 : index
    %2031 = memref.load %arg1[%c243] : memref<658xf32, #tpu.memory_space<smem>>
    %c0_584 = arith.constant 0 : index
    %c5_585 = arith.constant 5 : index
    %c0_586 = arith.constant 0 : index
    %2032 = vector.load %arg10[%c0_584, %c5_585, %c0_586] : memref<1x14x14xf32, #tpu.memory_space<vmem>>, vector<1x8x8xf32>
    %2033 = vector.shape_cast %2032 : vector<1x8x8xf32> to vector<8x8xf32>
    %2034 = vector.broadcast %2031 : f32 to vector<8x8xf32>
    %2035 = arith.mulf %2034, %2033 : vector<8x8xf32>
    %2036 = arith.addf %2030, %2035 : vector<8x8xf32>
    %c244 = arith.constant 244 : index
    %2037 = memref.load %arg1[%c244] : memref<658xf32, #tpu.memory_space<smem>>
    %c0_587 = arith.constant 0 : index
    %c5_588 = arith.constant 5 : index
    %c1_589 = arith.constant 1 : index
    %2038 = vector.load %arg10[%c0_587, %c5_588, %c1_589] : memref<1x14x14xf32, #tpu.memory_space<vmem>>, vector<1x8x8xf32>
    %2039 = vector.shape_cast %2038 : vector<1x8x8xf32> to vector<8x8xf32>
    %2040 = vector.broadcast %2037 : f32 to vector<8x8xf32>
    %2041 = arith.mulf %2040, %2039 : vector<8x8xf32>
    %2042 = arith.addf %2036, %2041 : vector<8x8xf32>
    %c245 = arith.constant 245 : index
    %2043 = memref.load %arg1[%c245] : memref<658xf32, #tpu.memory_space<smem>>
    %c0_590 = arith.constant 0 : index
    %c5_591 = arith.constant 5 : index
    %c2_592 = arith.constant 2 : index
    %2044 = vector.load %arg10[%c0_590, %c5_591, %c2_592] : memref<1x14x14xf32, #tpu.memory_space<vmem>>, vector<1x8x8xf32>
    %2045 = vector.shape_cast %2044 : vector<1x8x8xf32> to vector<8x8xf32>
    %2046 = vector.broadcast %2043 : f32 to vector<8x8xf32>
    %2047 = arith.mulf %2046, %2045 : vector<8x8xf32>
    %2048 = arith.addf %2042, %2047 : vector<8x8xf32>
    %c246 = arith.constant 246 : index
    %2049 = memref.load %arg1[%c246] : memref<658xf32, #tpu.memory_space<smem>>
    %c0_593 = arith.constant 0 : index
    %c5_594 = arith.constant 5 : index
    %c3_595 = arith.constant 3 : index
    %2050 = vector.load %arg10[%c0_593, %c5_594, %c3_595] : memref<1x14x14xf32, #tpu.memory_space<vmem>>, vector<1x8x8xf32>
    %2051 = vector.shape_cast %2050 : vector<1x8x8xf32> to vector<8x8xf32>
    %2052 = vector.broadcast %2049 : f32 to vector<8x8xf32>
    %2053 = arith.mulf %2052, %2051 : vector<8x8xf32>
    %2054 = arith.addf %2048, %2053 : vector<8x8xf32>
    %c247 = arith.constant 247 : index
    %2055 = memref.load %arg1[%c247] : memref<658xf32, #tpu.memory_space<smem>>
    %c0_596 = arith.constant 0 : index
    %c5_597 = arith.constant 5 : index
    %c4_598 = arith.constant 4 : index
    %2056 = vector.load %arg10[%c0_596, %c5_597, %c4_598] : memref<1x14x14xf32, #tpu.memory_space<vmem>>, vector<1x8x8xf32>
    %2057 = vector.shape_cast %2056 : vector<1x8x8xf32> to vector<8x8xf32>
    %2058 = vector.broadcast %2055 : f32 to vector<8x8xf32>
    %2059 = arith.mulf %2058, %2057 : vector<8x8xf32>
    %2060 = arith.addf %2054, %2059 : vector<8x8xf32>
    %c248 = arith.constant 248 : index
    %2061 = memref.load %arg1[%c248] : memref<658xf32, #tpu.memory_space<smem>>
    %c0_599 = arith.constant 0 : index
    %c5_600 = arith.constant 5 : index
    %c5_601 = arith.constant 5 : index
    %2062 = vector.load %arg10[%c0_599, %c5_600, %c5_601] : memref<1x14x14xf32, #tpu.memory_space<vmem>>, vector<1x8x8xf32>
    %2063 = vector.shape_cast %2062 : vector<1x8x8xf32> to vector<8x8xf32>
    %2064 = vector.broadcast %2061 : f32 to vector<8x8xf32>
    %2065 = arith.mulf %2064, %2063 : vector<8x8xf32>
    %2066 = arith.addf %2060, %2065 : vector<8x8xf32>
    %c249 = arith.constant 249 : index
    %2067 = memref.load %arg1[%c249] : memref<658xf32, #tpu.memory_space<smem>>
    %c0_602 = arith.constant 0 : index
    %c5_603 = arith.constant 5 : index
    %c6_604 = arith.constant 6 : index
    %2068 = vector.load %arg10[%c0_602, %c5_603, %c6_604] : memref<1x14x14xf32, #tpu.memory_space<vmem>>, vector<1x8x8xf32>
    %2069 = vector.shape_cast %2068 : vector<1x8x8xf32> to vector<8x8xf32>
    %2070 = vector.broadcast %2067 : f32 to vector<8x8xf32>
    %2071 = arith.mulf %2070, %2069 : vector<8x8xf32>
    %2072 = arith.addf %2066, %2071 : vector<8x8xf32>
    %c250 = arith.constant 250 : index
    %2073 = memref.load %arg1[%c250] : memref<658xf32, #tpu.memory_space<smem>>
    %c0_605 = arith.constant 0 : index
    %c6_606 = arith.constant 6 : index
    %c0_607 = arith.constant 0 : index
    %2074 = vector.load %arg10[%c0_605, %c6_606, %c0_607] : memref<1x14x14xf32, #tpu.memory_space<vmem>>, vector<1x8x8xf32>
    %2075 = vector.shape_cast %2074 : vector<1x8x8xf32> to vector<8x8xf32>
    %2076 = vector.broadcast %2073 : f32 to vector<8x8xf32>
    %2077 = arith.mulf %2076, %2075 : vector<8x8xf32>
    %2078 = arith.addf %2072, %2077 : vector<8x8xf32>
    %c251 = arith.constant 251 : index
    %2079 = memref.load %arg1[%c251] : memref<658xf32, #tpu.memory_space<smem>>
    %c0_608 = arith.constant 0 : index
    %c6_609 = arith.constant 6 : index
    %c1_610 = arith.constant 1 : index
    %2080 = vector.load %arg10[%c0_608, %c6_609, %c1_610] : memref<1x14x14xf32, #tpu.memory_space<vmem>>, vector<1x8x8xf32>
    %2081 = vector.shape_cast %2080 : vector<1x8x8xf32> to vector<8x8xf32>
    %2082 = vector.broadcast %2079 : f32 to vector<8x8xf32>
    %2083 = arith.mulf %2082, %2081 : vector<8x8xf32>
    %2084 = arith.addf %2078, %2083 : vector<8x8xf32>
    %c252 = arith.constant 252 : index
    %2085 = memref.load %arg1[%c252] : memref<658xf32, #tpu.memory_space<smem>>
    %c0_611 = arith.constant 0 : index
    %c6_612 = arith.constant 6 : index
    %c2_613 = arith.constant 2 : index
    %2086 = vector.load %arg10[%c0_611, %c6_612, %c2_613] : memref<1x14x14xf32, #tpu.memory_space<vmem>>, vector<1x8x8xf32>
    %2087 = vector.shape_cast %2086 : vector<1x8x8xf32> to vector<8x8xf32>
    %2088 = vector.broadcast %2085 : f32 to vector<8x8xf32>
    %2089 = arith.mulf %2088, %2087 : vector<8x8xf32>
    %2090 = arith.addf %2084, %2089 : vector<8x8xf32>
    %c253 = arith.constant 253 : index
    %2091 = memref.load %arg1[%c253] : memref<658xf32, #tpu.memory_space<smem>>
    %c0_614 = arith.constant 0 : index
    %c6_615 = arith.constant 6 : index
    %c3_616 = arith.constant 3 : index
    %2092 = vector.load %arg10[%c0_614, %c6_615, %c3_616] : memref<1x14x14xf32, #tpu.memory_space<vmem>>, vector<1x8x8xf32>
    %2093 = vector.shape_cast %2092 : vector<1x8x8xf32> to vector<8x8xf32>
    %2094 = vector.broadcast %2091 : f32 to vector<8x8xf32>
    %2095 = arith.mulf %2094, %2093 : vector<8x8xf32>
    %2096 = arith.addf %2090, %2095 : vector<8x8xf32>
    %c254 = arith.constant 254 : index
    %2097 = memref.load %arg1[%c254] : memref<658xf32, #tpu.memory_space<smem>>
    %c0_617 = arith.constant 0 : index
    %c6_618 = arith.constant 6 : index
    %c4_619 = arith.constant 4 : index
    %2098 = vector.load %arg10[%c0_617, %c6_618, %c4_619] : memref<1x14x14xf32, #tpu.memory_space<vmem>>, vector<1x8x8xf32>
    %2099 = vector.shape_cast %2098 : vector<1x8x8xf32> to vector<8x8xf32>
    %2100 = vector.broadcast %2097 : f32 to vector<8x8xf32>
    %2101 = arith.mulf %2100, %2099 : vector<8x8xf32>
    %2102 = arith.addf %2096, %2101 : vector<8x8xf32>
    %c255 = arith.constant 255 : index
    %2103 = memref.load %arg1[%c255] : memref<658xf32, #tpu.memory_space<smem>>
    %c0_620 = arith.constant 0 : index
    %c6_621 = arith.constant 6 : index
    %c5_622 = arith.constant 5 : index
    %2104 = vector.load %arg10[%c0_620, %c6_621, %c5_622] : memref<1x14x14xf32, #tpu.memory_space<vmem>>, vector<1x8x8xf32>
    %2105 = vector.shape_cast %2104 : vector<1x8x8xf32> to vector<8x8xf32>
    %2106 = vector.broadcast %2103 : f32 to vector<8x8xf32>
    %2107 = arith.mulf %2106, %2105 : vector<8x8xf32>
    %2108 = arith.addf %2102, %2107 : vector<8x8xf32>
    %c256 = arith.constant 256 : index
    %2109 = memref.load %arg1[%c256] : memref<658xf32, #tpu.memory_space<smem>>
    %c0_623 = arith.constant 0 : index
    %c6_624 = arith.constant 6 : index
    %c6_625 = arith.constant 6 : index
    %2110 = vector.load %arg10[%c0_623, %c6_624, %c6_625] : memref<1x14x14xf32, #tpu.memory_space<vmem>>, vector<1x8x8xf32>
    %2111 = vector.shape_cast %2110 : vector<1x8x8xf32> to vector<8x8xf32>
    %2112 = vector.broadcast %2109 : f32 to vector<8x8xf32>
    %2113 = arith.mulf %2112, %2111 : vector<8x8xf32>
    %2114 = arith.addf %2108, %2113 : vector<8x8xf32>
    %c0_626 = arith.constant 0 : index
    %c3_627 = arith.constant 3 : index
    %c3_628 = arith.constant 3 : index
    %2115 = vector.load %arg10[%c0_626, %c3_627, %c3_628] : memref<1x14x14xf32, #tpu.memory_space<vmem>>, vector<1x8x8xf32>
    %2116 = vector.shape_cast %2115 : vector<1x8x8xf32> to vector<8x8xf32>
    %2117 = vector.shape_cast %2114 : vector<8x8xf32> to vector<1x8x8xf32>
    tpu.vector_store %arg10[%c0_626, %c3_627, %c3_628], %2117 {strides = array<i32>} : memref<1x14x14xf32, #tpu.memory_space<vmem>>, vector<1x8x8xf32>,
    %c257 = arith.constant 257 : index
    %2118 = memref.load %arg1[%c257] : memref<658xf32, #tpu.memory_space<smem>>
    %c0_629 = arith.constant 0 : index
    %c0_630 = arith.constant 0 : index
    %c0_631 = arith.constant 0 : index
    %2119 = vector.load %arg10[%c0_629, %c0_630, %c0_631] : memref<1x14x14xf32, #tpu.memory_space<vmem>>, vector<1x8x8xf32>
    %2120 = vector.shape_cast %2119 : vector<1x8x8xf32> to vector<8x8xf32>
    %2121 = vector.broadcast %2118 : f32 to vector<8x8xf32>
    %2122 = arith.mulf %2121, %2120 : vector<8x8xf32>
    %c258 = arith.constant 258 : index
    %2123 = memref.load %arg1[%c258] : memref<658xf32, #tpu.memory_space<smem>>
    %c0_632 = arith.constant 0 : index
    %c0_633 = arith.constant 0 : index
    %c1_634 = arith.constant 1 : index
    %2124 = vector.load %arg10[%c0_632, %c0_633, %c1_634] : memref<1x14x14xf32, #tpu.memory_space<vmem>>, vector<1x8x8xf32>
    %2125 = vector.shape_cast %2124 : vector<1x8x8xf32> to vector<8x8xf32>
    %2126 = vector.broadcast %2123 : f32 to vector<8x8xf32>
    %2127 = arith.mulf %2126, %2125 : vector<8x8xf32>
    %2128 = arith.addf %2122, %2127 : vector<8x8xf32>
    %c259 = arith.constant 259 : index
    %2129 = memref.load %arg1[%c259] : memref<658xf32, #tpu.memory_space<smem>>
    %c0_635 = arith.constant 0 : index
    %c0_636 = arith.constant 0 : index
    %c2_637 = arith.constant 2 : index
    %2130 = vector.load %arg10[%c0_635, %c0_636, %c2_637] : memref<1x14x14xf32, #tpu.memory_space<vmem>>, vector<1x8x8xf32>
    %2131 = vector.shape_cast %2130 : vector<1x8x8xf32> to vector<8x8xf32>
    %2132 = vector.broadcast %2129 : f32 to vector<8x8xf32>
    %2133 = arith.mulf %2132, %2131 : vector<8x8xf32>
    %2134 = arith.addf %2128, %2133 : vector<8x8xf32>
    %c260 = arith.constant 260 : index
    %2135 = memref.load %arg1[%c260] : memref<658xf32, #tpu.memory_space<smem>>
    %c0_638 = arith.constant 0 : index
    %c0_639 = arith.constant 0 : index
    %c3_640 = arith.constant 3 : index
    %2136 = vector.load %arg10[%c0_638, %c0_639, %c3_640] : memref<1x14x14xf32, #tpu.memory_space<vmem>>, vector<1x8x8xf32>
    %2137 = vector.shape_cast %2136 : vector<1x8x8xf32> to vector<8x8xf32>
    %2138 = vector.broadcast %2135 : f32 to vector<8x8xf32>
    %2139 = arith.mulf %2138, %2137 : vector<8x8xf32>
    %2140 = arith.addf %2134, %2139 : vector<8x8xf32>
    %c261 = arith.constant 261 : index
    %2141 = memref.load %arg1[%c261] : memref<658xf32, #tpu.memory_space<smem>>
    %c0_641 = arith.constant 0 : index
    %c0_642 = arith.constant 0 : index
    %c4_643 = arith.constant 4 : index
    %2142 = vector.load %arg10[%c0_641, %c0_642, %c4_643] : memref<1x14x14xf32, #tpu.memory_space<vmem>>, vector<1x8x8xf32>
    %2143 = vector.shape_cast %2142 : vector<1x8x8xf32> to vector<8x8xf32>
    %2144 = vector.broadcast %2141 : f32 to vector<8x8xf32>
    %2145 = arith.mulf %2144, %2143 : vector<8x8xf32>
    %2146 = arith.addf %2140, %2145 : vector<8x8xf32>
    %c262 = arith.constant 262 : index
    %2147 = memref.load %arg1[%c262] : memref<658xf32, #tpu.memory_space<smem>>
    %c0_644 = arith.constant 0 : index
    %c0_645 = arith.constant 0 : index
    %c5_646 = arith.constant 5 : index
    %2148 = vector.load %arg10[%c0_644, %c0_645, %c5_646] : memref<1x14x14xf32, #tpu.memory_space<vmem>>, vector<1x8x8xf32>
    %2149 = vector.shape_cast %2148 : vector<1x8x8xf32> to vector<8x8xf32>
    %2150 = vector.broadcast %2147 : f32 to vector<8x8xf32>
    %2151 = arith.mulf %2150, %2149 : vector<8x8xf32>
    %2152 = arith.addf %2146, %2151 : vector<8x8xf32>
    %c263 = arith.constant 263 : index
    %2153 = memref.load %arg1[%c263] : memref<658xf32, #tpu.memory_space<smem>>
    %c0_647 = arith.constant 0 : index
    %c0_648 = arith.constant 0 : index
    %c6_649 = arith.constant 6 : index
    %2154 = vector.load %arg10[%c0_647, %c0_648, %c6_649] : memref<1x14x14xf32, #tpu.memory_space<vmem>>, vector<1x8x8xf32>
    %2155 = vector.shape_cast %2154 : vector<1x8x8xf32> to vector<8x8xf32>
    %2156 = vector.broadcast %2153 : f32 to vector<8x8xf32>
    %2157 = arith.mulf %2156, %2155 : vector<8x8xf32>
    %2158 = arith.addf %2152, %2157 : vector<8x8xf32>
    %c264 = arith.constant 264 : index
    %2159 = memref.load %arg1[%c264] : memref<658xf32, #tpu.memory_space<smem>>
    %c0_650 = arith.constant 0 : index
    %c1_651 = arith.constant 1 : index
    %c0_652 = arith.constant 0 : index
    %2160 = vector.load %arg10[%c0_650, %c1_651, %c0_652] : memref<1x14x14xf32, #tpu.memory_space<vmem>>, vector<1x8x8xf32>
    %2161 = vector.shape_cast %2160 : vector<1x8x8xf32> to vector<8x8xf32>
    %2162 = vector.broadcast %2159 : f32 to vector<8x8xf32>
    %2163 = arith.mulf %2162, %2161 : vector<8x8xf32>
    %2164 = arith.addf %2158, %2163 : vector<8x8xf32>
    %c265 = arith.constant 265 : index
    %2165 = memref.load %arg1[%c265] : memref<658xf32, #tpu.memory_space<smem>>
    %c0_653 = arith.constant 0 : index
    %c1_654 = arith.constant 1 : index
    %c1_655 = arith.constant 1 : index
    %2166 = vector.load %arg10[%c0_653, %c1_654, %c1_655] : memref<1x14x14xf32, #tpu.memory_space<vmem>>, vector<1x8x8xf32>
    %2167 = vector.shape_cast %2166 : vector<1x8x8xf32> to vector<8x8xf32>
    %2168 = vector.broadcast %2165 : f32 to vector<8x8xf32>
    %2169 = arith.mulf %2168, %2167 : vector<8x8xf32>
    %2170 = arith.addf %2164, %2169 : vector<8x8xf32>
    %c266 = arith.constant 266 : index
    %2171 = memref.load %arg1[%c266] : memref<658xf32, #tpu.memory_space<smem>>
    %c0_656 = arith.constant 0 : index
    %c1_657 = arith.constant 1 : index
    %c2_658 = arith.constant 2 : index
    %2172 = vector.load %arg10[%c0_656, %c1_657, %c2_658] : memref<1x14x14xf32, #tpu.memory_space<vmem>>, vector<1x8x8xf32>
    %2173 = vector.shape_cast %2172 : vector<1x8x8xf32> to vector<8x8xf32>
    %2174 = vector.broadcast %2171 : f32 to vector<8x8xf32>
    %2175 = arith.mulf %2174, %2173 : vector<8x8xf32>
    %2176 = arith.addf %2170, %2175 : vector<8x8xf32>
    %c267 = arith.constant 267 : index
    %2177 = memref.load %arg1[%c267] : memref<658xf32, #tpu.memory_space<smem>>
    %c0_659 = arith.constant 0 : index
    %c1_660 = arith.constant 1 : index
    %c3_661 = arith.constant 3 : index
    %2178 = vector.load %arg10[%c0_659, %c1_660, %c3_661] : memref<1x14x14xf32, #tpu.memory_space<vmem>>, vector<1x8x8xf32>
    %2179 = vector.shape_cast %2178 : vector<1x8x8xf32> to vector<8x8xf32>
    %2180 = vector.broadcast %2177 : f32 to vector<8x8xf32>
    %2181 = arith.mulf %2180, %2179 : vector<8x8xf32>
    %2182 = arith.addf %2176, %2181 : vector<8x8xf32>
    %c268 = arith.constant 268 : index
    %2183 = memref.load %arg1[%c268] : memref<658xf32, #tpu.memory_space<smem>>
    %c0_662 = arith.constant 0 : index
    %c1_663 = arith.constant 1 : index
    %c4_664 = arith.constant 4 : index
    %2184 = vector.load %arg10[%c0_662, %c1_663, %c4_664] : memref<1x14x14xf32, #tpu.memory_space<vmem>>, vector<1x8x8xf32>
    %2185 = vector.shape_cast %2184 : vector<1x8x8xf32> to vector<8x8xf32>
    %2186 = vector.broadcast %2183 : f32 to vector<8x8xf32>
    %2187 = arith.mulf %2186, %2185 : vector<8x8xf32>
    %2188 = arith.addf %2182, %2187 : vector<8x8xf32>
    %c269 = arith.constant 269 : index
    %2189 = memref.load %arg1[%c269] : memref<658xf32, #tpu.memory_space<smem>>
    %c0_665 = arith.constant 0 : index
    %c1_666 = arith.constant 1 : index
    %c5_667 = arith.constant 5 : index
    %2190 = vector.load %arg10[%c0_665, %c1_666, %c5_667] : memref<1x14x14xf32, #tpu.memory_space<vmem>>, vector<1x8x8xf32>
    %2191 = vector.shape_cast %2190 : vector<1x8x8xf32> to vector<8x8xf32>
    %2192 = vector.broadcast %2189 : f32 to vector<8x8xf32>
    %2193 = arith.mulf %2192, %2191 : vector<8x8xf32>
    %2194 = arith.addf %2188, %2193 : vector<8x8xf32>
    %c270 = arith.constant 270 : index
    %2195 = memref.load %arg1[%c270] : memref<658xf32, #tpu.memory_space<smem>>
    %c0_668 = arith.constant 0 : index
    %c1_669 = arith.constant 1 : index
    %c6_670 = arith.constant 6 : index
    %2196 = vector.load %arg10[%c0_668, %c1_669, %c6_670] : memref<1x14x14xf32, #tpu.memory_space<vmem>>, vector<1x8x8xf32>
    %2197 = vector.shape_cast %2196 : vector<1x8x8xf32> to vector<8x8xf32>
    %2198 = vector.broadcast %2195 : f32 to vector<8x8xf32>
    %2199 = arith.mulf %2198, %2197 : vector<8x8xf32>
    %2200 = arith.addf %2194, %2199 : vector<8x8xf32>
    %c271 = arith.constant 271 : index
    %2201 = memref.load %arg1[%c271] : memref<658xf32, #tpu.memory_space<smem>>
    %c0_671 = arith.constant 0 : index
    %c2_672 = arith.constant 2 : index
    %c0_673 = arith.constant 0 : index
    %2202 = vector.load %arg10[%c0_671, %c2_672, %c0_673] : memref<1x14x14xf32, #tpu.memory_space<vmem>>, vector<1x8x8xf32>
    %2203 = vector.shape_cast %2202 : vector<1x8x8xf32> to vector<8x8xf32>
    %2204 = vector.broadcast %2201 : f32 to vector<8x8xf32>
    %2205 = arith.mulf %2204, %2203 : vector<8x8xf32>
    %2206 = arith.addf %2200, %2205 : vector<8x8xf32>
    %c272 = arith.constant 272 : index
    %2207 = memref.load %arg1[%c272] : memref<658xf32, #tpu.memory_space<smem>>
    %c0_674 = arith.constant 0 : index
    %c2_675 = arith.constant 2 : index
    %c1_676 = arith.constant 1 : index
    %2208 = vector.load %arg10[%c0_674, %c2_675, %c1_676] : memref<1x14x14xf32, #tpu.memory_space<vmem>>, vector<1x8x8xf32>
    %2209 = vector.shape_cast %2208 : vector<1x8x8xf32> to vector<8x8xf32>
    %2210 = vector.broadcast %2207 : f32 to vector<8x8xf32>
    %2211 = arith.mulf %2210, %2209 : vector<8x8xf32>
    %2212 = arith.addf %2206, %2211 : vector<8x8xf32>
    %c273 = arith.constant 273 : index
    %2213 = memref.load %arg1[%c273] : memref<658xf32, #tpu.memory_space<smem>>
    %c0_677 = arith.constant 0 : index
    %c2_678 = arith.constant 2 : index
    %c2_679 = arith.constant 2 : index
    %2214 = vector.load %arg10[%c0_677, %c2_678, %c2_679] : memref<1x14x14xf32, #tpu.memory_space<vmem>>, vector<1x8x8xf32>
    %2215 = vector.shape_cast %2214 : vector<1x8x8xf32> to vector<8x8xf32>
    %2216 = vector.broadcast %2213 : f32 to vector<8x8xf32>
    %2217 = arith.mulf %2216, %2215 : vector<8x8xf32>
    %2218 = arith.addf %2212, %2217 : vector<8x8xf32>
    %c274 = arith.constant 274 : index
    %2219 = memref.load %arg1[%c274] : memref<658xf32, #tpu.memory_space<smem>>
    %c0_680 = arith.constant 0 : index
    %c2_681 = arith.constant 2 : index
    %c3_682 = arith.constant 3 : index
    %2220 = vector.load %arg10[%c0_680, %c2_681, %c3_682] : memref<1x14x14xf32, #tpu.memory_space<vmem>>, vector<1x8x8xf32>
    %2221 = vector.shape_cast %2220 : vector<1x8x8xf32> to vector<8x8xf32>
    %2222 = vector.broadcast %2219 : f32 to vector<8x8xf32>
    %2223 = arith.mulf %2222, %2221 : vector<8x8xf32>
    %2224 = arith.addf %2218, %2223 : vector<8x8xf32>
    %c275 = arith.constant 275 : index
    %2225 = memref.load %arg1[%c275] : memref<658xf32, #tpu.memory_space<smem>>
    %c0_683 = arith.constant 0 : index
    %c2_684 = arith.constant 2 : index
    %c4_685 = arith.constant 4 : index
    %2226 = vector.load %arg10[%c0_683, %c2_684, %c4_685] : memref<1x14x14xf32, #tpu.memory_space<vmem>>, vector<1x8x8xf32>
    %2227 = vector.shape_cast %2226 : vector<1x8x8xf32> to vector<8x8xf32>
    %2228 = vector.broadcast %2225 : f32 to vector<8x8xf32>
    %2229 = arith.mulf %2228, %2227 : vector<8x8xf32>
    %2230 = arith.addf %2224, %2229 : vector<8x8xf32>
    %c276 = arith.constant 276 : index
    %2231 = memref.load %arg1[%c276] : memref<658xf32, #tpu.memory_space<smem>>
    %c0_686 = arith.constant 0 : index
    %c2_687 = arith.constant 2 : index
    %c5_688 = arith.constant 5 : index
    %2232 = vector.load %arg10[%c0_686, %c2_687, %c5_688] : memref<1x14x14xf32, #tpu.memory_space<vmem>>, vector<1x8x8xf32>
    %2233 = vector.shape_cast %2232 : vector<1x8x8xf32> to vector<8x8xf32>
    %2234 = vector.broadcast %2231 : f32 to vector<8x8xf32>
    %2235 = arith.mulf %2234, %2233 : vector<8x8xf32>
    %2236 = arith.addf %2230, %2235 : vector<8x8xf32>
    %c277 = arith.constant 277 : index
    %2237 = memref.load %arg1[%c277] : memref<658xf32, #tpu.memory_space<smem>>
    %c0_689 = arith.constant 0 : index
    %c2_690 = arith.constant 2 : index
    %c6_691 = arith.constant 6 : index
    %2238 = vector.load %arg10[%c0_689, %c2_690, %c6_691] : memref<1x14x14xf32, #tpu.memory_space<vmem>>, vector<1x8x8xf32>
    %2239 = vector.shape_cast %2238 : vector<1x8x8xf32> to vector<8x8xf32>
    %2240 = vector.broadcast %2237 : f32 to vector<8x8xf32>
    %2241 = arith.mulf %2240, %2239 : vector<8x8xf32>
    %2242 = arith.addf %2236, %2241 : vector<8x8xf32>
    %c278 = arith.constant 278 : index
    %2243 = memref.load %arg1[%c278] : memref<658xf32, #tpu.memory_space<smem>>
    %c0_692 = arith.constant 0 : index
    %c3_693 = arith.constant 3 : index
    %c0_694 = arith.constant 0 : index
    %2244 = vector.load %arg10[%c0_692, %c3_693, %c0_694] : memref<1x14x14xf32, #tpu.memory_space<vmem>>, vector<1x8x8xf32>
    %2245 = vector.shape_cast %2244 : vector<1x8x8xf32> to vector<8x8xf32>
    %2246 = vector.broadcast %2243 : f32 to vector<8x8xf32>
    %2247 = arith.mulf %2246, %2245 : vector<8x8xf32>
    %2248 = arith.addf %2242, %2247 : vector<8x8xf32>
    %c279 = arith.constant 279 : index
    %2249 = memref.load %arg1[%c279] : memref<658xf32, #tpu.memory_space<smem>>
    %c0_695 = arith.constant 0 : index
    %c3_696 = arith.constant 3 : index
    %c1_697 = arith.constant 1 : index
    %2250 = vector.load %arg10[%c0_695, %c3_696, %c1_697] : memref<1x14x14xf32, #tpu.memory_space<vmem>>, vector<1x8x8xf32>
    %2251 = vector.shape_cast %2250 : vector<1x8x8xf32> to vector<8x8xf32>
    %2252 = vector.broadcast %2249 : f32 to vector<8x8xf32>
    %2253 = arith.mulf %2252, %2251 : vector<8x8xf32>
    %2254 = arith.addf %2248, %2253 : vector<8x8xf32>
    %c280 = arith.constant 280 : index
    %2255 = memref.load %arg1[%c280] : memref<658xf32, #tpu.memory_space<smem>>
    %c0_698 = arith.constant 0 : index
    %c3_699 = arith.constant 3 : index
    %c2_700 = arith.constant 2 : index
    %2256 = vector.load %arg10[%c0_698, %c3_699, %c2_700] : memref<1x14x14xf32, #tpu.memory_space<vmem>>, vector<1x8x8xf32>
    %2257 = vector.shape_cast %2256 : vector<1x8x8xf32> to vector<8x8xf32>
    %2258 = vector.broadcast %2255 : f32 to vector<8x8xf32>
    %2259 = arith.mulf %2258, %2257 : vector<8x8xf32>
    %2260 = arith.addf %2254, %2259 : vector<8x8xf32>
    %c281 = arith.constant 281 : index
    %2261 = memref.load %arg1[%c281] : memref<658xf32, #tpu.memory_space<smem>>
    %c0_701 = arith.constant 0 : index
    %c3_702 = arith.constant 3 : index
    %c3_703 = arith.constant 3 : index
    %2262 = vector.load %arg10[%c0_701, %c3_702, %c3_703] : memref<1x14x14xf32, #tpu.memory_space<vmem>>, vector<1x8x8xf32>
    %2263 = vector.shape_cast %2262 : vector<1x8x8xf32> to vector<8x8xf32>
    %2264 = vector.broadcast %2261 : f32 to vector<8x8xf32>
    %2265 = arith.mulf %2264, %2263 : vector<8x8xf32>
    %2266 = arith.addf %2260, %2265 : vector<8x8xf32>
    %c282 = arith.constant 282 : index
    %2267 = memref.load %arg1[%c282] : memref<658xf32, #tpu.memory_space<smem>>
    %c0_704 = arith.constant 0 : index
    %c3_705 = arith.constant 3 : index
    %c4_706 = arith.constant 4 : index
    %2268 = vector.load %arg10[%c0_704, %c3_705, %c4_706] : memref<1x14x14xf32, #tpu.memory_space<vmem>>, vector<1x8x8xf32>
    %2269 = vector.shape_cast %2268 : vector<1x8x8xf32> to vector<8x8xf32>
    %2270 = vector.broadcast %2267 : f32 to vector<8x8xf32>
    %2271 = arith.mulf %2270, %2269 : vector<8x8xf32>
    %2272 = arith.addf %2266, %2271 : vector<8x8xf32>
    %c283 = arith.constant 283 : index
    %2273 = memref.load %arg1[%c283] : memref<658xf32, #tpu.memory_space<smem>>
    %c0_707 = arith.constant 0 : index
    %c3_708 = arith.constant 3 : index
    %c5_709 = arith.constant 5 : index
    %2274 = vector.load %arg10[%c0_707, %c3_708, %c5_709] : memref<1x14x14xf32, #tpu.memory_space<vmem>>, vector<1x8x8xf32>
    %2275 = vector.shape_cast %2274 : vector<1x8x8xf32> to vector<8x8xf32>
    %2276 = vector.broadcast %2273 : f32 to vector<8x8xf32>
    %2277 = arith.mulf %2276, %2275 : vector<8x8xf32>
    %2278 = arith.addf %2272, %2277 : vector<8x8xf32>
    %c284 = arith.constant 284 : index
    %2279 = memref.load %arg1[%c284] : memref<658xf32, #tpu.memory_space<smem>>
    %c0_710 = arith.constant 0 : index
    %c3_711 = arith.constant 3 : index
    %c6_712 = arith.constant 6 : index
    %2280 = vector.load %arg10[%c0_710, %c3_711, %c6_712] : memref<1x14x14xf32, #tpu.memory_space<vmem>>, vector<1x8x8xf32>
    %2281 = vector.shape_cast %2280 : vector<1x8x8xf32> to vector<8x8xf32>
    %2282 = vector.broadcast %2279 : f32 to vector<8x8xf32>
    %2283 = arith.mulf %2282, %2281 : vector<8x8xf32>
    %2284 = arith.addf %2278, %2283 : vector<8x8xf32>
    %c285 = arith.constant 285 : index
    %2285 = memref.load %arg1[%c285] : memref<658xf32, #tpu.memory_space<smem>>
    %c0_713 = arith.constant 0 : index
    %c4_714 = arith.constant 4 : index
    %c0_715 = arith.constant 0 : index
    %2286 = vector.load %arg10[%c0_713, %c4_714, %c0_715] : memref<1x14x14xf32, #tpu.memory_space<vmem>>, vector<1x8x8xf32>
    %2287 = vector.shape_cast %2286 : vector<1x8x8xf32> to vector<8x8xf32>
    %2288 = vector.broadcast %2285 : f32 to vector<8x8xf32>
    %2289 = arith.mulf %2288, %2287 : vector<8x8xf32>
    %2290 = arith.addf %2284, %2289 : vector<8x8xf32>
    %c286 = arith.constant 286 : index
    %2291 = memref.load %arg1[%c286] : memref<658xf32, #tpu.memory_space<smem>>
    %c0_716 = arith.constant 0 : index
    %c4_717 = arith.constant 4 : index
    %c1_718 = arith.constant 1 : index
    %2292 = vector.load %arg10[%c0_716, %c4_717, %c1_718] : memref<1x14x14xf32, #tpu.memory_space<vmem>>, vector<1x8x8xf32>
    %2293 = vector.shape_cast %2292 : vector<1x8x8xf32> to vector<8x8xf32>
    %2294 = vector.broadcast %2291 : f32 to vector<8x8xf32>
    %2295 = arith.mulf %2294, %2293 : vector<8x8xf32>
    %2296 = arith.addf %2290, %2295 : vector<8x8xf32>
    %c287 = arith.constant 287 : index
    %2297 = memref.load %arg1[%c287] : memref<658xf32, #tpu.memory_space<smem>>
    %c0_719 = arith.constant 0 : index
    %c4_720 = arith.constant 4 : index
    %c2_721 = arith.constant 2 : index
    %2298 = vector.load %arg10[%c0_719, %c4_720, %c2_721] : memref<1x14x14xf32, #tpu.memory_space<vmem>>, vector<1x8x8xf32>
    %2299 = vector.shape_cast %2298 : vector<1x8x8xf32> to vector<8x8xf32>
    %2300 = vector.broadcast %2297 : f32 to vector<8x8xf32>
    %2301 = arith.mulf %2300, %2299 : vector<8x8xf32>
    %2302 = arith.addf %2296, %2301 : vector<8x8xf32>
    %c288 = arith.constant 288 : index
    %2303 = memref.load %arg1[%c288] : memref<658xf32, #tpu.memory_space<smem>>
    %c0_722 = arith.constant 0 : index
    %c4_723 = arith.constant 4 : index
    %c3_724 = arith.constant 3 : index
    %2304 = vector.load %arg10[%c0_722, %c4_723, %c3_724] : memref<1x14x14xf32, #tpu.memory_space<vmem>>, vector<1x8x8xf32>
    %2305 = vector.shape_cast %2304 : vector<1x8x8xf32> to vector<8x8xf32>
    %2306 = vector.broadcast %2303 : f32 to vector<8x8xf32>
    %2307 = arith.mulf %2306, %2305 : vector<8x8xf32>
    %2308 = arith.addf %2302, %2307 : vector<8x8xf32>
    %c289 = arith.constant 289 : index
    %2309 = memref.load %arg1[%c289] : memref<658xf32, #tpu.memory_space<smem>>
    %c0_725 = arith.constant 0 : index
    %c4_726 = arith.constant 4 : index
    %c4_727 = arith.constant 4 : index
    %2310 = vector.load %arg10[%c0_725, %c4_726, %c4_727] : memref<1x14x14xf32, #tpu.memory_space<vmem>>, vector<1x8x8xf32>
    %2311 = vector.shape_cast %2310 : vector<1x8x8xf32> to vector<8x8xf32>
    %2312 = vector.broadcast %2309 : f32 to vector<8x8xf32>
    %2313 = arith.mulf %2312, %2311 : vector<8x8xf32>
    %2314 = arith.addf %2308, %2313 : vector<8x8xf32>
    %c290 = arith.constant 290 : index
    %2315 = memref.load %arg1[%c290] : memref<658xf32, #tpu.memory_space<smem>>
    %c0_728 = arith.constant 0 : index
    %c4_729 = arith.constant 4 : index
    %c5_730 = arith.constant 5 : index
    %2316 = vector.load %arg10[%c0_728, %c4_729, %c5_730] : memref<1x14x14xf32, #tpu.memory_space<vmem>>, vector<1x8x8xf32>
    %2317 = vector.shape_cast %2316 : vector<1x8x8xf32> to vector<8x8xf32>
    %2318 = vector.broadcast %2315 : f32 to vector<8x8xf32>
    %2319 = arith.mulf %2318, %2317 : vector<8x8xf32>
    %2320 = arith.addf %2314, %2319 : vector<8x8xf32>
    %c291 = arith.constant 291 : index
    %2321 = memref.load %arg1[%c291] : memref<658xf32, #tpu.memory_space<smem>>
    %c0_731 = arith.constant 0 : index
    %c4_732 = arith.constant 4 : index
    %c6_733 = arith.constant 6 : index
    %2322 = vector.load %arg10[%c0_731, %c4_732, %c6_733] : memref<1x14x14xf32, #tpu.memory_space<vmem>>, vector<1x8x8xf32>
    %2323 = vector.shape_cast %2322 : vector<1x8x8xf32> to vector<8x8xf32>
    %2324 = vector.broadcast %2321 : f32 to vector<8x8xf32>
    %2325 = arith.mulf %2324, %2323 : vector<8x8xf32>
    %2326 = arith.addf %2320, %2325 : vector<8x8xf32>
    %c292 = arith.constant 292 : index
    %2327 = memref.load %arg1[%c292] : memref<658xf32, #tpu.memory_space<smem>>
    %c0_734 = arith.constant 0 : index
    %c5_735 = arith.constant 5 : index
    %c0_736 = arith.constant 0 : index
    %2328 = vector.load %arg10[%c0_734, %c5_735, %c0_736] : memref<1x14x14xf32, #tpu.memory_space<vmem>>, vector<1x8x8xf32>
    %2329 = vector.shape_cast %2328 : vector<1x8x8xf32> to vector<8x8xf32>
    %2330 = vector.broadcast %2327 : f32 to vector<8x8xf32>
    %2331 = arith.mulf %2330, %2329 : vector<8x8xf32>
    %2332 = arith.addf %2326, %2331 : vector<8x8xf32>
    %c293 = arith.constant 293 : index
    %2333 = memref.load %arg1[%c293] : memref<658xf32, #tpu.memory_space<smem>>
    %c0_737 = arith.constant 0 : index
    %c5_738 = arith.constant 5 : index
    %c1_739 = arith.constant 1 : index
    %2334 = vector.load %arg10[%c0_737, %c5_738, %c1_739] : memref<1x14x14xf32, #tpu.memory_space<vmem>>, vector<1x8x8xf32>
    %2335 = vector.shape_cast %2334 : vector<1x8x8xf32> to vector<8x8xf32>
    %2336 = vector.broadcast %2333 : f32 to vector<8x8xf32>
    %2337 = arith.mulf %2336, %2335 : vector<8x8xf32>
    %2338 = arith.addf %2332, %2337 : vector<8x8xf32>
    %c294 = arith.constant 294 : index
    %2339 = memref.load %arg1[%c294] : memref<658xf32, #tpu.memory_space<smem>>
    %c0_740 = arith.constant 0 : index
    %c5_741 = arith.constant 5 : index
    %c2_742 = arith.constant 2 : index
    %2340 = vector.load %arg10[%c0_740, %c5_741, %c2_742] : memref<1x14x14xf32, #tpu.memory_space<vmem>>, vector<1x8x8xf32>
    %2341 = vector.shape_cast %2340 : vector<1x8x8xf32> to vector<8x8xf32>
    %2342 = vector.broadcast %2339 : f32 to vector<8x8xf32>
    %2343 = arith.mulf %2342, %2341 : vector<8x8xf32>
    %2344 = arith.addf %2338, %2343 : vector<8x8xf32>
    %c295 = arith.constant 295 : index
    %2345 = memref.load %arg1[%c295] : memref<658xf32, #tpu.memory_space<smem>>
    %c0_743 = arith.constant 0 : index
    %c5_744 = arith.constant 5 : index
    %c3_745 = arith.constant 3 : index
    %2346 = vector.load %arg10[%c0_743, %c5_744, %c3_745] : memref<1x14x14xf32, #tpu.memory_space<vmem>>, vector<1x8x8xf32>
    %2347 = vector.shape_cast %2346 : vector<1x8x8xf32> to vector<8x8xf32>
    %2348 = vector.broadcast %2345 : f32 to vector<8x8xf32>
    %2349 = arith.mulf %2348, %2347 : vector<8x8xf32>
    %2350 = arith.addf %2344, %2349 : vector<8x8xf32>
    %c296 = arith.constant 296 : index
    %2351 = memref.load %arg1[%c296] : memref<658xf32, #tpu.memory_space<smem>>
    %c0_746 = arith.constant 0 : index
    %c5_747 = arith.constant 5 : index
    %c4_748 = arith.constant 4 : index
    %2352 = vector.load %arg10[%c0_746, %c5_747, %c4_748] : memref<1x14x14xf32, #tpu.memory_space<vmem>>, vector<1x8x8xf32>
    %2353 = vector.shape_cast %2352 : vector<1x8x8xf32> to vector<8x8xf32>
    %2354 = vector.broadcast %2351 : f32 to vector<8x8xf32>
    %2355 = arith.mulf %2354, %2353 : vector<8x8xf32>
    %2356 = arith.addf %2350, %2355 : vector<8x8xf32>
    %c297 = arith.constant 297 : index
    %2357 = memref.load %arg1[%c297] : memref<658xf32, #tpu.memory_space<smem>>
    %c0_749 = arith.constant 0 : index
    %c5_750 = arith.constant 5 : index
    %c5_751 = arith.constant 5 : index
    %2358 = vector.load %arg10[%c0_749, %c5_750, %c5_751] : memref<1x14x14xf32, #tpu.memory_space<vmem>>, vector<1x8x8xf32>
    %2359 = vector.shape_cast %2358 : vector<1x8x8xf32> to vector<8x8xf32>
    %2360 = vector.broadcast %2357 : f32 to vector<8x8xf32>
    %2361 = arith.mulf %2360, %2359 : vector<8x8xf32>
    %2362 = arith.addf %2356, %2361 : vector<8x8xf32>
    %c298 = arith.constant 298 : index
    %2363 = memref.load %arg1[%c298] : memref<658xf32, #tpu.memory_space<smem>>
    %c0_752 = arith.constant 0 : index
    %c5_753 = arith.constant 5 : index
    %c6_754 = arith.constant 6 : index
    %2364 = vector.load %arg10[%c0_752, %c5_753, %c6_754] : memref<1x14x14xf32, #tpu.memory_space<vmem>>, vector<1x8x8xf32>
    %2365 = vector.shape_cast %2364 : vector<1x8x8xf32> to vector<8x8xf32>
    %2366 = vector.broadcast %2363 : f32 to vector<8x8xf32>
    %2367 = arith.mulf %2366, %2365 : vector<8x8xf32>
    %2368 = arith.addf %2362, %2367 : vector<8x8xf32>
    %c299 = arith.constant 299 : index
    %2369 = memref.load %arg1[%c299] : memref<658xf32, #tpu.memory_space<smem>>
    %c0_755 = arith.constant 0 : index
    %c6_756 = arith.constant 6 : index
    %c0_757 = arith.constant 0 : index
    %2370 = vector.load %arg10[%c0_755, %c6_756, %c0_757] : memref<1x14x14xf32, #tpu.memory_space<vmem>>, vector<1x8x8xf32>
    %2371 = vector.shape_cast %2370 : vector<1x8x8xf32> to vector<8x8xf32>
    %2372 = vector.broadcast %2369 : f32 to vector<8x8xf32>
    %2373 = arith.mulf %2372, %2371 : vector<8x8xf32>
    %2374 = arith.addf %2368, %2373 : vector<8x8xf32>
    %c300 = arith.constant 300 : index
    %2375 = memref.load %arg1[%c300] : memref<658xf32, #tpu.memory_space<smem>>
    %c0_758 = arith.constant 0 : index
    %c6_759 = arith.constant 6 : index
    %c1_760 = arith.constant 1 : index
    %2376 = vector.load %arg10[%c0_758, %c6_759, %c1_760] : memref<1x14x14xf32, #tpu.memory_space<vmem>>, vector<1x8x8xf32>
    %2377 = vector.shape_cast %2376 : vector<1x8x8xf32> to vector<8x8xf32>
    %2378 = vector.broadcast %2375 : f32 to vector<8x8xf32>
    %2379 = arith.mulf %2378, %2377 : vector<8x8xf32>
    %2380 = arith.addf %2374, %2379 : vector<8x8xf32>
    %c301 = arith.constant 301 : index
    %2381 = memref.load %arg1[%c301] : memref<658xf32, #tpu.memory_space<smem>>
    %c0_761 = arith.constant 0 : index
    %c6_762 = arith.constant 6 : index
    %c2_763 = arith.constant 2 : index
    %2382 = vector.load %arg10[%c0_761, %c6_762, %c2_763] : memref<1x14x14xf32, #tpu.memory_space<vmem>>, vector<1x8x8xf32>
    %2383 = vector.shape_cast %2382 : vector<1x8x8xf32> to vector<8x8xf32>
    %2384 = vector.broadcast %2381 : f32 to vector<8x8xf32>
    %2385 = arith.mulf %2384, %2383 : vector<8x8xf32>
    %2386 = arith.addf %2380, %2385 : vector<8x8xf32>
    %c302 = arith.constant 302 : index
    %2387 = memref.load %arg1[%c302] : memref<658xf32, #tpu.memory_space<smem>>
    %c0_764 = arith.constant 0 : index
    %c6_765 = arith.constant 6 : index
    %c3_766 = arith.constant 3 : index
    %2388 = vector.load %arg10[%c0_764, %c6_765, %c3_766] : memref<1x14x14xf32, #tpu.memory_space<vmem>>, vector<1x8x8xf32>
    %2389 = vector.shape_cast %2388 : vector<1x8x8xf32> to vector<8x8xf32>
    %2390 = vector.broadcast %2387 : f32 to vector<8x8xf32>
    %2391 = arith.mulf %2390, %2389 : vector<8x8xf32>
    %2392 = arith.addf %2386, %2391 : vector<8x8xf32>
    %c303 = arith.constant 303 : index
    %2393 = memref.load %arg1[%c303] : memref<658xf32, #tpu.memory_space<smem>>
    %c0_767 = arith.constant 0 : index
    %c6_768 = arith.constant 6 : index
    %c4_769 = arith.constant 4 : index
    %2394 = vector.load %arg10[%c0_767, %c6_768, %c4_769] : memref<1x14x14xf32, #tpu.memory_space<vmem>>, vector<1x8x8xf32>
    %2395 = vector.shape_cast %2394 : vector<1x8x8xf32> to vector<8x8xf32>
    %2396 = vector.broadcast %2393 : f32 to vector<8x8xf32>
    %2397 = arith.mulf %2396, %2395 : vector<8x8xf32>
    %2398 = arith.addf %2392, %2397 : vector<8x8xf32>
    %c304 = arith.constant 304 : index
    %2399 = memref.load %arg1[%c304] : memref<658xf32, #tpu.memory_space<smem>>
    %c0_770 = arith.constant 0 : index
    %c6_771 = arith.constant 6 : index
    %c5_772 = arith.constant 5 : index
    %2400 = vector.load %arg10[%c0_770, %c6_771, %c5_772] : memref<1x14x14xf32, #tpu.memory_space<vmem>>, vector<1x8x8xf32>
    %2401 = vector.shape_cast %2400 : vector<1x8x8xf32> to vector<8x8xf32>
    %2402 = vector.broadcast %2399 : f32 to vector<8x8xf32>
    %2403 = arith.mulf %2402, %2401 : vector<8x8xf32>
    %2404 = arith.addf %2398, %2403 : vector<8x8xf32>
    %c305 = arith.constant 305 : index
    %2405 = memref.load %arg1[%c305] : memref<658xf32, #tpu.memory_space<smem>>
    %c0_773 = arith.constant 0 : index
    %c6_774 = arith.constant 6 : index
    %c6_775 = arith.constant 6 : index
    %2406 = vector.load %arg10[%c0_773, %c6_774, %c6_775] : memref<1x14x14xf32, #tpu.memory_space<vmem>>, vector<1x8x8xf32>
    %2407 = vector.shape_cast %2406 : vector<1x8x8xf32> to vector<8x8xf32>
    %2408 = vector.broadcast %2405 : f32 to vector<8x8xf32>
    %2409 = arith.mulf %2408, %2407 : vector<8x8xf32>
    %2410 = arith.addf %2404, %2409 : vector<8x8xf32>
    %2411 = arith.negf %2410 : vector<8x8xf32>
    %2412 = math.exp %2411 : vector<8x8xf32>
    %cst_776 = arith.constant 1.000000e+00 : f32
    %2413 = vector.broadcast %cst_776 : f32 to vector<8x8xf32>
    %2414 = arith.addf %2413, %2412 : vector<8x8xf32>
    %2415 = arith.divf %2413, %2414 : vector<8x8xf32>
    %2416 = vector.extract_strided_slice %1817 {offsets = [0, 0, 0], sizes = [1, 8, 8], strides = [1, 1, 1]} : vector<8x8x8xf32> to vector<1x8x8xf32>
    %2417 = vector.shape_cast %2416 : vector<1x8x8xf32> to vector<8x8xf32>
    %2418 = vector.shape_cast %2417 : vector<8x8xf32> to vector<1x8x8xf32>
    %cst_777 = arith.constant dense<0.000000e+00> : vector<1xf32>
    %2419 = vector.multi_reduction <add>, %2418, %cst_777 [1, 2] : vector<1x8x8xf32> to vector<1xf32>
    %2420 = vector.shape_cast %2419 : vector<1xf32> to vector<1x1x1xf32>
    %2421 = vector.extract %2420[0, 0, 0] : f32 from vector<1x1x1xf32>
    %2422 = vector.broadcast %2421 : f32 to vector<1x1xf32>
    %cst_778 = arith.constant 1.562500e-02 : f32
    %2423 = vector.broadcast %cst_778 : f32 to vector<1x1xf32>
    %2424 = arith.mulf %2422, %2423 : vector<1x1xf32>
    %c494 = arith.constant 494 : index
    %2425 = memref.load %arg1[%c494] : memref<658xf32, #tpu.memory_space<smem>>
    %2426 = vector.broadcast %2425 : f32 to vector<1x1xf32>
    %2427 = arith.mulf %2424, %2426 : vector<1x1xf32>
    %c562 = arith.constant 562 : index
    %2428 = memref.load %arg1[%c562] : memref<658xf32, #tpu.memory_space<smem>>
    %2429 = vector.broadcast %2428 : f32 to vector<1x1xf32>
    %2430 = arith.mulf %2427, %2429 : vector<1x1xf32>
    %c570 = arith.constant 570 : index
    %2431 = memref.load %arg1[%c570] : memref<658xf32, #tpu.memory_space<smem>>
    %2432 = vector.broadcast %2431 : f32 to vector<1x1xf32>
    %2433 = arith.addf %2430, %2432 : vector<1x1xf32>
    %cst_779 = arith.constant 0.000000e+00 : f32
    %2434 = vector.broadcast %cst_779 : f32 to vector<1x1xf32>
    %2435 = arith.maximumf %2433, %2434 : vector<1x1xf32>
    %2436 = vector.extract_strided_slice %1817 {offsets = [1, 0, 0], sizes = [1, 8, 8], strides = [1, 1, 1]} : vector<8x8x8xf32> to vector<1x8x8xf32>
    %2437 = vector.shape_cast %2436 : vector<1x8x8xf32> to vector<8x8xf32>
    %2438 = vector.shape_cast %2437 : vector<8x8xf32> to vector<1x8x8xf32>
    %cst_780 = arith.constant dense<0.000000e+00> : vector<1xf32>
    %2439 = vector.multi_reduction <add>, %2438, %cst_780 [1, 2] : vector<1x8x8xf32> to vector<1xf32>
    %2440 = vector.shape_cast %2439 : vector<1xf32> to vector<1x1x1xf32>
    %2441 = vector.extract %2440[0, 0, 0] : f32 from vector<1x1x1xf32>
    %2442 = vector.broadcast %2441 : f32 to vector<1x1xf32>
    %cst_781 = arith.constant 1.562500e-02 : f32
    %2443 = vector.broadcast %cst_781 : f32 to vector<1x1xf32>
    %2444 = arith.mulf %2442, %2443 : vector<1x1xf32>
    %c503 = arith.constant 503 : index
    %2445 = memref.load %arg1[%c503] : memref<658xf32, #tpu.memory_space<smem>>
    %2446 = vector.broadcast %2445 : f32 to vector<1x1xf32>
    %2447 = arith.mulf %2444, %2446 : vector<1x1xf32>
    %c563 = arith.constant 563 : index
    %2448 = memref.load %arg1[%c563] : memref<658xf32, #tpu.memory_space<smem>>
    %2449 = vector.broadcast %2448 : f32 to vector<1x1xf32>
    %2450 = arith.mulf %2447, %2449 : vector<1x1xf32>
    %c571 = arith.constant 571 : index
    %2451 = memref.load %arg1[%c571] : memref<658xf32, #tpu.memory_space<smem>>
    %2452 = vector.broadcast %2451 : f32 to vector<1x1xf32>
    %2453 = arith.addf %2450, %2452 : vector<1x1xf32>
    %cst_782 = arith.constant 0.000000e+00 : f32
    %2454 = vector.broadcast %cst_782 : f32 to vector<1x1xf32>
    %2455 = arith.maximumf %2453, %2454 : vector<1x1xf32>
    %2456 = vector.extract_strided_slice %1817 {offsets = [2, 0, 0], sizes = [1, 8, 8], strides = [1, 1, 1]} : vector<8x8x8xf32> to vector<1x8x8xf32>
    %2457 = vector.shape_cast %2456 : vector<1x8x8xf32> to vector<8x8xf32>
    %2458 = vector.shape_cast %2457 : vector<8x8xf32> to vector<1x8x8xf32>
    %cst_783 = arith.constant dense<0.000000e+00> : vector<1xf32>
    %2459 = vector.multi_reduction <add>, %2458, %cst_783 [1, 2] : vector<1x8x8xf32> to vector<1xf32>
    %2460 = vector.shape_cast %2459 : vector<1xf32> to vector<1x1x1xf32>
    %2461 = vector.extract %2460[0, 0, 0] : f32 from vector<1x1x1xf32>
    %2462 = vector.broadcast %2461 : f32 to vector<1x1xf32>
    %cst_784 = arith.constant 1.562500e-02 : f32
    %2463 = vector.broadcast %cst_784 : f32 to vector<1x1xf32>
    %2464 = arith.mulf %2462, %2463 : vector<1x1xf32>
    %c512 = arith.constant 512 : index
    %2465 = memref.load %arg1[%c512] : memref<658xf32, #tpu.memory_space<smem>>
    %2466 = vector.broadcast %2465 : f32 to vector<1x1xf32>
    %2467 = arith.mulf %2464, %2466 : vector<1x1xf32>
    %c564 = arith.constant 564 : index
    %2468 = memref.load %arg1[%c564] : memref<658xf32, #tpu.memory_space<smem>>
    %2469 = vector.broadcast %2468 : f32 to vector<1x1xf32>
    %2470 = arith.mulf %2467, %2469 : vector<1x1xf32>
    %c572 = arith.constant 572 : index
    %2471 = memref.load %arg1[%c572] : memref<658xf32, #tpu.memory_space<smem>>
    %2472 = vector.broadcast %2471 : f32 to vector<1x1xf32>
    %2473 = arith.addf %2470, %2472 : vector<1x1xf32>
    %cst_785 = arith.constant 0.000000e+00 : f32
    %2474 = vector.broadcast %cst_785 : f32 to vector<1x1xf32>
    %2475 = arith.maximumf %2473, %2474 : vector<1x1xf32>
    %2476 = vector.extract_strided_slice %1817 {offsets = [3, 0, 0], sizes = [1, 8, 8], strides = [1, 1, 1]} : vector<8x8x8xf32> to vector<1x8x8xf32>
    %2477 = vector.shape_cast %2476 : vector<1x8x8xf32> to vector<8x8xf32>
    %2478 = vector.shape_cast %2477 : vector<8x8xf32> to vector<1x8x8xf32>
    %cst_786 = arith.constant dense<0.000000e+00> : vector<1xf32>
    %2479 = vector.multi_reduction <add>, %2478, %cst_786 [1, 2] : vector<1x8x8xf32> to vector<1xf32>
    %2480 = vector.shape_cast %2479 : vector<1xf32> to vector<1x1x1xf32>
    %2481 = vector.extract %2480[0, 0, 0] : f32 from vector<1x1x1xf32>
    %2482 = vector.broadcast %2481 : f32 to vector<1x1xf32>
    %cst_787 = arith.constant 1.562500e-02 : f32
    %2483 = vector.broadcast %cst_787 : f32 to vector<1x1xf32>
    %2484 = arith.mulf %2482, %2483 : vector<1x1xf32>
    %c521 = arith.constant 521 : index
    %2485 = memref.load %arg1[%c521] : memref<658xf32, #tpu.memory_space<smem>>
    %2486 = vector.broadcast %2485 : f32 to vector<1x1xf32>
    %2487 = arith.mulf %2484, %2486 : vector<1x1xf32>
    %c565 = arith.constant 565 : index
    %2488 = memref.load %arg1[%c565] : memref<658xf32, #tpu.memory_space<smem>>
    %2489 = vector.broadcast %2488 : f32 to vector<1x1xf32>
    %2490 = arith.mulf %2487, %2489 : vector<1x1xf32>
    %c573 = arith.constant 573 : index
    %2491 = memref.load %arg1[%c573] : memref<658xf32, #tpu.memory_space<smem>>
    %2492 = vector.broadcast %2491 : f32 to vector<1x1xf32>
    %2493 = arith.addf %2490, %2492 : vector<1x1xf32>
    %cst_788 = arith.constant 0.000000e+00 : f32
    %2494 = vector.broadcast %cst_788 : f32 to vector<1x1xf32>
    %2495 = arith.maximumf %2493, %2494 : vector<1x1xf32>
    %2496 = vector.extract_strided_slice %1817 {offsets = [4, 0, 0], sizes = [1, 8, 8], strides = [1, 1, 1]} : vector<8x8x8xf32> to vector<1x8x8xf32>
    %2497 = vector.shape_cast %2496 : vector<1x8x8xf32> to vector<8x8xf32>
    %2498 = vector.shape_cast %2497 : vector<8x8xf32> to vector<1x8x8xf32>
    %cst_789 = arith.constant dense<0.000000e+00> : vector<1xf32>
    %2499 = vector.multi_reduction <add>, %2498, %cst_789 [1, 2] : vector<1x8x8xf32> to vector<1xf32>
    %2500 = vector.shape_cast %2499 : vector<1xf32> to vector<1x1x1xf32>
    %2501 = vector.extract %2500[0, 0, 0] : f32 from vector<1x1x1xf32>
    %2502 = vector.broadcast %2501 : f32 to vector<1x1xf32>
    %cst_790 = arith.constant 1.562500e-02 : f32
    %2503 = vector.broadcast %cst_790 : f32 to vector<1x1xf32>
    %2504 = arith.mulf %2502, %2503 : vector<1x1xf32>
    %c530 = arith.constant 530 : index
    %2505 = memref.load %arg1[%c530] : memref<658xf32, #tpu.memory_space<smem>>
    %2506 = vector.broadcast %2505 : f32 to vector<1x1xf32>
    %2507 = arith.mulf %2504, %2506 : vector<1x1xf32>
    %c566 = arith.constant 566 : index
    %2508 = memref.load %arg1[%c566] : memref<658xf32, #tpu.memory_space<smem>>
    %2509 = vector.broadcast %2508 : f32 to vector<1x1xf32>
    %2510 = arith.mulf %2507, %2509 : vector<1x1xf32>
    %c574 = arith.constant 574 : index
    %2511 = memref.load %arg1[%c574] : memref<658xf32, #tpu.memory_space<smem>>
    %2512 = vector.broadcast %2511 : f32 to vector<1x1xf32>
    %2513 = arith.addf %2510, %2512 : vector<1x1xf32>
    %cst_791 = arith.constant 0.000000e+00 : f32
    %2514 = vector.broadcast %cst_791 : f32 to vector<1x1xf32>
    %2515 = arith.maximumf %2513, %2514 : vector<1x1xf32>
    %2516 = vector.extract_strided_slice %1817 {offsets = [5, 0, 0], sizes = [1, 8, 8], strides = [1, 1, 1]} : vector<8x8x8xf32> to vector<1x8x8xf32>
    %2517 = vector.shape_cast %2516 : vector<1x8x8xf32> to vector<8x8xf32>
    %2518 = vector.shape_cast %2517 : vector<8x8xf32> to vector<1x8x8xf32>
    %cst_792 = arith.constant dense<0.000000e+00> : vector<1xf32>
    %2519 = vector.multi_reduction <add>, %2518, %cst_792 [1, 2] : vector<1x8x8xf32> to vector<1xf32>
    %2520 = vector.shape_cast %2519 : vector<1xf32> to vector<1x1x1xf32>
    %2521 = vector.extract %2520[0, 0, 0] : f32 from vector<1x1x1xf32>
    %2522 = vector.broadcast %2521 : f32 to vector<1x1xf32>
    %cst_793 = arith.constant 1.562500e-02 : f32
    %2523 = vector.broadcast %cst_793 : f32 to vector<1x1xf32>
    %2524 = arith.mulf %2522, %2523 : vector<1x1xf32>
    %c539 = arith.constant 539 : index
    %2525 = memref.load %arg1[%c539] : memref<658xf32, #tpu.memory_space<smem>>
    %2526 = vector.broadcast %2525 : f32 to vector<1x1xf32>
    %2527 = arith.mulf %2524, %2526 : vector<1x1xf32>
    %c567 = arith.constant 567 : index
    %2528 = memref.load %arg1[%c567] : memref<658xf32, #tpu.memory_space<smem>>
    %2529 = vector.broadcast %2528 : f32 to vector<1x1xf32>
    %2530 = arith.mulf %2527, %2529 : vector<1x1xf32>
    %c575 = arith.constant 575 : index
    %2531 = memref.load %arg1[%c575] : memref<658xf32, #tpu.memory_space<smem>>
    %2532 = vector.broadcast %2531 : f32 to vector<1x1xf32>
    %2533 = arith.addf %2530, %2532 : vector<1x1xf32>
    %cst_794 = arith.constant 0.000000e+00 : f32
    %2534 = vector.broadcast %cst_794 : f32 to vector<1x1xf32>
    %2535 = arith.maximumf %2533, %2534 : vector<1x1xf32>
    %2536 = vector.extract_strided_slice %1817 {offsets = [6, 0, 0], sizes = [1, 8, 8], strides = [1, 1, 1]} : vector<8x8x8xf32> to vector<1x8x8xf32>
    %2537 = vector.shape_cast %2536 : vector<1x8x8xf32> to vector<8x8xf32>
    %2538 = vector.shape_cast %2537 : vector<8x8xf32> to vector<1x8x8xf32>
    %cst_795 = arith.constant dense<0.000000e+00> : vector<1xf32>
    %2539 = vector.multi_reduction <add>, %2538, %cst_795 [1, 2] : vector<1x8x8xf32> to vector<1xf32>
    %2540 = vector.shape_cast %2539 : vector<1xf32> to vector<1x1x1xf32>
    %2541 = vector.extract %2540[0, 0, 0] : f32 from vector<1x1x1xf32>
    %2542 = vector.broadcast %2541 : f32 to vector<1x1xf32>
    %cst_796 = arith.constant 1.562500e-02 : f32
    %2543 = vector.broadcast %cst_796 : f32 to vector<1x1xf32>
    %2544 = arith.mulf %2542, %2543 : vector<1x1xf32>
    %c548 = arith.constant 548 : index
    %2545 = memref.load %arg1[%c548] : memref<658xf32, #tpu.memory_space<smem>>
    %2546 = vector.broadcast %2545 : f32 to vector<1x1xf32>
    %2547 = arith.mulf %2544, %2546 : vector<1x1xf32>
    %c568 = arith.constant 568 : index
    %2548 = memref.load %arg1[%c568] : memref<658xf32, #tpu.memory_space<smem>>
    %2549 = vector.broadcast %2548 : f32 to vector<1x1xf32>
    %2550 = arith.mulf %2547, %2549 : vector<1x1xf32>
    %c576 = arith.constant 576 : index
    %2551 = memref.load %arg1[%c576] : memref<658xf32, #tpu.memory_space<smem>>
    %2552 = vector.broadcast %2551 : f32 to vector<1x1xf32>
    %2553 = arith.addf %2550, %2552 : vector<1x1xf32>
    %cst_797 = arith.constant 0.000000e+00 : f32
    %2554 = vector.broadcast %cst_797 : f32 to vector<1x1xf32>
    %2555 = arith.maximumf %2553, %2554 : vector<1x1xf32>
    %2556 = vector.extract_strided_slice %1817 {offsets = [7, 0, 0], sizes = [1, 8, 8], strides = [1, 1, 1]} : vector<8x8x8xf32> to vector<1x8x8xf32>
    %2557 = vector.shape_cast %2556 : vector<1x8x8xf32> to vector<8x8xf32>
    %2558 = vector.shape_cast %2557 : vector<8x8xf32> to vector<1x8x8xf32>
    %cst_798 = arith.constant dense<0.000000e+00> : vector<1xf32>
    %2559 = vector.multi_reduction <add>, %2558, %cst_798 [1, 2] : vector<1x8x8xf32> to vector<1xf32>
    %2560 = vector.shape_cast %2559 : vector<1xf32> to vector<1x1x1xf32>
    %2561 = vector.extract %2560[0, 0, 0] : f32 from vector<1x1x1xf32>
    %2562 = vector.broadcast %2561 : f32 to vector<1x1xf32>
    %cst_799 = arith.constant 1.562500e-02 : f32
    %2563 = vector.broadcast %cst_799 : f32 to vector<1x1xf32>
    %2564 = arith.mulf %2562, %2563 : vector<1x1xf32>
    %c557 = arith.constant 557 : index
    %2565 = memref.load %arg1[%c557] : memref<658xf32, #tpu.memory_space<smem>>
    %2566 = vector.broadcast %2565 : f32 to vector<1x1xf32>
    %2567 = arith.mulf %2564, %2566 : vector<1x1xf32>
    %c569 = arith.constant 569 : index
    %2568 = memref.load %arg1[%c569] : memref<658xf32, #tpu.memory_space<smem>>
    %2569 = vector.broadcast %2568 : f32 to vector<1x1xf32>
    %2570 = arith.mulf %2567, %2569 : vector<1x1xf32>
    %c577 = arith.constant 577 : index
    %2571 = memref.load %arg1[%c577] : memref<658xf32, #tpu.memory_space<smem>>
    %2572 = vector.broadcast %2571 : f32 to vector<1x1xf32>
    %2573 = arith.addf %2570, %2572 : vector<1x1xf32>
    %cst_800 = arith.constant 0.000000e+00 : f32
    %2574 = vector.broadcast %cst_800 : f32 to vector<1x1xf32>
    %2575 = arith.maximumf %2573, %2574 : vector<1x1xf32>
    %c578 = arith.constant 578 : index
    %2576 = memref.load %arg1[%c578] : memref<658xf32, #tpu.memory_space<smem>>
    %2577 = vector.broadcast %2576 : f32 to vector<1x1xf32>
    %2578 = arith.mulf %2577, %2435 : vector<1x1xf32>
    %c579 = arith.constant 579 : index
    %2579 = memref.load %arg1[%c579] : memref<658xf32, #tpu.memory_space<smem>>
    %2580 = vector.broadcast %2579 : f32 to vector<1x1xf32>
    %2581 = arith.mulf %2580, %2455 : vector<1x1xf32>
    %2582 = arith.addf %2578, %2581 : vector<1x1xf32>
    %c580 = arith.constant 580 : index
    %2583 = memref.load %arg1[%c580] : memref<658xf32, #tpu.memory_space<smem>>
    %2584 = vector.broadcast %2583 : f32 to vector<1x1xf32>
    %2585 = arith.mulf %2584, %2475 : vector<1x1xf32>
    %2586 = arith.addf %2582, %2585 : vector<1x1xf32>
    %c581 = arith.constant 581 : index
    %2587 = memref.load %arg1[%c581] : memref<658xf32, #tpu.memory_space<smem>>
    %2588 = vector.broadcast %2587 : f32 to vector<1x1xf32>
    %2589 = arith.mulf %2588, %2495 : vector<1x1xf32>
    %2590 = arith.addf %2586, %2589 : vector<1x1xf32>
    %c582 = arith.constant 582 : index
    %2591 = memref.load %arg1[%c582] : memref<658xf32, #tpu.memory_space<smem>>
    %2592 = vector.broadcast %2591 : f32 to vector<1x1xf32>
    %2593 = arith.mulf %2592, %2515 : vector<1x1xf32>
    %2594 = arith.addf %2590, %2593 : vector<1x1xf32>
    %c583 = arith.constant 583 : index
    %2595 = memref.load %arg1[%c583] : memref<658xf32, #tpu.memory_space<smem>>
    %2596 = vector.broadcast %2595 : f32 to vector<1x1xf32>
    %2597 = arith.mulf %2596, %2535 : vector<1x1xf32>
    %2598 = arith.addf %2594, %2597 : vector<1x1xf32>
    %c584 = arith.constant 584 : index
    %2599 = memref.load %arg1[%c584] : memref<658xf32, #tpu.memory_space<smem>>
    %2600 = vector.broadcast %2599 : f32 to vector<1x1xf32>
    %2601 = arith.mulf %2600, %2555 : vector<1x1xf32>
    %2602 = arith.addf %2598, %2601 : vector<1x1xf32>
    %c585 = arith.constant 585 : index
    %2603 = memref.load %arg1[%c585] : memref<658xf32, #tpu.memory_space<smem>>
    %2604 = vector.broadcast %2603 : f32 to vector<1x1xf32>
    %2605 = arith.mulf %2604, %2575 : vector<1x1xf32>
    %2606 = arith.addf %2602, %2605 : vector<1x1xf32>
    %c642 = arith.constant 642 : index
    %2607 = memref.load %arg1[%c642] : memref<658xf32, #tpu.memory_space<smem>>
    %2608 = vector.broadcast %2607 : f32 to vector<1x1xf32>
    %2609 = arith.mulf %2606, %2608 : vector<1x1xf32>
    %c650 = arith.constant 650 : index
    %2610 = memref.load %arg1[%c650] : memref<658xf32, #tpu.memory_space<smem>>
    %2611 = vector.broadcast %2610 : f32 to vector<1x1xf32>
    %2612 = arith.addf %2609, %2611 : vector<1x1xf32>
    %cst_801 = arith.constant 0.000000e+00 : f32
    %2613 = vector.broadcast %cst_801 : f32 to vector<1x1xf32>
    %2614 = arith.maximumf %2612, %2613 : vector<1x1xf32>
    %2615 = arith.negf %2614 : vector<1x1xf32>
    %2616 = math.exp %2615 : vector<1x1xf32>
    %cst_802 = arith.constant 1.000000e+00 : f32
    %2617 = vector.broadcast %cst_802 : f32 to vector<1x1xf32>
    %2618 = arith.addf %2617, %2616 : vector<1x1xf32>
    %2619 = arith.divf %2617, %2618 : vector<1x1xf32>
    %c586 = arith.constant 586 : index
    %2620 = memref.load %arg1[%c586] : memref<658xf32, #tpu.memory_space<smem>>
    %2621 = vector.broadcast %2620 : f32 to vector<1x1xf32>
    %2622 = arith.mulf %2621, %2435 : vector<1x1xf32>
    %c587 = arith.constant 587 : index
    %2623 = memref.load %arg1[%c587] : memref<658xf32, #tpu.memory_space<smem>>
    %2624 = vector.broadcast %2623 : f32 to vector<1x1xf32>
    %2625 = arith.mulf %2624, %2455 : vector<1x1xf32>
    %2626 = arith.addf %2622, %2625 : vector<1x1xf32>
    %c588 = arith.constant 588 : index
    %2627 = memref.load %arg1[%c588] : memref<658xf32, #tpu.memory_space<smem>>
    %2628 = vector.broadcast %2627 : f32 to vector<1x1xf32>
    %2629 = arith.mulf %2628, %2475 : vector<1x1xf32>
    %2630 = arith.addf %2626, %2629 : vector<1x1xf32>
    %c589 = arith.constant 589 : index
    %2631 = memref.load %arg1[%c589] : memref<658xf32, #tpu.memory_space<smem>>
    %2632 = vector.broadcast %2631 : f32 to vector<1x1xf32>
    %2633 = arith.mulf %2632, %2495 : vector<1x1xf32>
    %2634 = arith.addf %2630, %2633 : vector<1x1xf32>
    %c590 = arith.constant 590 : index
    %2635 = memref.load %arg1[%c590] : memref<658xf32, #tpu.memory_space<smem>>
    %2636 = vector.broadcast %2635 : f32 to vector<1x1xf32>
    %2637 = arith.mulf %2636, %2515 : vector<1x1xf32>
    %2638 = arith.addf %2634, %2637 : vector<1x1xf32>
    %c591 = arith.constant 591 : index
    %2639 = memref.load %arg1[%c591] : memref<658xf32, #tpu.memory_space<smem>>
    %2640 = vector.broadcast %2639 : f32 to vector<1x1xf32>
    %2641 = arith.mulf %2640, %2535 : vector<1x1xf32>
    %2642 = arith.addf %2638, %2641 : vector<1x1xf32>
    %c592 = arith.constant 592 : index
    %2643 = memref.load %arg1[%c592] : memref<658xf32, #tpu.memory_space<smem>>
    %2644 = vector.broadcast %2643 : f32 to vector<1x1xf32>
    %2645 = arith.mulf %2644, %2555 : vector<1x1xf32>
    %2646 = arith.addf %2642, %2645 : vector<1x1xf32>
    %c593 = arith.constant 593 : index
    %2647 = memref.load %arg1[%c593] : memref<658xf32, #tpu.memory_space<smem>>
    %2648 = vector.broadcast %2647 : f32 to vector<1x1xf32>
    %2649 = arith.mulf %2648, %2575 : vector<1x1xf32>
    %2650 = arith.addf %2646, %2649 : vector<1x1xf32>
    %c643 = arith.constant 643 : index
    %2651 = memref.load %arg1[%c643] : memref<658xf32, #tpu.memory_space<smem>>
    %2652 = vector.broadcast %2651 : f32 to vector<1x1xf32>
    %2653 = arith.mulf %2650, %2652 : vector<1x1xf32>
    %c651 = arith.constant 651 : index
    %2654 = memref.load %arg1[%c651] : memref<658xf32, #tpu.memory_space<smem>>
    %2655 = vector.broadcast %2654 : f32 to vector<1x1xf32>
    %2656 = arith.addf %2653, %2655 : vector<1x1xf32>
    %cst_803 = arith.constant 0.000000e+00 : f32
    %2657 = vector.broadcast %cst_803 : f32 to vector<1x1xf32>
    %2658 = arith.maximumf %2656, %2657 : vector<1x1xf32>
    %2659 = arith.negf %2658 : vector<1x1xf32>
    %2660 = math.exp %2659 : vector<1x1xf32>
    %cst_804 = arith.constant 1.000000e+00 : f32
    %2661 = vector.broadcast %cst_804 : f32 to vector<1x1xf32>
    %2662 = arith.addf %2661, %2660 : vector<1x1xf32>
    %2663 = arith.divf %2661, %2662 : vector<1x1xf32>
    %c594 = arith.constant 594 : index
    %2664 = memref.load %arg1[%c594] : memref<658xf32, #tpu.memory_space<smem>>
    %2665 = vector.broadcast %2664 : f32 to vector<1x1xf32>
    %2666 = arith.mulf %2665, %2435 : vector<1x1xf32>
    %c595 = arith.constant 595 : index
    %2667 = memref.load %arg1[%c595] : memref<658xf32, #tpu.memory_space<smem>>
    %2668 = vector.broadcast %2667 : f32 to vector<1x1xf32>
    %2669 = arith.mulf %2668, %2455 : vector<1x1xf32>
    %2670 = arith.addf %2666, %2669 : vector<1x1xf32>
    %c596 = arith.constant 596 : index
    %2671 = memref.load %arg1[%c596] : memref<658xf32, #tpu.memory_space<smem>>
    %2672 = vector.broadcast %2671 : f32 to vector<1x1xf32>
    %2673 = arith.mulf %2672, %2475 : vector<1x1xf32>
    %2674 = arith.addf %2670, %2673 : vector<1x1xf32>
    %c597 = arith.constant 597 : index
    %2675 = memref.load %arg1[%c597] : memref<658xf32, #tpu.memory_space<smem>>
    %2676 = vector.broadcast %2675 : f32 to vector<1x1xf32>
    %2677 = arith.mulf %2676, %2495 : vector<1x1xf32>
    %2678 = arith.addf %2674, %2677 : vector<1x1xf32>
    %c598 = arith.constant 598 : index
    %2679 = memref.load %arg1[%c598] : memref<658xf32, #tpu.memory_space<smem>>
    %2680 = vector.broadcast %2679 : f32 to vector<1x1xf32>
    %2681 = arith.mulf %2680, %2515 : vector<1x1xf32>
    %2682 = arith.addf %2678, %2681 : vector<1x1xf32>
    %c599 = arith.constant 599 : index
    %2683 = memref.load %arg1[%c599] : memref<658xf32, #tpu.memory_space<smem>>
    %2684 = vector.broadcast %2683 : f32 to vector<1x1xf32>
    %2685 = arith.mulf %2684, %2535 : vector<1x1xf32>
    %2686 = arith.addf %2682, %2685 : vector<1x1xf32>
    %c600 = arith.constant 600 : index
    %2687 = memref.load %arg1[%c600] : memref<658xf32, #tpu.memory_space<smem>>
    %2688 = vector.broadcast %2687 : f32 to vector<1x1xf32>
    %2689 = arith.mulf %2688, %2555 : vector<1x1xf32>
    %2690 = arith.addf %2686, %2689 : vector<1x1xf32>
    %c601 = arith.constant 601 : index
    %2691 = memref.load %arg1[%c601] : memref<658xf32, #tpu.memory_space<smem>>
    %2692 = vector.broadcast %2691 : f32 to vector<1x1xf32>
    %2693 = arith.mulf %2692, %2575 : vector<1x1xf32>
    %2694 = arith.addf %2690, %2693 : vector<1x1xf32>
    %c644 = arith.constant 644 : index
    %2695 = memref.load %arg1[%c644] : memref<658xf32, #tpu.memory_space<smem>>
    %2696 = vector.broadcast %2695 : f32 to vector<1x1xf32>
    %2697 = arith.mulf %2694, %2696 : vector<1x1xf32>
    %c652 = arith.constant 652 : index
    %2698 = memref.load %arg1[%c652] : memref<658xf32, #tpu.memory_space<smem>>
    %2699 = vector.broadcast %2698 : f32 to vector<1x1xf32>
    %2700 = arith.addf %2697, %2699 : vector<1x1xf32>
    %cst_805 = arith.constant 0.000000e+00 : f32
    %2701 = vector.broadcast %cst_805 : f32 to vector<1x1xf32>
    %2702 = arith.maximumf %2700, %2701 : vector<1x1xf32>
    %2703 = arith.negf %2702 : vector<1x1xf32>
    %2704 = math.exp %2703 : vector<1x1xf32>
    %cst_806 = arith.constant 1.000000e+00 : f32
    %2705 = vector.broadcast %cst_806 : f32 to vector<1x1xf32>
    %2706 = arith.addf %2705, %2704 : vector<1x1xf32>
    %2707 = arith.divf %2705, %2706 : vector<1x1xf32>
    %c602 = arith.constant 602 : index
    %2708 = memref.load %arg1[%c602] : memref<658xf32, #tpu.memory_space<smem>>
    %2709 = vector.broadcast %2708 : f32 to vector<1x1xf32>
    %2710 = arith.mulf %2709, %2435 : vector<1x1xf32>
    %c603 = arith.constant 603 : index
    %2711 = memref.load %arg1[%c603] : memref<658xf32, #tpu.memory_space<smem>>
    %2712 = vector.broadcast %2711 : f32 to vector<1x1xf32>
    %2713 = arith.mulf %2712, %2455 : vector<1x1xf32>
    %2714 = arith.addf %2710, %2713 : vector<1x1xf32>
    %c604 = arith.constant 604 : index
    %2715 = memref.load %arg1[%c604] : memref<658xf32, #tpu.memory_space<smem>>
    %2716 = vector.broadcast %2715 : f32 to vector<1x1xf32>
    %2717 = arith.mulf %2716, %2475 : vector<1x1xf32>
    %2718 = arith.addf %2714, %2717 : vector<1x1xf32>
    %c605 = arith.constant 605 : index
    %2719 = memref.load %arg1[%c605] : memref<658xf32, #tpu.memory_space<smem>>
    %2720 = vector.broadcast %2719 : f32 to vector<1x1xf32>
    %2721 = arith.mulf %2720, %2495 : vector<1x1xf32>
    %2722 = arith.addf %2718, %2721 : vector<1x1xf32>
    %c606 = arith.constant 606 : index
    %2723 = memref.load %arg1[%c606] : memref<658xf32, #tpu.memory_space<smem>>
    %2724 = vector.broadcast %2723 : f32 to vector<1x1xf32>
    %2725 = arith.mulf %2724, %2515 : vector<1x1xf32>
    %2726 = arith.addf %2722, %2725 : vector<1x1xf32>
    %c607 = arith.constant 607 : index
    %2727 = memref.load %arg1[%c607] : memref<658xf32, #tpu.memory_space<smem>>
    %2728 = vector.broadcast %2727 : f32 to vector<1x1xf32>
    %2729 = arith.mulf %2728, %2535 : vector<1x1xf32>
    %2730 = arith.addf %2726, %2729 : vector<1x1xf32>
    %c608 = arith.constant 608 : index
    %2731 = memref.load %arg1[%c608] : memref<658xf32, #tpu.memory_space<smem>>
    %2732 = vector.broadcast %2731 : f32 to vector<1x1xf32>
    %2733 = arith.mulf %2732, %2555 : vector<1x1xf32>
    %2734 = arith.addf %2730, %2733 : vector<1x1xf32>
    %c609 = arith.constant 609 : index
    %2735 = memref.load %arg1[%c609] : memref<658xf32, #tpu.memory_space<smem>>
    %2736 = vector.broadcast %2735 : f32 to vector<1x1xf32>
    %2737 = arith.mulf %2736, %2575 : vector<1x1xf32>
    %2738 = arith.addf %2734, %2737 : vector<1x1xf32>
    %c645 = arith.constant 645 : index
    %2739 = memref.load %arg1[%c645] : memref<658xf32, #tpu.memory_space<smem>>
    %2740 = vector.broadcast %2739 : f32 to vector<1x1xf32>
    %2741 = arith.mulf %2738, %2740 : vector<1x1xf32>
    %c653 = arith.constant 653 : index
    %2742 = memref.load %arg1[%c653] : memref<658xf32, #tpu.memory_space<smem>>
    %2743 = vector.broadcast %2742 : f32 to vector<1x1xf32>
    %2744 = arith.addf %2741, %2743 : vector<1x1xf32>
    %cst_807 = arith.constant 0.000000e+00 : f32
    %2745 = vector.broadcast %cst_807 : f32 to vector<1x1xf32>
    %2746 = arith.maximumf %2744, %2745 : vector<1x1xf32>
    %2747 = arith.negf %2746 : vector<1x1xf32>
    %2748 = math.exp %2747 : vector<1x1xf32>
    %cst_808 = arith.constant 1.000000e+00 : f32
    %2749 = vector.broadcast %cst_808 : f32 to vector<1x1xf32>
    %2750 = arith.addf %2749, %2748 : vector<1x1xf32>
    %2751 = arith.divf %2749, %2750 : vector<1x1xf32>
    %c610 = arith.constant 610 : index
    %2752 = memref.load %arg1[%c610] : memref<658xf32, #tpu.memory_space<smem>>
    %2753 = vector.broadcast %2752 : f32 to vector<1x1xf32>
    %2754 = arith.mulf %2753, %2435 : vector<1x1xf32>
    %c611 = arith.constant 611 : index
    %2755 = memref.load %arg1[%c611] : memref<658xf32, #tpu.memory_space<smem>>
    %2756 = vector.broadcast %2755 : f32 to vector<1x1xf32>
    %2757 = arith.mulf %2756, %2455 : vector<1x1xf32>
    %2758 = arith.addf %2754, %2757 : vector<1x1xf32>
    %c612 = arith.constant 612 : index
    %2759 = memref.load %arg1[%c612] : memref<658xf32, #tpu.memory_space<smem>>
    %2760 = vector.broadcast %2759 : f32 to vector<1x1xf32>
    %2761 = arith.mulf %2760, %2475 : vector<1x1xf32>
    %2762 = arith.addf %2758, %2761 : vector<1x1xf32>
    %c613 = arith.constant 613 : index
    %2763 = memref.load %arg1[%c613] : memref<658xf32, #tpu.memory_space<smem>>
    %2764 = vector.broadcast %2763 : f32 to vector<1x1xf32>
    %2765 = arith.mulf %2764, %2495 : vector<1x1xf32>
    %2766 = arith.addf %2762, %2765 : vector<1x1xf32>
    %c614 = arith.constant 614 : index
    %2767 = memref.load %arg1[%c614] : memref<658xf32, #tpu.memory_space<smem>>
    %2768 = vector.broadcast %2767 : f32 to vector<1x1xf32>
    %2769 = arith.mulf %2768, %2515 : vector<1x1xf32>
    %2770 = arith.addf %2766, %2769 : vector<1x1xf32>
    %c615 = arith.constant 615 : index
    %2771 = memref.load %arg1[%c615] : memref<658xf32, #tpu.memory_space<smem>>
    %2772 = vector.broadcast %2771 : f32 to vector<1x1xf32>
    %2773 = arith.mulf %2772, %2535 : vector<1x1xf32>
    %2774 = arith.addf %2770, %2773 : vector<1x1xf32>
    %c616 = arith.constant 616 : index
    %2775 = memref.load %arg1[%c616] : memref<658xf32, #tpu.memory_space<smem>>
    %2776 = vector.broadcast %2775 : f32 to vector<1x1xf32>
    %2777 = arith.mulf %2776, %2555 : vector<1x1xf32>
    %2778 = arith.addf %2774, %2777 : vector<1x1xf32>
    %c617 = arith.constant 617 : index
    %2779 = memref.load %arg1[%c617] : memref<658xf32, #tpu.memory_space<smem>>
    %2780 = vector.broadcast %2779 : f32 to vector<1x1xf32>
    %2781 = arith.mulf %2780, %2575 : vector<1x1xf32>
    %2782 = arith.addf %2778, %2781 : vector<1x1xf32>
    %c646 = arith.constant 646 : index
    %2783 = memref.load %arg1[%c646] : memref<658xf32, #tpu.memory_space<smem>>
    %2784 = vector.broadcast %2783 : f32 to vector<1x1xf32>
    %2785 = arith.mulf %2782, %2784 : vector<1x1xf32>
    %c654 = arith.constant 654 : index
    %2786 = memref.load %arg1[%c654] : memref<658xf32, #tpu.memory_space<smem>>
    %2787 = vector.broadcast %2786 : f32 to vector<1x1xf32>
    %2788 = arith.addf %2785, %2787 : vector<1x1xf32>
    %cst_809 = arith.constant 0.000000e+00 : f32
    %2789 = vector.broadcast %cst_809 : f32 to vector<1x1xf32>
    %2790 = arith.maximumf %2788, %2789 : vector<1x1xf32>
    %2791 = arith.negf %2790 : vector<1x1xf32>
    %2792 = math.exp %2791 : vector<1x1xf32>
    %cst_810 = arith.constant 1.000000e+00 : f32
    %2793 = vector.broadcast %cst_810 : f32 to vector<1x1xf32>
    %2794 = arith.addf %2793, %2792 : vector<1x1xf32>
    %2795 = arith.divf %2793, %2794 : vector<1x1xf32>
    %c618 = arith.constant 618 : index
    %2796 = memref.load %arg1[%c618] : memref<658xf32, #tpu.memory_space<smem>>
    %2797 = vector.broadcast %2796 : f32 to vector<1x1xf32>
    %2798 = arith.mulf %2797, %2435 : vector<1x1xf32>
    %c619 = arith.constant 619 : index
    %2799 = memref.load %arg1[%c619] : memref<658xf32, #tpu.memory_space<smem>>
    %2800 = vector.broadcast %2799 : f32 to vector<1x1xf32>
    %2801 = arith.mulf %2800, %2455 : vector<1x1xf32>
    %2802 = arith.addf %2798, %2801 : vector<1x1xf32>
    %c620 = arith.constant 620 : index
    %2803 = memref.load %arg1[%c620] : memref<658xf32, #tpu.memory_space<smem>>
    %2804 = vector.broadcast %2803 : f32 to vector<1x1xf32>
    %2805 = arith.mulf %2804, %2475 : vector<1x1xf32>
    %2806 = arith.addf %2802, %2805 : vector<1x1xf32>
    %c621 = arith.constant 621 : index
    %2807 = memref.load %arg1[%c621] : memref<658xf32, #tpu.memory_space<smem>>
    %2808 = vector.broadcast %2807 : f32 to vector<1x1xf32>
    %2809 = arith.mulf %2808, %2495 : vector<1x1xf32>
    %2810 = arith.addf %2806, %2809 : vector<1x1xf32>
    %c622 = arith.constant 622 : index
    %2811 = memref.load %arg1[%c622] : memref<658xf32, #tpu.memory_space<smem>>
    %2812 = vector.broadcast %2811 : f32 to vector<1x1xf32>
    %2813 = arith.mulf %2812, %2515 : vector<1x1xf32>
    %2814 = arith.addf %2810, %2813 : vector<1x1xf32>
    %c623 = arith.constant 623 : index
    %2815 = memref.load %arg1[%c623] : memref<658xf32, #tpu.memory_space<smem>>
    %2816 = vector.broadcast %2815 : f32 to vector<1x1xf32>
    %2817 = arith.mulf %2816, %2535 : vector<1x1xf32>
    %2818 = arith.addf %2814, %2817 : vector<1x1xf32>
    %c624 = arith.constant 624 : index
    %2819 = memref.load %arg1[%c624] : memref<658xf32, #tpu.memory_space<smem>>
    %2820 = vector.broadcast %2819 : f32 to vector<1x1xf32>
    %2821 = arith.mulf %2820, %2555 : vector<1x1xf32>
    %2822 = arith.addf %2818, %2821 : vector<1x1xf32>
    %c625 = arith.constant 625 : index
    %2823 = memref.load %arg1[%c625] : memref<658xf32, #tpu.memory_space<smem>>
    %2824 = vector.broadcast %2823 : f32 to vector<1x1xf32>
    %2825 = arith.mulf %2824, %2575 : vector<1x1xf32>
    %2826 = arith.addf %2822, %2825 : vector<1x1xf32>
    %c647 = arith.constant 647 : index
    %2827 = memref.load %arg1[%c647] : memref<658xf32, #tpu.memory_space<smem>>
    %2828 = vector.broadcast %2827 : f32 to vector<1x1xf32>
    %2829 = arith.mulf %2826, %2828 : vector<1x1xf32>
    %c655 = arith.constant 655 : index
    %2830 = memref.load %arg1[%c655] : memref<658xf32, #tpu.memory_space<smem>>
    %2831 = vector.broadcast %2830 : f32 to vector<1x1xf32>
    %2832 = arith.addf %2829, %2831 : vector<1x1xf32>
    %cst_811 = arith.constant 0.000000e+00 : f32
    %2833 = vector.broadcast %cst_811 : f32 to vector<1x1xf32>
    %2834 = arith.maximumf %2832, %2833 : vector<1x1xf32>
    %2835 = arith.negf %2834 : vector<1x1xf32>
    %2836 = math.exp %2835 : vector<1x1xf32>
    %cst_812 = arith.constant 1.000000e+00 : f32
    %2837 = vector.broadcast %cst_812 : f32 to vector<1x1xf32>
    %2838 = arith.addf %2837, %2836 : vector<1x1xf32>
    %2839 = arith.divf %2837, %2838 : vector<1x1xf32>
    %c626 = arith.constant 626 : index
    %2840 = memref.load %arg1[%c626] : memref<658xf32, #tpu.memory_space<smem>>
    %2841 = vector.broadcast %2840 : f32 to vector<1x1xf32>
    %2842 = arith.mulf %2841, %2435 : vector<1x1xf32>
    %c627 = arith.constant 627 : index
    %2843 = memref.load %arg1[%c627] : memref<658xf32, #tpu.memory_space<smem>>
    %2844 = vector.broadcast %2843 : f32 to vector<1x1xf32>
    %2845 = arith.mulf %2844, %2455 : vector<1x1xf32>
    %2846 = arith.addf %2842, %2845 : vector<1x1xf32>
    %c628 = arith.constant 628 : index
    %2847 = memref.load %arg1[%c628] : memref<658xf32, #tpu.memory_space<smem>>
    %2848 = vector.broadcast %2847 : f32 to vector<1x1xf32>
    %2849 = arith.mulf %2848, %2475 : vector<1x1xf32>
    %2850 = arith.addf %2846, %2849 : vector<1x1xf32>
    %c629 = arith.constant 629 : index
    %2851 = memref.load %arg1[%c629] : memref<658xf32, #tpu.memory_space<smem>>
    %2852 = vector.broadcast %2851 : f32 to vector<1x1xf32>
    %2853 = arith.mulf %2852, %2495 : vector<1x1xf32>
    %2854 = arith.addf %2850, %2853 : vector<1x1xf32>
    %c630 = arith.constant 630 : index
    %2855 = memref.load %arg1[%c630] : memref<658xf32, #tpu.memory_space<smem>>
    %2856 = vector.broadcast %2855 : f32 to vector<1x1xf32>
    %2857 = arith.mulf %2856, %2515 : vector<1x1xf32>
    %2858 = arith.addf %2854, %2857 : vector<1x1xf32>
    %c631 = arith.constant 631 : index
    %2859 = memref.load %arg1[%c631] : memref<658xf32, #tpu.memory_space<smem>>
    %2860 = vector.broadcast %2859 : f32 to vector<1x1xf32>
    %2861 = arith.mulf %2860, %2535 : vector<1x1xf32>
    %2862 = arith.addf %2858, %2861 : vector<1x1xf32>
    %c632 = arith.constant 632 : index
    %2863 = memref.load %arg1[%c632] : memref<658xf32, #tpu.memory_space<smem>>
    %2864 = vector.broadcast %2863 : f32 to vector<1x1xf32>
    %2865 = arith.mulf %2864, %2555 : vector<1x1xf32>
    %2866 = arith.addf %2862, %2865 : vector<1x1xf32>
    %c633 = arith.constant 633 : index
    %2867 = memref.load %arg1[%c633] : memref<658xf32, #tpu.memory_space<smem>>
    %2868 = vector.broadcast %2867 : f32 to vector<1x1xf32>
    %2869 = arith.mulf %2868, %2575 : vector<1x1xf32>
    %2870 = arith.addf %2866, %2869 : vector<1x1xf32>
    %c648 = arith.constant 648 : index
    %2871 = memref.load %arg1[%c648] : memref<658xf32, #tpu.memory_space<smem>>
    %2872 = vector.broadcast %2871 : f32 to vector<1x1xf32>
    %2873 = arith.mulf %2870, %2872 : vector<1x1xf32>
    %c656 = arith.constant 656 : index
    %2874 = memref.load %arg1[%c656] : memref<658xf32, #tpu.memory_space<smem>>
    %2875 = vector.broadcast %2874 : f32 to vector<1x1xf32>
    %2876 = arith.addf %2873, %2875 : vector<1x1xf32>
    %cst_813 = arith.constant 0.000000e+00 : f32
    %2877 = vector.broadcast %cst_813 : f32 to vector<1x1xf32>
    %2878 = arith.maximumf %2876, %2877 : vector<1x1xf32>
    %2879 = arith.negf %2878 : vector<1x1xf32>
    %2880 = math.exp %2879 : vector<1x1xf32>
    %cst_814 = arith.constant 1.000000e+00 : f32
    %2881 = vector.broadcast %cst_814 : f32 to vector<1x1xf32>
    %2882 = arith.addf %2881, %2880 : vector<1x1xf32>
    %2883 = arith.divf %2881, %2882 : vector<1x1xf32>
    %c634 = arith.constant 634 : index
    %2884 = memref.load %arg1[%c634] : memref<658xf32, #tpu.memory_space<smem>>
    %2885 = vector.broadcast %2884 : f32 to vector<1x1xf32>
    %2886 = arith.mulf %2885, %2435 : vector<1x1xf32>
    %c635 = arith.constant 635 : index
    %2887 = memref.load %arg1[%c635] : memref<658xf32, #tpu.memory_space<smem>>
    %2888 = vector.broadcast %2887 : f32 to vector<1x1xf32>
    %2889 = arith.mulf %2888, %2455 : vector<1x1xf32>
    %2890 = arith.addf %2886, %2889 : vector<1x1xf32>
    %c636 = arith.constant 636 : index
    %2891 = memref.load %arg1[%c636] : memref<658xf32, #tpu.memory_space<smem>>
    %2892 = vector.broadcast %2891 : f32 to vector<1x1xf32>
    %2893 = arith.mulf %2892, %2475 : vector<1x1xf32>
    %2894 = arith.addf %2890, %2893 : vector<1x1xf32>
    %c637 = arith.constant 637 : index
    %2895 = memref.load %arg1[%c637] : memref<658xf32, #tpu.memory_space<smem>>
    %2896 = vector.broadcast %2895 : f32 to vector<1x1xf32>
    %2897 = arith.mulf %2896, %2495 : vector<1x1xf32>
    %2898 = arith.addf %2894, %2897 : vector<1x1xf32>
    %c638 = arith.constant 638 : index
    %2899 = memref.load %arg1[%c638] : memref<658xf32, #tpu.memory_space<smem>>
    %2900 = vector.broadcast %2899 : f32 to vector<1x1xf32>
    %2901 = arith.mulf %2900, %2515 : vector<1x1xf32>
    %2902 = arith.addf %2898, %2901 : vector<1x1xf32>
    %c639 = arith.constant 639 : index
    %2903 = memref.load %arg1[%c639] : memref<658xf32, #tpu.memory_space<smem>>
    %2904 = vector.broadcast %2903 : f32 to vector<1x1xf32>
    %2905 = arith.mulf %2904, %2535 : vector<1x1xf32>
    %2906 = arith.addf %2902, %2905 : vector<1x1xf32>
    %c640 = arith.constant 640 : index
    %2907 = memref.load %arg1[%c640] : memref<658xf32, #tpu.memory_space<smem>>
    %2908 = vector.broadcast %2907 : f32 to vector<1x1xf32>
    %2909 = arith.mulf %2908, %2555 : vector<1x1xf32>
    %2910 = arith.addf %2906, %2909 : vector<1x1xf32>
    %c641 = arith.constant 641 : index
    %2911 = memref.load %arg1[%c641] : memref<658xf32, #tpu.memory_space<smem>>
    %2912 = vector.broadcast %2911 : f32 to vector<1x1xf32>
    %2913 = arith.mulf %2912, %2575 : vector<1x1xf32>
    %2914 = arith.addf %2910, %2913 : vector<1x1xf32>
    %c649 = arith.constant 649 : index
    %2915 = memref.load %arg1[%c649] : memref<658xf32, #tpu.memory_space<smem>>
    %2916 = vector.broadcast %2915 : f32 to vector<1x1xf32>
    %2917 = arith.mulf %2914, %2916 : vector<1x1xf32>
    %c657 = arith.constant 657 : index
    %2918 = memref.load %arg1[%c657] : memref<658xf32, #tpu.memory_space<smem>>
    %2919 = vector.broadcast %2918 : f32 to vector<1x1xf32>
    %2920 = arith.addf %2917, %2919 : vector<1x1xf32>
    %cst_815 = arith.constant 0.000000e+00 : f32
    %2921 = vector.broadcast %cst_815 : f32 to vector<1x1xf32>
    %2922 = arith.maximumf %2920, %2921 : vector<1x1xf32>
    %2923 = arith.negf %2922 : vector<1x1xf32>
    %2924 = math.exp %2923 : vector<1x1xf32>
    %cst_816 = arith.constant 1.000000e+00 : f32
    %2925 = vector.broadcast %cst_816 : f32 to vector<1x1xf32>
    %2926 = arith.addf %2925, %2924 : vector<1x1xf32>
    %2927 = arith.divf %2925, %2926 : vector<1x1xf32>
    %2928 = arith.mulf %1486, %2415 : vector<8x8xf32>
    %2929 = vector.broadcast %2619 : vector<1x1xf32> to vector<8x8xf32>
    %2930 = arith.mulf %1486, %2929 : vector<8x8xf32>
    %2931 = arith.addf %2928, %2930 : vector<8x8xf32>
    %2932 = vector.extract_strided_slice %1817 {offsets = [0, 0, 0], sizes = [1, 8, 8], strides = [1, 1, 1]} : vector<8x8x8xf32> to vector<1x8x8xf32>
    %2933 = vector.shape_cast %2932 : vector<1x8x8xf32> to vector<8x8xf32>
    %2934 = arith.addf %2931, %2933 : vector<8x8xf32>
    %c0_817 = arith.constant 0 : index
    %c0_818 = arith.constant 0 : index
    %c0_819 = arith.constant 0 : index
    %c0_820 = arith.constant 0 : index
    %2935 = vector.load %arg6[%c0_817, %c0_818, %c0_819, %c0_820] : memref<1x8x8x8xf32, #tpu.memory_space<vmem>>, vector<1x1x8x8xf32>
    %2936 = vector.shape_cast %2935 : vector<1x1x8x8xf32> to vector<8x8xf32>
    %2937 = vector.shape_cast %2934 : vector<8x8xf32> to vector<1x1x8x8xf32>
    tpu.vector_store %arg6[%c0_817, %c0_818, %c0_819, %c0_820], %2937 {strides = array<i32>} : memref<1x8x8x8xf32, #tpu.memory_space<vmem>>, vector<1x1x8x8xf32>,
    %2938 = arith.mulf %1533, %2415 : vector<8x8xf32>
    %2939 = vector.broadcast %2663 : vector<1x1xf32> to vector<8x8xf32>
    %2940 = arith.mulf %1533, %2939 : vector<8x8xf32>
    %2941 = arith.addf %2938, %2940 : vector<8x8xf32>
    %2942 = vector.extract_strided_slice %1817 {offsets = [1, 0, 0], sizes = [1, 8, 8], strides = [1, 1, 1]} : vector<8x8x8xf32> to vector<1x8x8xf32>
    %2943 = vector.shape_cast %2942 : vector<1x8x8xf32> to vector<8x8xf32>
    %2944 = arith.addf %2941, %2943 : vector<8x8xf32>
    %c0_821 = arith.constant 0 : index
    %c1_822 = arith.constant 1 : index
    %c0_823 = arith.constant 0 : index
    %c0_824 = arith.constant 0 : index
    %2945 = vector.load %arg6[%c0_821, %c1_822, %c0_823, %c0_824] : memref<1x8x8x8xf32, #tpu.memory_space<vmem>>, vector<1x1x8x8xf32>
    %2946 = vector.shape_cast %2945 : vector<1x1x8x8xf32> to vector<8x8xf32>
    %2947 = vector.shape_cast %2944 : vector<8x8xf32> to vector<1x1x8x8xf32>
    tpu.vector_store %arg6[%c0_821, %c1_822, %c0_823, %c0_824], %2947 {strides = array<i32>} : memref<1x8x8x8xf32, #tpu.memory_space<vmem>>, vector<1x1x8x8xf32>,
    %2948 = arith.mulf %1580, %2415 : vector<8x8xf32>
    %2949 = vector.broadcast %2707 : vector<1x1xf32> to vector<8x8xf32>
    %2950 = arith.mulf %1580, %2949 : vector<8x8xf32>
    %2951 = arith.addf %2948, %2950 : vector<8x8xf32>
    %2952 = vector.extract_strided_slice %1817 {offsets = [2, 0, 0], sizes = [1, 8, 8], strides = [1, 1, 1]} : vector<8x8x8xf32> to vector<1x8x8xf32>
    %2953 = vector.shape_cast %2952 : vector<1x8x8xf32> to vector<8x8xf32>
    %2954 = arith.addf %2951, %2953 : vector<8x8xf32>
    %c0_825 = arith.constant 0 : index
    %c2_826 = arith.constant 2 : index
    %c0_827 = arith.constant 0 : index
    %c0_828 = arith.constant 0 : index
    %2955 = vector.load %arg6[%c0_825, %c2_826, %c0_827, %c0_828] : memref<1x8x8x8xf32, #tpu.memory_space<vmem>>, vector<1x1x8x8xf32>
    %2956 = vector.shape_cast %2955 : vector<1x1x8x8xf32> to vector<8x8xf32>
    %2957 = vector.shape_cast %2954 : vector<8x8xf32> to vector<1x1x8x8xf32>
    tpu.vector_store %arg6[%c0_825, %c2_826, %c0_827, %c0_828], %2957 {strides = array<i32>} : memref<1x8x8x8xf32, #tpu.memory_space<vmem>>, vector<1x1x8x8xf32>,
    %2958 = arith.mulf %1627, %2415 : vector<8x8xf32>
    %2959 = vector.broadcast %2751 : vector<1x1xf32> to vector<8x8xf32>
    %2960 = arith.mulf %1627, %2959 : vector<8x8xf32>
    %2961 = arith.addf %2958, %2960 : vector<8x8xf32>
    %2962 = vector.extract_strided_slice %1817 {offsets = [3, 0, 0], sizes = [1, 8, 8], strides = [1, 1, 1]} : vector<8x8x8xf32> to vector<1x8x8xf32>
    %2963 = vector.shape_cast %2962 : vector<1x8x8xf32> to vector<8x8xf32>
    %2964 = arith.addf %2961, %2963 : vector<8x8xf32>
    %c0_829 = arith.constant 0 : index
    %c3_830 = arith.constant 3 : index
    %c0_831 = arith.constant 0 : index
    %c0_832 = arith.constant 0 : index
    %2965 = vector.load %arg6[%c0_829, %c3_830, %c0_831, %c0_832] : memref<1x8x8x8xf32, #tpu.memory_space<vmem>>, vector<1x1x8x8xf32>
    %2966 = vector.shape_cast %2965 : vector<1x1x8x8xf32> to vector<8x8xf32>
    %2967 = vector.shape_cast %2964 : vector<8x8xf32> to vector<1x1x8x8xf32>
    tpu.vector_store %arg6[%c0_829, %c3_830, %c0_831, %c0_832], %2967 {strides = array<i32>} : memref<1x8x8x8xf32, #tpu.memory_space<vmem>>, vector<1x1x8x8xf32>,
    %2968 = arith.mulf %1674, %2415 : vector<8x8xf32>
    %2969 = vector.broadcast %2795 : vector<1x1xf32> to vector<8x8xf32>
    %2970 = arith.mulf %1674, %2969 : vector<8x8xf32>
    %2971 = arith.addf %2968, %2970 : vector<8x8xf32>
    %2972 = vector.extract_strided_slice %1817 {offsets = [4, 0, 0], sizes = [1, 8, 8], strides = [1, 1, 1]} : vector<8x8x8xf32> to vector<1x8x8xf32>
    %2973 = vector.shape_cast %2972 : vector<1x8x8xf32> to vector<8x8xf32>
    %2974 = arith.addf %2971, %2973 : vector<8x8xf32>
    %c0_833 = arith.constant 0 : index
    %c4_834 = arith.constant 4 : index
    %c0_835 = arith.constant 0 : index
    %c0_836 = arith.constant 0 : index
    %2975 = vector.load %arg6[%c0_833, %c4_834, %c0_835, %c0_836] : memref<1x8x8x8xf32, #tpu.memory_space<vmem>>, vector<1x1x8x8xf32>
    %2976 = vector.shape_cast %2975 : vector<1x1x8x8xf32> to vector<8x8xf32>
    %2977 = vector.shape_cast %2974 : vector<8x8xf32> to vector<1x1x8x8xf32>
    tpu.vector_store %arg6[%c0_833, %c4_834, %c0_835, %c0_836], %2977 {strides = array<i32>} : memref<1x8x8x8xf32, #tpu.memory_space<vmem>>, vector<1x1x8x8xf32>,
    %2978 = arith.mulf %1721, %2415 : vector<8x8xf32>
    %2979 = vector.broadcast %2839 : vector<1x1xf32> to vector<8x8xf32>
    %2980 = arith.mulf %1721, %2979 : vector<8x8xf32>
    %2981 = arith.addf %2978, %2980 : vector<8x8xf32>
    %2982 = vector.extract_strided_slice %1817 {offsets = [5, 0, 0], sizes = [1, 8, 8], strides = [1, 1, 1]} : vector<8x8x8xf32> to vector<1x8x8xf32>
    %2983 = vector.shape_cast %2982 : vector<1x8x8xf32> to vector<8x8xf32>
    %2984 = arith.addf %2981, %2983 : vector<8x8xf32>
    %c0_837 = arith.constant 0 : index
    %c5_838 = arith.constant 5 : index
    %c0_839 = arith.constant 0 : index
    %c0_840 = arith.constant 0 : index
    %2985 = vector.load %arg6[%c0_837, %c5_838, %c0_839, %c0_840] : memref<1x8x8x8xf32, #tpu.memory_space<vmem>>, vector<1x1x8x8xf32>
    %2986 = vector.shape_cast %2985 : vector<1x1x8x8xf32> to vector<8x8xf32>
    %2987 = vector.shape_cast %2984 : vector<8x8xf32> to vector<1x1x8x8xf32>
    tpu.vector_store %arg6[%c0_837, %c5_838, %c0_839, %c0_840], %2987 {strides = array<i32>} : memref<1x8x8x8xf32, #tpu.memory_space<vmem>>, vector<1x1x8x8xf32>,
    %2988 = arith.mulf %1768, %2415 : vector<8x8xf32>
    %2989 = vector.broadcast %2883 : vector<1x1xf32> to vector<8x8xf32>
    %2990 = arith.mulf %1768, %2989 : vector<8x8xf32>
    %2991 = arith.addf %2988, %2990 : vector<8x8xf32>
    %2992 = vector.extract_strided_slice %1817 {offsets = [6, 0, 0], sizes = [1, 8, 8], strides = [1, 1, 1]} : vector<8x8x8xf32> to vector<1x8x8xf32>
    %2993 = vector.shape_cast %2992 : vector<1x8x8xf32> to vector<8x8xf32>
    %2994 = arith.addf %2991, %2993 : vector<8x8xf32>
    %c0_841 = arith.constant 0 : index
    %c6_842 = arith.constant 6 : index
    %c0_843 = arith.constant 0 : index
    %c0_844 = arith.constant 0 : index
    %2995 = vector.load %arg6[%c0_841, %c6_842, %c0_843, %c0_844] : memref<1x8x8x8xf32, #tpu.memory_space<vmem>>, vector<1x1x8x8xf32>
    %2996 = vector.shape_cast %2995 : vector<1x1x8x8xf32> to vector<8x8xf32>
    %2997 = vector.shape_cast %2994 : vector<8x8xf32> to vector<1x1x8x8xf32>
    tpu.vector_store %arg6[%c0_841, %c6_842, %c0_843, %c0_844], %2997 {strides = array<i32>} : memref<1x8x8x8xf32, #tpu.memory_space<vmem>>, vector<1x1x8x8xf32>,
    %2998 = arith.mulf %1815, %2415 : vector<8x8xf32>
    %2999 = vector.broadcast %2927 : vector<1x1xf32> to vector<8x8xf32>
    %3000 = arith.mulf %1815, %2999 : vector<8x8xf32>
    %3001 = arith.addf %2998, %3000 : vector<8x8xf32>
    %3002 = vector.extract_strided_slice %1817 {offsets = [7, 0, 0], sizes = [1, 8, 8], strides = [1, 1, 1]} : vector<8x8x8xf32> to vector<1x8x8xf32>
    %3003 = vector.shape_cast %3002 : vector<1x8x8xf32> to vector<8x8xf32>
    %3004 = arith.addf %3001, %3003 : vector<8x8xf32>
    %c0_845 = arith.constant 0 : index
    %c7_846 = arith.constant 7 : index
    %c0_847 = arith.constant 0 : index
    %c0_848 = arith.constant 0 : index
    %3005 = vector.load %arg6[%c0_845, %c7_846, %c0_847, %c0_848] : memref<1x8x8x8xf32, #tpu.memory_space<vmem>>, vector<1x1x8x8xf32>
    %3006 = vector.shape_cast %3005 : vector<1x1x8x8xf32> to vector<8x8xf32>
    %3007 = vector.shape_cast %3004 : vector<8x8xf32> to vector<1x1x8x8xf32>
    tpu.vector_store %arg6[%c0_845, %c7_846, %c0_847, %c0_848], %3007 {strides = array<i32>} : memref<1x8x8x8xf32, #tpu.memory_space<vmem>>, vector<1x1x8x8xf32>,
    return
  }
  func.func @transform_0(%arg0: i32, %arg1: memref<658xf32, #tpu.memory_space<smem>>) -> (i32, i32, i32, i32) {
    %c0_i32 = arith.constant 0 : i32
    %c0_i32_0 = arith.constant 0 : i32
    %c0_i32_1 = arith.constant 0 : i32
    %c0_i32_2 = arith.constant 0 : i32
    return %arg0, %c0_i32, %c0_i32_0, %c0_i32_1 : i32, i32, i32, i32
  }
  func.func @transform_1(%arg0: i32, %arg1: memref<658xf32, #tpu.memory_space<smem>>) -> (i32, i32, i32, i32) {
    %c0_i32 = arith.constant 0 : i32
    %c0_i32_0 = arith.constant 0 : i32
    %c0_i32_1 = arith.constant 0 : i32
    %c0_i32_2 = arith.constant 0 : i32
    return %arg0, %c0_i32, %c0_i32_0, %c0_i32_1 : i32, i32, i32, i32
  }
  func.func @transform_2(%arg0: i32, %arg1: memref<658xf32, #tpu.memory_space<smem>>) -> (i32, i32, i32, i32) {
    %c0_i32 = arith.constant 0 : i32
    %c0_i32_0 = arith.constant 0 : i32
    %c0_i32_1 = arith.constant 0 : i32
    %c0_i32_2 = arith.constant 0 : i32
    return %arg0, %c0_i32, %c0_i32_0, %c0_i32_1 : i32, i32, i32, i32
  }
  func.func @transform_3(%arg0: i32, %arg1: memref<658xf32, #tpu.memory_space<smem>>) -> (i32, i32, i32, i32) {
    %c0_i32 = arith.constant 0 : i32
    %c0_i32_0 = arith.constant 0 : i32
    %c0_i32_1 = arith.constant 0 : i32
    %c0_i32_2 = arith.constant 0 : i32
    return %arg0, %c0_i32, %c0_i32_0, %c0_i32_1 : i32, i32, i32, i32
  }
  func.func @transform_4(%arg0: i32, %arg1: memref<658xf32, #tpu.memory_space<smem>>) -> (i32, i32, i32, i32) {
    %c0_i32 = arith.constant 0 : i32
    %c0_i32_0 = arith.constant 0 : i32
    %c0_i32_1 = arith.constant 0 : i32
    %c0_i32_2 = arith.constant 0 : i32
    return %arg0, %c0_i32, %c0_i32_0, %c0_i32_1 : i32, i32, i32, i32
  }
}

</mosaic_0001>

<bundles_post_ra>
// kernel: cir_forward.1
= control target key start
LH: loop header
LB: loop body
LE: loop exit
PB: predicated region body
PF: predicated region fallthrough
CT: control target
= control target key end

     0   :  { %s4767_s21 = smov [#allocation7]   ;;  %s7919_s0 = inlined_call_operand.vmem [shape: f32[658], index: 0, kind: input, shape index: {}]   ;;  %s7920_s1 = inlined_call_operand.vmem [shape: f32[2,4,8,8], index: 1, kind: input, shape index: {}]   ;;  %s7921_s2 = inlined_call_operand.vmem [shape: f32[2,4,8,9], index: 2, kind: input, shape index: {}]   ;;  %s7922_s3 = inlined_call_operand.vmem [shape: f32[2,4,9,8], index: 3, kind: input, shape index: {}]   ;;  %s7923_s4 = inlined_call_operand.vmem [shape: f32[2,8,8,8], index: 4, kind: input, shape index: {}]   ;;  %s7924_s5 = inlined_call_operand.hbm [shape: f32[2,8,8,8], index: 5, kind: output, shape index: {}]  }
   0x1   :  { %8002 = sst [smem:[#allocation43_spill]] %s7920_s1  ;;  %s11_s20 = sshll.u32 %s7919_s0, 4  ;;  %s12_s20 = int_to_ptr.vmem [resolvable:$true] %s11_s20 }
   0x2   :  { %8003 = sst [smem:[#allocation44_spill]] %s7921_s2 }
   0x3   :  { %8004 = sst [smem:[#allocation45_spill]] %s7922_s3 }
   0x4   :  { %8005 = sst [smem:[#allocation46_spill]] %s7923_s4 }
   0x5   :  { %8006 = sst [smem:[#allocation47_spill]] %s7924_s5 }
   0x6   :  { %14 = dma.vmem_to_smem %s12_s20, 96, %s4767_s21, [#allocation6] }
   0x7   :  { %4745 = dma.done.wait [#allocation6], 96 }
   0x8   :  { %4746 = vsyncadd [#allocation6], 4294967200 }
   0x9   :  { %17 = sfence }
   0xa   :  { %18 = vsyncpa [#allocation9], 0 }
   0xb   :  { %20 = vsyncpa [#allocation9 + $0x1], 0  ;;  %s4812_s22 = smov 0   ;;  %s4814_s23 = smov 0  }
   0xc   :  { %s4816_s24 = smov 0   ;;  %s4818_s25 = smov 0  }
   0xd LB: > { %8007 = sst [smem:[#allocation12_spill]] %s4753_s22  ;;  %s4833_s0 = sadd.s32 4294967295, %s4765_s25   ;;  %s4765_s25 = sphi %s4818_s25, %s8195_s25   ;;  %s4761_s24 = sphi %s4816_s24, %s8198_s24   ;;  %s4757_s23 = sphi %s4814_s23, %s8197_s23   ;;  %s4753_s22 = sphi %s4812_s22, %s8196_s22  }
   0xe   : > { %8008 = sst [smem:[#allocation13_spill]] %s4757_s23  ;;  %s3914_s26 = sadd.s32 4294967294, %s4765_s25  }
   0xf   : > { %8009 = sst [smem:[#allocation14_spill]] %s4761_s24  ;;  %s4837_s27 = sadd.s32 1, %s4765_s25  }
  0x10   : > { %8010 = sst [smem:[#allocation15_spill]] %s4765_s25  ;;  %s137_s28 = sadd.s32 1, %s4761_s24 }
  0x11   : > { %8011 = sst [smem:[#allocation16_spill]] %s4833_s0  ;;  %s134_s29 = ssub.s32 %s4765_s25, %s4837_s27 }
  0x12   : > { %8012 = sst [smem:[#allocation17_spill]] %s4837_s27  ;;  %p147_p0 = scmp.ne.s32.totalorder %s4761_s24, %s4757_s23 }
  0x13   : > { %p135_p1 = scmp.eq.s32.totalorder %s134_s29, 0  ;;  %p148_p2 = scmp.eq.s32.totalorder %s4833_s0, 1 }
  0x14   : > { %p153_p3 = scmp.ne.s32.totalorder %s4757_s23, %s4753_s22  ;;  %p154_p4 = scmp.eq.s32.totalorder %s3914_s26, 1 }
  0x15   : > { %s4848_s30 = scalar_select %p135_p1, %s4761_s24, %s137_s28  }
  0x16   : > { %p4850_p5 = por %p148_p2, %p147_p0  ;;  %p4854_p6 = por %p154_p4, %p153_p3 }
  0x17   : > { %8013 = sst [smem:[#allocation18_spill]] %s4848_s30  ;;  %p3917_p7 = scmp.ge.s32.totalorder %s4765_s25, 1 }
  0x18   : > { %s8014_s6 = scalar_select %p4850_p5, 1, 0 }
  0x19   : > { %s8016_s7 = scalar_select %p4854_p6, 1, 0 }
  0x1a   : > { %8015 = sst [smem:[#allocation19_spill]] %s8014_s6  ;;  %p204_p8 = scmp.lt.s32.totalorder %s4765_s25, 3 }
  0x1b   : > { %8017 = sst [smem:[#allocation20_spill]] %s8016_s7 }
  0x1c   : > { %p205_p9 = pnand %p3917_p7, %p204_p8 }
  0x1e   : > { %208 = sbr.rel (%p205_p9) target bundleno = 1064 (0x428), region = 36 }
  0x23   : > { %p245_p10 = scmp.lt.s32.totalorder %s4833_s0, 1  ;;  %s3934_s8 = sld [smem:[#allocation7 + $0x2]]  ;;  %vm265_vm0 = vcmask 64512   ;;  %vm267_vm1 = vcmask 58368   ;;  %vm275_vm2 = vcmask 80896   ;;  %vm297_vm3 = vcmask 113664  }
  0x24   : > { %s3940_s9 = sld [smem:[#allocation7 + $0x8]]  ;;  %s7936_s18 = smov 127   ;;  %vm299_vm4 = vcmask 111616   ;;  %vm803_vm5 = vcmask 72712   ;;  %vm2355_vm6 = vcmask 89112   ;;  %vm281_vm7 = vcmask 74752  }
  0x25   : > { %s4862_s10 = scalar_select %p245_p10, %s4833_s0, 1 }
  0x26   : > { %s3937_s11 = sld [smem:[#allocation7 + $0x5]] }
  0x27   : > { %s7925_s12 = sshll.u32 %s4862_s10, 5  ;;  %s8018_s2 = sld [smem:[#allocation44_spill]] }
  0x28   : > { %s3943_s16 = sld [smem:[#allocation7 + $0xb]] }
  0x29   : > { %v323_v1 = vstv %s3934_s8  ;;  %s4876_s17 = sld [smem:[#allocation7 + $0x14]]  ;;  %s4558_s8 = sshll.u32 %s4862_s10, 6 }
  0x2a   : > { %v355_v4 = vstv %s3940_s9  ;;  %s4879_s19 = sld [smem:[#allocation7 + $0x17]] }
  0x2b   : > { %s3947_s20 = sld [smem:[#allocation7 + $0xe]] }
  0x2c   : > { %v339_v7 = vstv %s3937_s11  ;;  %s4886_s21 = sld [smem:[#allocation7 + $0x1d]] }
  0x2d   : > { %s254_s15 = scalar_lea.vmem %s8018_s2, %s7925_s12  ;;  %s4888_s26 = sld [smem:[#allocation7 + $0x20]] }
  0x2e   : > { %v4870_v0 = vld [vmem:[%s254_s15] sm:$0xff]  ;;  %v4872_v2 = vld [vmem:[%s254_s15 + $0x10] sm:$0xff]  ;;  %v4882_v6 = vld [vmem:[%s254_s15 + $0x8] sm:$0xff]  ;;  %v371_v9 = vstv %s3943_s16  ;;  %s3950_s28 = sld [smem:[#allocation7 + $0x11]] }
  0x2f   : > { %v324_v3 = vmul.f32 %v323_v1, %v4870_v0  ;;  %v356_v5 = vmul.f32 %v4872_v2, %v355_v4  ;;  %v4884_v8 = vld [vmem:[%s254_s15 + $0x18] sm:$0xff]  ;;  %v340_v10 = vmul.f32 %v4882_v6, %v339_v7  ;;  %s4892_s29 = sld [smem:[#allocation7 + $0x26]]  ;;  %v421_v14 = vstv %s4876_s17 }
  0x30   : > { %v372_v11 = vmul.f32 %v4884_v8, %v371_v9  ;;  %s4895_s9 = sld [smem:[#allocation7 + $0x29]]  ;;  %v437_v15 = vstv %s4879_s19  ;;  %v422_v17 = vmul.f32 %v4872_v2, %v421_v14 }
  0x31   : > { %326 = vrot.lane.b32.xlu0 %v324_v3, %s7936_s18  ;;  %358 = vrot.lane.b32.xlu1 %v356_v5, %s7936_s18  ;;  %v389_v12 = vstv %s3947_s20  ;;  %s4897_s11 = sld [smem:[#allocation7 + $0x1a]]  ;;  %s8020_s20 = sshll.u32 %s4862_s10, 5  ;;  %v438_v19 = vmul.f32 %v4884_v8, %v437_v15 }
  0x32   : > { %v390_v13 = vmul.f32 %v389_v12, %v4870_v0  ;;  %s4058_s13 = sld [smem:[#allocation7 + $0x74]]  ;;  %v471_v29 = vstv %s4886_s21 }
  0x33   : > { %s8019_s3 = sld [smem:[#allocation45_spill]]  ;;  %v487_v33 = vstv %s4888_s26  ;;  %v472_v40 = vmul.f32 %v4882_v6, %v471_v29 }
  0x34   : > { %s4059_s12 = sld [smem:[#allocation7 + $0x75]]  ;;  %392 = vrot.lane.b32.xlu2 %v390_v13, %s7936_s18  ;;  %v405_v16 = vstv %s3950_s28  ;;  %v488_v43 = vmul.f32 %v4872_v2, %v487_v33 }
  0x35   : > { %s8021_s1 = sld [smem:[#allocation43_spill]]  ;;  %v406_v21 = vmul.f32 %v4882_v6, %v405_v16  ;;  %v521_v53 = vstv %s4892_s29 }
  0x36   : > { %s4060_s14 = sld [smem:[#allocation7 + $0x76]]  ;;  %v537_v56 = vstv %s4895_s9  ;;  %v522_v62 = vmul.f32 %v521_v53, %v4870_v0 }
  0x37   : > { %s4061_s15 = sld [smem:[#allocation7 + $0x77]]  ;;  %v455_v37 = vstv %s4897_s11  ;;  %v538_v3 = vmul.f32 %v4882_v6, %v537_v56 }
  0x38   : > { %s4923_s17 = sld [smem:[#allocation7 + $0x78]]  ;;  %v889_v23 = vstv %s4058_s13  ;;  %v456_v46 = vmul.f32 %v455_v37, %v4870_v0 }
  0x39   : > { %342 = vrot.lane.b32.xlu0 %v340_v10, %s7936_s18  ;;  %s4906_s16 = scalar_lea.vmem %s8019_s3, %s4558_s8  ;;  %374 = vrot.lane.b32.xlu1 %v372_v11, %s7936_s18  ;;  %s4929_s2 = sld [smem:[#allocation7 + $0x79]] }
  0x3a   : > { %v4921_v18 = vld [vmem:[%s4906_s16] sm:$0xff]  ;;  %s4935_s30 = sld [smem:[#allocation7 + $0x7a]]  ;;  %v4938_v24 = vld [vmem:[%s4906_s16 + $0x10] sm:$0xff]  ;;  %v892_v26 = vstv %s4059_s12 }
  0x3b   : > { %s4915_s24 = scalar_lea.vmem %s8021_s1, %s8020_s20  ;;  %v4933_v22 = vld [vmem:[%s4906_s16 + $0x1] sm:$0xff]  ;;  %v890_v25 = vmul.f32 %v889_v23, %v4921_v18  ;;  %s4941_s19 = sld [smem:[#allocation7 + $0x7b]]  ;;  %v4963_v38 = vld [vmem:[%s4906_s16 + $0x11] sm:$0xff] }
  0x3c   : > { %v4927_v20 = vld [vmem:[%s4915_s24] sm:$0xff]  ;;  %s4944_s28 = sld [smem:[#allocation7 + $0x2f]]  ;;  %v896_v28 = vstv %s4060_s14  ;;  %v4950_v30 = vld [vmem:[%s4915_s24 + $0x8] sm:$0xff]  ;;  %408 = vrot.lane.b32.xlu2 %v406_v21, %s7936_s18 }
  0x3d   : > { %v893_v27 = vmul.f32 %v892_v26, %v4927_v20  ;;  %v897_v31 = vmul.f32 %v896_v28, %v4933_v22  ;;  %v900_v32 = vstv %s4061_s15  ;;  %s4953_s12 = sld [smem:[#allocation7 + $0x7c]]  ;;  %v4974_v44 = vld [vmem:[%s4906_s16 + $0x20] sm:$0xff]  ;;  %v4984_v49 = vld [vmem:[%s4915_s24 + $0x10] sm:$0xff]  ;;  %v5019_v4 = vld [vmem:[%s4915_s24 + $0x18] sm:$0xff] }
  0x3e   : > { %v901_v35 = vmul.f32 %v4938_v24, %v900_v32  ;;  %v904_v36 = vstv %s4923_s17  ;;  %s4959_s13 = sld [smem:[#allocation7 + $0x7d]]  ;;  %v4996_v54 = vld [vmem:[%s4906_s16 + $0x21] sm:$0xff]  ;;  %v5004_v57 = vld [vmem:[%s4906_s16 + $0x30] sm:$0xff] }
  0x3f   : > { %v894_v34 = vadd.f32 %v893_v27, %v890_v25  ;;  %v908_v39 = vstv %s4929_s2  ;;  %s4966_s21 = sld [smem:[#allocation7 + $0x7e]]  ;;  %v905_v42 = vmul.f32 %v4950_v30, %v904_v36 }
  0x40   : > { %s4970_s26 = sld [smem:[#allocation7 + $0x7f]]  ;;  %v912_v45 = vstv %s4935_s30  ;;  %v909_v48 = vmul.f32 %v4963_v38, %v908_v39 }
  0x41   : > { %424 = vrot.lane.b32.xlu0 %v422_v17, %s7936_s18  ;;  %440 = vrot.lane.b32.xlu1 %v438_v19, %s7936_s18  ;;  %v898_v41 = vadd.f32 %v897_v31, %v894_v34  ;;  %s4977_s11 = sld [smem:[#allocation7 + $0x23]]  ;;  %v916_v50 = vstv %s4941_s19  ;;  %v913_v52 = vmul.f32 %v4974_v44, %v912_v45  ;;  %v5045_v17 = vld [vmem:[%s4906_s16 + $0x31] sm:$0xff] }
  0x42   : > { %s4981_s20 = sld [smem:[#allocation7 + $0x2c]]  ;;  %v917_v59 = vmul.f32 %v4984_v49, %v916_v50  ;;  %v569_v14 = vstv %s4944_s28 }
  0x43   : > { %v902_v47 = vadd.f32 %v901_v35, %v898_v41  ;;  %s4987_s14 = sld [smem:[#allocation7 + $0x80]]  ;;  %v920_v55 = vstv %s4953_s12  ;;  %v570_v33 = vmul.f32 %v4884_v8, %v569_v14 }
  0x44   : > { %s4991_s15 = sld [smem:[#allocation7 + $0x81]]  ;;  %458 = vrot.lane.b32.xlu2 %v456_v46, %s7936_s18  ;;  %v924_v60 = vstv %s4959_s13  ;;  %v921_v1 = vmul.f32 %v4996_v54, %v920_v55 }
  0x45   : > { %v906_v51 = vadd.f32 %v905_v42, %v902_v47  ;;  %s4999_s17 = sld [smem:[#allocation7 + $0x82]]  ;;  %v925_v5 = vmul.f32 %v5004_v57, %v924_v60  ;;  %v928_v7 = vstv %s4966_s21 }
  0x46   : > { %s5008_s2 = sld [smem:[#allocation7 + $0x83]]  ;;  %v929_v21 = vmul.f32 %v5019_v4, %v928_v7  ;;  %v932_v27 = vstv %s4970_s26 }
  0x47   : > { %v910_v58 = vadd.f32 %v909_v48, %v906_v51  ;;  %v503_v61 = vstv %s4977_s11  ;;  %s5011_s29 = sld [smem:[#allocation7 + $0x84]]  ;;  %v933_v47 = vmul.f32 %v5045_v17, %v932_v27 }
  0x48   : > { %s5015_s9 = sld [smem:[#allocation7 + $0x85]]  ;;  %v504_v11 = vmul.f32 %v4884_v8, %v503_v61  ;;  %v553_v42 = vstv %s4981_s20 }
  0x49   : > { %474 = vrot.lane.b32.xlu0 %v472_v40, %s7936_s18  ;;  %490 = vrot.lane.b32.xlu1 %v488_v43, %s7936_s18  ;;  %v914_v63 = vadd.f32 %v913_v52, %v910_v58  ;;  %s8022_s4 = sld [smem:[#allocation46_spill]]  ;;  %v939_v9 = vstv %s4987_s14  ;;  %v554_v61 = vmul.f32 %v4872_v2, %v553_v42 }
  0x4a   : > { %s5031_s13 = sld [smem:[#allocation7 + $0x86]]  ;;  %v940_v12 = vmul.f32 %v939_v9, %v4921_v18  ;;  %v942_v13 = vstv %s4991_s15 }
  0x4b   : > { %v918_v10 = vadd.f32 %v917_v59, %v914_v63  ;;  %s5036_s24 = sld [smem:[#allocation7 + $0x87]]  ;;  %v943_v15 = vmul.f32 %v942_v13, %v4927_v20  ;;  %v946_v16 = vstv %s4999_s17 }
  0x4c   : > { %s5039_s10 = sld [smem:[#allocation7 + $0x99]]  ;;  %v947_v25 = vmul.f32 %v946_v16, %v4933_v22  ;;  %v950_v26 = vstv %s5008_s2  ;;  %506 = vrot.lane.b32.xlu2 %v504_v11, %s7936_s18 }
  0x4d   : > { %v922_v19 = vadd.f32 %v921_v1, %v918_v10  ;;  %v944_v29 = vadd.f32 %v943_v15, %v940_v12  ;;  %v951_v31 = vmul.f32 %v4938_v24, %v950_v26  ;;  %v954_v32 = vstv %s5011_s29  ;;  %s5058_s16 = sld [smem:[#allocation7 + $0x89]] }
  0x4e   : > { %v958_v37 = vstv %s5015_s9  ;;  %s5065_s28 = sld [smem:[#allocation7 + $0x8a]]  ;;  %v955_v45 = vmul.f32 %v4950_v30, %v954_v32 }
  0x4f   : > { %s5028_s12 = scalar_lea.vmem %s8022_s4, %s4558_s8  ;;  %s5051_s8 = sld [smem:[#allocation7 + $0x88]]  ;;  %v926_v34 = vadd.f32 %v925_v5, %v922_v19  ;;  %v948_v43 = vadd.f32 %v947_v25, %v944_v29  ;;  %v959_v58 = vmul.f32 %v4963_v38, %v958_v37 }
  0x50   : > { %8023 = sst [smem:[#allocation21_spill]] %s5028_s12  ;;  %v2328_v23 = vld [vmem:[%s5028_s12] sm:$0xff]  ;;  %v2329_v28 = vld [vmem:[%s5028_s12 + $0x8] sm:$0xff]  ;;  %v2330_v35 = vld [vmem:[%s5028_s12 + $0x10] sm:$0xff]  ;;  %v962_v52 = vstv %s5031_s13 }
  0x51   : > { %524 = vrot.lane.b32.xlu0 %v522_v62, %s7936_s18  ;;  %540 = vrot.lane.b32.xlu1 %v538_v3, %s7936_s18  ;;  %v2332_v36 = vld [vmem:[%s5028_s12 + $0x20] sm:$0xff]  ;;  %v2331_v39 = vld [vmem:[%s5028_s12 + $0x18] sm:$0xff]  ;;  %v5070_v41 = vsel %vm265_vm0, %v2328_v23, -inf  ;;  %s5074_s21 = sld [smem:[#allocation7 + $0x8b]]  ;;  %v930_v46 = vadd.f32 %v929_v21, %v926_v34  ;;  %v2337_v51 = vsel %vm265_vm0, %v2329_v28, -inf  ;;  %v2338_v53 = vsel %vm265_vm0, %v2330_v35, -inf }
  0x52   : > { %v2333_v40 = vld [vmem:[%s5028_s12 + $0x28] sm:$0xff]  ;;  %v2334_v48 = vld [vmem:[%s5028_s12 + $0x30] sm:$0xff]  ;;  %v2335_v50 = vld [vmem:[%s5028_s12 + $0x38] sm:$0xff]  ;;  %s5081_s26 = sld [smem:[#allocation7 + $0x68]]  ;;  %v2340_v55 = vsel %vm265_vm0, %v2332_v36, -inf  ;;  %v952_v56 = vadd.f32 %v951_v31, %v948_v43  ;;  %v2339_v59 = vsel %vm265_vm0, %v2331_v39, -inf  ;;  %v966_v62 = vstv %s5036_s24 }
  0x53   : > { %s5086_s11 = sld [smem:[#allocation7 + $0x69]]  ;;  %v2342_v60 = vsel %vm265_vm0, %v2333_v40, -inf  ;;  %v2344_v63 = vsel %vm265_vm0, %v2334_v48, -inf  ;;  %v2346_v1 = vsel %vm265_vm0, %v2335_v50, -inf  ;;  %v963_v5 = vmul.f32 %v4974_v44, %v962_v52  ;;  %s7928_s24 = smov 1  }
  0x54   : > { %s5092_s20 = sld [smem:[#allocation7 + $0x6a]]  ;;  %v956_v3 = vadd.f32 %v955_v45, %v952_v56  ;;  %v934_v7 = vadd.f32 %v933_v47, %v930_v46  ;;  %v2341_v9 = vmax.f32 %v5070_v41, %v2340_v55  ;;  %v936_v11 = vstv %s5039_s10  ;;  %556 = vrot.lane.b32.xlu2 %v554_v61, %s7936_s18 }
  0x55   : > { %s5097_s14 = sld [smem:[#allocation7 + $0x6b]]  ;;  %v970_v10 = vstv %s5051_s8  ;;  %v2343_v12 = vmax.f32 %v2337_v51, %v2342_v60  ;;  %v967_v14 = vmul.f32 %v4984_v49, %v966_v62  ;;  %v2345_v15 = vmax.f32 %v2338_v53, %v2344_v63 }
  0x56   : > { %s5102_s15 = sld [smem:[#allocation7 + $0x6c]]  ;;  %v960_v13 = vadd.f32 %v959_v58, %v956_v3  ;;  %v2347_v16 = vmax.f32 %v2339_v59, %v2346_v1  ;;  %v974_v19 = vstv %s5058_s16  ;;  %v971_v25 = vmul.f32 %v4996_v54, %v970_v10 }
  0x57   : > { %s5106_s17 = sld [smem:[#allocation7 + $0x6d]]  ;;  %v937_v28 = vadd.f32 %v936_v11, %v934_v7  ;;  %v978_v29 = vstv %s5065_s28  ;;  %v975_v34 = vmul.f32 %v5004_v57, %v974_v19  ;;  %v982_v37 = vstv %s5074_s21 }
  0x58   : > { %v839_v21 = vstv %s5081_s26  ;;  %s5111_s2 = sld [smem:[#allocation7 + $0x6e]]  ;;  %v964_v23 = vadd.f32 %v963_v5, %v960_v13  ;;  %v979_v43 = vmul.f32 %v5019_v4, %v978_v29  ;;  %v2348_v46 = vmax.f32 %v2341_v9, %v2343_v12 }
  0x59   : > { %572 = vrot.lane.b32.xlu0 %v570_v33, %s7936_s18  ;;  %v840_v26 = vmul.f32 %v839_v21, %v4921_v18  ;;  %v842_v27 = vstv %s5086_s11  ;;  %s5116_s29 = sld [smem:[#allocation7 + $0x6f]]  ;;  %v2349_v47 = vmax.f32 %v2345_v15, %v2347_v16  ;;  %v983_v52 = vmul.f32 %v5045_v17, %v982_v37 }
  0x5a   : > { %s5119_s9 = sld [smem:[#allocation7 + $0x9a]]  ;;  %v843_v31 = vmul.f32 %v842_v27, %v4927_v20  ;;  %v846_v32 = vstv %s5092_s20  ;;  %v968_v33 = vadd.f32 %v967_v14, %v964_v23 }
  0x5b   : > { %v847_v35 = vmul.f32 %v846_v32, %v4933_v22  ;;  %v850_v36 = vstv %s5097_s14  ;;  %s5126_s30 = sld [smem:[#allocation7 + $0x70]]  ;;  %v2350_v60 = vmax.f32 %v2348_v46, %v2349_v47  ;;  %s7927_s14 = smov 3  }
  0x5c   : > { %v844_v39 = vadd.f32 %v843_v31, %v840_v26  ;;  %v851_v40 = vmul.f32 %v4938_v24, %v850_v36  ;;  %v854_v41 = vstv %s5102_s15  ;;  %s5131_s19 = sld [smem:[#allocation7 + $0x71]]  ;;  %v972_v42 = vadd.f32 %v971_v25, %v968_v33 }
  0x5d   : > { %v858_v45 = vstv %s5106_s17  ;;  %s5135_s13 = sld [smem:[#allocation7 + $0x72]]  ;;  %v855_v50 = vmul.f32 %v4950_v30, %v854_v41 }
  0x5e   : > { %v848_v48 = vadd.f32 %v847_v35, %v844_v39  ;;  %s5139_s10 = sld [smem:[#allocation7 + $0x73]]  ;;  %v976_v51 = vadd.f32 %v975_v34, %v972_v42  ;;  %v862_v53 = vstv %s5111_s2  ;;  %v859_v56 = vmul.f32 %v4963_v38, %v858_v45 }
  0x5f   : > { %s4084_s8 = sld [smem:[#allocation7 + $0x8c]]  ;;  %v866_v59 = vstv %s5116_s29  ;;  %v863_v63 = vmul.f32 %v4974_v44, %v862_v53 }
  0x60   : > { %v852_v55 = vadd.f32 %v851_v40, %v848_v48  ;;  %s4085_s16 = sld [smem:[#allocation7 + $0x8d]]  ;;  %v980_v58 = vadd.f32 %v979_v43, %v976_v51  ;;  %v986_v61 = vstv %s5119_s9  ;;  %v867_v7 = vmul.f32 %v4984_v49, %v866_v59 }
  0x61   : > { %1044 = vrot.lane.b32.xlu0 %v937_v28, %s7928_s24  ;;  %s4086_s28 = sld [smem:[#allocation7 + $0x8e]]  ;;  %v870_v3 = vstv %s5126_s30 }
  0x62   : > { %v856_v62 = vadd.f32 %v855_v50, %v852_v55  ;;  %s4087_s21 = sld [smem:[#allocation7 + $0x8f]]  ;;  %v984_v1 = vadd.f32 %v983_v52, %v980_v58  ;;  %v874_v10 = vstv %s5131_s19  ;;  %v871_v13 = vmul.f32 %v4996_v54, %v870_v3 }
  0x63   : > { %s5148_s26 = sld [smem:[#allocation7 + $0x90]]  ;;  %v878_v16 = vstv %s5135_s13  ;;  %v875_v25 = vmul.f32 %v5004_v57, %v874_v10 }
  0x64   : > { %v860_v5 = vadd.f32 %v859_v56, %v856_v62  ;;  %s5151_s11 = sld [smem:[#allocation7 + $0x91]]  ;;  %v987_v9 = vadd.f32 %v986_v61, %v984_v1  ;;  %v882_v27 = vstv %s5139_s10  ;;  %v879_v33 = vmul.f32 %v5019_v4, %v878_v16 }
  0x65   : > { %v989_v11 = vstv %s4084_s8  ;;  %s5154_s20 = sld [smem:[#allocation7 + $0x92]] }
  0x66   : > { %v864_v12 = vadd.f32 %v863_v63, %v860_v5  ;;  %v990_v14 = vmul.f32 %v989_v11, %v4921_v18  ;;  %v992_v15 = vstv %s4085_s16  ;;  %s5159_s15 = sld [smem:[#allocation7 + $0x93]]  ;;  %1050 = vrot.lane.b32.xlu1 %v987_v9, %s7928_s24  ;;  %v4771_v9 = vmov 0.0  }
  0x67   : > { %s5163_s17 = sld [smem:[#allocation7 + $0x98]]  ;;  %v993_v19 = vmul.f32 %v992_v15, %v4927_v20  ;;  %v996_v21 = vstv %s4086_s28  ;;  %266 = vst.msk [vmem:[#allocation2] sm:$0xff] %vm265_vm0, %v4771_v9 }
  0x68   : > { %v868_v23 = vadd.f32 %v867_v7, %v864_v12  ;;  %v997_v26 = vmul.f32 %v996_v21, %v4933_v22  ;;  %v1000_v18 = vstv %s4087_s21  ;;  %s4092_s2 = sld [smem:[#allocation7 + $0x94]]  ;;  %v883_v22 = vmul.f32 %v5045_v17, %v882_v27  ;;  %268 = vst.msk [vmem:[#allocation2 + $0x8] sm:$0x3] %vm267_vm1, %v4771_v9 }
  0x69   : > { %2352 = vrot.lane.b32.xlu0 %v2350_v60, %s7927_s14  ;;  %v994_v28 = vadd.f32 %v993_v19, %v990_v14  ;;  %v1001_v29 = vmul.f32 %v4938_v24, %v1000_v18  ;;  %v1004_v31 = vstv %s5148_s26  ;;  %s4093_s29 = sld [smem:[#allocation7 + $0x95]]  ;;  %269 = vst.msk [vmem:[#allocation2 + $0x10] sm:$0xff] %vm265_vm0, %v4771_v9 }
  0x6a   : > { %v872_v32 = vadd.f32 %v871_v13, %v868_v23  ;;  %v1008_v34 = vstv %s5151_s11  ;;  %v1005_v36 = vmul.f32 %v4950_v30, %v1004_v31  ;;  %s4094_s9 = sld [smem:[#allocation7 + $0x96]]  ;;  %270 = vst.msk [vmem:[#allocation2 + $0x18] sm:$0x3] %vm267_vm1, %v4771_v9 }
  0x6b   : > { %v998_v35 = vadd.f32 %v997_v26, %v994_v28  ;;  %v1012_v39 = vstv %s5154_s20  ;;  %v1009_v41 = vmul.f32 %v4963_v38, %v1008_v34  ;;  %s4095_s30 = sld [smem:[#allocation7 + $0x97]]  ;;  %271 = vst.msk [vmem:[#allocation2 + $0x20] sm:$0xff] %vm265_vm0, %v4771_v9 }
  0x6c   : > { %v876_v37 = vadd.f32 %v875_v25, %v872_v32  ;;  %v1016_v24 = vstv %s5159_s15  ;;  %v1013_v46 = vmul.f32 %v4974_v44, %v1012_v39  ;;  %s4096_s19 = sld [smem:[#allocation7 + $0x9b]]  ;;  %272 = vst.msk [vmem:[#allocation2 + $0x28] sm:$0x3] %vm267_vm1, %v4771_v9 }
  0x6d   : > { %v1002_v40 = vadd.f32 %v1001_v29, %v998_v35  ;;  %v886_v43 = vstv %s5163_s17  ;;  %v1017_v51 = vmul.f32 %v4984_v49, %v1016_v24  ;;  %s3945_s13 = sld [smem:[#allocation7 + $0xc]]  ;;  %273 = vst.msk [vmem:[#allocation2 + $0x30] sm:$0xff] %vm265_vm0, %v4771_v9 }
  0x6e   : > { %v880_v42 = vadd.f32 %v879_v33, %v876_v37  ;;  %v1020_v48 = vstv %s4092_s2  ;;  %s3946_s10 = sld [smem:[#allocation7 + $0xd]]  ;;  %274 = vst.msk [vmem:[#allocation2 + $0x38] sm:$0x3] %vm267_vm1, %v4771_v9 }
  0x6f   : > { %v1006_v45 = vadd.f32 %v1005_v36, %v1002_v40  ;;  %v1024_v53 = vstv %s4093_s29  ;;  %v1021_v56 = vmul.f32 %v4996_v54, %v1020_v48  ;;  %s315_s8 = sld [smem:[#allocation7]]  ;;  %277 = vst.msk [vmem:[#allocation3 + $0x8] sm:$0xff] %vm275_vm2, %v4771_v9 }
  0x70   : > { %v884_v47 = vadd.f32 %v883_v22, %v880_v42  ;;  %v1028_v38 = vstv %s4094_s9  ;;  %v1025_v59 = vmul.f32 %v5004_v57, %v1024_v53  ;;  %s3933_s16 = sld [smem:[#allocation7 + $0x1]]  ;;  %276 = vst.msk [vmem:[#allocation3] sm:$0xff] %vm275_vm2, %v4771_v9 }
  0x71   : > { %v1010_v50 = vadd.f32 %v1009_v41, %v1006_v45  ;;  %v1032_v60 = vstv %s4095_s30  ;;  %v1029_v44 = vmul.f32 %v5019_v4, %v1028_v38  ;;  %s3948_s28 = sld [smem:[#allocation7 + $0xf]]  ;;  %278 = vst.msk [vmem:[#allocation3 + $0x10] sm:$0xff] %vm275_vm2, %v4771_v9 }
  0x72   : > { %v887_v52 = vadd.f32 %v886_v43, %v884_v47  ;;  %v1033_v63 = vmul.f32 %v5045_v17, %v1032_v60  ;;  %v1036_v3 = vstv %s4096_s19  ;;  %s3949_s21 = sld [smem:[#allocation7 + $0x10]]  ;;  %279 = vst.msk [vmem:[#allocation3 + $0x18] sm:$0xff] %vm275_vm2, %v4771_v9 }
  0x73   : > { %v1014_v55 = vadd.f32 %v1013_v46, %v1010_v50  ;;  %v382_v54 = vstv %s3945_s13  ;;  %s3935_s26 = sld [smem:[#allocation7 + $0x3]]  ;;  %280 = vst.msk [vmem:[#allocation4] sm:$0xff] %vm275_vm2, %v4771_v9 }
  0x74   : > { %1039 = vrot.lane.b32.xlu2 %v887_v52, %s7928_s24  ;;  %v385_v57 = vstv %s3946_s10  ;;  %v383_v17 = vmul.f32 %v382_v54, %v4870_v0  ;;  %s3936_s11 = sld [smem:[#allocation7 + $0x4]]  ;;  %283 = vst.msk [vmem:[#allocation4 + $0x10] sm:$0xff] %vm275_vm2, %v4771_v9 }
  0x75   : > { %v1018_v58 = vadd.f32 %v1017_v51, %v1014_v55  ;;  %v386_v10 = vmul.f32 %v4927_v20, %v385_v57  ;;  %v316_v12 = vstv %s315_s8  ;;  %s5205_s20 = sld [smem:[#allocation7 + $0x12]]  ;;  %285 = vst.msk [vmem:[#allocation4 + $0x20] sm:$0xff] %vm275_vm2, %v4771_v9 }
  0x76   : > { %v319_v13 = vstv %s3933_s16  ;;  %v317_v16 = vmul.f32 %v316_v12, %v4870_v0  ;;  %s5210_s15 = sld [smem:[#allocation7 + $0x18]]  ;;  %287 = vst.msk [vmem:[#allocation4 + $0x30] sm:$0xff] %vm275_vm2, %v4771_v9 }
  0x77   : > { %v1022_v61 = vadd.f32 %v1021_v56, %v1018_v58  ;;  %v387_v11 = vadd.f32 %v386_v10, %v383_v17  ;;  %v397_v14 = vstv %s3948_s28  ;;  %v320_v19 = vmul.f32 %v4927_v20, %v319_v13  ;;  %s3959_s17 = sld [smem:[#allocation7 + $0x19]]  ;;  %289 = vst.msk [vmem:[#allocation4 + $0x40] sm:$0xff] %vm275_vm2, %v4771_v9 }
  0x78   : > { %v398_v21 = vmul.f32 %v4882_v6, %v397_v14  ;;  %v401_v25 = vstv %s3949_s21  ;;  %s5212_s2 = sld [smem:[#allocation7 + $0x6]]  ;;  %291 = vst.msk [vmem:[#allocation4 + $0x50] sm:$0xff] %vm275_vm2, %v4771_v9 }
  0x79   : > { %v1026_v62 = vadd.f32 %v1025_v59, %v1022_v61  ;;  %v331_v26 = vstv %s3935_s26  ;;  %s5214_s29 = sld [smem:[#allocation7 + $0x7]]  ;;  %v321_v18 = vadd.f32 %v320_v19, %v317_v16  ;;  %v402_v28 = vmul.f32 %v4950_v30, %v401_v25  ;;  %293 = vst.msk [vmem:[#allocation4 + $0x60] sm:$0xff] %vm275_vm2, %v4771_v9 }
  0x7a   : > { %s5217_s9 = sld [smem:[#allocation7 + $0x13]]  ;;  %v332_v29 = vmul.f32 %v4882_v6, %v331_v26  ;;  %v335_v32 = vstv %s3936_s11  ;;  %295 = vst.msk [vmem:[#allocation4 + $0x70] sm:$0xff] %vm275_vm2, %v4771_v9 }
  0x7b   : > { %v1030_v1 = vadd.f32 %v1029_v44, %v1026_v62  ;;  %s5220_s30 = sld [smem:[#allocation7 + $0x9]]  ;;  %v413_v37 = vstv %s5205_s20  ;;  %v336_v41 = vmul.f32 %v4950_v30, %v335_v32  ;;  %298 = vst.msk [vmem:[#allocation5] sm:$0xff] %vm297_vm3, %v4771_v9 }
  0x7c   : > { %s5222_s19 = sld [smem:[#allocation7 + $0xa]]  ;;  %v448_v22 = vstv %s5210_s15  ;;  %v414_v43 = vmul.f32 %v4872_v2, %v413_v37  ;;  %300 = vst.msk [vmem:[#allocation5 + $0x8] sm:$0x3f] %vm299_vm4, %v4771_v9 }
  0x7d   : > { %v1034_v5 = vadd.f32 %v1033_v63, %v1030_v1  ;;  %v451_v39 = vstv %s3959_s17  ;;  %s5226_s13 = sld [smem:[#allocation7 + $0x1b]]  ;;  %v449_v46 = vmul.f32 %v448_v22, %v4870_v0  ;;  %292 = vst.msk [vmem:[#allocation4 + $0x58] sm:$0x3] %vm281_vm7, %v4771_v9 }
  0x7e   : > { %s5229_s10 = sld [smem:[#allocation7 + $0x15]]  ;;  %v347_v42 = vstv %s5212_s2  ;;  %v452_v47 = vmul.f32 %v4927_v20, %v451_v39  ;;  %282 = vst.msk [vmem:[#allocation4 + $0x8] sm:$0x3] %vm281_vm7, %v4771_v9 }
  0x7f   : > { %v1037_v7 = vadd.f32 %v1036_v3, %v1034_v5  ;;  %v351_v24 = vstv %s5214_s29  ;;  %s5233_s8 = sld [smem:[#allocation7 + $0x16]]  ;;  %v348_v50 = vmul.f32 %v4872_v2, %v347_v42  ;;  %284 = vst.msk [vmem:[#allocation4 + $0x18] sm:$0x3] %vm281_vm7, %v4771_v9 }
  0x80   : > { %v417_v48 = vstv %s5217_s9  ;;  %s5239_s16 = sld [smem:[#allocation7 + $0x1c]]  ;;  %v352_v53 = vmul.f32 %v4984_v49, %v351_v24  ;;  %v453_v60 = vadd.f32 %v452_v47, %v449_v46  ;;  %286 = vst.msk [vmem:[#allocation4 + $0x28] sm:$0x3] %vm281_vm7, %v4771_v9 }
  0x81   : > { %1056 = vrot.lane.b32.xlu2 %v1037_v7, %s7928_s24  ;;  %v363_v55 = vstv %s5220_s30  ;;  %s5244_s28 = sld [smem:[#allocation7 + $0x30]]  ;;  %v418_v59 = vmul.f32 %v4984_v49, %v417_v48  ;;  %288 = vst.msk [vmem:[#allocation4 + $0x38] sm:$0x3] %vm281_vm7, %v4771_v9 }
  0x82   : > { %s5248_s21 = sld [smem:[#allocation7 + $0x31]]  ;;  %v364_v63 = vmul.f32 %v4884_v8, %v363_v55  ;;  %v367_v1 = vstv %s5222_s19  ;;  %290 = vst.msk [vmem:[#allocation4 + $0x48] sm:$0x3] %vm281_vm7, %v4771_v9 }
  0x83   : > { %v463_v61 = vstv %s5226_s13  ;;  %s5250_s26 = sld [smem:[#allocation7 + $0x1e]]  ;;  %v368_v12 = vmul.f32 %v5019_v4, %v367_v1  ;;  %294 = vst.msk [vmem:[#allocation4 + $0x68] sm:$0x3] %vm281_vm7, %v4771_v9 }
  0x84   : > { %v429_v3 = vstv %s5229_s10  ;;  %s5256_s11 = sld [smem:[#allocation7 + $0x1f]]  ;;  %v464_v57 = vmul.f32 %v4882_v6, %v463_v61  ;;  %296 = vst.msk [vmem:[#allocation4 + $0x78] sm:$0x3] %vm281_vm7, %v4771_v9 }
  0x85   : > { %v433_v5 = vstv %s5233_s8  ;;  %s5259_s20 = sld [smem:[#allocation7 + $0x24]]  ;;  %v430_v13 = vmul.f32 %v4884_v8, %v429_v3 }
  0x86   : > { %v467_v10 = vstv %s5239_s16  ;;  %s5262_s15 = sld [smem:[#allocation7 + $0x25]] }
  0x87   : > { %v468_v25 = vmul.f32 %v4950_v30, %v467_v10  ;;  %s5272_s17 = sld [smem:[#allocation7 + $0x21]] }
  0x88   : > { %s5276_s2 = sld [smem:[#allocation7 + $0x27]] }
  0x89   : > { %s5282_s29 = sld [smem:[#allocation7 + $0x22]] }
  0x8a   : > { %s5292_s9 = sld [smem:[#allocation7 + $0x28]] }
  0x8b   : > { %s5306_s30 = sld [smem:[#allocation7 + $0x2a]] }
  0x8c   : > { %s5311_s19 = sld [smem:[#allocation7 + $0x32]] }
  0x8d   : > { %v495_v46 = vstv %s5272_s17  ;;  %s5315_s13 = sld [smem:[#allocation7 + $0x2b]]  ;;  %s7934_s17 = smov 125  }
  0x8e   : > { %v393_v15 = vpop.permute.xlu2 %392  ;;  %s3980_s10 = sld [smem:[#allocation7 + $0x2d]] }
  0x8f   : > { %v395_v23 = vadd.f32 %v393_v15, %v387_v11  ;;  %v434_v15 = vmul.f32 %v5019_v4, %v433_v5  ;;  %s3981_s8 = sld [smem:[#allocation7 + $0x2e]] }
  0x90   : > { %v533_v55 = vstv %s5292_s9  ;;  %s3983_s16 = sld [smem:[#allocation7 + $0x33]] }
  0x91   : > { %v399_v27 = vadd.f32 %v398_v21, %v395_v23  ;;  %s4102_s9 = sld [smem:[#allocation7 + $0xa1]] }
  0x92   : > { %v511_v3 = vstv %s5311_s19  ;;  %s7930_s19 = smov 124   ;;  %s5400_s14 = sld [smem:[#allocation7 + $0xbf]] }
  0x93   : > { %v403_v36 = vadd.f32 %v402_v28, %v399_v27  ;;  %v379_v27 = vstv %s5244_s28  ;;  %v479_v28 = vstv %s5250_s26  ;;  %s4336_s28 = sld [smem:[#allocation7 + $0xd3]] }
  0x94   : > { %v480_v39 = vmul.f32 %v4872_v2, %v479_v28  ;;  %s4335_s26 = sld [smem:[#allocation7 + $0xd2]] }
  0x95   : > { %s5404_s24 = sld [smem:[#allocation7 + $0xbe]] }
  0x96   : > { %v409_v33 = vpop.permute.xlu2 %408  ;;  %s5425_s1 = sld [smem:[#allocation7 + $0xca]] }
  0x97   : > { %v411_v45 = vadd.f32 %v409_v33, %v403_v36  ;;  %v483_v33 = vstv %s5256_s11  ;;  %v517_v36 = vstv %s5262_s15  ;;  %s4098_s11 = sld [smem:[#allocation7 + $0x9d]] }
  0x98   : > { %s4338_s15 = sld [smem:[#allocation7 + $0xd5]] }
  0x99   : > { %v415_v38 = vadd.f32 %v414_v43, %v411_v45  ;;  %v518_v45 = vmul.f32 %v4927_v20, %v517_v36  ;;  %s5439_s3 = sld [smem:[#allocation7 + $0xdc]] }
  0x9a   : > { %s5441_s4 = sld [smem:[#allocation7 + $0xcb]] }
  0x9b   : > { %v419_v54 = vadd.f32 %v418_v59, %v415_v38  ;;  %s5445_s27 = sld [smem:[#allocation7 + $0xda]] }
  0x9c   : > { %s5448_s7 = sld [smem:[#allocation7 + $0x4c]] }
  0x9d   : > { %s4011_s22 = sld [smem:[#allocation7 + $0x4d]] }
  0x9e   : > { %v459_v44 = vpop.permute.xlu2 %458  ;;  %s5462_s25 = sld [smem:[#allocation7 + $0x4f]] }
  0x9f   : > { %v461_v17 = vadd.f32 %v459_v44, %v453_v60  ;;  %v534_v44 = vmul.f32 %v4950_v30, %v533_v55  ;;  %s5464_s6 = sld [smem:[#allocation7 + $0x50]] }
  0xa0   : > { %s5468_s5 = sld [smem:[#allocation7 + $0x51]] }
  0xa1   : > { %v465_v21 = vadd.f32 %v464_v57, %v461_v17  ;;  %s5471_s0 = sld [smem:[#allocation7 + $0x52]] }
  0xa2   : > { %s5478_s23 = sld [smem:[#allocation7 + $0x42]] }
  0xa3   : > { %v327_v31 = vpop.permute.xlu0 %326  ;;  %v359_v35 = vpop.permute.xlu1 %358  ;;  %v469_v32 = vadd.f32 %v468_v25, %v465_v21  ;;  %s5505_s12 = sld [smem:[#allocation7 + $0x55]] }
  0xa4   : > { %v329_v34 = vadd.f32 %v327_v31, %v321_v18 }
  0xa6   : > { %v333_v40 = vadd.f32 %v332_v29, %v329_v34  ;;  %v445_v34 = vstv %s5248_s21  ;;  %s4334_s21 = sld [smem:[#allocation7 + $0xd1]] }
  0xa8   : > { %v337_v51 = vadd.f32 %v336_v41, %v333_v40  ;;  %v484_v41 = vmul.f32 %v4984_v49, %v483_v33  ;;  %v2370_v33 = vstv %s4335_s26  ;;  %s4111_s26 = sld [smem:[#allocation7 + $0xa9]] }
  0xab   : > { %v343_v52 = vpop.permute.xlu0 %342  ;;  %v375_v58 = vpop.permute.xlu1 %374 }
  0xac   : > { %v345_v56 = vadd.f32 %v343_v52, %v337_v51  ;;  %v499_v51 = vstv %s5282_s29  ;;  %v507_v52 = vpop.permute.xlu2 %506  ;;  %s4099_s29 = sld [smem:[#allocation7 + $0x9e]] }
  0xae   : > { %v349_v62 = vadd.f32 %v348_v50, %v345_v56  ;;  %v529_v50 = vstv %s5276_s2  ;;  %s7942_s2 = smov 126  }
  0xaf   : > { %v530_v38 = vmul.f32 %v4882_v6, %v529_v50 }
  0xb0   : > { %v353_v7 = vadd.f32 %v352_v53, %v349_v62  ;;  %v545_v62 = vstv %s5306_s30  ;;  %s4101_s30 = sld [smem:[#allocation7 + $0xa0]] }
  0xb1   : > { %v546_v6 = vmul.f32 %v4872_v2, %v545_v62 }
  0xb2   : > { %v361_v11 = vadd.f32 %v359_v35, %v353_v7  ;;  %v514_v35 = vstv %s5259_s20  ;;  %v549_v7 = vstv %s5315_s13  ;;  %s4337_s20 = sld [smem:[#allocation7 + $0xd4]] }
  0xb3   : > { %v425_v14 = vpop.permute.xlu0 %424  ;;  %v441_v23 = vpop.permute.xlu1 %440  ;;  %v515_v43 = vmul.f32 %v514_v35, %v4870_v0  ;;  %v496_v0 = vmul.f32 %v4884_v8, %v495_v46  ;;  %s4104_s13 = sld [smem:[#allocation7 + $0xa3]] }
  0xb4   : > { %v365_v16 = vadd.f32 %v364_v63, %v361_v11  ;;  %v427_v19 = vadd.f32 %v425_v14, %v419_v54  ;;  %v557_v17 = vpop.permute.xlu2 %556  ;;  %v561_v14 = vstv %s3980_s10  ;;  %s7932_s10 = smov 123  }
  0xb5   : > { %v519_v53 = vadd.f32 %v518_v45, %v515_v43  ;;  %v1077_v45 = vstv %s4099_s29  ;;  %s5377_s29 = sld [smem:[#allocation7 + $0xb2]] }
  0xb6   : > { %v369_v26 = vadd.f32 %v368_v12, %v365_v16  ;;  %v431_v18 = vadd.f32 %v430_v13, %v427_v19  ;;  %v550_v12 = vmul.f32 %v4984_v49, %v549_v7  ;;  %v562_v16 = vmul.f32 %v4884_v8, %v561_v14 }
  0xb8   : > { %v377_v29 = vadd.f32 %v375_v58, %v369_v26  ;;  %v435_v31 = vadd.f32 %v434_v15, %v431_v18  ;;  %v500_v58 = vmul.f32 %v5019_v4, %v499_v51  ;;  %v565_v15 = vstv %s3981_s8  ;;  %s4107_s8 = sld [smem:[#allocation7 + $0xa6]] }
  0xb9   : > { %v577_v18 = vstv %s3983_s16  ;;  %s4105_s16 = sld [smem:[#allocation7 + $0xa4]] }
  0xba   : > { %v380_v37 = vadd.f32 %v379_v27, %v377_v29  ;;  %v443_v22 = vadd.f32 %v441_v23, %v435_v31  ;;  %v566_v23 = vmul.f32 %v5019_v4, %v565_v15  ;;  %v2378_v31 = vstv %s4336_s28  ;;  %s4108_s28 = sld [smem:[#allocation7 + $0xa7]] }
  0xbb   : > { %v475_v40 = vpop.permute.xlu0 %474  ;;  %v491_v47 = vpop.permute.xlu1 %490 }
  0xbc   : > { %579 = vst.msk [vmem:[#allocation2 + $0x1] sm:$0xff] %vm265_vm0, %v380_v37  ;;  %v446_v42 = vadd.f32 %v445_v34, %v443_v22  ;;  %v477_v24 = vadd.f32 %v475_v40, %v469_v32  ;;  %v2362_v32 = vstv %s4334_s21  ;;  %v2386_v40 = vstv %s4337_s20  ;;  %s4112_s21 = sld [smem:[#allocation7 + $0xaa]] }
  0xbd   : > { %s4114_s20 = sld [smem:[#allocation7 + $0xac]] }
  0xbe   : > { %581 = vst.msk [vmem:[#allocation2 + $0x11] sm:$0xff] %vm265_vm0, %v446_v42  ;;  %v481_v48 = vadd.f32 %v480_v39, %v477_v24  ;;  %v1069_v39 = vstv %s4098_s11  ;;  %v1129_v55 = vstv %s4107_s8  ;;  %s4115_s11 = sld [smem:[#allocation7 + $0xad]] }
  0xbf   : > { %s5389_s8 = sld [smem:[#allocation7 + $0xb5]] }
  0xc0   : > { %v485_v20 = vadd.f32 %v484_v41, %v481_v48  ;;  %v2394_v41 = vstv %s4338_s15  ;;  %v1089_v48 = vstv %s4101_s30  ;;  %s4117_s15 = sld [smem:[#allocation7 + $0xaf]] }
  0xc1   : > { %s5382_s30 = sld [smem:[#allocation7 + $0xb3]] }
  0xc2   : > { %v493_v56 = vadd.f32 %v491_v47, %v485_v20  ;;  %v1097_v47 = vstv %s4102_s9  ;;  %s5379_s9 = sld [smem:[#allocation7 + $0xb0]] }
  0xc3   : > { %v525_v59 = vpop.permute.xlu0 %524  ;;  %v541_v5 = vpop.permute.xlu1 %540 }
  0xc4   : > { %v497_v60 = vadd.f32 %v496_v0, %v493_v56  ;;  %v527_v61 = vadd.f32 %v525_v59, %v519_v53  ;;  %v1109_v53 = vstv %s4104_s13  ;;  %v1117_v56 = vstv %s4105_s16  ;;  %s5385_s13 = sld [smem:[#allocation7 + $0xb6]] }
  0xc5   : > { %s5392_s16 = sld [smem:[#allocation7 + $0xb8]]  ;;  %v1179_v7 = vstv %s4115_s11 }
  0xc6   : > { %v531_v63 = vadd.f32 %v530_v38, %v527_v61  ;;  %v501_v1 = vadd.f32 %v500_v58, %v497_v60  ;;  %v1137_v60 = vstv %s4108_s28  ;;  %v1159_v61 = vstv %s4112_s21  ;;  %s5394_s28 = sld [smem:[#allocation7 + $0xbb]] }
  0xc7   : > { %s5396_s21 = sld [smem:[#allocation7 + $0xb9]] }
  0xc8   : > { %v509_v54 = vadd.f32 %v507_v52, %v501_v1  ;;  %v535_v57 = vadd.f32 %v534_v44, %v531_v63  ;;  %v1151_v44 = vstv %s4111_s26  ;;  %s5398_s26 = sld [smem:[#allocation7 + $0xbc]] }
  0xc9   : > { %s5411_s11 = sld [smem:[#allocation7 + $0xc4]] }
  0xca   : > { %v512_v10 = vadd.f32 %v511_v3, %v509_v54  ;;  %v543_v11 = vadd.f32 %v541_v5, %v535_v57  ;;  %v1171_v3 = vstv %s4114_s20  ;;  %v1191_v5 = vstv %s4117_s15  ;;  %s5407_s20 = sld [smem:[#allocation7 + $0xc1]] }
  0xcb   : > { %v573_v13 = vpop.permute.xlu0 %572  ;;  %s5414_s15 = sld [smem:[#allocation7 + $0xc2]]  ;;  %v1253_v15 = vstv %s5392_s16  ;;  %s8025_s16 = smov 126  }
  0xcc   : > { %583 = vst.msk [vmem:[#allocation2 + $0x21] sm:$0xff] %vm265_vm0, %v512_v10  ;;  %v547_v30 = vadd.f32 %v546_v6, %v543_v11  ;;  %v1219_v10 = vstv %s5382_s30  ;;  %v1211_v11 = vstv %s5377_s29  ;;  %s5436_s29 = sld [smem:[#allocation7 + $0xd6]]  ;;  %s8024_s30 = smov 127  }
  0xce   : > { %v551_v19 = vadd.f32 %v550_v12, %v547_v30  ;;  %v1040_v2 = vpop.permute.xlu2 %1039  ;;  %v1233_v30 = vstv %s5389_s8  ;;  %s5455_s8 = sld [smem:[#allocation7 + $0x40]] }
  0xcf   : > { %1042 = vst.msk [vmem:[#allocation3] sm:$0xff] %vm803_vm5, %v1040_v2  ;;  %v1261_v2 = vstv %s5396_s21  ;;  %s5485_s21 = sld [smem:[#allocation7 + $0x35]] }
  0xd0   : > { %v559_v21 = vadd.f32 %v557_v17, %v551_v19  ;;  %v1199_v17 = vstv %s5379_s9  ;;  %s5432_s9 = sld [smem:[#allocation7 + $0xd8]] }
  0xd2   : > { %v563_v25 = vadd.f32 %v562_v16, %v559_v21  ;;  %v1241_v16 = vstv %s5385_s13  ;;  %s5459_s13 = sld [smem:[#allocation7 + $0x41]] }
  0xd3   : > { %v1045_v26 = vpop.permute.xlu0 %1044 }
  0xd4   : > { %v567_v49 = vadd.f32 %v566_v23, %v563_v25  ;;  %1048 = vst.msk [vmem:[#allocation3 + $0x8] sm:$0xff] %vm803_vm5, %v1045_v26  ;;  %v1281_v25 = vstv %s5398_s26  ;;  %v1273_v26 = vstv %s5394_s28  ;;  %s5482_s28 = sld [smem:[#allocation7 + $0x34]] }
  0xd5   : > { %s5499_s26 = sld [smem:[#allocation7 + $0x43]] }
  0xd6   : > { %v575_v27 = vadd.f32 %v573_v13, %v567_v49  ;;  %v5349_v22 = vld [vmem:[#allocation3] sm:$0xff] }
  0xd7   : > { %v1070_v42 = vmul.f32 %v1069_v39, %v5349_v22  ;;  %v1078_v50 = vmul.f32 %v1077_v45, %v5349_v22  ;;  %v1160_v63 = vmul.f32 %v1159_v61, %v5349_v22  ;;  %v1152_v1 = vmul.f32 %v1151_v44, %v5349_v22  ;;  %v5473_v49 = vld [vmem:[#allocation2] sm:$0xff]  ;;  %v5537_v61 = vld [vmem:[#allocation2 + $0x11] sm:$0xff] }
  0xd8   : > { %v578_v28 = vadd.f32 %v577_v18, %v575_v27  ;;  %v1051_v4 = vpop.permute.xlu1 %1050  ;;  %v1234_v19 = vmul.f32 %v1233_v30, %v5349_v22  ;;  %v1242_v23 = vmul.f32 %v1241_v16, %v5349_v22  ;;  %v5475_v18 = vld [vmem:[#allocation2 + $0x1] sm:$0xff]  ;;  %v699_v27 = vstv %s5448_s7  ;;  %s5496_s7 = sld [smem:[#allocation7 + $0x54]] }
  0xd9   : > { %1054 = vst.msk [vmem:[#allocation3 + $0x10] sm:$0xff] %vm803_vm5, %v1051_v4  ;;  %v1315_v39 = vstv %s5407_s20  ;;  %v710_v45 = vstv %s5462_s25  ;;  %s5526_s25 = sld [smem:[#allocation7 + $0x59]]  ;;  %v714_v44 = vstv %s5464_s6 }
  0xda   : > { %585 = vst.msk [vmem:[#allocation2 + $0x31] sm:$0xff] %vm265_vm0, %v578_v28  ;;  %v702_v28 = vstv %s4011_s22  ;;  %s5491_s22 = sld [smem:[#allocation7 + $0x53]] }
  0xdb   : > { %v2353_v8 = vpop.permute.xlu0 %2352  ;;  %v1057_v29 = vpop.permute.xlu2 %1056  ;;  %v5358_v46 = vld [vmem:[#allocation3 + $0x8] sm:$0xff]  ;;  %s5541_s20 = sld [smem:[#allocation7 + $0x46]] }
  0xdc   : > { %2356 = vst.msk [vmem:[#allocation5 + $0x3] sm:$0xff] %vm2355_vm6, %v2353_v8  ;;  %v1098_v51 = vmul.f32 %v1097_v47, %v5358_v46  ;;  %v1090_v52 = vmul.f32 %v1089_v48, %v5358_v46  ;;  %v1172_v54 = vmul.f32 %v1171_v3, %v5358_v46  ;;  %v1180_v57 = vmul.f32 %v1179_v7, %v5358_v46  ;;  %s5552_s6 = sld [smem:[#allocation7 + $0x38]] }
  0xdd   : > { %1060 = vst.msk [vmem:[#allocation3 + $0x18] sm:$0xff] %vm803_vm5, %v1057_v29  ;;  %v1254_v21 = vmul.f32 %v1253_v15, %v5358_v46  ;;  %v1262_v8 = vmul.f32 %v1261_v2, %v5358_v46  ;;  %v1316_v48 = vmul.f32 %v1315_v39, %v5349_v22  ;;  %v1323_v3 = vstv %s5414_s15  ;;  %v5562_v15 = vld [vmem:[#allocation2 + $0x12] sm:$0xff]  ;;  %s5579_s15 = sld [smem:[#allocation7 + $0x3a]] }
  0xe0   : > { %v5365_v0 = vld [vmem:[#allocation3 + $0x10] sm:$0xff] }
  0xe1   : > { %v1110_v38 = vmul.f32 %v1109_v53, %v5365_v0  ;;  %v1118_v59 = vmul.f32 %v1117_v56, %v5365_v0  ;;  %v1192_v6 = vmul.f32 %v1191_v5, %v5365_v0  ;;  %v1200_v12 = vmul.f32 %v1199_v17, %v5365_v0 }
  0xe2   : > { %v1282_v4 = vmul.f32 %v1281_v25, %v5365_v0  ;;  %v1274_v29 = vmul.f32 %v1273_v26, %v5365_v0  ;;  %v599_v56 = vstv %s5482_s28  ;;  %v752_v25 = vstv %s5526_s25  ;;  %s5586_s28 = sld [smem:[#allocation7 + $0x5b]] }
  0xe3   : > { %v5342_v34 = vld [vmem:[#allocation5] sm:$0xff]  ;;  %v2402_v26 = vstv %s5436_s29  ;;  %v753_v39 = vmul.f32 %v752_v25, %v5475_v18  ;;  %s7953_s29 = smov 122   ;;  %s5691_s25 = sld [smem:[#allocation7 + $0x60]] }
  0xe4   : > { %v2379_v35 = vmul.f32 %v2378_v31, %v5342_v34  ;;  %v2363_v36 = vmul.f32 %v2362_v32, %v5342_v34  ;;  %v2371_v37 = vmul.f32 %v2370_v33, %v5342_v34  ;;  %v2387_v24 = vmul.f32 %v2386_v40, %v5342_v34  ;;  %v5367_v20 = vld [vmem:[#allocation3 + $0x18] sm:$0xff]  ;;  %v5503_v40 = vld [vmem:[#allocation2 + $0x2] sm:$0xff] }
  0xe5   : > { %v2395_v43 = vmul.f32 %v2394_v41, %v5342_v34  ;;  %v1130_v58 = vmul.f32 %v1129_v55, %v5367_v20  ;;  %v1138_v62 = vmul.f32 %v1137_v60, %v5367_v20  ;;  %v1220_v13 = vmul.f32 %v1219_v10, %v5367_v20 }
  0xe6   : > { %2381 = vrot.lane.b32.xlu0 %v2379_v35, %s7934_s17  ;;  %2365 = vrot.lane.b32.xlu1 %v2363_v36, %s7936_s18  ;;  %s5423_s17 = sld [smem:[#allocation7 + $0xc7]]  ;;  %v1212_v14 = vmul.f32 %v1211_v11, %v5367_v20  ;;  %v700_v31 = vmul.f32 %v699_v27, %v5473_v49  ;;  %v703_v32 = vmul.f32 %v702_v28, %v5475_v18  ;;  %v649_v33 = vstv %s5455_s8  ;;  %v5575_v27 = vld [vmem:[#allocation2 + $0x20] sm:$0xff] }
  0xe7   : > { %2373 = vrot.lane.b32.xlu2 %v2371_v37, %s7942_s2  ;;  %v652_v35 = vstv %s5459_s13  ;;  %v1293_v37 = vstv %s5404_s24  ;;  %v650_v41 = vmul.f32 %v649_v33, %v5473_v49  ;;  %s5510_s8 = sld [smem:[#allocation7 + $0x44]]  ;;  %v715_v10 = vmul.f32 %v714_v44, %v5537_v61 }
  0xe8   : > { %v1294_v47 = vmul.f32 %v1293_v37, %v5367_v20  ;;  %s5521_s24 = sld [smem:[#allocation7 + $0x58]]  ;;  %v718_v11 = vstv %s5468_s5  ;;  %v2447_v44 = vstv %s5439_s3 }
  0xe9   : > { %s5547_s13 = sld [smem:[#allocation7 + $0x56]] }
  0xea   : > { %s5568_s5 = sld [smem:[#allocation7 + $0x39]] }
  0xeb   : > { %s5725_s3 = sld [smem:[#allocation7 + $0x62]] }
  0xed   : > { %v664_v16 = vstv %s5510_s8  ;;  %s5631_s8 = sld [smem:[#allocation7 + $0x5e]] }
  0xee   : > { %2389 = vrot.lane.b32.xlu1 %v2387_v24, %s7930_s19  ;;  %1072 = vrot.lane.b32.xlu0 %v1070_v42, %s7936_s18  ;;  %s5416_s19 = sld [smem:[#allocation7 + $0xc5]]  ;;  %v653_v42 = vmul.f32 %v652_v35, %v5475_v18  ;;  %v1301_v24 = vstv %s5400_s14  ;;  %v749_v2 = vstv %s5521_s24 }
  0xef   : > { %2397 = vrot.lane.b32.xlu2 %v2395_v43, %s7932_s10  ;;  %s5420_s10 = sld [smem:[#allocation7 + $0xc8]]  ;;  %v704_v43 = vadd.f32 %v703_v32, %v700_v31  ;;  %v1302_v53 = vmul.f32 %v1301_v24, %v5367_v20  ;;  %v665_v31 = vmul.f32 %v664_v16, %v5537_v61  ;;  %v672_v35 = vstv %s5541_s20  ;;  %s8026_s20 = smov 125  }
  0xf0   : > { %v654_v55 = vadd.f32 %v653_v42, %v650_v41  ;;  %s5535_s14 = sld [smem:[#allocation7 + $0x37]]  ;;  %v750_v37 = vmul.f32 %v749_v2, %v5473_v49  ;;  %v1355_v41 = vstv %s5423_s17  ;;  %v1375_v42 = vstv %s5425_s1 }
  0xf1   : > { %s5609_s1 = sld [smem:[#allocation7 + $0x5c]] }
  0xf2   : > { %s5613_s17 = sld [smem:[#allocation7 + $0x4a]] }
  0xf3   : > { %s5648_s24 = sld [smem:[#allocation7 + $0x3d]] }
  0xf4   : > { %v1343_v5 = vstv %s5416_s19  ;;  %s5558_s19 = sld [smem:[#allocation7 + $0x5a]] }
  0xf5   : > { %v1344_v30 = vmul.f32 %v1343_v5, %v5358_v46 }
  0xf6   : > { %1080 = vrot.lane.b32.xlu1 %v1078_v50, %s7942_s2  ;;  %1100 = vrot.lane.b32.xlu0 %v1098_v51, %s7942_s2  ;;  %v5517_v50 = vld [vmem:[#allocation2 + $0x10] sm:$0xff]  ;;  %v610_v33 = vstv %s5535_s14  ;;  %s5701_s14 = sld [smem:[#allocation7 + $0x65]] }
  0xf7   : > { %1092 = vrot.lane.b32.xlu2 %v1090_v52, %s7936_s18  ;;  %v656_v52 = vstv %s5478_s23  ;;  %s5530_s23 = sld [smem:[#allocation7 + $0x45]] }
  0xf8   : > { %v657_v60 = vmul.f32 %v656_v52, %v5503_v40  ;;  %v5603_v52 = vld [vmem:[#allocation2 + $0x21] sm:$0xff] }
  0xfa   : > { %v658_v7 = vadd.f32 %v657_v60, %v654_v55  ;;  %v756_v55 = vstv %s5558_s19  ;;  %s5734_s19 = sld [smem:[#allocation7 + $0x64]] }
  0xfd   : > { %v668_v32 = vstv %s5530_s23  ;;  %s5698_s23 = sld [smem:[#allocation7 + $0x61]] }
  0xfe   : > { %1112 = vrot.lane.b32.xlu1 %v1110_v38, %s7936_s18  ;;  %1132 = vrot.lane.b32.xlu0 %v1130_v58, %s7936_s18  ;;  %v602_v38 = vstv %s5485_s21  ;;  %s5588_s21 = sld [smem:[#allocation7 + $0x57]] }
  0xff   : > { %1120 = vrot.lane.b32.xlu2 %v1118_v59, %s7942_s2  ;;  %v711_v59 = vmul.f32 %v710_v45, %v5517_v50  ;;  %v1363_v45 = vstv %s5420_s10  ;;  %s5617_s10 = sld [smem:[#allocation7 + $0x3b]] }
 0x100   : > { %v1364_v60 = vmul.f32 %v1363_v45, %v5365_v0 }
 0x105   : > { %v626_v45 = vstv %s5617_s10  ;;  %s4356_s10 = sld [smem:[#allocation7 + $0xe7]] }
 0x106   : > { %1140 = vrot.lane.b32.xlu1 %v1138_v62, %s7942_s2  ;;  %1162 = vrot.lane.b32.xlu0 %v1160_v63, %s7942_s2  ;;  %v660_v62 = vstv %s5499_s26  ;;  %v600_v63 = vmul.f32 %v599_v56, %v5473_v49  ;;  %s5600_s26 = sld [smem:[#allocation7 + $0x49]]  ;;  %v669_v49 = vmul.f32 %v668_v32, %v5562_v15  ;;  %v1356_v56 = vmul.f32 %v1355_v41, %v5365_v0 }
 0x107   : > { %1154 = vrot.lane.b32.xlu2 %v1152_v1, %s7936_s18  ;;  %v603_v1 = vmul.f32 %v602_v38, %v5475_v18  ;;  %v673_v18 = vmul.f32 %v672_v35, %v5575_v27  ;;  %v1376_v38 = vmul.f32 %v1375_v42, %v5367_v20 }
 0x10e   : > { %1174 = vrot.lane.b32.xlu1 %v1172_v54, %s7936_s18  ;;  %1194 = vrot.lane.b32.xlu0 %v1192_v6, %s7936_s18  ;;  %s5429_s18 = sld [smem:[#allocation7 + $0xd9]]  ;;  %v1335_v54 = vstv %s5411_s11 }
 0x10f   : > { %1182 = vrot.lane.b32.xlu2 %v1180_v57, %s7942_s2  ;;  %v2415_v57 = vstv %s5432_s9  ;;  %s5565_s11 = sld [smem:[#allocation7 + $0x47]] }
 0x110   : > { %s5673_s9 = sld [smem:[#allocation7 + $0x5f]] }
 0x114   : > { %v2423_v6 = vstv %s5429_s18  ;;  %s5678_s18 = sld [smem:[#allocation7 + $0x66]] }
 0x116   : > { %1202 = vrot.lane.b32.xlu1 %v1200_v12, %s7942_s2  ;;  %1222 = vrot.lane.b32.xlu0 %v1220_v13, %s7942_s2  ;;  %s5452_s2 = sld [smem:[#allocation7 + $0x4e]]  ;;  %v661_v12 = vmul.f32 %v660_v62, %v5517_v50 }
 0x117   : > { %1214 = vrot.lane.b32.xlu2 %v1212_v14, %s8024_s30  ;;  %v1324_v14 = vmul.f32 %v1323_v3, %v5349_v22  ;;  %v676_v3 = vstv %s5565_s11  ;;  %s5739_s11 = sld [smem:[#allocation7 + $0xe0]] }
 0x118   : > { %v677_v25 = vmul.f32 %v676_v3, %v5603_v52 }
 0x11c   : > { %v706_v36 = vstv %s5452_s2  ;;  %s5513_s2 = sld [smem:[#allocation7 + $0x36]] }
 0x11d   : > { %v707_v51 = vmul.f32 %v706_v36, %v5503_v40 }
 0x11e   : > { %1236 = vrot.lane.b32.xlu1 %v1234_v19, %s8024_s30  ;;  %1256 = vrot.lane.b32.xlu0 %v1254_v21, %s8024_s30  ;;  %v604_v19 = vadd.f32 %v603_v1, %v600_v63  ;;  %v1336_v21 = vmul.f32 %v1335_v54, %v5358_v46 }
 0x11f   : > { %1244 = vrot.lane.b32.xlu2 %v1242_v23, %s8025_s16  ;;  %v708_v58 = vadd.f32 %v707_v51, %v704_v43  ;;  %v662_v23 = vadd.f32 %v661_v12, %v658_v7  ;;  %v611_v51 = vmul.f32 %v610_v33, %v5517_v50  ;;  %v757_v7 = vmul.f32 %v756_v55, %v5503_v40  ;;  %v5633_v12 = vld [vmem:[#allocation2 + $0x22] sm:$0xff] }
 0x121   : > { %v712_v17 = vadd.f32 %v711_v59, %v708_v58  ;;  %v666_v43 = vadd.f32 %v665_v31, %v662_v23  ;;  %v754_v59 = vadd.f32 %v753_v39, %v750_v37  ;;  %v2431_v23 = vstv %s5445_s27  ;;  %s5656_s27 = sld [smem:[#allocation7 + $0x4b]] }
 0x122   : > { %v606_v13 = vstv %s5513_s2  ;;  %s5639_s2 = sld [smem:[#allocation7 + $0x3c]]  ;;  %v2403_v39 = vmul.f32 %v2402_v26, %v5342_v34 }
 0x123   : > { %v716_v28 = vadd.f32 %v715_v10, %v712_v17  ;;  %v670_v63 = vadd.f32 %v669_v49, %v666_v43  ;;  %v618_v17 = vstv %s5568_s5  ;;  %v622_v10 = vstv %s5579_s15  ;;  %s5744_s5 = sld [smem:[#allocation7 + $0x63]]  ;;  %s8028_s15 = smov 124  }
 0x124   : > { %v758_v16 = vadd.f32 %v757_v7, %v754_v59 }
 0x125   : > { %v674_v54 = vadd.f32 %v673_v18, %v670_v63  ;;  %v772_v18 = vstv %s5631_s8  ;;  %s4351_s8 = sld [smem:[#allocation7 + $0xe2]] }
 0x126   : > { %1264 = vrot.lane.b32.xlu1 %v1262_v8, %s8025_s16  ;;  %1284 = vrot.lane.b32.xlu0 %v1282_v4, %s8025_s16  ;;  %v722_v8 = vstv %s5471_s0  ;;  %v607_v4 = vmul.f32 %v606_v13, %v5503_v40  ;;  %s5596_s0 = sld [smem:[#allocation7 + $0x48]]  ;;  %v5635_v13 = vld [vmem:[#allocation2 + $0x30] sm:$0xff] }
 0x127   : > { %1276 = vrot.lane.b32.xlu2 %v1274_v29, %s8024_s30  ;;  %v719_v29 = vmul.f32 %v718_v11, %v5562_v15  ;;  %v723_v24 = vmul.f32 %v722_v8, %v5575_v27  ;;  %v760_v11 = vstv %s5586_s28  ;;  %v684_v8 = vstv %s5600_s26  ;;  %s8029_s28 = smov 1   ;;  %s4352_s26 = sld [smem:[#allocation7 + $0xe3]] }
 0x128   : > { %v608_v36 = vadd.f32 %v607_v4, %v604_v19  ;;  %v619_v4 = vmul.f32 %v618_v17, %v5562_v15  ;;  %v761_v31 = vmul.f32 %v760_v11, %v5517_v50  ;;  %v678_v35 = vadd.f32 %v677_v25, %v674_v54  ;;  %v5707_v17 = vld [vmem:[#allocation2 + $0x32] sm:$0xff] }
 0x129   : > { %v685_v43 = vmul.f32 %v684_v8, %v5635_v13  ;;  %v692_v11 = vstv %s5656_s27  ;;  %s4355_s27 = sld [smem:[#allocation7 + $0xe6]] }
 0x12a   : > { %v612_v58 = vadd.f32 %v611_v51, %v608_v36  ;;  %v764_v36 = vstv %s5609_s1  ;;  %v762_v42 = vadd.f32 %v761_v31, %v758_v16  ;;  %v688_v51 = vstv %s5613_s17  ;;  %s4353_s1 = sld [smem:[#allocation7 + $0xe4]] }
 0x12b   : > { %v765_v26 = vmul.f32 %v764_v36, %v5537_v61  ;;  %v776_v16 = vstv %s5673_s9  ;;  %v780_v36 = vstv %s5691_s25  ;;  %s4348_s17 = sld [smem:[#allocation7 + $0xdf]] }
 0x12c   : > { %v777_v31 = vmul.f32 %v776_v16, %v5603_v52  ;;  %s4097_s9 = sld [smem:[#allocation7 + $0x9c]] }
 0x12d   : > { %s4366_s25 = sld [smem:[#allocation7 + $0xf1]] }
 0x12e   : > { %1296 = vrot.lane.b32.xlu1 %v1294_v47, %s8024_s30  ;;  %1318 = vrot.lane.b32.xlu0 %v1316_v48, %s8024_s30  ;;  %v720_v47 = vadd.f32 %v719_v29, %v716_v28  ;;  %v726_v48 = vstv %s5491_s22  ;;  %s5625_s22 = sld [smem:[#allocation7 + $0x5d]]  ;;  %v680_v28 = vstv %s5596_s0  ;;  %v623_v29 = vmul.f32 %v622_v10, %v5575_v27 }
 0x12f   : > { %1304 = vrot.lane.b32.xlu2 %v1302_v53, %s8025_s16  ;;  %v614_v53 = vstv %s5552_s6  ;;  %v727_v1 = vmul.f32 %v726_v48, %v5603_v52  ;;  %s5728_s6 = sld [smem:[#allocation7 + $0xdd]] }
 0x130   : > { %v724_v62 = vadd.f32 %v723_v24, %v720_v47  ;;  %v615_v5 = vmul.f32 %v614_v53, %v5537_v61  ;;  %v681_v24 = vmul.f32 %v680_v28, %v5633_v12  ;;  %v5682_v47 = vld [vmem:[#allocation2 + $0x31] sm:$0xff]  ;;  %v1383_v53 = vstv %s5441_s4  ;;  %s5711_s4 = sld [smem:[#allocation7 + $0x3f]] }
 0x131   : > { %v1384_v7 = vmul.f32 %v1383_v53, %v5367_v20  ;;  %v689_v10 = vmul.f32 %v688_v51, %v5682_v47  ;;  %v693_v28 = vmul.f32 %v692_v11, %v5707_v17  ;;  %s4035_s0 = sld [smem:[#allocation7 + $0x67]]  ;;  %v2508_v16 = vstv %s4353_s1 }
 0x132   : > { %v616_v40 = vadd.f32 %v615_v5, %v612_v58  ;;  %v728_v2 = vadd.f32 %v727_v1, %v724_v62  ;;  %v682_v48 = vadd.f32 %v681_v24, %v678_v35  ;;  %v742_v58 = vstv %s5588_s21  ;;  %s4350_s21 = sld [smem:[#allocation7 + $0xe1]] }
 0x133   : > { %v634_v62 = vstv %s5648_s24  ;;  %v773_v5 = vmul.f32 %v772_v18, %v5575_v27  ;;  %s4360_s24 = sld [smem:[#allocation7 + $0xeb]] }
 0x134   : > { %v620_v41 = vadd.f32 %v619_v4, %v616_v40  ;;  %v768_v49 = vstv %s5625_s22  ;;  %v686_v59 = vadd.f32 %v685_v43, %v682_v48  ;;  %v788_v48 = vstv %s5725_s3  ;;  %s4357_s22 = sld [smem:[#allocation7 + $0xe8]] }
 0x135   : > { %v769_v3 = vmul.f32 %v768_v49, %v5562_v15  ;;  %v635_v15 = vmul.f32 %v634_v62, %v5635_v13  ;;  %v2455_v53 = vstv %s5728_s6  ;;  %s5834_s3 = sld [smem:[#allocation7 + $0xed]] }
 0x136   : > { %1326 = vrot.lane.b32.xlu1 %v1324_v14, %s8025_s16  ;;  %1346 = vrot.lane.b32.xlu0 %v1344_v30, %s8025_s16  ;;  %v730_v14 = vstv %s5496_s7  ;;  %v734_v30 = vstv %s5505_s12  ;;  %s5665_s12 = sld [smem:[#allocation7 + $0xdb]]  ;;  %v690_v27 = vadd.f32 %v689_v10, %v686_v59 }
 0x137   : > { %1338 = vrot.lane.b32.xlu2 %v1336_v21, %s8024_s30  ;;  %v5643_v21 = vld [vmem:[#allocation5 + $0x1] sm:$0xff]  ;;  %v731_v32 = vmul.f32 %v730_v14, %v5633_v12  ;;  %v735_v33 = vmul.f32 %v734_v30, %v5635_v13  ;;  %s5685_s7 = sld [smem:[#allocation7 + $0x3e]]  ;;  %v642_v24 = vstv %s5711_s4  ;;  %v792_v59 = vstv %s5744_s5 }
 0x138   : > { %v2416_v37 = vmul.f32 %v2415_v57, %v5643_v21  ;;  %v2424_v50 = vmul.f32 %v2423_v6, %v5643_v21  ;;  %v738_v57 = vstv %s5547_s13  ;;  %v624_v6 = vadd.f32 %v623_v29, %v620_v41  ;;  %s8027_s13 = smov 123   ;;  %s5829_s4 = sld [smem:[#allocation7 + $0xf2]] }
 0x139   : > { %v732_v34 = vadd.f32 %v731_v32, %v728_v2  ;;  %v739_v63 = vmul.f32 %v738_v57, %v5682_v47  ;;  %v2432_v54 = vmul.f32 %v2431_v23, %v5643_v21  ;;  %v2448_v20 = vmul.f32 %v2447_v44, %v5643_v21  ;;  %s5836_s6 = sld [smem:[#allocation7 + $0xf5]] }
 0x13a   : > { %v743_v23 = vmul.f32 %v742_v58, %v5707_v17  ;;  %v694_v35 = vadd.f32 %v693_v28, %v690_v27  ;;  %v789_v58 = vmul.f32 %v788_v48, %v5682_v47  ;;  %v2484_v10 = vstv %s4350_s21  ;;  %s5852_s5 = sld [smem:[#allocation7 + $0xa2]] }
 0x13b   : > { %v736_v55 = vadd.f32 %v735_v33, %v732_v34  ;;  %v746_v33 = vstv %s5678_s18  ;;  %v796_v11 = vstv %s4035_s0  ;;  %s4364_s18 = sld [smem:[#allocation7 + $0xef]]  ;;  %v1066_v48 = vstv %s4097_s9 }
 0x13c   : > { %v2439_v44 = vstv %s5665_s12  ;;  %s4363_s12 = sld [smem:[#allocation7 + $0xee]] }
 0x13d   : > { %v740_v14 = vadd.f32 %v739_v63, %v736_v55  ;;  %v638_v8 = vstv %s5685_s7  ;;  %v646_v55 = vstv %s5734_s19  ;;  %s4358_s7 = sld [smem:[#allocation7 + $0xe9]] }
 0x13e   : > { %1358 = vrot.lane.b32.xlu1 %v1356_v56, %s8024_s30  ;;  %1378 = vrot.lane.b32.xlu0 %v1376_v38, %s8024_s30  ;;  %v627_v56 = vmul.f32 %v626_v45, %v5603_v52  ;;  %v766_v38 = vadd.f32 %v765_v26, %v762_v42  ;;  %v639_v41 = vmul.f32 %v638_v8, %v5682_v47  ;;  %s5842_s19 = sld [smem:[#allocation7 + $0xb4]] }
 0x13f   : > { %1366 = vrot.lane.b32.xlu2 %v1364_v60, %s8025_s16  ;;  %v630_v60 = vstv %s5639_s2  ;;  %v744_v4 = vadd.f32 %v743_v23, %v740_v14  ;;  %v781_v45 = vmul.f32 %v780_v36, %v5633_v12  ;;  %v2500_v14 = vstv %s4352_s26  ;;  %s4359_s2 = sld [smem:[#allocation7 + $0xea]] }
 0x140   : > { %v628_v1 = vadd.f32 %v627_v56, %v624_v6  ;;  %v631_v30 = vmul.f32 %v630_v60, %v5633_v12  ;;  %v770_v40 = vadd.f32 %v769_v3, %v766_v38  ;;  %v643_v6 = vmul.f32 %v642_v24, %v5707_v17  ;;  %v5761_v56 = vld [vmem:[#allocation5 + $0x2] sm:$0xff]  ;;  %s5859_s21 = sld [smem:[#allocation7 + $0xf6]] }
 0x141   : > { %v5641_v19 = vpop.permute.xlu2 %2373  ;;  %v747_v52 = vadd.f32 %v746_v33, %v744_v4  ;;  %v2476_v38 = vstv %s5739_s11  ;;  %v2456_v60 = vmul.f32 %v2455_v53, %v5643_v21  ;;  %v793_v3 = vmul.f32 %v792_v59, %v5707_v17  ;;  %s5845_s11 = sld [smem:[#allocation7 + $0xab]] }
 0x142   : > { %v632_v2 = vadd.f32 %v631_v30, %v628_v1  ;;  %v774_v25 = vadd.f32 %v773_v5, %v770_v40  ;;  %v2477_v1 = vmul.f32 %v2476_v38, %v5761_v56  ;;  %v2485_v30 = vmul.f32 %v2484_v10, %v5761_v56  ;;  %s5865_s0 = sld [smem:[#allocation7 + $0xf0]] }
 0x143   : > { %v2501_v17 = vmul.f32 %v2500_v14, %v5761_v56  ;;  %v2468_v23 = vstv %s4348_s17  ;;  %v2509_v28 = vmul.f32 %v2508_v16, %v5761_v56  ;;  %v2537_v33 = vstv %s4357_s22  ;;  %s5871_s26 = sld [smem:[#allocation7 + $0xf8]] }
 0x144   : > { %v636_v29 = vadd.f32 %v635_v15, %v632_v2  ;;  %v778_v42 = vadd.f32 %v777_v31, %v774_v25  ;;  %v5789_v2 = vld [vmem:[#allocation5 + $0x3] sm:$0xff]  ;;  %v2529_v25 = vstv %s4356_s10  ;;  %v2469_v8 = vmul.f32 %v2468_v23, %v5761_v56  ;;  %s5873_s1 = sld [smem:[#allocation7 + $0xb7]] }
 0x145   : > { %v2553_v36 = vstv %s4359_s2  ;;  %v1067_v53 = vmul.f32 %v1066_v48, %v5349_v22  ;;  %v2590_v38 = vstv %s4364_s18  ;;  %v2606_v59 = vstv %s4366_s25  ;;  %v5868_v23 = vld [vmem:[#allocation5 + $0x5] sm:$0xff]  ;;  %s5884_s17 = sld [smem:[#allocation7 + $0xae]] }
 0x146   : > { %2418 = vrot.lane.b32.xlu1 %v2416_v37, %s8024_s30  ;;  %2405 = vrot.lane.b32.xlu0 %v2403_v39, %s7953_s29  ;;  %v784_v37 = vstv %s5698_s23  ;;  %v696_v39 = vstv %s5701_s14  ;;  %v640_v43 = vadd.f32 %v639_v41, %v636_v29  ;;  %v782_v26 = vadd.f32 %v781_v45, %v778_v42  ;;  %v5813_v45 = vld [vmem:[#allocation5 + $0x4] sm:$0xff]  ;;  %s5815_s23 = sld [smem:[#allocation7 + $0x9f]] }
 0x147   : > { %2426 = vrot.lane.b32.xlu2 %v2424_v50, %s8025_s16  ;;  %v2440_v50 = vmul.f32 %v2439_v44, %v5643_v21  ;;  %v785_v34 = vmul.f32 %v784_v37, %v5635_v13  ;;  %v697_v57 = vadd.f32 %v696_v39, %v694_v35  ;;  %v2530_v44 = vmul.f32 %v2529_v25, %v5789_v2  ;;  %s5822_s14 = sld [smem:[#allocation7 + $0xa8]] }
 0x148   : > { %v644_v12 = vadd.f32 %v643_v6, %v640_v43  ;;  %v2492_v35 = vstv %s4351_s8  ;;  %v2538_v37 = vmul.f32 %v2537_v33, %v5789_v2  ;;  %v2554_v41 = vmul.f32 %v2553_v36, %v5789_v2  ;;  %s5890_s10 = sld [smem:[#allocation7 + $0xf9]] }
 0x149   : > { %v5693_v61 = vpop.permute.xlu2 %2397  ;;  %v786_v13 = vadd.f32 %v785_v34, %v782_v26  ;;  %v2493_v39 = vmul.f32 %v2492_v35, %v5761_v56  ;;  %v2521_v43 = vstv %s4355_s27  ;;  %v2582_v34 = vstv %s4363_s12  ;;  %s5897_s22 = sld [smem:[#allocation7 + $0xf4]] }
 0x14a   : > { %v647_v62 = vadd.f32 %v646_v55, %v644_v12  ;;  %v2522_v6 = vmul.f32 %v2521_v43, %v5789_v2  ;;  %v2583_v26 = vmul.f32 %v2582_v34, %v5813_v45  ;;  %v2635_v25 = vstv %s5836_s6  ;;  %s5900_s8 = sld [smem:[#allocation7 + $0xfc]] }
 0x14b   : > { %v790_v63 = vadd.f32 %v789_v58, %v786_v13  ;;  %v2545_v58 = vstv %s4358_s7  ;;  %v1230_v33 = vstv %s5842_s19  ;;  %v1167_v36 = vstv %s5845_s11  ;;  %s5903_s2 = sld [smem:[#allocation7 + $0xa5]] }
 0x14c   : > { %s5920_s27 = sld [smem:[#allocation7 + $0xc0]] }
 0x14d   : > { %v794_v47 = vadd.f32 %v793_v3, %v790_v63  ;;  %v2591_v63 = vmul.f32 %v2590_v38, %v5813_v45  ;;  %s5925_s12 = sld [smem:[#allocation7 + $0xfd]] }
 0x14e   : > { %1386 = vrot.lane.b32.xlu1 %v1384_v7, %s8025_s16  ;;  %2434 = vrot.lane.b32.xlu0 %v2432_v54, %s8026_s20  ;;  %s5932_s9 = sld [smem:[#allocation7 + $0xf7]] }
 0x14f   : > { %2450 = vrot.lane.b32.xlu2 %v2448_v20, %s8027_s13  ;;  %v797_v15 = vadd.f32 %v796_v11, %v794_v47  ;;  %v2607_v47 = vmul.f32 %v2606_v59, %v5813_v45  ;;  %s5940_s18 = sld [smem:[#allocation7 + $0xff]] }
 0x150   : > { %s5945_s7 = sld [smem:[#allocation7 + $0xb1]] }
 0x151   : > { %v5731_v32 = vpop.permute.xlu2 %1092  ;;  %s5959_s25 = sld [smem:[#allocation7 + $0xc3]] }
 0x152   : > { %s5996_s6 = sld [smem:[#allocation7 + $0xc6]] }
 0x153   : > { %s6000_s19 = sld [smem:[#allocation7 + $0xd0]] }
 0x154   : > { %s6007_s11 = sld [smem:[#allocation7 + $0xcd]] }
 0x156   : > { %2442 = vrot.lane.b32.xlu1 %v2440_v50, %s8028_s15  ;;  %812 = vrot.lane.b32.xlu0 %v747_v52, %s8029_s28  ;;  %v2561_v52 = vstv %s4360_s24  ;;  %s5916_s24 = sld [smem:[#allocation7 + $0xba]] }
 0x157   : > { %806 = vrot.lane.b32.xlu2 %v697_v57, %s8029_s28  ;;  %v2562_v57 = vmul.f32 %v2561_v52, %v5789_v2 }
 0x158   : > { %v5753_v51 = vpop.permute.xlu0 %2381  ;;  %v5755_v49 = vpop.permute.xlu1 %2365 }
 0x159   : > { %v5757_v18 = vpop.permute.xlu2 %1120 }
 0x15e   : > { %2458 = vrot.lane.b32.xlu0 %v2456_v60, %s7953_s29  ;;  %799 = vrot.lane.b32.xlu1 %v647_v62, %s8029_s28  ;;  %v1085_v62 = vstv %s5815_s23  ;;  %s5973_s23 = sld [smem:[#allocation7 + $0x100]] }
 0x15f   : > { %2479 = vrot.lane.b32.xlu2 %v2477_v1, %s8025_s16  ;;  %v2546_v1 = vmul.f32 %v2545_v58, %v5789_v2  ;;  %v1086_v10 = vmul.f32 %v1085_v62, %v5358_v46 }
 0x160   : > { %v5772_v5 = vpop.permute.xlu1 %2389  ;;  %v5774_v7 = vpop.permute.xlu0 %1072 }
 0x161   : > { %v5776_v54 = vpop.permute.xlu2 %1154  ;;  %v1075_v60 = vadd.f32 %v5774_v7, %v1067_v53  ;;  %v1148_v7 = vstv %s5822_s14  ;;  %v2659_v53 = vstv %s5871_s26  ;;  %s5981_s14 = sld [smem:[#allocation7 + $0xfb]] }
 0x162   : > { %v1149_v16 = vmul.f32 %v1148_v7, %v5349_v22  ;;  %v2660_v62 = vmul.f32 %v2659_v53, %v5868_v23  ;;  %v1207_v53 = vstv %s5945_s7  ;;  %s4148_s26 = sld [smem:[#allocation7 + $0xcf]] }
 0x163   : > { %s6099_s7 = sld [smem:[#allocation7 + $0x166]] }
 0x166   : > { %2487 = vrot.lane.b32.xlu0 %v2485_v30, %s8026_s20  ;;  %818 = vrot.lane.b32.xlu1 %v797_v15, %s8029_s28 }
 0x167   : > { %2503 = vrot.lane.b32.xlu2 %v2501_v17, %s8027_s13  ;;  %v2614_v17 = vstv %s5829_s4  ;;  %s5985_s4 = sld [smem:[#allocation7 + $0xcc]] }
 0x168   : > { %v5783_v40 = vpop.permute.xlu1 %1080  ;;  %v5785_v20 = vpop.permute.xlu0 %1100 }
 0x169   : > { %v5787_v27 = vpop.permute.xlu2 %1182  ;;  %v1083_v3 = vadd.f32 %v5783_v40, %v1075_v60  ;;  %v2574_v40 = vstv %s5834_s3  ;;  %s5991_s3 = sld [smem:[#allocation7 + $0xbd]] }
 0x16b   : > { %v1087_v30 = vadd.f32 %v1086_v10, %v1083_v3 }
 0x16d   : > { %v1095_v35 = vadd.f32 %v5731_v32, %v1087_v30  ;;  %v1168_v32 = vmul.f32 %v1167_v36, %v5358_v46  ;;  %v1249_v46 = vstv %s5873_s1  ;;  %v2667_v30 = vstv %s5890_s10  ;;  %s4340_s1 = sld [smem:[#allocation7 + $0xd7]] }
 0x16e   : > { %2511 = vrot.lane.b32.xlu0 %v2509_v28, %s7953_s29  ;;  %2471 = vrot.lane.b32.xlu1 %v2469_v8, %s8024_s30  ;;  %v1157_v28 = vadd.f32 %v5776_v54, %v1149_v16  ;;  %v2615_v8 = vmul.f32 %v2614_v17, %v5813_v45  ;;  %v1231_v54 = vmul.f32 %v1230_v33, %v5349_v22  ;;  %v2627_v17 = vstv %s5897_s22  ;;  %v5937_v16 = vld [vmem:[#allocation5 + $0x6] sm:$0xff]  ;;  %s4195_s10 = sld [smem:[#allocation7 + $0x158]] }
 0x16f   : > { %2532 = vrot.lane.b32.xlu2 %v2530_v44, %s8025_s16  ;;  %v2575_v44 = vmul.f32 %v2574_v40, %v5813_v45  ;;  %v5934_v40 = vld [vmem:[#allocation3 + $0x10] sm:$0xff]  ;;  %v2628_v33 = vmul.f32 %v2627_v17, %v5868_v23  ;;  %s4194_s22 = sld [smem:[#allocation7 + $0x157]] }
 0x170   : > { %v5797_v4 = vpop.permute.xlu1 %1112  ;;  %v5799_v29 = vpop.permute.xlu0 %1132 }
 0x171   : > { %v5801_v31 = vpop.permute.xlu2 %1214 }
 0x176   : > { %2540 = vrot.lane.b32.xlu0 %v2538_v37, %s8026_s20  ;;  %2495 = vrot.lane.b32.xlu1 %v2493_v39, %s8028_s15  ;;  %v2636_v37 = vmul.f32 %v2635_v25, %v5868_v23  ;;  %v2688_v25 = vstv %s5900_s8  ;;  %s6062_s8 = sld [smem:[#allocation7 + $0x15e]] }
 0x177   : > { %2556 = vrot.lane.b32.xlu2 %v2554_v41, %s8027_s13  ;;  %v1105_v41 = vstv %s5852_s5  ;;  %v2689_v36 = vmul.f32 %v2688_v25, %v5937_v16  ;;  %v2680_v25 = vstv %s5981_s14  ;;  %s6016_s5 = sld [smem:[#allocation7 + $0xfe]] }
 0x178   : > { %v5809_v42 = vpop.permute.xlu1 %1140  ;;  %v1163_v50 = vpop.permute.xlu0 %1162  ;;  %v1106_v22 = vmul.f32 %v1105_v41, %v5365_v0  ;;  %s6118_s14 = sld [smem:[#allocation7 + $0x16a]] }
 0x179   : > { %v5811_v24 = vpop.permute.xlu2 %1244  ;;  %v1165_v39 = vadd.f32 %v1163_v50, %v1157_v28  ;;  %v1103_v50 = vadd.f32 %v5785_v20, %v1095_v35 }
 0x17b   : > { %v1169_v48 = vadd.f32 %v1168_v32, %v1165_v39  ;;  %v1107_v60 = vadd.f32 %v1106_v22, %v1103_v50  ;;  %v1269_v39 = vstv %s5916_s24  ;;  %s6066_s24 = sld [smem:[#allocation7 + $0x15b]] }
 0x17d   : > { %v1115_v7 = vadd.f32 %v5797_v4, %v1107_v60  ;;  %v1125_v4 = vstv %s5903_s2  ;;  %s6064_s2 = sld [smem:[#allocation7 + $0x15d]] }
 0x17e   : > { %2564 = vrot.lane.b32.xlu0 %v2562_v57, %s7953_s29  ;;  %2524 = vrot.lane.b32.xlu1 %v2522_v6, %s8024_s30  ;;  %v2643_v6 = vstv %s5859_s21  ;;  %s4145_s21 = sld [smem:[#allocation7 + $0xc9]] }
 0x17f   : > { %2585 = vrot.lane.b32.xlu2 %v2583_v26, %s8025_s16  ;;  %v2598_v26 = vstv %s5865_s0  ;;  %v2644_v58 = vmul.f32 %v2643_v6, %v5868_v23  ;;  %v1123_v35 = vadd.f32 %v5757_v18, %v1115_v7  ;;  %v2651_v6 = vstv %s5932_s9  ;;  %s4135_s0 = sld [smem:[#allocation7 + $0xce]] }
 0x180   : > { %v5825_v12 = vpop.permute.xlu1 %1174  ;;  %v5827_v13 = vpop.permute.xlu0 %1194  ;;  %v2599_v59 = vmul.f32 %v2598_v26, %v5813_v45  ;;  %v1312_v26 = vstv %s5920_s27  ;;  %s6083_s27 = sld [smem:[#allocation7 + $0x161]] }
 0x181   : > { %v5832_v55 = vpop.permute.xlu2 %1276  ;;  %v1177_v38 = vadd.f32 %v5825_v12, %v1169_v48  ;;  %v2712_v48 = vstv %s5940_s18  ;;  %s4208_s9 = sld [smem:[#allocation7 + $0x163]] }
 0x182   : > { %v2713_v60 = vmul.f32 %v2712_v48, %v5937_v16  ;;  %v2704_v48 = vstv %s6016_s5  ;;  %s4354_s18 = sld [smem:[#allocation7 + $0xe5]] }
 0x183   : > { %v1185_v12 = vadd.f32 %v5787_v27, %v1177_v38  ;;  %s4223_s5 = sld [smem:[#allocation7 + $0x170]] }
 0x186   : > { %2593 = vrot.lane.b32.xlu0 %v2591_v63, %s8026_s20  ;;  %2548 = vrot.lane.b32.xlu1 %v2546_v1, %s8028_s15  ;;  %v5911_v63 = vld [vmem:[#allocation3 + $0x8] sm:$0xff] }
 0x187   : > { %2609 = vrot.lane.b32.xlu2 %v2607_v47, %s8027_s13  ;;  %v1250_v0 = vmul.f32 %v5911_v63, %v1249_v46 }
 0x188   : > { %v5855_v11 = vpop.permute.xlu1 %1202  ;;  %v5857_v14 = vpop.permute.xlu0 %1222 }
 0x189   : > { %v5861_v15 = vpop.permute.xlu2 %1304 }
 0x18e   : > { %2617 = vrot.lane.b32.xlu0 %v2615_v8, %s7953_s29  ;;  %2577 = vrot.lane.b32.xlu1 %v2575_v44, %s8024_s30  ;;  %v2668_v44 = vmul.f32 %v2667_v30, %v5868_v23 }
 0x18f   : > { %2638 = vrot.lane.b32.xlu2 %v2636_v37, %s8025_s16  ;;  %v5963_v37 = vld [vmem:[#allocation3 + $0x18] sm:$0xff] }
 0x190   : > { %v1237_v52 = vpop.permute.xlu1 %1236  ;;  %v1257_v43 = vpop.permute.xlu0 %1256  ;;  %v1126_v18 = vmul.f32 %v5963_v37, %v1125_v4  ;;  %v1145_v4 = vstv %s5985_s4  ;;  %s4216_s4 = sld [smem:[#allocation7 + $0x169]] }
 0x191   : > { %v1239_v34 = vadd.f32 %v1237_v52, %v1231_v54  ;;  %v5893_v57 = vpop.permute.xlu2 %1338 }
 0x193   : > { %v1247_v20 = vadd.f32 %v5811_v24, %v1239_v34  ;;  %v1187_v24 = vstv %s5884_s17  ;;  %v2696_v34 = vstv %s5925_s12  ;;  %s4197_s17 = sld [smem:[#allocation7 + $0x15a]] }
 0x194   : > { %v1188_v27 = vmul.f32 %v5934_v40, %v1187_v24  ;;  %v2697_v38 = vmul.f32 %v2696_v34, %v5937_v16  ;;  %s4205_s12 = sld [smem:[#allocation7 + $0x160]] }
 0x195   : > { %v1251_v1 = vadd.f32 %v1250_v0, %v1247_v20  ;;  %v2652_v20 = vmul.f32 %v2651_v6, %v5868_v23  ;;  %v1227_v6 = vstv %s6007_s11  ;;  %s6138_s11 = sld [smem:[#allocation7 + $0x16d]] }
 0x196   : > { %2646 = vrot.lane.b32.xlu0 %v2644_v58, %s8026_s20  ;;  %2601 = vrot.lane.b32.xlu1 %v2599_v59, %s8028_s15  ;;  %v1189_v28 = vadd.f32 %v1188_v27, %v1185_v12  ;;  %v4667_v58 = vld [vmem:[#allocation3] sm:$0xff] }
 0x197   : > { %2662 = vrot.lane.b32.xlu2 %v2660_v62, %s8027_s13  ;;  %v1259_v8 = vadd.f32 %v1257_v43, %v1251_v1  ;;  %v1127_v43 = vadd.f32 %v1126_v18, %v1123_v35  ;;  %v1313_v59 = vmul.f32 %v4667_v58, %v1312_v26  ;;  %v1208_v62 = vmul.f32 %v5963_v37, %v1207_v53 }
 0x198   : > { %v1265_v3 = vpop.permute.xlu1 %1264  ;;  %v5923_v47 = vpop.permute.xlu0 %1284  ;;  %v1197_v54 = vadd.f32 %v5827_v13, %v1189_v28  ;;  %v1270_v13 = vmul.f32 %v5934_v40, %v1269_v39  ;;  %v1289_v28 = vstv %s5991_s3  ;;  %v1351_v35 = vstv %s5996_s6  ;;  %s4219_s3 = sld [smem:[#allocation7 + $0x16c]] }
 0x199   : > { %v5928_v10 = vpop.permute.xlu2 %1366  ;;  %v1267_v41 = vadd.f32 %v1265_v3, %v1259_v8  ;;  %v1135_v9 = vadd.f32 %v5799_v29, %v1127_v43  ;;  %v2720_v3 = vstv %s5973_s23  ;;  %v2359_v18 = vstv %s6000_s19  ;;  %s4212_s23 = sld [smem:[#allocation7 + $0x167]] }
 0x19a   : > { %v1205_v22 = vadd.f32 %v5855_v11, %v1197_v54  ;;  %v1331_v11 = vstv %s5959_s25  ;;  %v1290_v39 = vmul.f32 %v5963_v37, %v1289_v28  ;;  %s6104_s25 = sld [smem:[#allocation7 + $0x164]] }
 0x19b   : > { %v1271_v46 = vadd.f32 %v1270_v13, %v1267_v41  ;;  %v1143_v7 = vadd.f32 %v5809_v42, %v1135_v9  ;;  %v1332_v30 = vmul.f32 %v5911_v63, %v1331_v11  ;;  %v2681_v42 = vmul.f32 %v2680_v25, %v5937_v16  ;;  %s4361_s6 = sld [smem:[#allocation7 + $0xec]] }
 0x19c   : > { %v1209_v29 = vadd.f32 %v1208_v62, %v1205_v22  ;;  %s6133_s19 = sld [smem:[#allocation7 + $0x16f]] }
 0x19d   : > { %v1279_v24 = vadd.f32 %v5832_v55, %v1271_v46  ;;  %v2721_v55 = vmul.f32 %v2720_v3, %v5937_v16 }
 0x19e   : > { %2670 = vrot.lane.b32.xlu0 %v2668_v44, %s7953_s29  ;;  %2630 = vrot.lane.b32.xlu1 %v2628_v33, %s8024_s30  ;;  %v1217_v44 = vadd.f32 %v5801_v31, %v1209_v29  ;;  %v1352_v31 = vmul.f32 %v5934_v40, %v1351_v35  ;;  %v1718_v35 = vstv %s4197_s17  ;;  %s4150_s17 = sld [smem:[#allocation7 + $0x133]] }
 0x19f   : > { %2691 = vrot.lane.b32.xlu2 %v2689_v36, %s8025_s16  ;;  %v1287_v33 = vadd.f32 %v5923_v47, %v1279_v24  ;;  %v1146_v36 = vadd.f32 %v1145_v4, %v1143_v7  ;;  %v2411_v7 = vstv %s4340_s1  ;;  %s4368_s1 = sld [smem:[#allocation7 + $0xf3]] }
 0x1a0   : > { %v5971_v32 = vpop.permute.xlu1 %1296  ;;  %v1319_v52 = vpop.permute.xlu0 %1318  ;;  %v1225_v47 = vadd.f32 %v5857_v14, %v1217_v44  ;;  %v2705_v14 = vmul.f32 %v2704_v48, %v5937_v16 }
 0x1a1   : > { %v5977_v50 = vpop.permute.xlu2 %2426  ;;  %v1321_v0 = vadd.f32 %v1319_v52, %v1313_v59  ;;  %v1291_v41 = vadd.f32 %v1290_v39, %v1287_v33 }
 0x1a2   : > { %v1228_v46 = vadd.f32 %v1227_v6, %v1225_v47 }
 0x1a3   : > { %v1299_v40 = vadd.f32 %v5971_v32, %v1291_v41  ;;  %v1309_v32 = vstv %s4135_s0  ;;  %s4227_s0 = sld [smem:[#allocation7 + $0x172]] }
 0x1a5   : > { %v1307_v58 = vadd.f32 %v5861_v15, %v1299_v40 }
 0x1a6   : > { %2699 = vrot.lane.b32.xlu0 %v2697_v38, %s8026_s20  ;;  %2654 = vrot.lane.b32.xlu1 %v2652_v20, %s8028_s15  ;;  %v1371_v38 = vstv %s4145_s21  ;;  %s6152_s21 = sld [smem:[#allocation7 + $0x173]] }
 0x1a7   : > { %2715 = vrot.lane.b32.xlu2 %v2713_v60, %s8027_s13  ;;  %v1310_v29 = vadd.f32 %v1309_v32, %v1307_v58 }
 0x1a8   : > { %v1327_v12 = vpop.permute.xlu1 %1326  ;;  %v1347_v1 = vpop.permute.xlu0 %1346 }
 0x1a9   : > { %v1329_v17 = vadd.f32 %v1327_v12, %v1321_v0  ;;  %v6013_v27 = vpop.permute.xlu2 %2450 }
 0x1ab   : > { %v1333_v8 = vadd.f32 %v1332_v30, %v1329_v17 }
 0x1ad   : > { %v1341_v63 = vadd.f32 %v5893_v57, %v1333_v8  ;;  %v4668_v57 = vld [vmem:[#allocation5] sm:$0xff] }
 0x1ae   : > { %2723 = vrot.lane.b32.xlu0 %v2721_v55, %s7953_s29  ;;  %2683 = vrot.lane.b32.xlu1 %v2681_v42, %s8024_s30  ;;  %v2360_v34 = vmul.f32 %v4668_v57, %v2359_v18 }
 0x1af   : > { %v1349_v54 = vadd.f32 %v1347_v1, %v1341_v63  ;;  %1394 = vrot.lane.b32.xlu2 %v1146_v36, %s8029_s28  ;;  %v1705_v36 = vstv %s4195_s10  ;;  %v1697_v63 = vstv %s4194_s22  ;;  %s4153_s10 = sld [smem:[#allocation7 + $0x136]] }
 0x1b0   : > { %v1359_v52 = vpop.permute.xlu1 %1358  ;;  %v1379_v43 = vpop.permute.xlu0 %1378  ;;  %v2368_v53 = vadd.f32 %v5755_v49, %v2360_v34  ;;  %v1372_v49 = vmul.f32 %v5963_v37, %v1371_v38  ;;  %s4154_s22 = sld [smem:[#allocation7 + $0x137]] }
 0x1b1   : > { %v1353_v13 = vadd.f32 %v1352_v31, %v1349_v54  ;;  %v807_v26 = vpop.permute.xlu2 %806 }
 0x1b2   : > { %810 = vst.msk [vmem:[#allocation4 + $0x51] sm:$0xff] %vm803_vm5, %v807_v26  ;;  %v2376_v20 = vadd.f32 %v5641_v19, %v2368_v53  ;;  %v1739_v26 = vstv %s6064_s2  ;;  %v1726_v53 = vstv %s6066_s24  ;;  %s4161_s2 = sld [smem:[#allocation7 + $0x13c]] }
 0x1b3   : > { %v1361_v22 = vadd.f32 %v1359_v52, %v1353_v13  ;;  %v1747_v13 = vstv %s6062_s8  ;;  %s4375_s8 = sld [smem:[#allocation7 + $0xfa]] }
 0x1b4   : > { %v2384_v11 = vadd.f32 %v5753_v51, %v2376_v20  ;;  %v2412_v51 = vmul.f32 %v2411_v7, %v5643_v21  ;;  %s4164_s24 = sld [smem:[#allocation7 + $0x13f]] }
 0x1b5   : > { %v1369_v9 = vadd.f32 %v5928_v10, %v1361_v22  ;;  %v1391_v10 = vstv %s4148_s26  ;;  %s4230_s26 = sld [smem:[#allocation7 + $0x175]] }
 0x1b6   : > { %1399 = vrot.lane.b32.xlu0 %v1228_v46, %s8029_s28  ;;  %2707 = vrot.lane.b32.xlu1 %v2705_v14, %s8028_s15  ;;  %v2392_v24 = vadd.f32 %v5772_v5, %v2384_v11  ;;  %v1787_v11 = vstv %s4208_s9  ;;  %s4168_s9 = sld [smem:[#allocation7 + $0x143]] }
 0x1b7   : > { %v1373_v0 = vadd.f32 %v1372_v49, %v1369_v9 }
 0x1b8   : > { %v2419_v59 = vpop.permute.xlu1 %2418  ;;  %v2406_v60 = vpop.permute.xlu0 %2405  ;;  %v2400_v1 = vadd.f32 %v5693_v61, %v2392_v24 }
 0x1b9   : > { %v6045_v62 = vpop.permute.xlu2 %2479  ;;  %v1381_v19 = vadd.f32 %v1379_v43, %v1373_v0  ;;  %v6101_v58 = vld [vmem:[#allocation4 + $0x50] sm:$0xff] }
 0x1ba   : > { %v2408_v30 = vadd.f32 %v2406_v60, %v2400_v1  ;;  %v1766_v60 = vstv %s4205_s12  ;;  %v6106_v32 = vld [vmem:[#allocation4 + $0x51] sm:$0xff]  ;;  %s4165_s12 = sld [smem:[#allocation7 + $0x140]] }
 0x1bc   : > { %v2413_v25 = vadd.f32 %v2412_v51, %v2408_v30  ;;  %v6120_v30 = vld [vmem:[#allocation4 + $0x52] sm:$0xff]  ;;  %v1795_v51 = vstv %s6104_s25  ;;  %s4175_s25 = sld [smem:[#allocation7 + $0x148]] }
 0x1be   : > { %1405 = vrot.lane.b32.xlu1 %v1310_v29, %s8029_s28  ;;  %v2421_v8 = vadd.f32 %v2419_v59, %v2413_v25  ;;  %v1774_v59 = vstv %s6083_s27  ;;  %s4151_s27 = sld [smem:[#allocation7 + $0x134]] }
 0x1c0   : > { %v1387_v15 = vpop.permute.xlu1 %1386  ;;  %v2435_v12 = vpop.permute.xlu0 %2434  ;;  %v2429_v61 = vadd.f32 %v5977_v50, %v2421_v8 }
 0x1c1   : > { %v1389_v3 = vadd.f32 %v1387_v15, %v1381_v19  ;;  %v6051_v37 = vpop.permute.xlu2 %2503  ;;  %v1775_v19 = vmul.f32 %v1774_v59, %v6101_v58  ;;  %v1788_v15 = vmul.f32 %v1787_v11, %v6106_v32 }
 0x1c2   : > { %v2437_v21 = vadd.f32 %v2435_v12, %v2429_v61  ;;  %v2517_v12 = vstv %s4354_s18  ;;  %s8030_s18 = smov 3  }
 0x1c3   : > { %v1392_v17 = vadd.f32 %v1391_v10, %v1389_v3  ;;  %v1767_v10 = vmul.f32 %v1766_v60, %v6101_v58  ;;  %v2518_v7 = vmul.f32 %v2517_v12, %v5789_v2  ;;  %v1796_v2 = vmul.f32 %v1795_v51, %v6106_v32 }
 0x1c4   : > { %v2623_v51 = vstv %s4368_s1  ;;  %s6249_s1 = sld [smem:[#allocation7 + $0x145]] }
 0x1c5   : > { %1411 = vrot.lane.b32.xlu2 %v1392_v17, %s8029_s28  ;;  %s4347_s28 = sld [smem:[#allocation7 + $0xde]]  ;;  %v1808_v17 = vstv %s6099_s7 }
 0x1c6   : > { %s4156_s7 = sld [smem:[#allocation7 + $0x139]] }
 0x1c8   : > { %v2443_v5 = vpop.permute.xlu1 %2442  ;;  %v813_v4 = vpop.permute.xlu0 %812 }
 0x1c9   : > { %816 = vst.msk [vmem:[#allocation4 + $0x61] sm:$0xff] %vm803_vm5, %v813_v4  ;;  %v6056_v28 = vpop.permute.xlu2 %2532  ;;  %v2445_v42 = vadd.f32 %v2443_v5, %v2437_v21  ;;  %v1816_v5 = vstv %s4212_s23  ;;  %s4173_s23 = sld [smem:[#allocation7 + $0x146]] }
 0x1cb   : > { %v2453_v31 = vadd.f32 %v6013_v27, %v2445_v42  ;;  %v2464_v57 = vstv %s4347_s28  ;;  %s4157_s28 = sld [smem:[#allocation7 + $0x13a]] }
 0x1cc   : > { %v2465_v27 = vmul.f32 %v2464_v57, %v5761_v56 }
 0x1d0   : > { %v2459_v55 = vpop.permute.xlu0 %2458  ;;  %v800_v44 = vpop.permute.xlu1 %799  ;;  %v6135_v42 = vld [vmem:[#allocation4 + $0x60] sm:$0xff] }
 0x1d1   : > { %v6059_v33 = vpop.permute.xlu2 %2556  ;;  %804 = vst.msk [vmem:[#allocation4 + $0x41] sm:$0xff] %vm803_vm5, %v800_v44  ;;  %v2461_v34 = vadd.f32 %v2459_v55, %v2453_v31  ;;  %v1809_v55 = vmul.f32 %v1808_v17, %v6120_v30  ;;  %v1817_v44 = vmul.f32 %v1816_v5, %v6120_v30 }
 0x1d3   : > { %v2466_v48 = vadd.f32 %v2465_v27, %v2461_v34  ;;  %v2570_v27 = vstv %s4361_s6  ;;  %s4178_s6 = sld [smem:[#allocation7 + $0x14b]] }
 0x1d8   : > { %v2488_v18 = vpop.permute.xlu0 %2487  ;;  %v819_v50 = vpop.permute.xlu1 %818  ;;  %v6068_v39 = vld [vmem:[#allocation4 + $0x41] sm:$0xff] }
 0x1d9   : > { %v6070_v54 = vld [vmem:[#allocation4 + $0x40] sm:$0xff]  ;;  %v6073_v47 = vpop.permute.xlu2 %2585  ;;  %822 = vst.msk [vmem:[#allocation4 + $0x71] sm:$0xff] %vm803_vm5, %v819_v50  ;;  %v1719_v41 = vmul.f32 %v1718_v35, %v6068_v39  ;;  %v1727_v20 = vmul.f32 %v1726_v53, %v6068_v39  ;;  %v1843_v35 = vstv %s6118_s14  ;;  %v1856_v50 = vstv %s4219_s3  ;;  %s4204_s14 = sld [smem:[#allocation7 + $0x15f]] }
 0x1da   : > { %v1706_v52 = vmul.f32 %v1705_v36, %v6070_v54  ;;  %v1698_v43 = vmul.f32 %v1697_v63, %v6070_v54  ;;  %v6085_v6 = vld [vmem:[#allocation4 + $0x42] sm:$0xff]  ;;  %v1835_v36 = vstv %s4216_s4  ;;  %s4162_s4 = sld [smem:[#allocation7 + $0x13d]] }
 0x1db   : > { %1721 = vrot.lane.b32.xlu0 %v1719_v41, %s8024_s30  ;;  %v1748_v38 = vmul.f32 %v1747_v13, %v6085_v6  ;;  %v1740_v56 = vmul.f32 %v1739_v26, %v6085_v6  ;;  %v1836_v57 = vmul.f32 %v1835_v36, %v6135_v42  ;;  %v6154_v53 = vld [vmem:[#allocation4 + $0x62] sm:$0xff]  ;;  %s4179_s3 = sld [smem:[#allocation7 + $0x14c]] }
 0x1dc   : > { %1708 = vrot.lane.b32.xlu2 %v1706_v52, %s8025_s16  ;;  %1700 = vrot.lane.b32.xlu1 %v1698_v43, %s8024_s30  ;;  %v1844_v43 = vmul.f32 %v1843_v35, %v6135_v42 }
 0x1e0   : > { %v2512_v22 = vpop.permute.xlu0 %2511  ;;  %v2472_v46 = vpop.permute.xlu1 %2471  ;;  %v6167_v11 = vld [vmem:[#allocation4 + $0x70] sm:$0xff] }
 0x1e1   : > { %v6090_v40 = vpop.permute.xlu2 %2609  ;;  %v2474_v14 = vadd.f32 %v2472_v46, %v2466_v48  ;;  %v2571_v48 = vmul.f32 %v2570_v27, %v5813_v45  ;;  %v1864_v46 = vstv %s6138_s11  ;;  %s4167_s11 = sld [smem:[#allocation7 + $0x142]] }
 0x1e3   : > { %v2482_v9 = vadd.f32 %v6045_v62, %v2474_v14  ;;  %1750 = vrot.lane.b32.xlu0 %v1748_v38, %s8025_s16  ;;  %v1885_v38 = vstv %s4223_s5  ;;  %s6235_s5 = sld [smem:[#allocation7 + $0x159]] }
 0x1e4   : > { %1742 = vrot.lane.b32.xlu2 %v1740_v56, %s8024_s30  ;;  %1729 = vrot.lane.b32.xlu1 %v1727_v20, %s8025_s16  ;;  %v1886_v60 = vmul.f32 %v1885_v38, %v6154_v53 }
 0x1e5   : > { %v2490_v49 = vadd.f32 %v2488_v18, %v2482_v9  ;;  %v6140_v18 = vld [vmem:[#allocation4 + $0x61] sm:$0xff] }
 0x1e6   : > { %v1857_v34 = vmul.f32 %v1856_v50, %v6140_v18  ;;  %v1865_v45 = vmul.f32 %v1864_v46, %v6140_v18 }
 0x1e8   : > { %v2541_v62 = vpop.permute.xlu0 %2540  ;;  %v2496_v0 = vpop.permute.xlu1 %2495 }
 0x1e9   : > { %v6108_v29 = vpop.permute.xlu2 %2638  ;;  %v2498_v24 = vadd.f32 %v2496_v0, %v2490_v49  ;;  %v1904_v0 = vstv %s4227_s0  ;;  %s4184_s0 = sld [smem:[#allocation7 + $0x14f]] }
 0x1eb   : > { %v2506_v1 = vadd.f32 %v6051_v37, %v2498_v24  ;;  %1777 = vrot.lane.b32.xlu0 %v1775_v19, %s8025_s16  ;;  %v6170_v19 = vld [vmem:[#allocation4 + $0x71] sm:$0xff] }
 0x1ec   : > { %1769 = vrot.lane.b32.xlu2 %v1767_v10, %s8024_s30  ;;  %1790 = vrot.lane.b32.xlu1 %v1788_v15, %s8024_s30  ;;  %v1925_v10 = vstv %s4230_s26  ;;  %s6245_s26 = sld [smem:[#allocation7 + $0x168]] }
 0x1ed   : > { %v2514_v3 = vadd.f32 %v2512_v22, %v2506_v1  ;;  %v1877_v22 = vstv %s6133_s19  ;;  %v1926_v17 = vmul.f32 %v1925_v10, %v6170_v19  ;;  %s4193_s19 = sld [smem:[#allocation7 + $0x156]] }
 0x1ee   : > { %v1878_v59 = vmul.f32 %v1877_v22, %v6154_v53 }
 0x1ef   : > { %v2519_v25 = vadd.f32 %v2518_v7, %v2514_v3  ;;  %v1905_v7 = vmul.f32 %v1904_v0, %v6167_v11  ;;  %v1511_v0 = vstv %s4164_s24  ;;  %s4226_s24 = sld [smem:[#allocation7 + $0x171]] }
 0x1f0   : > { %v2565_v37 = vpop.permute.xlu0 %2564  ;;  %v2525_v4 = vpop.permute.xlu1 %2524 }
 0x1f1   : > { %v6124_v8 = vpop.permute.xlu2 %2662  ;;  %v2527_v61 = vadd.f32 %v2525_v4, %v2519_v25 }
 0x1f3   : > { %v2535_v21 = vadd.f32 %v6056_v28, %v2527_v61  ;;  %1811 = vrot.lane.b32.xlu0 %v1809_v55, %s8024_s30  ;;  %v1421_v61 = vstv %s4150_s17  ;;  %v1442_v55 = vstv %s4153_s10  ;;  %s6253_s17 = sld [smem:[#allocation7 + $0x15c]] }
 0x1f4   : > { %1798 = vrot.lane.b32.xlu2 %v1796_v2, %s8025_s16  ;;  %1819 = vrot.lane.b32.xlu1 %v1817_v44, %s8025_s16  ;;  %s6259_s10 = sld [smem:[#allocation7 + $0x155]] }
 0x1f5   : > { %v2543_v63 = vadd.f32 %v2541_v62, %v2535_v21  ;;  %v1912_v62 = vstv %s6152_s21  ;;  %s6238_s21 = sld [smem:[#allocation7 + $0x151]] }
 0x1f6   : > { %v1913_v3 = vmul.f32 %v1912_v62, %v6167_v11  ;;  %v1490_v62 = vstv %s4161_s2  ;;  %s4210_s2 = sld [smem:[#allocation7 + $0x165]] }
 0x1f8   : > { %v2594_v28 = vpop.permute.xlu0 %2593  ;;  %v2549_v31 = vpop.permute.xlu1 %2548 }
 0x1f9   : > { %v6142_v41 = vpop.permute.xlu2 %2691  ;;  %v2551_v52 = vadd.f32 %v2549_v31, %v2543_v63 }
 0x1fb   : > { %v2559_v13 = vadd.f32 %v6059_v33, %v2551_v52  ;;  %1846 = vrot.lane.b32.xlu0 %v1844_v43, %s8025_s16  ;;  %v1471_v52 = vstv %s4157_s28  ;;  %s6276_s28 = sld [smem:[#allocation7 + $0x149]] }
 0x1fc   : > { %1838 = vrot.lane.b32.xlu2 %v1836_v57, %s8024_s30  ;;  %1859 = vrot.lane.b32.xlu1 %v1857_v34, %s8024_s30 }
 0x1fd   : > { %v2567_v26 = vadd.f32 %v2565_v37, %v2559_v13  ;;  %v2624_v37 = vmul.f32 %v2623_v51, %v5868_v23 }
 0x1ff   : > { %v2572_v14 = vadd.f32 %v2571_v48, %v2567_v26  ;;  %v2676_v26 = vstv %s4375_s8  ;;  %s6280_s8 = sld [smem:[#allocation7 + $0x162]] }
 0x200   : > { %v2618_v33 = vpop.permute.xlu0 %2617  ;;  %v2578_v56 = vpop.permute.xlu1 %2577  ;;  %v2677_v22 = vmul.f32 %v2676_v26, %v5937_v16  ;;  %v1694_v26 = vstv %s4193_s19  ;;  %s4155_s19 = sld [smem:[#allocation7 + $0x138]] }
 0x201   : > { %v6158_v20 = vpop.permute.xlu2 %2715  ;;  %v2580_v9 = vadd.f32 %v2578_v56, %v2572_v14 }
 0x203   : > { %v2588_v49 = vadd.f32 %v6073_v47, %v2580_v9  ;;  %1880 = vrot.lane.b32.xlu0 %v1878_v59, %s8024_s30 }
 0x204   : > { %1867 = vrot.lane.b32.xlu2 %v1865_v45, %s8025_s16  ;;  %1888 = vrot.lane.b32.xlu1 %v1886_v60, %s8025_s16 }
 0x205   : > { %v2596_v24 = vadd.f32 %v2594_v28, %v2588_v49  ;;  %v1450_v28 = vstv %s4154_s22  ;;  %s6267_s22 = sld [smem:[#allocation7 + $0x154]] }
 0x208   : > { %v2647_v15 = vpop.permute.xlu0 %2646  ;;  %v2602_v12 = vpop.permute.xlu1 %2601 }
 0x209   : > { %v1395_v1 = vpop.permute.xlu2 %1394  ;;  %v2604_v47 = vadd.f32 %v2602_v12, %v2596_v24 }
 0x20a   : > { %1397 = vst.msk [vmem:[#allocation4 + $0x1] sm:$0xff] %vm803_vm5, %v1395_v1  ;;  %v1429_v1 = vstv %s4151_s27  ;;  %s4183_s27 = sld [smem:[#allocation7 + $0x14e]] }
 0x20b   : > { %v2612_v25 = vadd.f32 %v6090_v40, %v2604_v47  ;;  %1915 = vrot.lane.b32.xlu0 %v1913_v3, %s8025_s16  ;;  %v1519_v3 = vstv %s4165_s12  ;;  %s4187_s12 = sld [smem:[#allocation7 + $0x152]] }
 0x20c   : > { %1907 = vrot.lane.b32.xlu2 %v1905_v7, %s8024_s30  ;;  %1928 = vrot.lane.b32.xlu1 %v1926_v17, %s8024_s30  ;;  %v1540_v17 = vstv %s4168_s9  ;;  %s4218_s9 = sld [smem:[#allocation7 + $0x16b]] }
 0x20d   : > { %v2620_v5 = vadd.f32 %v2618_v33, %v2612_v25 }
 0x20f   : > { %v2625_v4 = vadd.f32 %v2624_v37, %v2620_v5  ;;  %v1463_v5 = vstv %s4156_s7  ;;  %s8031_s7 = sld [smem:[#allocation21_spill]] }
 0x210   : > { %v2671_v2 = vpop.permute.xlu0 %2670  ;;  %v2631_v44 = vpop.permute.xlu1 %2630 }
 0x211   : > { %v2633_v21 = vadd.f32 %v2631_v44, %v2625_v4  ;;  %v6181_v35 = vld [vmem:[#allocation4] sm:$0xff]  ;;  %v1567_v44 = vstv %s4173_s23  ;;  %s4149_s23 = sld [smem:[#allocation7 + $0x132]] }
 0x212   : > { %v6183_v40 = vld [vmem:[#allocation4 + $0x1] sm:$0xff]  ;;  %v1422_v36 = vmul.f32 %v1421_v61, %v6181_v35  ;;  %v1430_v47 = vmul.f32 %v1429_v1, %v6181_v35 }
 0x213   : > { %v1443_v63 = vmul.f32 %v1442_v55, %v6183_v40  ;;  %v2641_v50 = vadd.f32 %v6108_v29, %v2633_v21  ;;  %v6190_v31 = vld [vmem:[#allocation4 + $0x2] sm:$0xff]  ;;  %v1451_v27 = vmul.f32 %v1450_v28, %v6183_v40  ;;  %v1580_v55 = vstv %s4175_s25  ;;  %s4229_s25 = sld [smem:[#allocation7 + $0x174]] }
 0x214   : > { %1424 = vrot.lane.b32.xlu0 %v1422_v36, %s8024_s30  ;;  %v1472_v13 = vmul.f32 %v1471_v52, %v6190_v31  ;;  %v1464_v4 = vmul.f32 %v1463_v5, %v6190_v31  ;;  %v1670_v5 = vstv %s6267_s22  ;;  %s6353_s22 = sld [smem:[#allocation7 + $0x182]] }
 0x215   : > { %1445 = vrot.lane.b32.xlu2 %v1443_v63, %s8024_s30  ;;  %v2649_v23 = vadd.f32 %v2647_v15, %v2641_v50  ;;  %v1763_v63 = vstv %s4204_s14  ;;  %v1498_v50 = vstv %s4162_s4  ;;  %s4160_s14 = sld [smem:[#allocation7 + $0x13b]] }
 0x216   : > { %s4152_s4 = sld [smem:[#allocation7 + $0x135]] }
 0x218   : > { %v2700_v43 = vpop.permute.xlu0 %2699  ;;  %v2655_v57 = vpop.permute.xlu1 %2654 }
 0x219   : > { %v2657_v34 = vadd.f32 %v2655_v57, %v2649_v23  ;;  %v1764_v23 = vmul.f32 %v1763_v63, %v6101_v58 }
 0x21b   : > { %v2665_v48 = vadd.f32 %v6124_v8, %v2657_v34  ;;  %v1609_v34 = vstv %s4179_s3  ;;  %s4385_s3 = sld [smem:[#allocation7 + $0x104]] }
 0x21c   : > { %1453 = vrot.lane.b32.xlu0 %v1451_v27, %s8025_s16  ;;  %v1601_v27 = vstv %s4178_s6  ;;  %s4383_s6 = sld [smem:[#allocation7 + $0x102]] }
 0x21d   : > { %1474 = vrot.lane.b32.xlu2 %v1472_v13, %s8025_s16  ;;  %v2673_v29 = vadd.f32 %v2671_v2, %v2665_v48  ;;  %v1532_v48 = vstv %s4167_s11  ;;  %s4384_s11 = sld [smem:[#allocation7 + $0x103]] }
 0x21f   : > { %v1412_v46 = vpop.permute.xlu2 %1411  ;;  %v2678_v14 = vadd.f32 %v2677_v22, %v2673_v29 }
 0x220   : > { %1415 = vst.msk [vmem:[#allocation4 + $0x31] sm:$0xff] %vm803_vm5, %v1412_v46  ;;  %v2724_v38 = vpop.permute.xlu0 %2723  ;;  %v2684_v33 = vpop.permute.xlu1 %2683  ;;  %v1695_v46 = vmul.f32 %v1694_v26, %v6070_v54  ;;  %v1832_v54 = vstv %s6245_s26  ;;  %v1804_v26 = vstv %s4210_s2  ;;  %s6346_s26 = sld [smem:[#allocation7 + $0x147]] }
 0x221   : > { %v2686_v56 = vadd.f32 %v2684_v33, %v2678_v14  ;;  %s6360_s2 = sld [smem:[#allocation7 + $0x19a]] }
 0x223   : > { %v2694_v9 = vadd.f32 %v6142_v41, %v2686_v56  ;;  %v1649_v56 = vstv %s6238_s21  ;;  %s6340_s21 = sld [smem:[#allocation7 + $0x141]] }
 0x225   : > { %v2702_v59 = vadd.f32 %v2700_v43, %v2694_v9 }
 0x227   : > { %v6261_v33 = vld [vmem:[#allocation4 + $0x31] sm:$0xff] }
 0x228   : > { %v1400_v8 = vpop.permute.xlu0 %1399  ;;  %v2708_v45 = vpop.permute.xlu1 %2707  ;;  %v6264_v9 = vld [vmem:[#allocation4 + $0x30] sm:$0xff] }
 0x229   : > { %1403 = vst.msk [vmem:[#allocation4 + $0x11] sm:$0xff] %vm803_vm5, %v1400_v8  ;;  %v2710_v60 = vadd.f32 %v2708_v45, %v2702_v59  ;;  %v1636_v59 = vstv %s4184_s0  ;;  %v1714_v8 = vstv %s6235_s5  ;;  %s6338_s5 = sld [smem:[#allocation7 + $0x13e]] }
 0x22a   : > { %s6344_s0 = sld [smem:[#allocation7 + $0x144]] }
 0x22b   : > { %v2718_v16 = vadd.f32 %v6158_v20, %v2710_v60 }
 0x22d   : > { %v2726_v49 = vadd.f32 %v2724_v38, %v2718_v16  ;;  %v1650_v16 = vmul.f32 %v1649_v56, %v6261_v33 }
 0x22f   : > { %2728 = vrot.lane.b32.xlu1 %v2726_v49, %s8030_s18  ;;  %v1637_v49 = vmul.f32 %v1636_v59, %v6264_v9  ;;  %s4221_s18 = sld [smem:[#allocation7 + $0x16e]] }
 0x230   : > { %v1406_v24 = vpop.permute.xlu1 %1405  ;;  %v6203_v41 = vld [vmem:[#allocation4 + $0x10] sm:$0xff] }
 0x231   : > { %v6205_v10 = vld [vmem:[#allocation4 + $0x11] sm:$0xff]  ;;  %1409 = vst.msk [vmem:[#allocation4 + $0x21] sm:$0xff] %vm803_vm5, %v1406_v24  ;;  %v1491_v15 = vmul.f32 %v1490_v62, %v6203_v41  ;;  %v1499_v52 = vmul.f32 %v1498_v50, %v6203_v41  ;;  %v1715_v62 = vmul.f32 %v1714_v8, %v6068_v39  ;;  %v1783_v50 = vstv %s6280_s8  ;;  %s6358_s8 = sld [smem:[#allocation7 + $0x192]] }
 0x232   : > { %v1512_v12 = vmul.f32 %v1511_v0, %v6205_v10  ;;  %v6215_v7 = vld [vmem:[#allocation4 + $0x12] sm:$0xff]  ;;  %v1520_v51 = vmul.f32 %v1519_v3, %v6205_v10  ;;  %v1559_v0 = vstv %s6249_s1  ;;  %s6348_s1 = sld [smem:[#allocation7 + $0x14a]] }
 0x233   : > { %1493 = vrot.lane.b32.xlu0 %v1491_v15, %s8024_s30  ;;  %v1541_v25 = vmul.f32 %v1540_v17, %v6215_v7  ;;  %v1533_v14 = vmul.f32 %v1532_v48, %v6215_v7  ;;  %v1833_v15 = vmul.f32 %v1832_v54, %v6135_v42  ;;  %v1901_v48 = vstv %s4226_s24  ;;  %s4387_s24 = sld [smem:[#allocation7 + $0x106]] }
 0x234   : > { %1514 = vrot.lane.b32.xlu2 %v1512_v12, %s8024_s30  ;;  %v1735_v12 = vstv %s6253_s17  ;;  %s4386_s17 = sld [smem:[#allocation7 + $0x105]] }
 0x236   : > { %v6212_v20 = vpop.permute.xlu2 %1708 }
 0x237   : > { %1432 = vrot.lane.b32.xlu1 %v1430_v47, %s8025_s16 }
 0x238   : > { %v6225_v61 = vld [vmem:[#allocation4 + $0x21] sm:$0xff] }
 0x239   : > { %v6227_v2 = vld [vmem:[#allocation4 + $0x20] sm:$0xff]  ;;  %v1581_v21 = vmul.f32 %v1580_v55, %v6225_v61 }
 0x23a   : > { %v1568_v36 = vmul.f32 %v1567_v44, %v6227_v2  ;;  %v6242_v57 = vld [vmem:[#allocation4 + $0x22] sm:$0xff]  ;;  %v1560_v39 = vmul.f32 %v1559_v0, %v6227_v2 }
 0x23b   : > { %1522 = vrot.lane.b32.xlu0 %v1520_v51, %s8025_s16  ;;  %v1610_v58 = vmul.f32 %v1609_v34, %v6242_v57  ;;  %v1602_v13 = vmul.f32 %v1601_v27, %v6242_v57  ;;  %v6285_v51 = vld [vmem:[#allocation4 + $0x32] sm:$0xff]  ;;  %v1784_v27 = vmul.f32 %v1783_v50, %v6106_v32  ;;  %v4670_v50 = vld [vmem:[%s8031_s7] sm:$0xff] }
 0x23c   : > { %1543 = vrot.lane.b32.xlu2 %v1541_v25, %s8025_s16  ;;  %v1678_v25 = vstv %s6259_s10  ;;  %s6351_s10 = sld [smem:[#allocation7 + $0x17a]] }
 0x23d   : > { %v1679_v44 = vmul.f32 %v1678_v25, %v6285_v51 }
 0x23e   : > { %v6222_v37 = vpop.permute.xlu2 %1742 }
 0x23f   : > { %1466 = vrot.lane.b32.xlu1 %v1464_v4, %s8024_s30  ;;  %v1736_v4 = vmul.f32 %v1735_v12, %v6085_v6  ;;  %v1873_v12 = vstv %s4221_s18  ;;  %s6370_s18 = sld [smem:[#allocation7 + $0x1b2]] }
 0x243   : > { %1583 = vrot.lane.b32.xlu0 %v1581_v21, %s8024_s30  ;;  %v1671_v21 = vmul.f32 %v1670_v5, %v6285_v51 }
 0x244   : > { %1570 = vrot.lane.b32.xlu2 %v1568_v36, %s8025_s16  ;;  %v1588_v36 = vstv %s6276_s28  ;;  %s6355_s28 = sld [smem:[#allocation7 + $0x18a]] }
 0x246   : > { %v1770_v28 = vpop.permute.xlu2 %1769 }
 0x247   : > { %v6240_v43 = vadd.f32 %v1770_v28, %v1764_v23  ;;  %1501 = vrot.lane.b32.xlu1 %v1499_v52, %s8025_s16  ;;  %v1589_v52 = vmul.f32 %v1588_v36, %v6225_v61 }
 0x24b   : > { %1612 = vrot.lane.b32.xlu0 %v1610_v58, %s8025_s16 }
 0x24c   : > { %1604 = vrot.lane.b32.xlu2 %v1602_v13, %s8024_s30 }
 0x24d   : > { %v1722_v29 = vpop.permute.xlu0 %1721 }
 0x24e   : > { %v6255_v22 = vpop.permute.xlu2 %1798  ;;  %v1701_v38 = vpop.permute.xlu1 %1700 }
 0x24f   : > { %v1703_v45 = vadd.f32 %v1701_v38, %v1695_v46  ;;  %1535 = vrot.lane.b32.xlu1 %v1533_v14, %s8024_s30  ;;  %v1805_v14 = vmul.f32 %v1804_v26, %v6120_v30 }
 0x251   : > { %v1711_v60 = vadd.f32 %v6212_v20, %v1703_v45 }
 0x253   : > { %1652 = vrot.lane.b32.xlu0 %v1650_v16, %s8024_s30  ;;  %v1716_v24 = vadd.f32 %v1715_v62, %v1711_v60  ;;  %v1657_v60 = vstv %s4187_s12  ;;  %s6366_s12 = sld [smem:[#allocation7 + $0x107]] }
 0x254   : > { %1639 = vrot.lane.b32.xlu2 %v1637_v49, %s8025_s16  ;;  %v1852_v49 = vstv %s4218_s9  ;;  %v1658_v30 = vmul.f32 %v1657_v60, %v6261_v33  ;;  %s6368_s9 = sld [smem:[#allocation7 + $0x1aa]] }
 0x255   : > { %v1751_v1 = vpop.permute.xlu0 %1750  ;;  %v1724_v47 = vadd.f32 %v1722_v29, %v1716_v24  ;;  %v1628_v29 = vstv %s4183_s27  ;;  %v1853_v0 = vmul.f32 %v1852_v49, %v6140_v18  ;;  %v1921_v18 = vstv %s4229_s25  ;;  %s6363_s27 = sld [smem:[#allocation7 + $0x1a2]] }
 0x256   : > { %v1839_v20 = vpop.permute.xlu2 %1838  ;;  %v1730_v17 = vpop.permute.xlu1 %1729  ;;  %v1629_v32 = vmul.f32 %v1628_v29, %v6264_v9  ;;  %s6372_s25 = sld [smem:[#allocation7 + $0x1ba]] }
 0x257   : > { %v1841_v3 = vadd.f32 %v1839_v20, %v1833_v15  ;;  %v1732_v55 = vadd.f32 %v1730_v17, %v1724_v47  ;;  %1562 = vrot.lane.b32.xlu1 %v1560_v39, %s8024_s30  ;;  %v1874_v20 = vmul.f32 %v1873_v12, %v6154_v53 }
 0x259   : > { %v1737_v42 = vadd.f32 %v1736_v4, %v1732_v55  ;;  %v1922_v55 = vmul.f32 %v1921_v18, %v6170_v19 }
 0x25b   : > { %v1745_v63 = vadd.f32 %v6222_v37, %v1737_v42  ;;  %1681 = vrot.lane.b32.xlu0 %v1679_v44, %s8025_s16 }
 0x25c   : > { %1673 = vrot.lane.b32.xlu2 %v1671_v21, %s8024_s30  ;;  %v4669_v21 = vld [vmem:[%s8031_s7 + $0x10] sm:$0xff] }
 0x25d   : > { %v6298_v6 = vadd.f32 %v1751_v1, %v1745_v63  ;;  %v1778_v23 = vpop.permute.xlu0 %1777  ;;  %v3165_v36 = vsel %vm265_vm0, %v4669_v21, 0.0  ;;  %v1418_v63 = vstv %s4149_s23  ;;  %s6376_s23 = sld [smem:[#allocation7 + $0x1c2]]  ;;  %v1479_v21 = vstv %s6351_s10 }
 0x25e   : > { %v1868_v28 = vpop.permute.xlu2 %1867  ;;  %v1780_v34 = vadd.f32 %v1778_v23, %v6240_v43  ;;  %v1791_v58 = vpop.permute.xlu1 %1790  ;;  %v1902_v43 = vmul.f32 %v1901_v48, %v6167_v11  ;;  %v3121_v23 = vsel %vm265_vm0, %v4670_v50, 0.0  ;;  %s6408_s10 = sld [smem:[#allocation7 + $0x1c3]] }
 0x25f   : > { %1591 = vrot.lane.b32.xlu1 %v1589_v52, %s8025_s16 }
 0x260   : > { %v1785_v13 = vadd.f32 %v1784_v27, %v1780_v34  ;;  %v4671_v27 = vld [vmem:[%s8031_s7 + $0x8] sm:$0xff] }
 0x261   : > { %v3143_v19 = vsel %vm265_vm0, %v4671_v27, 0.0 }
 0x262   : > { %v1793_v37 = vadd.f32 %v1791_v58, %v1785_v13  ;;  %v4672_v13 = vld [vmem:[%s8031_s7 + $0x18] sm:$0xff] }
 0x264   : > { %v1801_v46 = vadd.f32 %v6255_v22, %v1793_v37  ;;  %v3187_v37 = vsel %vm265_vm0, %v4672_v13, 0.0  ;;  %v1556_v13 = vstv %s6344_s0  ;;  %s6431_s0 = sld [smem:[#allocation7 + $0x14d]] }
 0x265   : > { %v1812_v38 = vpop.permute.xlu0 %1811 }
 0x266   : > { %v1908_v56 = vpop.permute.xlu2 %1907  ;;  %v1820_v59 = vpop.permute.xlu1 %1819  ;;  %v1806_v8 = vadd.f32 %v1805_v14, %v1801_v46 }
 0x267   : > { %v1910_v45 = vadd.f32 %v1908_v56, %v1902_v43  ;;  %1631 = vrot.lane.b32.xlu1 %v1629_v32, %s8024_s30  ;;  %v1438_v43 = vstv %s4152_s4  ;;  %v2753_v32 = vstv %s4385_s3  ;;  %s6381_s4 = sld [smem:[#allocation7 + $0x183]] }
 0x268   : > { %v1814_v54 = vadd.f32 %v1812_v38, %v1806_v8  ;;  %v4673_v38 = vld [vmem:[%s8031_s7 + $0x20] sm:$0xff]  ;;  %s6384_s3 = sld [smem:[#allocation7 + $0x18b]] }
 0x269   : > { %v3209_v56 = vsel %vm265_vm0, %v4673_v38, 0.0  ;;  %v2014_v38 = vstv %s6358_s8  ;;  %s6441_s8 = sld [smem:[#allocation7 + $0x17c]] }
 0x26a   : > { %v6309_v16 = vadd.f32 %v1820_v59, %v1814_v54  ;;  %v2737_v59 = vstv %s4383_s6  ;;  %v1439_v54 = vmul.f32 %v1438_v43, %v6183_v40  ;;  %s6387_s6 = sld [smem:[#allocation7 + $0x193]] }
 0x26d   : > { %v1847_v22 = vpop.permute.xlu0 %1846 }
 0x26e   : > { %v1849_v62 = vadd.f32 %v1847_v22, %v1841_v3  ;;  %v1860_v11 = vpop.permute.xlu1 %1859 }
 0x26f   : > { %1660 = vrot.lane.b32.xlu1 %v1658_v30, %s8025_s16  ;;  %v1446_v26 = vpop.permute.xlu2 %1445 }
 0x270   : > { %v1854_v24 = vadd.f32 %v1853_v0, %v1849_v62  ;;  %v1459_v62 = vstv %s4155_s19  ;;  %v2745_v0 = vstv %s4384_s11  ;;  %s6390_s19 = sld [smem:[#allocation7 + $0x19b]] }
 0x271   : > { %s6393_s11 = sld [smem:[#allocation7 + $0x1a3]] }
 0x272   : > { %v1862_v15 = vadd.f32 %v1860_v11, %v1854_v24  ;;  %v1460_v24 = vmul.f32 %v1459_v62, %v6190_v31  ;;  %v1972_v62 = vstv %s6384_s3  ;;  %s6489_s3 = sld [smem:[#allocation7 + $0x18e]] }
 0x274   : > { %v1870_v1 = vadd.f32 %v1868_v28, %v1862_v15  ;;  %v1419_v28 = vmul.f32 %v1418_v63, %v6181_v35  ;;  %v1487_v35 = vstv %s4160_s14  ;;  %s6379_s14 = sld [smem:[#allocation7 + $0x17b]] }
 0x275   : > { %v1881_v47 = vpop.permute.xlu0 %1880  ;;  %v1488_v29 = vmul.f32 %v1487_v35, %v6203_v41  ;;  %v1557_v35 = vmul.f32 %v1556_v13, %v6227_v2  ;;  %v2194_v2 = vstv %s6370_s18  ;;  %s6473_s18 = sld [smem:[#allocation7 + $0x1ac]] }
 0x276   : > { %v1875_v39 = vadd.f32 %v1874_v20, %v1870_v1  ;;  %v1889_v17 = vpop.permute.xlu1 %1888 }
 0x277   : > { %v1475_v22 = vpop.permute.xlu2 %1474 }
 0x278   : > { %v1883_v25 = vadd.f32 %v1881_v47, %v1875_v39  ;;  %v1507_v39 = vstv %s6338_s5  ;;  %s6397_s5 = sld [smem:[#allocation7 + $0x1ab]] }
 0x279   : > { %v1508_v18 = vmul.f32 %v1507_v39, %v6205_v10  ;;  %v2777_v10 = vstv %s6366_s12  ;;  %s6465_s12 = sld [smem:[#allocation7 + $0x19c]] }
 0x27a   : > { %v6315_v3 = vadd.f32 %v1889_v17, %v1883_v25  ;;  %v2761_v17 = vstv %s4386_s17  ;;  %s6404_s17 = sld [smem:[#allocation7 + $0x1bb]] }
 0x27d   : > { %v1916_v5 = vpop.permute.xlu0 %1915 }
 0x27e   : > { %v1918_v4 = vadd.f32 %v1916_v5, %v1910_v45  ;;  %v1929_v44 = vpop.permute.xlu1 %1928 }
 0x280   : > { %v1923_v42 = vadd.f32 %v1922_v55, %v1918_v4 }
 0x282   : > { %v6320_v53 = vadd.f32 %v1929_v44, %v1923_v42  ;;  %v2769_v44 = vstv %s4387_s24  ;;  %s6461_s24 = sld [smem:[#allocation7 + $0x18c]] }
 0x285   : > { %3166 = vadd.xlane.f32.xlu2 %v3165_v36  ;;  %3122 = vadd.xlane.f32.xlu0 %v3121_v23  ;;  %v1528_v36 = vstv %s6340_s21  ;;  %s6401_s21 = sld [smem:[#allocation7 + $0x1b3]] }
 0x286   : > { %v1425_v52 = vpop.permute.xlu0 %1424 }
 0x287   : > { %v1427_v34 = vadd.f32 %v1425_v52, %v1419_v28 }
 0x28e   : > { %v1454_v58 = vpop.permute.xlu0 %1453  ;;  %v1515_v20 = vpop.permute.xlu2 %1514 }
 0x296   : > { %v1544_v42 = vpop.permute.xlu2 %1543 }
 0x299   : > { %3144 = vadd.xlane.f32.xlu1 %v3143_v19  ;;  %v1529_v19 = vmul.f32 %v1528_v36, %v6215_v7  ;;  %v1576_v7 = vstv %s6346_s26  ;;  %s6433_s26 = sld [smem:[#allocation7 + $0x17e]] }
 0x29a   : > { %v1577_v43 = vmul.f32 %v1576_v7, %v6225_v61 }
 0x2a1   : > { %3188 = vadd.xlane.f32.xlu1 %v3187_v37  ;;  %v2729_v48 = vpop.permute.xlu1 %2728 }
 0x2a2   : > { %2731 = vst.msk [vmem:[#allocation5 + $0x3] sm:$0xff] %vm2355_vm6, %v2729_v48 }
 0x2a5   : > { %v1494_v46 = vpop.permute.xlu0 %1493 }
 0x2a6   : > { %v1496_v14 = vadd.f32 %v1494_v46, %v1488_v29  ;;  %v1597_v29 = vstv %s6348_s1  ;;  %v1571_v46 = vpop.permute.xlu2 %1570  ;;  %s6484_s1 = sld [smem:[#allocation7 + $0x109]] }
 0x2a9   : > { %3210 = vadd.xlane.f32.xlu1 %v3209_v56  ;;  %v1433_v8 = vpop.permute.xlu1 %1432  ;;  %v6333_v45 = vld [vmem:[#allocation5] sm:$0xff]  ;;  %v1548_v56 = vstv %s6379_s14  ;;  %s6481_s14 = sld [smem:[#allocation7 + $0x1c4]] }
 0x2aa   : > { %v1435_v60 = vadd.f32 %v1433_v8, %v1427_v34  ;;  %v2754_v49 = vmul.f32 %v2753_v32, %v6333_v45  ;;  %v2738_v41 = vmul.f32 %v2737_v59, %v6333_v45  ;;  %v2746_v1 = vmul.f32 %v2745_v0, %v6333_v45 }
 0x2ab   : > { %v2762_v4 = vmul.f32 %v2761_v17, %v6333_v45  ;;  %v2770_v50 = vmul.f32 %v2769_v44, %v6333_v45  ;;  %v1482_v34 = vstv %s6353_s22  ;;  %v2059_v32 = vstv %s6360_s2  ;;  %s6437_s22 = sld [smem:[#allocation7 + $0x150]] }
 0x2ac   : > { %v1440_v30 = vadd.f32 %v1439_v54, %v1435_v60  ;;  %2756 = vrot.lane.b32.xlu0 %v2754_v49, %s8026_s20  ;;  %2740 = vrot.lane.b32.xlu2 %v2738_v41, %s8024_s30  ;;  %v2104_v59 = vstv %s6363_s27  ;;  %v2149_v8 = vstv %s6368_s9  ;;  %s6451_s2 = sld [smem:[#allocation7 + $0x184]] }
 0x2ad   : > { %v1523_v23 = vpop.permute.xlu0 %1522  ;;  %v2239_v60 = vstv %s6372_s25  ;;  %v1551_v41 = vstv %s6381_s4  ;;  %s6463_s27 = sld [smem:[#allocation7 + $0x194]] }
 0x2ae   : > { %v1448_v40 = vadd.f32 %v1446_v26, %v1440_v30  ;;  %v2284_v30 = vstv %s6376_s23  ;;  %s6471_s9 = sld [smem:[#allocation7 + $0x1a4]] }
 0x2af   : > { %s6475_s25 = sld [smem:[#allocation7 + $0x1b4]] }
 0x2b0   : > { %v1456_v11 = vadd.f32 %v1454_v58, %v1448_v40  ;;  %v2778_v58 = vmul.f32 %v2777_v10, %v6333_v45  ;;  %v4674_v10 = vld [vmem:[%s8031_s7 + $0x28] sm:$0xff]  ;;  %s6478_s23 = sld [smem:[#allocation7 + $0x1bc]] }
 0x2b1   : > { %v1467_v15 = vpop.permute.xlu1 %1466  ;;  %s6486_s4 = sld [smem:[#allocation7 + $0x186]] }
 0x2b2   : > { %v1461_v12 = vadd.f32 %v1460_v24, %v1456_v11  ;;  %v2017_v11 = vstv %s6387_s6  ;;  %v2062_v24 = vstv %s6390_s19  ;;  %s6492_s6 = sld [smem:[#allocation7 + $0x196]] }
 0x2b3   : > { %s6494_s19 = sld [smem:[#allocation7 + $0x19e]] }
 0x2b4   : > { %v1469_v47 = vadd.f32 %v1467_v15, %v1461_v12  ;;  %2748 = vrot.lane.b32.xlu2 %v2746_v1, %s8025_s16  ;;  %v2107_v15 = vstv %s6393_s11  ;;  %v2152_v12 = vstv %s6397_s5  ;;  %v2197_v1 = vstv %s6401_s21  ;;  %s6499_s11 = sld [smem:[#allocation7 + $0x17d]] }
 0x2b5   : > { %v1584_v61 = vpop.permute.xlu0 %1583  ;;  %s6505_s5 = sld [smem:[#allocation7 + $0x185]] }
 0x2b6   : > { %v1477_v31 = vadd.f32 %v1475_v22, %v1469_v47  ;;  %s6509_s21 = sld [smem:[#allocation7 + $0x18d]] }
 0x2b8   : > { %v1480_v28 = vmul.f32 %v1479_v21, %v1477_v31 }
 0x2b9   : > { %v1502_v25 = vpop.permute.xlu1 %1501 }
 0x2ba   : > { %v1504_v5 = vadd.f32 %v1502_v25, %v1496_v14  ;;  %v1483_v26 = vadd.f32 %v1482_v34, %v1480_v28  ;;  %v1969_v14 = vstv %s6355_s28  ;;  %s6439_s28 = sld [smem:[#allocation7 + $0x153]]  ;;  %v1605_v34 = vpop.permute.xlu2 %1604 }
 0x2bc   : > { %v1509_v55 = vadd.f32 %v1508_v18, %v1504_v5  ;;  %2764 = vrot.lane.b32.xlu2 %v2762_v4, %s8028_s15  ;;  %v1484_v49 = vmax.f32 %v1483_v26, 0.0  ;;  %v2287_v18 = vstv %s6408_s10  ;;  %s6515_s10 = sld [smem:[#allocation7 + $0x19d]] }
 0x2be   : > { %v1517_v63 = vadd.f32 %v1515_v20, %v1509_v55  ;;  %v2242_v20 = vstv %s6404_s17  ;;  %v1970_v39 = vmul.f32 %v1969_v14, %v1484_v49  ;;  %v2015_v17 = vmul.f32 %v2014_v38, %v1484_v49  ;;  %s6512_s17 = sld [smem:[#allocation7 + $0x195]] }
 0x2bf   : > { %v2060_v25 = vmul.f32 %v2059_v32, %v1484_v49  ;;  %v2105_v5 = vmul.f32 %v2104_v59, %v1484_v49  ;;  %v2150_v4 = vmul.f32 %v2149_v8, %v1484_v49  ;;  %v2195_v44 = vmul.f32 %v2194_v2, %v1484_v49  ;;  %v1613_v32 = vpop.permute.xlu0 %1612 }
 0x2c0   : > { %v1525_v27 = vadd.f32 %v1523_v23, %v1517_v63  ;;  %v2240_v21 = vmul.f32 %v2239_v60, %v1484_v49  ;;  %v2285_v36 = vmul.f32 %v2284_v30, %v1484_v49  ;;  %v3231_v63 = vsel %vm265_vm0, %v4674_v10, 0.0 }
 0x2c1   : > { %v1536_v52 = vpop.permute.xlu1 %1535  ;;  %v1625_v59 = vstv %s6431_s0  ;;  %v1598_v8 = vmul.f32 %v1597_v29, %v6242_v57  ;;  %v1617_v30 = vstv %s6441_s8  ;;  %s6519_s0 = sld [smem:[#allocation7 + $0x10b]] }
 0x2c2   : > { %2772 = vrot.lane.b32.xlu1 %v2770_v50, %s8027_s13  ;;  %v1530_v37 = vadd.f32 %v1529_v19, %v1525_v27  ;;  %v1626_v60 = vmul.f32 %v1625_v59, %v6264_v9  ;;  %v1640_v29 = vpop.permute.xlu2 %1639  ;;  %s6541_s8 = sld [smem:[#allocation7 + $0x1b5]] }
 0x2c4   : > { %2780 = vrot.lane.b32.xlu2 %v2778_v58, %s7953_s29  ;;  %v1538_v48 = vadd.f32 %v1536_v52, %v1530_v37  ;;  %s6621_s29 = sld [smem:[#allocation7 + $0x112]] }
 0x2c6   : > { %v1546_v54 = vadd.f32 %v1544_v42, %v1538_v48 }
 0x2c8   : > { %v1549_v40 = vmul.f32 %v1548_v56, %v1546_v54 }
 0x2c9   : > { %v1563_v22 = vpop.permute.xlu1 %1562 }
 0x2ca   : > { %v1565_v0 = vadd.f32 %v1563_v22, %v1557_v35  ;;  %v1552_v47 = vadd.f32 %v1551_v41, %v1549_v40  ;;  %v1645_v41 = vstv %s6437_s22  ;;  %s6533_s22 = sld [smem:[#allocation7 + $0x1a5]] }
 0x2cb   : > { %v1646_v40 = vmul.f32 %v1645_v41, %v6261_v33  ;;  %v1980_v41 = vstv %s6509_s21  ;;  %s4395_s21 = sld [smem:[#allocation7 + $0x10e]] }
 0x2cc   : > { %v1573_v31 = vadd.f32 %v1571_v46, %v1565_v0  ;;  %v1553_v55 = vmax.f32 %v1552_v47, 0.0  ;;  %v1620_v0 = vstv %s6451_s2  ;;  %v2066_v47 = vstv %s6465_s12  ;;  %s6544_s2 = sld [smem:[#allocation7 + $0x1bd]] }
 0x2cd   : > { %s6556_s12 = sld [smem:[#allocation7 + $0x1a6]] }
 0x2ce   : > { %v1578_v42 = vadd.f32 %v1577_v43, %v1573_v31  ;;  %v1973_v50 = vmul.f32 %v1972_v62, %v1553_v55  ;;  %v2018_v23 = vmul.f32 %v2017_v11, %v1553_v55  ;;  %v2063_v28 = vmul.f32 %v2062_v24, %v1553_v55  ;;  %v1653_v24 = vpop.permute.xlu0 %1652 }
 0x2cf   : > { %v2108_v52 = vmul.f32 %v2107_v15, %v1553_v55  ;;  %v2153_v27 = vmul.f32 %v2152_v12, %v1553_v55  ;;  %v2198_v19 = vmul.f32 %v2197_v1, %v1553_v55  ;;  %v2243_v58 = vmul.f32 %v2242_v20, %v1553_v55 }
 0x2d0   : > { %v2288_v13 = vmul.f32 %v2287_v18, %v1553_v55  ;;  %v6443_v7 = vadd.f32 %v1973_v50, %v1970_v39  ;;  %v6445_v26 = vadd.f32 %v2018_v23, %v2015_v17  ;;  %v6447_v48 = vadd.f32 %v2063_v28, %v2060_v25 }
 0x2d1   : > { %v1592_v37 = vpop.permute.xlu1 %1591  ;;  %v6449_v35 = vadd.f32 %v2108_v52, %v2105_v5  ;;  %v6453_v46 = vadd.f32 %v2153_v27, %v2150_v4  ;;  %v6455_v14 = vadd.f32 %v2198_v19, %v2195_v44  ;;  %v6457_v38 = vadd.f32 %v2243_v58, %v2240_v21 }
 0x2d2   : > { %v6459_v56 = vadd.f32 %v2288_v13, %v2285_v36  ;;  %v1586_v43 = vadd.f32 %v1584_v61, %v1578_v42  ;;  %v1666_v15 = vstv %s6439_s28  ;;  %v1976_v12 = vstv %s6461_s24  ;;  %s6539_s28 = sld [smem:[#allocation7 + $0x1ad]] }
 0x2d3   : > { %v2021_v1 = vstv %s6463_s27  ;;  %v2111_v31 = vstv %s6471_s9  ;;  %v2156_v39 = vstv %s6473_s18  ;;  %v2201_v17 = vstv %s6475_s25  ;;  %s6548_s24 = sld [smem:[#allocation7 + $0x1c5]] }
 0x2d4   : > { %v1594_v54 = vadd.f32 %v1592_v37, %v1586_v43  ;;  %v2246_v18 = vstv %s6478_s23  ;;  %v2291_v5 = vstv %s6481_s14  ;;  %v1667_v42 = vmul.f32 %v1666_v15, %v6285_v51  ;;  %s6554_s27 = sld [smem:[#allocation7 + $0x10d]] }
 0x2d5   : > { %v2790_v44 = vstv %s6484_s1  ;;  %s6558_s9 = sld [smem:[#allocation7 + $0x1ae]] }
 0x2d6   : > { %3232 = vadd.xlane.f32.xlu0 %v3231_v63  ;;  %v1599_v2 = vadd.f32 %v1598_v8, %v1594_v54  ;;  %v1682_v59 = vpop.permute.xlu0 %1681  ;;  %v1686_v8 = vstv %s6499_s11  ;;  %s6562_s18 = sld [smem:[#allocation7 + $0x1b6]] }
 0x2d7   : > { %s6564_s25 = sld [smem:[#allocation7 + $0x1be]] }
 0x2d8   : > { %v1607_v22 = vadd.f32 %v1605_v34, %v1599_v2  ;;  %v6517_v34 = vld [vmem:[#allocation5 + $0x1] sm:$0xff]  ;;  %v1689_v2 = vstv %s6505_s5  ;;  %s6566_s23 = sld [smem:[#allocation7 + $0x1c6]] }
 0x2d9   : > { %v1632_v49 = vpop.permute.xlu1 %1631  ;;  %s6570_s14 = sld [smem:[#allocation7 + $0x17f]] }
 0x2da   : > { %v1634_v57 = vadd.f32 %v1632_v49, %v1626_v60  ;;  %v1615_v62 = vadd.f32 %v1613_v32, %v1607_v22  ;;  %v4675_v32 = vld [vmem:[%s8031_s7 + $0x38] sm:$0xff]  ;;  %v2806_v60 = vstv %s6519_s0  ;;  %s6576_s1 = sld [smem:[#allocation7 + $0x187]] }
 0x2db   : > { %s6582_s11 = sld [smem:[#allocation7 + $0x18f]] }
 0x2dc   : > { %v1642_v9 = vadd.f32 %v1640_v29, %v1634_v57  ;;  %v1618_v61 = vmul.f32 %v1617_v30, %v1615_v62  ;;  %v2807_v57 = vmul.f32 %v2806_v60, %v6517_v34  ;;  %v2025_v29 = vstv %s6512_s17  ;;  %s6585_s5 = sld [smem:[#allocation7 + $0x197]] }
 0x2dd   : > { %v2070_v30 = vstv %s6515_s10  ;;  %v2115_v62 = vstv %s6533_s22  ;;  %s6587_s17 = sld [smem:[#allocation7 + $0x19f]]  ;;  %v2029_v60 = vstv %s6492_s6 }
 0x2de   : > { %v1647_v11 = vadd.f32 %v1646_v40, %v1642_v9  ;;  %v1621_v20 = vadd.f32 %v1620_v0, %v1618_v61  ;;  %8032 = sst [smem:[#allocation22_spill]] %s6566_s23  ;;  %v2160_v9 = vstv %s6539_s28  ;;  %v2205_v40 = vstv %s6541_s8 }
 0x2df   : > { %v2250_v0 = vstv %s6544_s2  ;;  %v2295_v61 = vstv %s6548_s24  ;;  %s4393_s10 = sld [smem:[#allocation7 + $0x10c]] }
 0x2e0   : > { %v1655_v33 = vadd.f32 %v1653_v24, %v1647_v11  ;;  %v1622_v4 = vmax.f32 %v1621_v20, 0.0  ;;  %v2822_v24 = vstv %s6554_s27  ;;  %s4391_s0 = sld [smem:[#allocation7 + $0x10a]] }
 0x2e1   : > { %v1661_v25 = vpop.permute.xlu1 %1660  ;;  %s6610_s22 = sld [smem:[#allocation7 + $0x1a7]] }
 0x2e2   : > { %v1663_v55 = vadd.f32 %v1661_v25, %v1655_v33  ;;  %v1977_v21 = vmul.f32 %v1976_v12, %v1622_v4  ;;  %v2022_v36 = vmul.f32 %v2021_v1, %v1622_v4  ;;  %v2067_v10 = vmul.f32 %v2066_v47, %v1622_v4  ;;  %s4382_s28 = sld [smem:[#allocation7 + $0x101]] }
 0x2e3   : > { %v2112_v63 = vmul.f32 %v2111_v31, %v1622_v4  ;;  %v2157_v50 = vmul.f32 %v2156_v39, %v1622_v4  ;;  %v2202_v23 = vmul.f32 %v2201_v17, %v1622_v4  ;;  %v2247_v28 = vmul.f32 %v2246_v18, %v1622_v4  ;;  %s6613_s8 = sld [smem:[#allocation7 + $0x1af]] }
 0x2e4   : > { %v2292_v52 = vmul.f32 %v2291_v5, %v1622_v4  ;;  %v6522_v51 = vadd.f32 %v1977_v21, %v6443_v7  ;;  %v6525_v27 = vadd.f32 %v2022_v36, %v6445_v26  ;;  %v6528_v19 = vadd.f32 %v2067_v10, %v6447_v48  ;;  %s6615_s2 = sld [smem:[#allocation7 + $0x1b7]] }
 0x2e5   : > { %v6531_v58 = vadd.f32 %v2112_v63, %v6449_v35  ;;  %v2158_v13 = vadd.f32 %v2157_v50, %v6453_v46  ;;  %v2203_v37 = vadd.f32 %v2202_v23, %v6455_v14  ;;  %v2248_v43 = vadd.f32 %v2247_v28, %v6457_v38  ;;  %v1674_v35 = vpop.permute.xlu2 %1673  ;;  %v4676_v38 = vld [vmem:[%s8031_s7 + $0x30] sm:$0xff]  ;;  %s6617_s24 = sld [smem:[#allocation7 + $0x111]] }
 0x2e6   : > { %v2293_v7 = vadd.f32 %v2292_v52, %v6459_v56  ;;  %v1668_v26 = vadd.f32 %v1667_v42, %v1663_v55  ;;  %v2791_v48 = vmul.f32 %v2790_v44, %v6517_v34  ;;  %v3275_v46 = vsel %vm265_vm0, %v4675_v32, 0.0  ;;  %s6619_s27 = sld [smem:[#allocation7 + $0x1bf]] }
 0x2e7   : > { %v3253_v56 = vsel %vm265_vm0, %v4676_v38, 0.0  ;;  %v2823_v21 = vmul.f32 %v2822_v24, %v6517_v34  ;;  %v2830_v23 = vstv %s4395_s21  ;;  %s6624_s7 = sld [smem:[#allocation7 + $0x110]]  ;;  %s8035_s21 = smov 122   ;;  %v1827_v24 = vstv %s6576_s1 }
 0x2e8   : > { %v1676_v14 = vadd.f32 %v1674_v35, %v1668_v26  ;;  %v6640_v35 = vld [vmem:[#allocation5 + $0x2] sm:$0xff]  ;;  %s6692_s1 = sld [smem:[#allocation7 + $0x119]] }
 0x2e9   : > { %s6768_s6 = sld [smem:[#allocation7 + $0x120]] }
 0x2ea   : > { %2793 = vrot.lane.b32.xlu0 %v2791_v48, %s8024_s30  ;;  %v1684_v54 = vadd.f32 %v1682_v59, %v1676_v14  ;;  %8033 = sst [smem:[#allocation23_spill]] %s6615_s2  ;;  %v1755_v14 = vstv %s6433_s26  ;;  %v2859_v59 = vstv %s6621_s29 }
 0x2eb   : > { %s6628_s2 = sld [smem:[#allocation7 + $0x180]]  ;;  %v2851_v32 = vstv %s6617_s24 }
 0x2ec   : > { %3276 = vadd.xlane.f32.xlu1 %v3275_v46  ;;  %v1687_v49 = vmul.f32 %v1686_v8, %v1684_v54  ;;  %8034 = sst [smem:[#allocation24_spill]] %s6619_s27  ;;  %v1758_v54 = vstv %s6486_s4 }
 0x2ed   : > { %3254 = vadd.xlane.f32.xlu2 %v3253_v56  ;;  %s6631_s27 = sld [smem:[#allocation7 + $0x188]]  ;;  %v2852_v56 = vmul.f32 %v2851_v32, %v6640_v35  ;;  %v2843_v8 = vstv %s6624_s7 }
 0x2ee   : > { %v1690_v22 = vadd.f32 %v1689_v2, %v1687_v49  ;;  %s6653_s24 = sld [smem:[#allocation7 + $0x113]]  ;;  %v1984_v2 = vstv %s6489_s3  ;;  %v2074_v49 = vstv %s6494_s19  ;;  %s8042_s3 = smov 126  }
 0x2ef   : > { %s6663_s26 = sld [smem:[#allocation7 + $0x1a8]]  ;;  %s8043_s19 = smov 125  }
 0x2f0   : > { %v1691_v11 = vmax.f32 %v1690_v22, 0.0  ;;  %v2164_v22 = vstv %s6558_s9  ;;  %s6668_s29 = sld [smem:[#allocation7 + $0x1b0]] }
 0x2f1   : > { %s6675_s7 = sld [smem:[#allocation7 + $0x1b8]] }
 0x2f2   : > { %2809 = vrot.lane.b32.xlu0 %v2807_v57, %s8026_s20  ;;  %v1981_v15 = vmul.f32 %v1980_v41, %v1691_v11  ;;  %v2026_v12 = vmul.f32 %v2025_v29, %v1691_v11  ;;  %v2071_v1 = vmul.f32 %v2070_v30, %v1691_v11  ;;  %v2116_v20 = vmul.f32 %v2115_v62, %v1691_v11  ;;  %s6681_s4 = sld [smem:[#allocation7 + $0x118]] }
 0x2f3   : > { %v2161_v33 = vmul.f32 %v2160_v9, %v1691_v11  ;;  %v2206_v47 = vmul.f32 %v2205_v40, %v1691_v11  ;;  %v2251_v31 = vmul.f32 %v2250_v0, %v1691_v11  ;;  %v2296_v39 = vmul.f32 %v2295_v61, %v1691_v11  ;;  %s6773_s9 = sld [smem:[#allocation7 + $0x11e]] }
 0x2f4   : > { %v6590_v17 = vadd.f32 %v1981_v15, %v6522_v51  ;;  %v6593_v25 = vadd.f32 %v2026_v12, %v6525_v27  ;;  %v6596_v18 = vadd.f32 %v2071_v1, %v6528_v19  ;;  %v6599_v5 = vadd.f32 %v2116_v20, %v6531_v58 }
 0x2f5   : > { %v6601_v4 = vadd.f32 %v2161_v33, %v2158_v13  ;;  %v6603_v55 = vadd.f32 %v2206_v47, %v2203_v37  ;;  %v6605_v42 = vadd.f32 %v2251_v31, %v2248_v43  ;;  %v6607_v44 = vadd.f32 %v2296_v39, %v2293_v7 }
 0x2f6   : > { %v2831_v51 = vmul.f32 %v2830_v23, %v6517_v34  ;;  %v2814_v27 = vstv %s4393_s10  ;;  %v2798_v19 = vstv %s4391_s0  ;;  %v2734_v13 = vstv %s4382_s28  ;;  %s6635_s10 = sld [smem:[#allocation7 + $0x190]] }
 0x2f7   : > { %v2815_v37 = vmul.f32 %v2814_v27, %v6517_v34  ;;  %v2799_v43 = vmul.f32 %v2798_v19, %v6517_v34  ;;  %v2735_v48 = vmul.f32 %v2734_v13, %v6333_v45  ;;  %s6643_s0 = sld [smem:[#allocation7 + $0x114]]  ;;  %v2119_v41 = vstv %s6556_s12  ;;  %s8044_s12 = smov 127  }
 0x2f8   : > { %v3123_v36 = vpop.xlane.xlu0 %3122  ;;  %v3167_v50 = vpop.xlane.xlu2 %3166  ;;  %s6645_s28 = sld [smem:[#allocation7 + $0x198]]  ;;  %v2209_v57 = vstv %s6562_s18  ;;  %v1756_v29 = vmul.f32 %v1755_v14, %v6298_v6  ;;  %v2860_v30 = vmul.f32 %v2859_v59, %v6640_v35  ;;  %v2844_v62 = vmul.f32 %v2843_v8, %v6640_v35  ;;  %v6715_v59 = vld [vmem:[#allocation5 + $0x3] sm:$0xff] }
 0x2f9   : > { %v3124_v10 = vrot.slane %v3123_v36, 4  ;;  %v3168_v26 = vrot.slane %v3167_v50, 4  ;;  %v2254_v9 = vstv %s6564_s25  ;;  %v2299_v40 = vstv %s6566_s23  ;;  %s6687_s23 = sld [smem:[#allocation7 + $0x1c0]] }
 0x2fa   : > { %2825 = vrot.lane.b32.xlu0 %v2823_v21, %s8027_s13  ;;  %s6626_s13 = sld [smem:[#allocation7 + $0x1c7]]  ;;  %v1824_v0 = vstv %s6570_s14  ;;  %v1988_v12 = vstv %s6582_s11  ;;  %v2033_v1 = vstv %s6585_s5  ;;  %v1759_v31 = vadd.f32 %v1758_v54, %v1756_v29 }
 0x2fb   : > { %v3125_v63 = vadd.f32 %v3124_v10, %v3123_v36  ;;  %v3169_v45 = vadd.f32 %v3168_v26, %v3167_v50  ;;  %v2078_v20 = vstv %s6587_s17  ;;  %s8037_s14 = sld [smem:[#allocation24_spill]]  ;;  %v2123_v33 = vstv %s6610_s22 }
 0x2fc   : > { %v1825_v39 = vmul.f32 %v1824_v0, %v6309_v16  ;;  %v2867_v50 = vstv %s6653_s24  ;;  %v1893_v16 = vstv %s6628_s2  ;;  %v1760_v26 = vmax.f32 %v1759_v31, 0.0  ;;  %s8040_s2 = smov 124   ;;  %s6725_s24 = sld [smem:[#allocation7 + $0x11c]] }
 0x2fd   : > { %v3126_v28 = vrot.slane %v3125_v63, 2  ;;  %v3170_v61 = vrot.slane %v3169_v45, 2  ;;  %v2875_v6 = vstv %s6643_s0  ;;  %s6697_s0 = sld [smem:[#allocation7 + $0x117]]  ;;  %v2904_v8 = vstv %s6681_s4 }
 0x2fe   : > { %v2876_v10 = vmul.f32 %v2875_v6, %v6640_v35  ;;  %v1828_v13 = vadd.f32 %v1827_v24, %v1825_v39  ;;  %v2037_v32 = vstv %s6645_s28  ;;  %v2127_v29 = vstv %s6663_s26  ;;  %s6730_s4 = sld [smem:[#allocation7 + $0x11a]] }
 0x2ff   : > { %v3127_v52 = vadd.f32 %v3126_v28, %v3125_v63  ;;  %v3171_v23 = vadd.f32 %v3170_v61, %v3169_v45  ;;  %v2168_v28 = vstv %s6613_s8  ;;  %v2262_v0 = vstv %s6687_s23  ;;  %s6819_s18 = sld [smem:[#allocation7 + $0x122]] }
 0x300   : > { %v2303_v19 = vstv %s6626_s13  ;;  %v2912_v6 = vstv %s6692_s1  ;;  %v1985_v31 = vmul.f32 %v1984_v2, %v1760_v26  ;;  %v6736_v39 = vmul.f32 %v2029_v60, %v1760_v26  ;;  %s8046_s13 = smov 124   ;;  %s6830_s25 = sld [smem:[#allocation7 + $0x123]] }
 0x301   : > { %v3128_v58 = vrot.slane %v3127_v52, 1  ;;  %v3172_v14 = vrot.slane %v3171_v23, 1  ;;  %v6750_v2 = vmul.f32 %v2164_v22, %v1760_v26  ;;  %v2210_v60 = vmul.f32 %v2209_v57, %v1760_v26  ;;  %s6835_s23 = sld [smem:[#allocation7 + $0x121]] }
 0x302   : > { %2833 = vrot.lane.b32.xlu0 %v2831_v51, %s8035_s21  ;;  %s6658_s21 = sld [smem:[#allocation7 + $0x1a0]]  ;;  %v2258_v51 = vstv %s8037_s14  ;;  %v6762_v22 = vmul.f32 %v2299_v40, %v1760_v26 }
 0x303   : > { %v3129_v7 = vadd.f32 %v3128_v58, %v3127_v52  ;;  %v1896_v58 = vstv %s6631_s27  ;;  %s6718_s27 = sld [smem:[#allocation7 + $0x11b]]  ;;  %v3173_v24 = vadd.f32 %v3172_v14, %v3171_v23 }
 0x304   : > { %s4420_s11 = sld [smem:[#allocation7 + $0x127]] }
 0x305   : > { %2817 = vrot.lane.b32.xlu1 %v2815_v37, %s8028_s15  ;;  %2801 = vrot.lane.b32.xlu2 %v2799_v43, %s8025_s16  ;;  %4561 = vpush %v3129_v7  ;;  %s6648_s15 = sld [smem:[#allocation7 + $0x115]]  ;;  %v2868_v43 = vmul.f32 %v2867_v50, %v6640_v35  ;;  %v6746_v50 = vmul.f32 %v2119_v41, %v1760_v26 }
 0x306   : > { %v2741_v46 = vpop.permute.xlu2 %2740  ;;  %v2255_v41 = vmul.f32 %v2254_v9, %v1760_v26  ;;  %s4418_s5 = sld [smem:[#allocation7 + $0x125]] }
 0x307   : > { %v2743_v38 = vadd.f32 %v2741_v46, %v2735_v48  ;;  %v1992_v48 = vstv %s6635_s10  ;;  %s4422_s17 = sld [smem:[#allocation7 + $0x129]] }
 0x308   : > { %v2082_v54 = vstv %s6658_s21  ;;  %s4423_s22 = sld [smem:[#allocation7 + $0x12a]] }
 0x309   : > { %v2928_v40 = vstv %s6718_s27  ;;  %s4421_s8 = sld [smem:[#allocation7 + $0x128]] }
 0x30a   : > { %2854 = vrot.lane.b32.xlu0 %v2852_v56, %s8025_s16  ;;  %s8036_s16 = sld [smem:[#allocation23_spill]] }
 0x30b   : > { %v2883_v63 = vstv %s6648_s15  ;;  %s8039_s15 = smov 122   ;;  %s4426_s21 = sld [smem:[#allocation7 + $0x12d]] }
 0x30c   : > { %v3145_v11 = vpop.xlane.xlu1 %3144  ;;  %v2884_v37 = vmul.f32 %v2883_v63, %v6640_v35  ;;  %v6742_v63 = vmul.f32 %v2074_v49, %v1760_v26  ;;  %s4427_s10 = sld [smem:[#allocation7 + $0x12e]] }
 0x30d   : > { %v3146_v15 = vrot.slane %v3145_v11, 4  ;;  %2862 = vrot.lane.b32.xlu1 %v2860_v30, %s8026_s20  ;;  %2846 = vrot.lane.b32.xlu2 %v2844_v62, %s8024_s30  ;;  %s6705_s30 = sld [smem:[#allocation7 + $0x1c8]]  ;;  %s8038_s20 = smov 123   ;;  %v2172_v30 = vstv %s6668_s29  ;;  %v2217_v62 = vstv %s6675_s7 }
 0x30e   : > { %v2749_v47 = vpop.permute.xlu2 %2748  ;;  %s4425_s28 = sld [smem:[#allocation7 + $0x12c]] }
 0x30f   : > { %v3147_v21 = vadd.f32 %v3146_v15, %v3145_v11  ;;  %v6690_v36 = vadd.f32 %v2749_v47, %v2743_v38  ;;  %v1894_v38 = vmul.f32 %v1893_v16, %v6315_v3  ;;  %v1829_v3 = vmax.f32 %v1828_v13, 0.0  ;;  %s4389_s26 = sld [smem:[#allocation7 + $0x108]] }
 0x310   : > { %v2213_v52 = vstv %s8036_s16  ;;  %v2905_v15 = vmul.f32 %v2904_v8, %v6715_v59  ;;  %v2896_v47 = vstv %s6697_s0  ;;  %s8045_s16 = smov 122   ;;  %s4429_s29 = sld [smem:[#allocation7 + $0x130]] }
 0x311   : > { %v3148_v27 = vrot.slane %v3147_v21, 2  ;;  %v2897_v16 = vmul.f32 %v2896_v47, %v6715_v59  ;;  %v2034_v13 = vmul.f32 %v2033_v1, %v1829_v3  ;;  %v2124_v1 = vmul.f32 %v2123_v33, %v1829_v3  ;;  %s4231_s7 = sld [smem:[#allocation7 + $0x176]] }
 0x312   : > { %2878 = vrot.lane.b32.xlu0 %v2876_v10, %s8038_s20  ;;  %v2214_v26 = vmul.f32 %v2213_v52, %v1829_v3  ;;  %v2259_v14 = vmul.f32 %v2258_v51, %v1829_v3  ;;  %v2304_v8 = vmul.f32 %v2303_v19, %v1829_v3  ;;  %v2929_v33 = vmul.f32 %v2928_v40, %v6715_v59  ;;  %v6793_v51 = vld [vmem:[#allocation5 + $0x4] sm:$0xff]  ;;  %s4428_s14 = sld [smem:[#allocation7 + $0x12f]] }
 0x313   : > { %v3149_v7 = vadd.f32 %v3148_v27, %v3147_v21  ;;  %v1897_v21 = vadd.f32 %v1896_v58, %v1894_v38  ;;  %v2307_v23 = vstv %s6705_s30  ;;  %v2913_v27 = vmul.f32 %v2912_v6, %v6715_v59  ;;  %s4419_s30 = sld [smem:[#allocation7 + $0x126]] }
 0x314   : > { %v3189_v46 = vpop.xlane.xlu1 %3188  ;;  %v1989_v58 = vmul.f32 %v1988_v12, %v1829_v3  ;;  %v2079_v12 = vmul.f32 %v2078_v20, %v1829_v3  ;;  %v2256_v40 = vadd.f32 %v2255_v41, %v6605_v42  ;;  %s4233_s1 = sld [smem:[#allocation7 + $0x178]] }
 0x315   : > { %v3190_v45 = vrot.slane %v3189_v46, 4  ;;  %2886 = vrot.lane.b32.xlu1 %v2884_v37, %s8039_s15  ;;  %2870 = vrot.lane.b32.xlu2 %v2868_v43, %s8040_s2  ;;  %v3150_v56 = vrot.slane %v3149_v7, 1  ;;  %s6738_s15 = sld [smem:[#allocation7 + $0x11f]]  ;;  %v1898_v37 = vmax.f32 %v1897_v21, 0.0 }
 0x316   : > { %v2765_v20 = vpop.permute.xlu2 %2764  ;;  %s4234_s0 = sld [smem:[#allocation7 + $0x179]] }
 0x317   : > { %v3191_v61 = vadd.f32 %v3190_v45, %v3189_v46  ;;  %v3151_v11 = vadd.f32 %v3150_v56, %v3149_v7  ;;  %v2169_v7 = vmul.f32 %v2168_v28, %v1829_v3  ;;  %v2936_v28 = vstv %s6725_s24  ;;  %s6883_s2 = sld [smem:[#allocation7 + $0x10f]] }
 0x318   : > { %v1993_v52 = vmul.f32 %v1992_v48, %v1898_v37  ;;  %v2038_v19 = vmul.f32 %v2037_v32, %v1898_v37  ;;  %v2083_v3 = vmul.f32 %v2082_v54, %v1898_v37  ;;  %v1986_v48 = vadd.f32 %v1985_v31, %v6590_v17  ;;  %s6885_s27 = sld [smem:[#allocation7 + $0x116]] }
 0x319   : > { %v3192_v10 = vrot.slane %v3191_v61, 2  ;;  %4563 = vpush %v3151_v11  ;;  %v2173_v6 = vmul.f32 %v2172_v30, %v1898_v37  ;;  %v2937_v47 = vmul.f32 %v2936_v28, %v6715_v59  ;;  %v2263_v32 = vmul.f32 %v2262_v0, %v1898_v37  ;;  %s6889_s24 = sld [smem:[#allocation7 + $0x11d]] }
 0x31a   : > { %4565 = vpush %v3173_v24  ;;  %2907 = vrot.lane.b32.xlu0 %v2905_v15, %s8042_s3  ;;  %v2128_v15 = vmul.f32 %v2127_v29, %v1898_v37  ;;  %v2965_v54 = vstv %s6768_s6  ;;  %v2949_v17 = vstv %s6773_s9  ;;  %v1990_v30 = vadd.f32 %v1989_v58, %v1986_v48  ;;  %s6895_s6 = sld [smem:[#allocation7 + $0x23a]] }
 0x31b   : > { %v3193_v49 = vadd.f32 %v3192_v10, %v3191_v61  ;;  %v2920_v61 = vstv %s6730_s4  ;;  %v2957_v24 = vstv %s6738_s15  ;;  %v2031_v31 = vadd.f32 %v6736_v39, %v6593_v25  ;;  %s4430_s15 = sld [smem:[#allocation7 + $0x131]] }
 0x31c   : > { %v3211_v57 = vpop.xlane.xlu1 %3210  ;;  %v2921_v21 = vmul.f32 %v2920_v61, %v6715_v59  ;;  %v2121_v0 = vadd.f32 %v6746_v50, %v6599_v5  ;;  %v2308_v5 = vmul.f32 %v2307_v23, %v1898_v37  ;;  %v2301_v50 = vadd.f32 %v6762_v22, %v6607_v44  ;;  %s6891_s4 = sld [smem:[#allocation7 + $0x1ee]] }
 0x31d   : > { %v3212_v43 = vrot.slane %v3211_v57, 4  ;;  %2915 = vrot.lane.b32.xlu1 %v2913_v27, %s8043_s19  ;;  %2899 = vrot.lane.b32.xlu2 %v2897_v16, %s8044_s12  ;;  %v3194_v9 = vrot.slane %v3193_v49, 1  ;;  %v2218_v27 = vmul.f32 %v2217_v62, %v1898_v37  ;;  %v2958_v16 = vmul.f32 %v2957_v24, %v6793_v51  ;;  %s6899_s9 = sld [smem:[#allocation7 + $0x24a]] }
 0x31e   : > { %v2757_v46 = vpop.permute.xlu0 %2756  ;;  %v2076_v62 = vadd.f32 %v6742_v63, %v6596_v18  ;;  %v2035_v58 = vadd.f32 %v2034_v13, %v2031_v31  ;;  %v2125_v18 = vadd.f32 %v2124_v1, %v2121_v0  ;;  %v2966_v23 = vmul.f32 %v2965_v54, %v6793_v51 }
 0x31f   : > { %v3213_v38 = vadd.f32 %v3212_v43, %v3211_v57  ;;  %v2759_v45 = vadd.f32 %v2757_v46, %v6690_v36  ;;  %v3195_v56 = vadd.f32 %v3194_v9, %v3193_v49  ;;  %v2166_v49 = vadd.f32 %v6750_v2, %v6601_v4 }
 0x320   : > { %v2211_v57 = vadd.f32 %v2210_v60, %v6603_v55  ;;  %v6832_v9 = vadd.f32 %v1993_v52, %v1990_v30  ;;  %v2080_v25 = vadd.f32 %v2079_v12, %v2076_v62  ;;  %v6839_v4 = vadd.f32 %v2038_v19, %v2035_v58 }
 0x321   : > { %v3214_v11 = vrot.slane %v3213_v38, 2  ;;  %4567 = vpush %v3195_v56  ;;  %v6796_v36 = vadd.f32 %v2765_v20, %v2759_v45  ;;  %v2170_v39 = vadd.f32 %v2169_v7, %v2166_v49  ;;  %v2260_v55 = vadd.f32 %v2259_v14, %v2256_v40  ;;  %v2997_v56 = vld [vmem:[#allocation5 + $0x5] sm:$0xff]  ;;  %v2781_v20 = vpop.permute.xlu2 %2780 }
 0x322   : > { %2931 = vrot.lane.b32.xlu0 %v2929_v33, %s8038_s20  ;;  %v2215_v63 = vadd.f32 %v2214_v26, %v2211_v57  ;;  %v6844_v42 = vadd.f32 %v2083_v3, %v2080_v25  ;;  %v6846_v2 = vadd.f32 %v2128_v15, %v2125_v18  ;;  %v2950_v13 = vmul.f32 %v2949_v17, %v6793_v51 }
 0x323   : > { %v3215_v10 = vadd.f32 %v3214_v11, %v3213_v38  ;;  %v6848_v60 = vadd.f32 %v2173_v6, %v2170_v39  ;;  %v6854_v37 = vadd.f32 %v2263_v32, %v2260_v55  ;;  %v2305_v12 = vadd.f32 %v2304_v8, %v2301_v50  ;;  %v4677_v39 = vld [vmem:[#allocation4 + $0x71] sm:$0xff] }
 0x324   : > { %v6850_v41 = vadd.f32 %v2218_v27, %v2215_v63  ;;  %v2981_v44 = vstv %s6819_s18  ;;  %v2989_v7 = vstv %s6830_s25  ;;  %v2973_v26 = vstv %s6835_s23  ;;  %s6904_s18 = sld [smem:[#allocation7 + $0x25a]] }
 0x325   : > { %2939 = vrot.lane.b32.xlu1 %v2937_v47, %s8045_s16  ;;  %2923 = vrot.lane.b32.xlu2 %v2921_v21, %s8046_s13  ;;  %v3216_v29 = vrot.slane %v3215_v10, 1  ;;  %v6859_v22 = vadd.f32 %v2308_v5, %v2305_v12  ;;  %v2982_v1 = vmul.f32 %v2981_v44, %v6793_v51  ;;  %v2990_v46 = vmul.f32 %v2989_v7, %v6793_v51  ;;  %v3050_v47 = vld [vmem:[#allocation5 + $0x6] sm:$0xff]  ;;  %s6906_s25 = sld [smem:[#allocation7 + $0x262]] }
 0x326   : > { %v2974_v14 = vmul.f32 %v2973_v26, %v6793_v51  ;;  %v3010_v8 = vstv %s4419_s30  ;;  %v3018_v61 = vstv %s4420_s11  ;;  %v3002_v52 = vstv %s4418_s5  ;;  %s6909_s23 = sld [smem:[#allocation7 + $0x26a]] }
 0x327   : > { %v3217_v43 = vadd.f32 %v3216_v29, %v3215_v10  ;;  %v3011_v28 = vmul.f32 %v3010_v8, %v2997_v56  ;;  %v3019_v11 = vmul.f32 %v3018_v61, %v2997_v56  ;;  %v3003_v24 = vmul.f32 %v3002_v52, %v2997_v56  ;;  %s6912_s30 = sld [smem:[#allocation7 + $0x272]] }
 0x328   : > { %v3042_v3 = vstv %s4423_s22  ;;  %v3026_v15 = vstv %s4421_s8  ;;  %v3063_v21 = vstv %s4426_s21  ;;  %v3071_v27 = vstv %s4427_s10  ;;  %s6914_s11 = sld [smem:[#allocation7 + $0x27a]] }
 0x329   : > { %4569 = vpush %v3217_v43  ;;  %v3043_v48 = vmul.f32 %v3042_v3, %v2997_v56  ;;  %v3027_v6 = vmul.f32 %v3026_v15, %v2997_v56  ;;  %v3064_v10 = vmul.f32 %v3063_v21, %v3050_v47  ;;  %v3055_v32 = vstv %s4425_s28  ;;  %s6918_s5 = sld [smem:[#allocation7 + $0x233]] }
 0x32a   : > { %2960 = vrot.lane.b32.xlu0 %v2958_v16, %s8042_s3  ;;  %v3072_v29 = vmul.f32 %v3071_v27, %v3050_v47  ;;  %v3056_v17 = vmul.f32 %v3055_v32, %v3050_v47  ;;  %v2786_v31 = vstv %s4389_s26  ;;  %v3087_v62 = vstv %s4429_s29  ;;  %s6922_s22 = sld [smem:[#allocation7 + $0x243]] }
 0x32b   : > { %v2787_v49 = vmul.f32 %v2786_v31, %v6517_v34  ;;  %v3088_v57 = vmul.f32 %v3087_v62, %v3050_v47  ;;  %v1933_v43 = vstv %s4231_s7  ;;  %v3079_v58 = vstv %s4428_s14  ;;  %v1941_v34 = vld [vmem:[#allocation4 + $0x72] sm:$0xff]  ;;  %s6928_s8 = sld [smem:[#allocation7 + $0x25b]] }
 0x32c   : > { %v1934_v63 = vmul.f32 %v4677_v39, %v1933_v43  ;;  %v3080_v5 = vmul.f32 %v3079_v58, %v3050_v47  ;;  %v1946_v50 = vstv %s4233_s1  ;;  %v3095_v12 = vstv %s4430_s15  ;;  %s6930_s21 = sld [smem:[#allocation7 + $0x263]] }
 0x32d   : > { %2968 = vrot.lane.b32.xlu1 %v2966_v23, %s8043_s19  ;;  %2952 = vrot.lane.b32.xlu2 %v2950_v13, %s8044_s12  ;;  %v1947_v23 = vmul.f32 %v1946_v50, %v1941_v34  ;;  %v1954_v13 = vstv %s4234_s0  ;;  %v3096_v7 = vmul.f32 %v3095_v12, %v3050_v47  ;;  %s6932_s10 = sld [smem:[#allocation7 + $0x26b]]  ;;  %v3134_v21 = vstv %s6891_s4 }
 0x32e   : > { %v1955_v44 = vmul.f32 %v1954_v13, %v1941_v34  ;;  %8047 = sst [smem:[#allocation23_spill]] %s6914_s11  ;;  %v2839_v32 = vstv %s6883_s2  ;;  %v3355_v39 = vstv %s6899_s9  ;;  %v3640_v34 = vstv %s6912_s30 }
 0x32f   : > { %s6934_s28 = sld [smem:[#allocation7 + $0x273]]  ;;  %v3697_v50 = vstv %s6914_s11  ;;  %v3159_v12 = vstv %s6918_s5 }
 0x330   : > { %8048 = sst [smem:[#allocation24_spill]] %s6922_s22 }
 0x331   : > { %8050 = sst [smem:[#allocation25_spill]] %s6928_s8 }
 0x332   : > { %2984 = vrot.lane.b32.xlu0 %v2982_v1, %s8038_s20  ;;  %s6936_s26 = sld [smem:[#allocation7 + $0x27b]] }
 0x333   : > { %s6938_s29 = sld [smem:[#allocation7 + $0x200]] }
 0x334   : > { %v2773_v38 = vpop.permute.xlu1 %2772  ;;  %s6940_s14 = sld [smem:[#allocation7 + $0x234]] }
 0x335   : > { %v2775_v45 = vadd.f32 %v2773_v38, %v6796_v36  ;;  %2992 = vrot.lane.b32.xlu1 %v2990_v46, %s8045_s16  ;;  %2976 = vrot.lane.b32.xlu2 %v2974_v14, %s8046_s13  ;;  %v3034_v36 = vstv %s4422_s17  ;;  %s6920_s17 = sld [smem:[#allocation7 + $0x23b]] }
 0x336   : > { %v3035_v19 = vmul.f32 %v3034_v36, %v2997_v56  ;;  %8051 = sst [smem:[#allocation26_spill]] %s6934_s28  ;;  %s4562_s7 = spop %4561 }
 0x337   : > { %v2783_v33 = vadd.f32 %v2781_v20, %v2775_v45  ;;  %s6942_s1 = sld [smem:[#allocation7 + $0x23c]] }
 0x338   : > { %8052 = sst [smem:[#allocation27_spill]] %s6936_s26 }
 0x339   : > { %v6880_v25 = vadd.f32 %v2787_v49, %v2783_v33  ;;  %8053 = sst [smem:[#allocation28_spill]] %s6938_s29 }
 0x33a   : > { %3013 = vrot.lane.b32.xlu0 %v3011_v28, %s8042_s3  ;;  %s6944_s0 = sld [smem:[#allocation7 + $0x244]] }
 0x33b   : > { %s6946_s15 = sld [smem:[#allocation7 + $0x24c]] }
 0x33c   : > { %s6949_s29 = sld [smem:[#allocation7 + $0x254]] }
 0x33d   : > { %3021 = vrot.lane.b32.xlu1 %v3019_v11, %s8043_s19  ;;  %3005 = vrot.lane.b32.xlu2 %v3003_v24, %s8044_s12  ;;  %8054 = sst [smem:[#allocation29_spill]] %s6942_s1  ;;  %v3131_v24 = vstv %s4562_s7 }
 0x33e   : > { %s6951_s26 = sld [smem:[#allocation7 + $0x25c]]  ;;  %v3132_v47 = vmul.f32 0.015625, %v3131_v24  ;;  %v3181_v24 = vstv %s6940_s14 }
 0x33f   : > { %s6953_s1 = sld [smem:[#allocation7 + $0x264]] }
 0x340   : > { %8055 = sst [smem:[#allocation30_spill]] %s6944_s0 }
 0x341   : > { %8056 = sst [smem:[#allocation31_spill]] %s6946_s15 }
 0x342   : > { %3037 = vrot.lane.b32.xlu0 %v3035_v19, %s8038_s20  ;;  %8057 = sst [smem:[#allocation32_spill]] %s6949_s29 }
 0x343   : > { %s6956_s7 = sld [smem:[#allocation7 + $0x26c]] }
 0x344   : > { %8058 = sst [smem:[#allocation33_spill]] %s6951_s26 }
 0x345   : > { %3045 = vrot.lane.b32.xlu1 %v3043_v48, %s8045_s16  ;;  %3029 = vrot.lane.b32.xlu2 %v3027_v6, %s8046_s13  ;;  %8059 = sst [smem:[#allocation34_spill]] %s6953_s1 }
 0x346   : > { %s6958_s15 = sld [smem:[#allocation7 + $0x274]] }
 0x347   : > { %s6960_s29 = sld [smem:[#allocation7 + $0x27c]] }
 0x348   : > { %s6965_s0 = sld [smem:[#allocation7 + $0x209]] }
 0x349   : > { %v3233_v16 = vpop.xlane.xlu0 %3232  ;;  %s6970_s4 = sld [smem:[#allocation7 + $0x235]] }
 0x34a   : > { %v3234_v54 = vrot.slane %v3233_v16, 4  ;;  %3066 = vrot.lane.b32.xlu0 %v3064_v10, %s8042_s3  ;;  %s6963_s26 = spop %4563  ;;  %s6972_s2 = sld [smem:[#allocation7 + $0x23d]] }
 0x34b   : > { %v3153_v49 = vstv %s6963_s26  ;;  %s7004_s26 = sld [smem:[#allocation7 + $0x265]] }
 0x34c   : > { %v3235_v30 = vadd.f32 %v3234_v54, %v3233_v16  ;;  %8060 = sst [smem:[#allocation35_spill]] %s6958_s15  ;;  %v3135_v16 = vmul.f32 %v3134_v21, %v3132_v47 }
 0x34d   : > { %3074 = vrot.lane.b32.xlu1 %v3072_v29, %s8043_s19  ;;  %3058 = vrot.lane.b32.xlu2 %v3056_v17, %s8044_s12  ;;  %s6897_s19 = sld [smem:[#allocation7 + $0x242]]  ;;  %v2892_v29 = vstv %s6885_s27  ;;  %v2945_v17 = vstv %s6889_s24 }
 0x34e   : > { %v3236_v0 = vrot.slane %v3235_v30, 2  ;;  %8061 = sst [smem:[#allocation36_spill]] %s6960_s29  ;;  %v6979_v43 = vmul.f32 %v2892_v29, %v6715_v59  ;;  %v6982_v58 = vmul.f32 %v2945_v17, %v6793_v51  ;;  %v3590_v29 = vstv %s6956_s7 }
 0x34f   : > { %8062 = sst [smem:[#allocation37_spill]] %s6965_s0  ;;  %v3647_v17 = vstv %s6958_s15 }
 0x350   : > { %v3237_v40 = vadd.f32 %v3236_v0, %v3235_v30  ;;  %v2840_v0 = vmul.f32 %v2839_v32, %v6640_v35  ;;  %s6976_s0 = sld [smem:[#allocation7 + $0x245]] }
 0x351   : > { %s6987_s27 = sld [smem:[#allocation7 + $0x24d]] }
 0x352   : > { %3090 = vrot.lane.b32.xlu0 %v3088_v57, %s8038_s20  ;;  %v3238_v18 = vrot.slane %v3237_v40, 1  ;;  %s6893_s20 = sld [smem:[#allocation7 + $0x232]] }
 0x353   : > { %s6992_s24 = sld [smem:[#allocation7 + $0x255]] }
 0x354   : > { %v3239_v55 = vadd.f32 %v3238_v18, %v3237_v40  ;;  %v3298_v18 = vstv %s6897_s19  ;;  %8067 = sst [smem:[#allocation42_spill]] %s7004_s26 }
 0x355   : > { %1936 = vrot.lane.b32.xlu1 %v1934_v63, %s8042_s3  ;;  %3082 = vrot.lane.b32.xlu2 %v3080_v5, %s8046_s13  ;;  %s6902_s13 = sld [smem:[#allocation7 + $0x252]]  ;;  %v3469_v63 = vstv %s6904_s18  ;;  %v3526_v5 = vstv %s6906_s25 }
 0x356   : > { %4571 = vpush %v3239_v55  ;;  %8063 = sst [smem:[#allocation38_spill]] %s6976_s0  ;;  %v3583_v55 = vstv %s6909_s23 }
 0x357   : > { %8064 = sst [smem:[#allocation39_spill]] %s6987_s27 }
 0x358   : > { %v3137_v30 = vstv %s6893_s20  ;;  %s6997_s20 = spop %4565  ;;  %s8069_s27 = sld [smem:[#allocation28_spill]] }
 0x359   : > { %v3138_v40 = vmul.f32 %v3137_v30, %v3135_v16  ;;  %8065 = sst [smem:[#allocation40_spill]] %s6992_s24 }
 0x35a   : > { %1949 = vrot.lane.b32.xlu0 %v1947_v23, %s8044_s12  ;;  %s6916_s12 = sld [smem:[#allocation7 + $0x1f7]]  ;;  %v3154_v23 = vmul.f32 0.015625, %v3153_v49 }
 0x35b   : > { %v3412_v35 = vstv %s6902_s13  ;;  %s8068_s24 = sld [smem:[#allocation27_spill]] }
 0x35c   : > { %v2794_v1 = vpop.permute.xlu0 %2793  ;;  %s8070_s0 = sld [smem:[#allocation29_spill]] }
 0x35d   : > { %1957 = vrot.lane.b32.xlu1 %v1955_v44, %s8042_s3  ;;  %3098 = vrot.lane.b32.xlu2 %v3096_v7, %s8045_s16  ;;  %s6924_s3 = sld [smem:[#allocation7 + $0x24b]]  ;;  %v2796_v36 = vadd.f32 %v2794_v1, %v6880_v25  ;;  %v3140_v25 = vstv %s6895_s6  ;;  %v3162_v44 = vstv %s6920_s17 }
 0x35e   : > { %s6926_s16 = sld [smem:[#allocation7 + $0x253]]  ;;  %v3141_v7 = vadd.f32 %v3140_v25, %v3138_v40 }
 0x35f   : > { %v3277_v26 = vpop.xlane.xlu1 %3276  ;;  %s6999_s6 = sld [smem:[#allocation7 + $0x25d]] }
 0x360   : > { %v3278_v46 = vrot.slane %v3277_v26, 4  ;;  %v3255_v14 = vpop.xlane.xlu2 %3254  ;;  %v3156_v13 = vstv %s6916_s12  ;;  %s7009_s11 = sld [smem:[#allocation7 + $0x26d]] }
 0x361   : > { %v3256_v38 = vrot.slane %v3255_v14, 4  ;;  %s7014_s12 = sld [smem:[#allocation7 + $0x275]] }
 0x362   : > { %v3279_v45 = vadd.f32 %v3278_v46, %v3277_v26  ;;  %v3301_v26 = vstv %s6922_s22  ;;  %s8072_s5 = sld [smem:[#allocation30_spill]] }
 0x363   : > { %v3257_v56 = vadd.f32 %v3256_v38, %v3255_v14  ;;  %8049 = sst [smem:[#allocation22_spill]] %s6924_s3  ;;  %v3358_v46 = vstv %s6924_s3 }
 0x364   : > { %v2810_v8 = vpop.permute.xlu0 %2809  ;;  %v3280_v20 = vrot.slane %v3279_v45, 2  ;;  %v3415_v14 = vstv %s6926_s16  ;;  %s8073_s17 = sld [smem:[#allocation31_spill]] }
 0x365   : > { %v3258_v33 = vrot.slane %v3257_v56, 2  ;;  %8066 = sst [smem:[#allocation41_spill]] %s6999_s6 }
 0x366   : > { %v3281_v52 = vadd.f32 %v3280_v20, %v3279_v45  ;;  %v3472_v45 = vstv %s6928_s8  ;;  %s8074_s26 = sld [smem:[#allocation32_spill]]  ;;  %s7024_s8 = spop %4567 }
 0x367   : > { %v3259_v61 = vadd.f32 %v3258_v33, %v3257_v56  ;;  %v3529_v56 = vstv %s6930_s21  ;;  %8071 = sst [smem:[#allocation28_spill]] %s7014_s12  ;;  %v3157_v33 = vmul.f32 %v3156_v13, %v3154_v23  ;;  %v3197_v30 = vstv %s7024_s8 }
 0x368   : > { %v2802_v11 = vpop.permute.xlu2 %2801  ;;  %v3282_v3 = vrot.slane %v3281_v52, 1  ;;  %s8075_s22 = sld [smem:[#allocation33_spill]] }
 0x369   : > { %v3260_v19 = vrot.slane %v3259_v61, 1  ;;  %v2804_v15 = vadd.f32 %v2802_v11, %v2796_v36  ;;  %s7019_s3 = sld [smem:[#allocation7 + $0x27d]]  ;;  %v3178_v11 = vstv %s8069_s27  ;;  %v3184_v36 = vstv %s8070_s0 }
 0x36a   : > { %v3283_v6 = vadd.f32 %v3282_v3, %v3281_v52  ;;  %v3700_v52 = vstv %s8068_s24  ;;  %v3362_v47 = vstv %s8073_s17  ;;  %s7030_s24 = sld [smem:[#allocation7 + $0x236]] }
 0x36b   : > { %v3261_v48 = vadd.f32 %v3260_v19, %v3259_v61  ;;  %v2812_v27 = vadd.f32 %v2810_v8, %v2804_v15  ;;  %v3175_v8 = vstv %s6997_s20  ;;  %v3643_v61 = vstv %s6934_s28  ;;  %s7026_s20 = sld [smem:[#allocation7 + $0x212]] }
 0x36c   : > { %v2826_v28 = vpop.permute.xlu0 %2825  ;;  %v3142_v15 = vmax.f32 %v3141_v7, 0.0  ;;  %s8076_s28 = sld [smem:[#allocation37_spill]]  ;;  %v3419_v21 = vstv %s8074_s26 }
 0x36d   : > { %4573 = vpush %v3261_v48  ;;  %v3176_v48 = vmul.f32 0.015625, %v3175_v8  ;;  %s7035_s14 = sld [smem:[#allocation7 + $0x23e]] }
 0x36e   : > { %4575 = vpush %v3283_v6  ;;  %v3305_v6 = vstv %s8072_s5  ;;  %s7040_s27 = sld [smem:[#allocation7 + $0x246]]  ;;  %v7055_v40 = vmul.f32 %v3355_v39, %v3142_v15  ;;  %v7062_v23 = vmul.f32 %v3412_v35, %v3142_v15  ;;  %v7066_v13 = vmul.f32 %v3469_v63, %v3142_v15 }
 0x36f   : > { %v3179_v25 = vmul.f32 %v3178_v11, %v3176_v48  ;;  %s8080_s19 = sld [smem:[#allocation40_spill]]  ;;  %v7083_v63 = vmul.f32 %v3640_v34, %v3142_v15  ;;  %v3594_v48 = vstv %s7009_s11 }
 0x370   : > { %v2847_v31 = vpop.permute.xlu2 %2846  ;;  %s7068_s9 = sld [smem:[#allocation7 + $0x25e]] }
 0x371   : > { %s8081_s15 = sld [smem:[#allocation42_spill]] }
 0x372   : > { %s7079_s13 = sld [smem:[#allocation7 + $0x266]] }
 0x373   : > { %s7090_s18 = sld [smem:[#allocation7 + $0x26e]] }
 0x374   : > { %v2834_v10 = vpop.permute.xlu0 %2833  ;;  %s7095_s25 = sld [smem:[#allocation7 + $0x276]] }
 0x375   : > { %s7098_s23 = sld [smem:[#allocation7 + $0x27e]] }
 0x376   : > { %s7104_s30 = sld [smem:[#allocation7 + $0x21b]] }
 0x377   : > { %v2818_v54 = vpop.permute.xlu1 %2817  ;;  %v3537_v11 = vstv %s8081_s15  ;;  %s7109_s15 = sld [smem:[#allocation7 + $0x237]] }
 0x378   : > { %v2820_v62 = vadd.f32 %v2818_v54, %v2812_v27  ;;  %v2871_v19 = vpop.permute.xlu2 %2870  ;;  %v3533_v27 = vstv %s6953_s1  ;;  %v3160_v54 = vmul.f32 %v3159_v12, %v3157_v33  ;;  %s7045_s1 = spop %4569  ;;  %v7072_v12 = vmul.f32 %v3526_v5, %v3142_v15  ;;  %s7128_s0 = sld [smem:[#allocation7 + $0x24f]] }
 0x379   : > { %v3219_v35 = vstv %s7045_s1  ;;  %v3480_v33 = vstv %s6999_s6  ;;  %s7140_s8 = sld [smem:[#allocation7 + $0x257]] }
 0x37a   : > { %v2828_v57 = vadd.f32 %v2826_v28, %v2820_v62  ;;  %v3586_v28 = vstv %s6932_s10  ;;  %v3200_v62 = vstv %s8076_s28  ;;  %s7058_s28 = sld [smem:[#allocation7 + $0x256]]  ;;  %v3163_v7 = vadd.f32 %v3162_v44, %v3160_v54 }
 0x37b   : > { %v3423_v44 = vstv %s8080_s19  ;;  %v3708_v54 = vstv %s7019_s3  ;;  %s7145_s16 = sld [smem:[#allocation7 + $0x25f]] }
 0x37c   : > { %v2836_v59 = vadd.f32 %v2834_v10, %v2828_v57  ;;  %v2855_v51 = vpop.permute.xlu0 %2854  ;;  %v3476_v10 = vstv %s8075_s22  ;;  %s7047_s22 = sld [smem:[#allocation7 + $0x24e]]  ;;  %v7051_v57 = vmul.f32 %v3298_v18, %v3142_v15  ;;  %v3198_v18 = vmul.f32 0.015625, %v3197_v30 }
 0x37d   : > { %v3225_v30 = vstv %s7030_s24  ;;  %s7151_s21 = sld [smem:[#allocation7 + $0x267]] }
 0x37e   : > { %v2841_v1 = vadd.f32 %v2840_v0, %v2836_v59  ;;  %v3203_v0 = vstv %s6970_s4  ;;  %v3206_v59 = vstv %s6972_s2  ;;  %s8079_s4 = sld [smem:[#allocation39_spill]]  ;;  %v3201_v34 = vmul.f32 %v3200_v62, %v3198_v18 }
 0x37f   : > { %v2863_v38 = vpop.permute.xlu1 %2862  ;;  %v3228_v62 = vstv %s7035_s14  ;;  %s7119_s14 = sld [smem:[#allocation7 + $0x247]] }
 0x380   : > { %v2849_v20 = vadd.f32 %v2847_v31, %v2841_v1  ;;  %v3704_v31 = vstv %s6960_s29  ;;  %s8078_s29 = sld [smem:[#allocation38_spill]]  ;;  %v7076_v1 = vmul.f32 %v3583_v55, %v3142_v15 }
 0x381   : > { %s7157_s10 = sld [smem:[#allocation7 + $0x26f]] }
 0x382   : > { %v2857_v3 = vadd.f32 %v2855_v51, %v2849_v20  ;;  %v3182_v20 = vmul.f32 %v3181_v24, %v3179_v25  ;;  %v3313_v25 = vstv %s7040_s27  ;;  %s7181_s5 = sld [smem:[#allocation7 + $0x238]] }
 0x383   : > { %s7189_s26 = sld [smem:[#allocation7 + $0x240]] }
 0x384   : > { %v2865_v32 = vadd.f32 %v2863_v38, %v2857_v3  ;;  %v2879_v16 = vpop.permute.xlu0 %2878  ;;  %v7087_v38 = vmul.f32 %v3697_v50, %v3142_v15  ;;  %v3366_v55 = vstv %s8079_s4  ;;  %v3220_v50 = vmul.f32 0.015625, %v3219_v35  ;;  %s7201_s6 = sld [smem:[#allocation7 + $0x258]] }
 0x385   : > { %v3164_v15 = vmax.f32 %v3163_v7, 0.0  ;;  %v3204_v7 = vmul.f32 %v3203_v0, %v3201_v34  ;;  %s7225_s4 = sld [smem:[#allocation7 + $0x268]] }
 0x386   : > { %v2873_v49 = vadd.f32 %v2871_v19, %v2865_v32  ;;  %v3309_v8 = vstv %s8078_s29  ;;  %v2900_v19 = vpop.permute.xlu2 %2899  ;;  %v3651_v32 = vstv %s7014_s12  ;;  %s7116_s12 = sld [smem:[#allocation7 + $0x23f]] }
 0x387   : > { %v2887_v51 = vpop.permute.xlu1 %2886  ;;  %v3473_v0 = vmul.f32 %v3472_v45, %v3164_v15  ;;  %v3530_v34 = vmul.f32 %v3529_v56, %v3164_v15  ;;  %s7138_s1 = spop %4571  ;;  %v3207_v45 = vadd.f32 %v3206_v59, %v3204_v7  ;;  %v3655_v56 = vstv %s7095_s25  ;;  %8087 = sst [smem:[#allocation29_spill]] %s7157_s10 }
 0x388   : > { %v2881_v39 = vadd.f32 %v2879_v16, %v2873_v49  ;;  %v3222_v16 = vstv %s7026_s20  ;;  %s7163_s20 = sld [smem:[#allocation7 + $0x277]] }
 0x389   : > { %v3223_v35 = vmul.f32 %v3222_v16, %v3220_v50  ;;  %v3587_v50 = vmul.f32 %v3586_v28, %v3164_v15  ;;  %v3712_v28 = vstv %s7098_s23  ;;  %v3531_v59 = vadd.f32 %v3530_v34, %v7072_v12  ;;  %s7195_s10 = sld [smem:[#allocation7 + $0x250]] }
 0x38a   : > { %v2889_v5 = vadd.f32 %v2887_v51, %v2881_v39  ;;  %v3370_v51 = vstv %s7047_s22  ;;  %s7209_s29 = sld [smem:[#allocation7 + $0x260]] }
 0x38b   : > { %s7234_s11 = sld [smem:[#allocation7 + $0x239]] }
 0x38c   : > { %v2894_v24 = vadd.f32 %v6979_v43, %v2889_v5  ;;  %v2908_v3 = vpop.permute.xlu0 %2907  ;;  %v3185_v43 = vadd.f32 %v3184_v36, %v3182_v20  ;;  %v3484_v5 = vstv %s7068_s9  ;;  %v3302_v36 = vmul.f32 %v3301_v26, %v3164_v15  ;;  %s7240_s22 = sld [smem:[#allocation7 + $0x270]] }
 0x38d   : > { %v3359_v20 = vmul.f32 %v3358_v46, %v3164_v15  ;;  %v3701_v26 = vmul.f32 %v3700_v52, %v3164_v15  ;;  %s7242_s3 = sld [smem:[#allocation7 + $0x241]] }
 0x38e   : > { %v2902_v49 = vadd.f32 %v2900_v19, %v2894_v24  ;;  %v3416_v24 = vmul.f32 %v3415_v14, %v3164_v15  ;;  %v3186_v46 = vmax.f32 %v3185_v43, 0.0  ;;  %v3598_v14 = vstv %s7090_s18  ;;  %8090 = sst [smem:[#allocation30_spill]] %s7163_s20 }
 0x38f   : > { %v2916_v39 = vpop.permute.xlu1 %2915  ;;  %v3360_v18 = vadd.f32 %v3359_v20, %v7055_v40  ;;  %v3474_v43 = vadd.f32 %v3473_v0, %v7066_v13  ;;  %s7174_s20 = sld [smem:[#allocation7 + $0x224]]  ;;  %v3244_v20 = vstv %s7104_s30 }
 0x390   : > { %v2910_v19 = vadd.f32 %v2908_v3, %v2902_v49  ;;  %v3644_v3 = vmul.f32 %v3643_v61, %v3164_v15  ;;  %v3226_v49 = vmul.f32 %v3225_v30, %v3223_v35  ;;  %v3303_v61 = vadd.f32 %v3302_v36, %v7051_v57  ;;  %v2924_v57 = vpop.permute.xlu2 %2923  ;;  %s7191_s30 = sld [smem:[#allocation7 + $0x248]] }
 0x391   : > { %v3417_v52 = vadd.f32 %v3416_v24, %v7062_v23  ;;  %v3241_v15 = vstv %s7138_s1  ;;  %v3588_v30 = vadd.f32 %v3587_v50, %v7076_v1  ;;  %v3702_v23 = vadd.f32 %v3701_v26, %v7087_v38  ;;  %s7170_s1 = sld [smem:[#allocation7 + $0x27f]] }
 0x392   : > { %v2918_v16 = vadd.f32 %v2916_v39, %v2910_v19  ;;  %v3645_v39 = vadd.f32 %v3644_v3, %v7083_v63  ;;  %v3306_v7 = vmul.f32 %v3305_v6, %v3186_v46  ;;  %v3363_v13 = vmul.f32 %v3362_v47, %v3186_v46  ;;  %s7257_s9 = sld [smem:[#allocation7 + $0x249]] }
 0x393   : > { %v3420_v1 = vmul.f32 %v3419_v21, %v3186_v46  ;;  %v3208_v63 = vmax.f32 %v3207_v45, 0.0  ;;  %v3229_v35 = vadd.f32 %v3228_v62, %v3226_v49  ;;  %v3242_v19 = vmul.f32 0.015625, %v3241_v15  ;;  %s7261_s18 = sld [smem:[#allocation7 + $0x282]] }
 0x394   : > { %v2932_v40 = vpop.permute.xlu0 %2931  ;;  %v2926_v12 = vadd.f32 %v2924_v57, %v2918_v16  ;;  %v3477_v38 = vmul.f32 %v3476_v10, %v3186_v46  ;;  %v3534_v6 = vmul.f32 %v3533_v27, %v3186_v46  ;;  %v3307_v24 = vadd.f32 %v3306_v7, %v3303_v61  ;;  %s8099_s25 = sld [smem:[#allocation30_spill]] }
 0x395   : > { %v3591_v0 = vmul.f32 %v3590_v29, %v3186_v46  ;;  %v3648_v21 = vmul.f32 %v3647_v17, %v3186_v46  ;;  %v3705_v62 = vmul.f32 %v3704_v31, %v3186_v46  ;;  %v3364_v34 = vadd.f32 %v3363_v13, %v3360_v18  ;;  %s7265_s23 = sld [smem:[#allocation7 + $0x28a]] }
 0x396   : > { %v2934_v47 = vadd.f32 %v2932_v40, %v2926_v12  ;;  %v3421_v10 = vadd.f32 %v3420_v1, %v3417_v52  ;;  %v3478_v50 = vadd.f32 %v3477_v38, %v3474_v43  ;;  %v3535_v3 = vadd.f32 %v3534_v6, %v3531_v59  ;;  %s7291_s24 = sld [smem:[#allocation7 + $0x261]] }
 0x397   : > { %v2940_v36 = vpop.permute.xlu1 %2939  ;;  %v3310_v29 = vmul.f32 %v3309_v8, %v3208_v63  ;;  %v3230_v17 = vmax.f32 %v3229_v35, 0.0  ;;  %v3245_v31 = vmul.f32 %v3244_v20, %v3242_v19  ;;  %v3592_v18 = vadd.f32 %v3591_v0, %v3588_v30  ;;  %s7308_s17 = sld [smem:[#allocation7 + $0x28d]] }
 0x398   : > { %v2942_v27 = vadd.f32 %v2940_v36, %v2934_v47  ;;  %v3649_v26 = vadd.f32 %v3648_v21, %v3645_v39  ;;  %v3247_v46 = vstv %s7109_s15  ;;  %v3706_v45 = vadd.f32 %v3705_v62, %v3702_v23  ;;  %s7219_s15 = sld [smem:[#allocation7 + $0x22d]] }
 0x399   : > { %v3367_v8 = vmul.f32 %v3366_v55, %v3208_v63  ;;  %v3424_v49 = vmul.f32 %v3423_v44, %v3208_v63  ;;  %v3481_v61 = vmul.f32 %v3480_v33, %v3208_v63  ;;  %v3538_v52 = vmul.f32 %v3537_v11, %v3208_v63  ;;  %s7315_s2 = sld [smem:[#allocation7 + $0x287]] }
 0x39a   : > { %v7199_v16 = vadd.f32 %v6982_v58, %v2942_v27  ;;  %v3595_v58 = vmul.f32 %v3594_v48, %v3208_v63  ;;  %v3652_v15 = vmul.f32 %v3651_v32, %v3208_v63  ;;  %v3709_v43 = vmul.f32 %v3708_v54, %v3208_v63  ;;  %s7320_s7 = sld [smem:[#allocation7 + $0x279]] }
 0x39b   : > { %v3311_v55 = vadd.f32 %v3310_v29, %v3307_v24  ;;  %v3314_v44 = vmul.f32 %v3313_v25, %v3230_v17  ;;  %v3371_v59 = vmul.f32 %v3370_v51, %v3230_v17  ;;  %v3248_v33 = vmul.f32 %v3247_v46, %v3245_v31 }
 0x39c   : > { %v8096_v30 = vstv %s7058_s28  ;;  %v3485_v48 = vmul.f32 %v3484_v5, %v3230_v17  ;;  %v8097_v39 = vstv %s7079_s13  ;;  %v3250_v57 = vstv %s7116_s12  ;;  %s7246_s12 = sld [smem:[#allocation7 + $0x278]] }
 0x39d   : > { %v3428_v11 = vmul.f32 %v8096_v30, %v3230_v17  ;;  %v3542_v32 = vmul.f32 %v8097_v39, %v3230_v17  ;;  %v3368_v54 = vadd.f32 %v3367_v8, %v3364_v34  ;;  %v3425_v40 = vadd.f32 %v3424_v49, %v3421_v10  ;;  %s7250_s28 = sld [smem:[#allocation7 + $0x280]] }
 0x39e   : > { %v3599_v23 = vmul.f32 %v3598_v14, %v3230_v17  ;;  %v3656_v25 = vmul.f32 %v3655_v56, %v3230_v17  ;;  %v3482_v51 = vadd.f32 %v3481_v61, %v3478_v50  ;;  %v3539_v7 = vadd.f32 %v3538_v52, %v3535_v3  ;;  %s4574_s27 = spop %4573  ;;  %s8098_s13 = sld [smem:[#allocation29_spill]] }
 0x39f   : > { %v3596_v13 = vadd.f32 %v3595_v58, %v3592_v18  ;;  %v3653_v12 = vadd.f32 %v3652_v15, %v3649_v26  ;;  %v3710_v5 = vadd.f32 %v3709_v43, %v3706_v45  ;;  %v3315_v1 = vadd.f32 %v3314_v44, %v3311_v55  ;;  %s4576_s19 = spop %4575 }
 0x3a0   : > { %v3713_v63 = vmul.f32 %v3712_v28, %v3230_v17  ;;  %v3251_v35 = vadd.f32 %v3250_v57, %v3248_v33  ;;  %v3372_v14 = vadd.f32 %v3371_v59, %v3368_v54  ;;  %v3429_v56 = vadd.f32 %v3428_v11, %v3425_v40  ;;  %v2953_v54 = vpop.permute.xlu2 %2952 }
 0x3a1   : > { %v3486_v19 = vadd.f32 %v3485_v48, %v3482_v51  ;;  %v7248_v36 = vadd.f32 %v3542_v32, %v3539_v7  ;;  %v7252_v38 = vadd.f32 %v3599_v23, %v3596_v13  ;;  %v7254_v6 = vadd.f32 %v3656_v25, %v3653_v12 }
 0x3a2   : > { %v3263_v28 = vstv %s4574_s27  ;;  %v3266_v20 = vstv %s7174_s20  ;;  %v3317_v47 = vstv %s7119_s14  ;;  %v3285_v0 = vstv %s4576_s19  ;;  %s7270_s14 = sld [smem:[#allocation7 + $0x251]] }
 0x3a3   : > { %v3264_v24 = vmul.f32 0.015625, %v3263_v28  ;;  %v3288_v21 = vstv %s7219_s15  ;;  %v3252_v62 = vmax.f32 %v3251_v35, 0.0  ;;  %v3374_v34 = vstv %s7128_s0  ;;  %s7275_s20 = sld [smem:[#allocation7 + $0x283]] }
 0x3a4   : > { %v3269_v10 = vstv %s7181_s5  ;;  %v3286_v50 = vmul.f32 0.015625, %v3285_v0  ;;  %v3431_v27 = vstv %s7140_s8  ;;  %v3488_v3 = vstv %s7145_s16  ;;  %s7280_s0 = sld [smem:[#allocation7 + $0x28b]] }
 0x3a5   : > { %v3267_v29 = vmul.f32 %v3266_v20, %v3264_v24  ;;  %v3291_v17 = vstv %s7234_s11  ;;  %v3545_v31 = vstv %s7151_s21  ;;  %v3602_v18 = vstv %s8098_s13  ;;  %s7282_s8 = sld [smem:[#allocation7 + $0x259]] }
 0x3a6   : > { %v3272_v26 = vstv %s7189_s26  ;;  %v3289_v46 = vmul.f32 %v3288_v21, %v3286_v50  ;;  %v3659_v45 = vstv %s8099_s25  ;;  %v3716_v8 = vstv %s7170_s1  ;;  %s7285_s16 = sld [smem:[#allocation7 + $0x284]] }
 0x3a7   : > { %v3270_v49 = vmul.f32 %v3269_v10, %v3267_v29  ;;  %v3294_v61 = vstv %s7242_s3  ;;  %v3318_v52 = vmul.f32 %v3317_v47, %v3252_v62  ;;  %v3375_v58 = vmul.f32 %v3374_v34, %v3252_v62  ;;  %s7288_s21 = sld [smem:[#allocation7 + $0x28c]] }
 0x3a8   : > { %v3432_v15 = vmul.f32 %v3431_v27, %v3252_v62  ;;  %v3292_v43 = vmul.f32 %v3291_v17, %v3289_v46  ;;  %v3714_v55 = vadd.f32 %v3713_v63, %v3710_v5  ;;  %v3489_v44 = vmul.f32 %v3488_v3, %v3252_v62  ;;  %s7294_s1 = sld [smem:[#allocation7 + $0x269]] }
 0x3a9   : > { %v3273_v59 = vadd.f32 %v3272_v26, %v3270_v49  ;;  %v3321_v33 = vstv %s7191_s30  ;;  %v3546_v30 = vmul.f32 %v3545_v31, %v3252_v62  ;;  %v3603_v11 = vmul.f32 %v3602_v18, %v3252_v62  ;;  %s7297_s5 = sld [smem:[#allocation7 + $0x285]] }
 0x3aa   : > { %v3378_v48 = vstv %s7195_s10  ;;  %v3295_v39 = vadd.f32 %v3294_v61, %v3292_v43  ;;  %v3660_v32 = vmul.f32 %v3659_v45, %v3252_v62  ;;  %v3717_v57 = vmul.f32 %v3716_v8, %v3252_v62  ;;  %s7303_s26 = sld [smem:[#allocation7 + $0x271]]  ;;  %v7331_v61 = vpop.permute.xlu2 %2976  ;;  %v2961_v43 = vpop.permute.xlu0 %2960 }
 0x3ab   : > { %v3274_v40 = vmax.f32 %v3273_v59, 0.0  ;;  %v3435_v23 = vstv %s7201_s6  ;;  %v3319_v25 = vadd.f32 %v3318_v52, %v3315_v1  ;;  %v3376_v51 = vadd.f32 %v3375_v58, %v3372_v14  ;;  %s7311_s30 = sld [smem:[#allocation7 + $0x286]] }
 0x3ac   : > { %v3433_v7 = vadd.f32 %v3432_v15, %v3429_v56  ;;  %v3492_v13 = vstv %s7209_s29  ;;  %v3490_v12 = vadd.f32 %v3489_v44, %v3486_v19  ;;  %v3549_v35 = vstv %s7225_s4  ;;  %s7325_s10 = sld [smem:[#allocation7 + $0x28e]] }
 0x3ad   : > { %v3322_v5 = vmul.f32 %v3321_v33, %v3274_v40  ;;  %v3379_v63 = vmul.f32 %v3378_v48, %v3274_v40  ;;  %v3547_v28 = vadd.f32 %v3546_v30, %v7248_v36  ;;  %v3436_v20 = vmul.f32 %v3435_v23, %v3274_v40  ;;  %s7329_s6 = sld [smem:[#allocation7 + $0x28f]] }
 0x3ae   : > { %v3606_v47 = vstv %s7240_s22  ;;  %v7301_v1 = vmax.f32 %v3295_v39, 0.0  ;;  %v3604_v14 = vadd.f32 %v3603_v11, %v7252_v38  ;;  %v3661_v56 = vadd.f32 %v3660_v32, %v7254_v6  ;;  %s7334_s29 = sld [smem:[#allocation7 + $0x288]] }
 0x3af   : > { %v3493_v19 = vmul.f32 %v3492_v13, %v3274_v40  ;;  %v3325_v24 = vstv %s7257_s9  ;;  %v3718_v0 = vadd.f32 %v3717_v57, %v3714_v55  ;;  %v3323_v36 = vadd.f32 %v3322_v5, %v3319_v25  ;;  %s7339_s15 = sld [smem:[#allocation7 + $0x281]] }
 0x3b0   : > { %v3550_v21 = vmul.f32 %v3549_v35, %v3274_v40  ;;  %v3663_v62 = vstv %s7246_s12  ;;  %v3380_v34 = vadd.f32 %v3379_v63, %v3376_v51  ;;  %v3607_v10 = vmul.f32 %v3606_v47, %v3274_v40  ;;  %s7343_s4 = sld [smem:[#allocation7 + $0x290]] }
 0x3b1   : > { %v3720_v50 = vstv %s7250_s28  ;;  %v3382_v38 = vstv %s7270_s14  ;;  %v3437_v6 = vadd.f32 %v3436_v20, %v3433_v7  ;;  %v3326_v27 = vmul.f32 %v3325_v24, %v7301_v1  ;;  %s7347_s11 = sld [smem:[#allocation7 + $0x289]] }
 0x3b2   : > { %v3329_v3 = vstv %s7261_s18  ;;  %v3439_v29 = vstv %s7282_s8  ;;  %v2955_v17 = vadd.f32 %v2953_v54, %v7199_v16  ;;  %v3494_v31 = vadd.f32 %v3493_v19, %v3490_v12  ;;  %s7353_s22 = sld [smem:[#allocation7 + $0x291]] }
 0x3b3   : > { %v3383_v18 = vmul.f32 %v3382_v38, %v7301_v1  ;;  %v3496_v26 = vstv %s7291_s24  ;;  %v3551_v46 = vadd.f32 %v3550_v21, %v3547_v28  ;;  %v3327_v45 = vadd.f32 %v3326_v27, %v3323_v36  ;;  %s7358_s3 = sld [smem:[#allocation7 + $0x124]] }
 0x3b4   : > { %v3440_v8 = vmul.f32 %v3439_v29, %v7301_v1  ;;  %v3553_v49 = vstv %s7294_s1  ;;  %v3608_v52 = vadd.f32 %v3607_v10, %v3604_v14  ;;  %v3664_v16 = vmul.f32 %v3663_v62, %v3274_v40  ;;  %v2969_v29 = vpop.permute.xlu1 %2968  ;;  %s7370_s12 = sld [smem:[#allocation7 + $0x177]] }
 0x3b5   : > { %v3384_v58 = vadd.f32 %v3383_v18, %v3380_v34  ;;  %v3497_v15 = vmul.f32 %v3496_v26, %v7301_v1  ;;  %v3386_v55 = vstv %s7275_s20  ;;  %v3554_v59 = vmul.f32 %v3553_v49, %v7301_v1  ;;  %s7372_s27 = sld [smem:[#allocation7 + $0x12b]] }
 0x3b6   : > { %v3441_v44 = vadd.f32 %v3440_v8, %v3437_v6  ;;  %v3610_v33 = vstv %s7303_s26  ;;  %v3721_v30 = vmul.f32 %v3720_v50, %v3274_v40  ;;  %v3443_v11 = vstv %s7285_s16  ;;  %s7374_s28 = sld [smem:[#allocation7 + $0x181]] }
 0x3b7   : > { %v3498_v48 = vadd.f32 %v3497_v15, %v3494_v31  ;;  %v3611_v39 = vmul.f32 %v3610_v33, %v7301_v1  ;;  %v3330_v32 = vmul.f32 %v3329_v3, %v3327_v45  ;;  %v3332_v57 = vstv %s7265_s23  ;;  %v2985_v45 = vpop.permute.xlu0 %2984  ;;  %s7376_s19 = sld [smem:[#allocation7 + $0x189]] }
 0x3b8   : > { %v3500_v54 = vstv %s7297_s5  ;;  %v3555_v23 = vadd.f32 %v3554_v59, %v3551_v46  ;;  %v3665_v25 = vadd.f32 %v3664_v16, %v3661_v56  ;;  %v3387_v51 = vmul.f32 %v3386_v55, %v3384_v58  ;;  %s7378_s9 = sld [smem:[#allocation7 + $0x191]] }
 0x3b9   : > { %v3557_v7 = vstv %s7311_s30  ;;  %v3612_v40 = vadd.f32 %v3611_v39, %v3608_v52  ;;  %v3389_v13 = vstv %s7280_s0  ;;  %v3444_v12 = vmul.f32 %v3443_v11, %v3441_v44  ;;  %s7380_s13 = sld [smem:[#allocation7 + $0x1ca]] }
 0x3ba   : > { %v3614_v5 = vstv %s7315_s2  ;;  %v3667_v63 = vstv %s7320_s7  ;;  %v2963_v35 = vadd.f32 %v2961_v43, %v2955_v17  ;;  %v3722_v28 = vadd.f32 %v3721_v30, %v3718_v0  ;;  %v3006_v17 = vpop.permute.xlu2 %3005  ;;  %s7382_s18 = sld [smem:[#allocation7 + $0x1d2]] }
 0x3bb   : > { %v3446_v20 = vstv %s7288_s21  ;;  %v3501_v47 = vmul.f32 %v3500_v54, %v3498_v48  ;;  %v3333_v14 = vadd.f32 %v3332_v57, %v3330_v32  ;;  %v3503_v56 = vstv %s7308_s17  ;;  %s7384_s25 = sld [smem:[#allocation7 + $0x1da]] }
 0x3bc   : > { %v3558_v19 = vmul.f32 %v3557_v7, %v3555_v23  ;;  %v3668_v24 = vmul.f32 %v3667_v63, %v7301_v1  ;;  %v3390_v36 = vadd.f32 %v3389_v13, %v3387_v51  ;;  %v3560_v21 = vstv %s7325_s10  ;;  %8100 = sst [smem:[#allocation31_spill]] %s7374_s28  ;;  %v2993_v51 = vpop.permute.xlu1 %2992 }
 0x3bd   : > { %v3615_v62 = vmul.f32 %v3614_v5, %v3612_v40  ;;  %v3671_v34 = vstv %s7334_s29  ;;  %v3447_v10 = vadd.f32 %v3446_v20, %v3444_v12  ;;  %v3617_v50 = vstv %s7329_s6  ;;  %v4678_v40 = vld [vmem:[#allocation5 + $0x5] sm:$0xff]  ;;  %s7386_s23 = sld [smem:[#allocation7 + $0x1e2]] }
 0x3be   : > { %v3669_v38 = vadd.f32 %v3668_v24, %v3665_v25  ;;  %v3724_v6 = vstv %s7339_s15  ;;  %v3504_v0 = vadd.f32 %v3503_v56, %v3501_v47  ;;  %v3674_v27 = vstv %s7343_s4  ;;  %8101 = sst [smem:[#allocation32_spill]] %s7378_s9 }
 0x3bf   : > { %v3725_v3 = vmul.f32 %v3724_v6, %v7301_v1  ;;  %v3334_v31 = vmax.f32 %v3333_v14, 0.0  ;;  %v3561_v18 = vadd.f32 %v3560_v21, %v3558_v19  ;;  %v3728_v46 = vstv %s7347_s11  ;;  %v3014_v5 = vpop.permute.xlu0 %3013  ;;  %s7388_s14 = sld [smem:[#allocation7 + $0x199]] }
 0x3c0   : > { %v3672_v26 = vmul.f32 %v3671_v34, %v3669_v38  ;;  %v3391_v8 = vmax.f32 %v3390_v36, 0.0  ;;  %v3618_v49 = vadd.f32 %v3617_v50, %v3615_v62  ;;  %v2971_v16 = vadd.f32 %v2969_v29, %v2963_v35  ;;  %8102 = sst [smem:[#allocation37_spill]] %s7382_s18 }
 0x3c1   : > { %v3726_v52 = vadd.f32 %v3725_v3, %v3722_v28  ;;  %v3448_v58 = vmax.f32 %v3447_v10, 0.0  ;;  %v3731_v43 = vstv %s7353_s22  ;;  %v3505_v55 = vmax.f32 %v3504_v0, 0.0  ;;  %8103 = sst [smem:[#allocation23_spill]] %s7384_s25 }
 0x3c2   : > { %v3675_v15 = vadd.f32 %v3674_v27, %v3672_v26  ;;  %v2979_v59 = vadd.f32 %v7331_v61, %v2971_v16  ;;  %v4466_v1 = vmul.f32 -1.442695, %v3334_v31  ;;  %v3562_v33 = vmax.f32 %v3561_v18, 0.0  ;;  %v3030_v7 = vpop.permute.xlu2 %3029  ;;  %s7390_s20 = sld [smem:[#allocation7 + $0x1cb]]  ;;  %v4679_v16 = vld [vmem:[#allocation5 + $0x6] sm:$0xff] }
 0x3c3   : > { %v3729_v44 = vmul.f32 %v3728_v46, %v3726_v52  ;;  %v2998_v30 = vstv %s7358_s3  ;;  %v4477_v11 = vmul.f32 -1.442695, %v3391_v8  ;;  %v3619_v48 = vmax.f32 %v3618_v49, 0.0  ;;  %8104 = sst [smem:[#allocation38_spill]] %s7386_s23 }
 0x3c4   : > { %v2987_v32 = vadd.f32 %v2985_v45, %v2979_v59  ;;  %v4488_v57 = vmul.f32 -1.442695, %v3448_v58  ;;  %v3676_v54 = vmax.f32 %v3675_v15, 0.0  ;;  %v4499_v23 = vmul.f32 -1.442695, %v3505_v55  ;;  %v3022_v24 = vpop.permute.xlu1 %3021  ;;  %s7392_s0 = sld [smem:[#allocation7 + $0x1d3]] }
 0x3c5   : > { %v3732_v39 = vadd.f32 %v3731_v43, %v3729_v44  ;;  %4628 = vpow2.f32 %v4466_v1  ;;  %v4510_v61 = vmul.f32 -1.442695, %v3562_v33  ;;  %v2999_v13 = vmul.f32 %v4678_v40, %v2998_v30  ;;  %s7394_s8 = sld [smem:[#allocation7 + $0x1db]] }
 0x3c6   : > { %v2995_v12 = vadd.f32 %v2993_v51, %v2987_v32  ;;  %4630 = vpow2.f32 %v4477_v11  ;;  %v4521_v63 = vmul.f32 -1.442695, %v3619_v48  ;;  %v4532_v35 = vmul.f32 -1.442695, %v3676_v54  ;;  %s7398_s16 = sld [smem:[#allocation7 + $0x1e3]] }
 0x3c7   : > { %v3733_v25 = vmax.f32 %v3732_v39, 0.0  ;;  %4632 = vpow2.f32 %v4488_v57  ;;  %v3038_v62 = vpop.permute.xlu0 %3037  ;;  %s7402_s21 = sld [smem:[#allocation7 + $0x1a1]]  ;;  %v3051_v46 = vstv %s7372_s27 }
 0x3c8   : > { %v3000_v28 = vadd.f32 %v2999_v13, %v2995_v12  ;;  %4634 = vpow2.f32 %v4499_v23  ;;  %s7406_s24 = sld [smem:[#allocation7 + $0x1cc]]  ;;  %v3052_v58 = vmul.f32 %v4679_v16, %v3051_v46  ;;  %v1962_v46 = vstv %s7374_s28 }
 0x3c9   : > { %v4543_v20 = vmul.f32 -1.442695, %v3733_v25  ;;  %4636 = vpow2.f32 %v4510_v61  ;;  %s7410_s1 = sld [smem:[#allocation7 + $0x1d4]]  ;;  %v1996_v16 = vstv %s7378_s9 }
 0x3ca   : > { %v3008_v47 = vadd.f32 %v3006_v17, %v3000_v28  ;;  %4638 = vpow2.f32 %v4521_v63  ;;  %8105 = sst [smem:[#allocation39_spill]] %s7392_s0  ;;  %v3059_v50 = vpop.permute.xlu2 %3058 }
 0x3cb   : > { %v4629_v14 = vpop.eup %4628  ;;  %4640 = vpow2.f32 %v4532_v35  ;;  %8106 = sst [smem:[#allocation40_spill]] %s7394_s8  ;;  %v1942_v35 = vstv %s7370_s12 }
 0x3cc   : > { %v3016_v56 = vadd.f32 %v3014_v5, %v3008_v47  ;;  %v4631_v19 = vpop.eup %4630  ;;  %4642 = vpow2.f32 %v4543_v20  ;;  %v7396_v10 = vadd.f32 1.0, %v4629_v14  ;;  %8107 = sst [smem:[#allocation24_spill]] %s7398_s16  ;;  %v3046_v49 = vpop.permute.xlu1 %3045 }
 0x3cd   : > { %v4633_v36 = vpop.eup %4632  ;;  %v7400_v6 = vadd.f32 1.0, %v4631_v19  ;;  %s7416_s5 = sld [smem:[#allocation7 + $0x1dc]] }
 0x3ce   : > { %v3024_v21 = vadd.f32 %v3022_v24, %v3016_v56  ;;  %v4635_v34 = vpop.eup %4634  ;;  %v7404_v3 = vadd.f32 1.0, %v4633_v36  ;;  %8108 = sst [smem:[#allocation22_spill]] %s7406_s24  ;;  %4644 = vrcp.f32 %v7396_v10  ;;  %vm3344_vm9 = vweird.f32 %v7396_v10 }
 0x3cf   : > { %v4637_v38 = vpop.eup %4636  ;;  %v7408_v17 = vadd.f32 1.0, %v4635_v34  ;;  %8109 = sst [smem:[#allocation25_spill]] %s7410_s1  ;;  %4646 = vrcp.f32 %v7400_v6  ;;  %v3067_v43 = vpop.permute.xlu0 %3066  ;;  %vm3401_vm10 = vweird.f32 %v7400_v6 }
 0x3d0   : > { %v3032_v0 = vadd.f32 %v3030_v7, %v3024_v21  ;;  %v4639_v27 = vpop.eup %4638  ;;  %v7413_v26 = vadd.f32 1.0, %v4637_v38  ;;  %s7421_s26 = sld [smem:[#allocation7 + $0x1e4]]  ;;  %4648 = vrcp.f32 %v7404_v3  ;;  %vm3458_vm3 = vweird.f32 %v7404_v3 }
 0x3d1   : > { %v4641_v29 = vpop.eup %4640  ;;  %v7419_v45 = vadd.f32 1.0, %v4639_v27  ;;  %s7426_s17 = sld [smem:[#allocation7 + $0x1a9]]  ;;  %4650 = vrcp.f32 %v7408_v17  ;;  %vm3515_vm5 = vweird.f32 %v7408_v17 }
 0x3d2   : > { %v3040_v31 = vadd.f32 %v3038_v62, %v3032_v0  ;;  %v4643_v18 = vpop.eup %4642  ;;  %v7424_v8 = vadd.f32 1.0, %v4641_v29  ;;  %s7431_s30 = sld [smem:[#allocation7 + $0x1cd]]  ;;  %4652 = vrcp.f32 %v7413_v26  ;;  %v3083_v59 = vpop.permute.xlu2 %3082  ;;  %v4680_v62 = vld [vmem:[#allocation4 + $0x72] sm:$0xff] }
 0x3d3   : > { %v7429_v52 = vadd.f32 1.0, %v4643_v18  ;;  %s7434_s2 = sld [smem:[#allocation7 + $0x1d5]]  ;;  %4654 = vrcp.f32 %v7419_v45  ;;  %v1943_v34 = vmul.f32 %v4680_v62, %v1942_v35 }
 0x3d4   : > { %v3048_v15 = vadd.f32 %v3046_v49, %v3040_v31  ;;  %s7437_s7 = sld [smem:[#allocation7 + $0x1dd]]  ;;  %v7439_v44 = vpop.eup %4644  ;;  %4656 = vrcp.f32 %v7424_v8  ;;  %v3075_v32 = vpop.permute.xlu1 %3074 }
 0x3d5   : > { %s7442_s10 = sld [smem:[#allocation7 + $0x1e5]]  ;;  %v7444_v1 = vpop.eup %4646  ;;  %4658 = vrcp.f32 %v7429_v52  ;;  %v7475_v61 = vmul.f32 %v7439_v44, %v7396_v10  ;;  %vm3345_vm8 = vweird.f32 %v7439_v44 }
 0x3d6   : > { %8110 = sst [smem:[#allocation26_spill]] %s7421_s26  ;;  %v3053_v55 = vadd.f32 %v3052_v58, %v3048_v15  ;;  %v7449_v30 = vpop.eup %4648  ;;  %v7479_v40 = vmul.f32 %v7444_v1, %v7400_v6  ;;  %v2000_v58 = vstv %s7380_s13  ;;  %v3350_v15 = vand.u32 2147483648, %v7396_v10  ;;  %vm7615_vm13 = vmor %vm3344_vm9, %vm3345_vm8 }
 0x3d7   : > { %s7447_s6 = sld [smem:[#allocation7 + $0x1b1]]  ;;  %v7453_v11 = vpop.eup %4650  ;;  %v3091_v25 = vpop.permute.xlu0 %3090  ;;  %v7483_v13 = vmul.f32 %v7449_v30, %v7404_v3  ;;  %v3341_v19 = vsub.f32 1.0, %v7475_v61  ;;  %vm3402_vm12 = vweird.f32 %v7444_v1  ;;  %vm3459_vm14 = vweird.f32 %v7449_v30 }
 0x3d8   : > { %v3061_v33 = vadd.f32 %v3059_v50, %v3053_v55  ;;  %s7451_s29 = sld [smem:[#allocation7 + $0x1ce]]  ;;  %v7457_v39 = vpop.eup %4652  ;;  %v7489_v12 = vmul.f32 %v7453_v11, %v7408_v17  ;;  %v3398_v24 = vsub.f32 1.0, %v7479_v40  ;;  %vm7630_vm1 = vmor %vm3401_vm10, %vm3402_vm12  ;;  %vm3516_vm2 = vweird.f32 %v7453_v11 }
 0x3d9   : > { %s7455_s15 = sld [smem:[#allocation7 + $0x1d6]]  ;;  %v7461_v57 = vpop.eup %4654  ;;  %v7493_v5 = vmul.f32 %v7457_v39, %v7413_v26  ;;  %v3455_v36 = vsub.f32 1.0, %v7483_v13  ;;  %v3342_v35 = vmul.f32 %v7439_v44, %v3341_v19  ;;  %v3405_v13 = vand.u32 2147483647, %v7400_v6  ;;  %vm7643_vm4 = vmor %vm3458_vm3, %vm3459_vm14 }
 0x3da   : > { %v3069_v48 = vadd.f32 %v3067_v43, %v3061_v33  ;;  %s7459_s4 = sld [smem:[#allocation7 + $0x1de]]  ;;  %v7465_v23 = vpop.eup %4656  ;;  %v7500_v28 = vmul.f32 %v7461_v57, %v7419_v45  ;;  %v3099_v14 = vpop.permute.xlu2 %3098  ;;  %v3512_v50 = vsub.f32 1.0, %v7489_v12  ;;  %vm3517_vm7 = vmor %vm3515_vm5, %vm3516_vm2  ;;  %vm3573_vm12 = vweird.f32 %v7457_v39 }
 0x3db   : > { %s7463_s11 = sld [smem:[#allocation7 + $0x1e6]]  ;;  %v7469_v51 = vpop.eup %4658  ;;  %v7504_v20 = vmul.f32 %v7465_v23, %v7424_v8  ;;  %v3569_v38 = vsub.f32 1.0, %v7493_v5  ;;  %vm3406_vm6 = vcmp.eq.f32.partialorder %v3405_v13, 8.507059e+37  ;;  %vm3629_vm14 = vweird.f32 %v7419_v45 }
 0x3dc   : > { %v3077_v54 = vadd.f32 %v3075_v32, %v3069_v48  ;;  %s7467_s22 = sld [smem:[#allocation7 + $0x1b9]]  ;;  %v7508_v47 = vmul.f32 %v7469_v51, %v7429_v52  ;;  %v1937_v21 = vpop.permute.xlu1 %1936  ;;  %v3626_v29 = vsub.f32 1.0, %v7500_v28  ;;  %v3513_v40 = vmul.f32 %v7453_v11, %v3512_v50 }
 0x3dd   : > { %s7471_s3 = sld [smem:[#allocation7 + $0x1cf]]  ;;  %v1939_v27 = vadd.f32 %v1937_v21, %v6320_v53  ;;  %v3683_v31 = vsub.f32 1.0, %v7504_v20  ;;  %v1965_v53 = vstv %s7376_s19  ;;  %v3351_v50 = vor.u32 1.1754944e-38, %v3350_v15 }
 0x3de   : > { %v3085_v7 = vadd.f32 %v3083_v59, %v3077_v54  ;;  %s7485_s27 = sld [smem:[#allocation7 + $0x1d7]]  ;;  %v3740_v18 = vsub.f32 1.0, %v7508_v47  ;;  %v2041_v59 = vstv %s7388_s14  ;;  %v3462_v15 = vand.u32 2147483647, %v7404_v3 }
 0x3df   : > { %s7517_s12 = sld [smem:[#allocation7 + $0x1d0]]  ;;  %v1944_v49 = vadd.f32 %v1943_v34, %v1939_v27  ;;  %v1950_v21 = vpop.permute.xlu0 %1949  ;;  %v2176_v27 = vstv %s7447_s6  ;;  %v3343_v34 = vadd.f32 %v7439_v44, %v3342_v35  ;;  %v3514_v32 = vadd.f32 %v7453_v11, %v3513_v40 }
 0x3e0   : > { %v3093_v63 = vadd.f32 %v3091_v25, %v3085_v7  ;;  %s7538_s28 = sld [smem:[#allocation7 + $0x1c9]]  ;;  %v2086_v25 = vstv %s7402_s21  ;;  %v3348_v7 = vand.u32 2147483647, %v7396_v10  ;;  %v3519_v40 = vand.u32 2147483647, %v7408_v17 }
 0x3e1   : > { %s7544_s9 = sld [smem:[#allocation7 + $0x1d1]]  ;;  %v7573_v61 = vadd.f32 %v1950_v21, %v1944_v49  ;;  %v3399_v49 = vmul.f32 %v7444_v1, %v3398_v24  ;;  %v3347_v19 = vsel %vm7615_vm13, %v7439_v44, %v3343_v34  ;;  %vm3463_vm8 = vcmp.eq.f32.partialorder %v3462_v15, 8.507059e+37 }
 0x3e2   : > { %8111 = sst [smem:[#allocation27_spill]] %s7467_s22  ;;  %v3101_v56 = vadd.f32 %v3099_v14, %v3093_v63  ;;  %v2131_v14 = vstv %s7426_s17  ;;  %vm7604_vm11 = vcmp.eq.f32.partialorder %v3348_v7, 8.507059e+37  ;;  %v3407_v7 = vand.u32 2147483648, %v7400_v6 }
 0x3e3   : > { %8112 = sst [smem:[#allocation33_spill]] %s7471_s3  ;;  %v3400_v35 = vadd.f32 %v7444_v1, %v3399_v49  ;;  %v3521_v6 = vand.u32 2147483648, %v7408_v17  ;;  %v3518_v5 = vsel %vm3517_vm7, %v7453_v11, %v3514_v32  ;;  %vm3520_vm10 = vcmp.eq.f32.partialorder %v3519_v40, 8.507059e+37 }
 0x3e4   : > { %8113 = sst [smem:[#allocation34_spill]] %s7485_s27  ;;  %v4431_v0 = vmul.f32 -1.442695, %v3101_v56  ;;  %v3456_v56 = vmul.f32 %v7449_v30, %v3455_v36  ;;  %v3408_v34 = vor.u32 1.1754944e-38, %v3407_v7  ;;  %v3741_v11 = vmul.f32 %v7469_v51, %v3740_v18  ;;  %v1958_v28 = vpop.permute.xlu1 %1957 }
 0x3e5   : > { %s7496_s3 = sld [smem:[#allocation7 + $0x1df]]  ;;  %v3576_v32 = vand.u32 2147483647, %v7413_v26  ;;  %v3578_v20 = vand.u32 2147483648, %v7413_v26  ;;  %vm3687_vm3 = vweird.f32 %v7465_v23  ;;  %v3635_v7 = vand.u32 2147483648, %v7419_v45 }
 0x3e6   : > { %s7510_s27 = sld [smem:[#allocation7 + $0x1e7]]  ;;  %4660 = vpow2.f32 %v4431_v0  ;;  %v2311_v21 = vstv %s7538_s28  ;;  %v3457_v48 = vadd.f32 %v7449_v30, %v3456_v56  ;;  %v3464_v0 = vand.u32 2147483648, %v7404_v3 }
 0x3e7   : > { %s7512_s22 = sld [smem:[#allocation7 + $0x1c1]]  ;;  %v3404_v56 = vsel %vm7630_vm1, %v7444_v1, %v3400_v35  ;;  %v7656_v3 = vsel %vm7604_vm11, %v3351_v50, %v3347_v19  ;;  %v3627_v19 = vmul.f32 %v7461_v57, %v3626_v29  ;;  %vm3572_vm11 = vweird.f32 %v7413_v26 }
 0x3e8   : > { %8115 = sst [smem:[#allocation36_spill]] %s7517_s12  ;;  %v3461_v1 = vsel %vm7643_vm4, %v7449_v30, %v3457_v48  ;;  %v3465_v17 = vor.u32 1.1754944e-38, %v3464_v0  ;;  %v3684_v48 = vmul.f32 %v7465_v23, %v3683_v31  ;;  %vm3630_vm1 = vweird.f32 %v7461_v57  ;;  %vm7702_vm4 = vmor %vm3572_vm11, %vm3573_vm12 }
 0x3e9   : > { %s7528_s12 = sld [smem:[#allocation7 + $0x1e0]]  ;;  %v3628_v18 = vadd.f32 %v7461_v57, %v3627_v19  ;;  %v3633_v35 = vand.u32 2147483647, %v7419_v45  ;;  %vm7710_vm5 = vmor %vm3629_vm14, %vm3630_vm1  ;;  %v3692_v15 = vand.u32 2147483648, %v7424_v8  ;;  %v3579_v12 = vor.u32 1.1754944e-38, %v3578_v20 }
 0x3ea   : > { %s7550_s23 = sld [smem:[#allocation7 + $0x1d9]]  ;;  %v7669_v24 = vsel %vm3463_vm8, %v3465_v17, %v3461_v1  ;;  %v3685_v13 = vadd.f32 %v7465_v23, %v3684_v48  ;;  %vm3743_vm8 = vweird.f32 %v7429_v52  ;;  %v8150_v29 = vstv %s7390_s20 }
 0x3eb   : > { %s8117_s25 = sld [smem:[#allocation27_spill]]  ;;  %v3632_v40 = vsel %vm7710_vm5, %v7461_v57, %v3628_v18  ;;  %vm3634_vm11 = vcmp.eq.f32.partialorder %v3633_v35, 8.507059e+37  ;;  %v3693_v1 = vor.u32 1.1754944e-38, %v3692_v15  ;;  %v8153_v47 = vstv %s7451_s29 }
 0x3ec   : > { %s8118_s0 = sld [smem:[#allocation33_spill]]  ;;  %v4661_v54 = vpop.eup %4660  ;;  %v8162_v15 = vstv %s7434_s2 }
 0x3ed   : > { %8114 = sst [smem:[#allocation35_spill]] %s7512_s22  ;;  %v7568_v43 = vadd.f32 1.0, %v4661_v54  ;;  %v7661_v54 = vsel %vm3406_vm6, %v3408_v34, %v3404_v56  ;;  %vm3686_vm6 = vweird.f32 %v7424_v8  ;;  %v8163_v56 = vstv %s7455_s15 }
 0x3ee   : > { %s7522_s22 = sld [smem:[#allocation7 + $0x1d8]]  ;;  %vm7718_vm7 = vmor %vm3686_vm6, %vm3687_vm3 }
 0x3ef   : > { %s8119_s8 = sld [smem:[#allocation34_spill]]  ;;  %4662 = vrcp.f32 %v7568_v43  ;;  %v3115_v10 = vand.u32 2147483647, %v7568_v43  ;;  %v3117_v55 = vand.u32 2147483648, %v7568_v43  ;;  %vm3111_vm15 = vweird.f32 %v7568_v43 }
 0x3f0   : > { %s7556_s18 = sld [smem:[#allocation7 + $0x1e1]] }
 0x3f1   : > { %s8120_s16 = sld [smem:[#allocation35_spill]]  ;;  %v2221_v62 = vstv %s8117_s25  ;;  %v7652_v33 = vor.u32 1.1754944e-38, %v3117_v55  ;;  %v3522_v55 = vor.u32 1.1754944e-38, %v3521_v6  ;;  %vm7682_vm13 = vcmp.eq.f32.partialorder %v3115_v10, 8.507059e+37 }
 0x3f2   : > { %s7562_s1 = sld [smem:[#allocation7 + $0x1e9]]  ;;  %v3742_v10 = vadd.f32 %v7469_v51, %v3741_v11  ;;  %v3690_v6 = vand.u32 2147483647, %v7424_v8  ;;  %v8154_v18 = vstv %s8118_s0 }
 0x3f3   : > { %s8122_s24 = sld [smem:[#allocation36_spill]]  ;;  %v7675_v0 = vsel %vm3520_vm10, %v3522_v55, %v3518_v5 }
 0x3f4   : > { %8116 = sst [smem:[#allocation41_spill]] %s7522_s22  ;;  %vm3691_vm12 = vcmp.eq.f32.partialorder %v3690_v6, 8.507059e+37 }
 0x3f5   : > { %s7532_s22 = sld [smem:[#allocation7 + $0x1e8]]  ;;  %v7611_v36 = vpop.eup %4662 }
 0x3f6   : > { %s8123_s26 = sld [smem:[#allocation41_spill]]  ;;  %v3107_v49 = vmul.f32 %v7611_v36, %v7568_v43  ;;  %vm3112_vm9 = vweird.f32 %v7611_v36  ;;  %v1960_v43 = vadd.f32 %v1958_v28, %v7573_v61  ;;  %v3747_v61 = vand.u32 2147483647, %v7429_v52 }
 0x3f7   : > { %v2266_v63 = vstv %s8120_s16  ;;  %vm7695_vm2 = vmor %vm3111_vm15, %vm3112_vm9  ;;  %vm3744_vm15 = vweird.f32 %v7469_v51  ;;  %vm3577_vm9 = vcmp.eq.f32.partialorder %v3576_v32, 8.507059e+37  ;;  %s8146_s19 = sld [smem:[#allocation22_spill]] }
 0x3f8   : > { %8121 = sst [smem:[#allocation42_spill]] %s7562_s1  ;;  %v3108_v44 = vsub.f32 1.0, %v3107_v49  ;;  %v3570_v49 = vmul.f32 %v7457_v39, %v3569_v38  ;;  %v1963_v34 = vmul.f32 %v1962_v46, %v1960_v43  ;;  %vm7735_vm10 = vmor %vm3743_vm8, %vm3744_vm15  ;;  %vm3748_vm14 = vcmp.eq.f32.partialorder %v3747_v61, 8.507059e+37 }
 0x3f9   : > { %v3746_v57 = vsel %vm7735_vm10, %v7469_v51, %v3742_v10  ;;  %s8147_s14 = sld [smem:[#allocation37_spill]]  ;;  %v8164_v61 = vstv %s8119_s8 }
 0x3fa   : > { %v3109_v38 = vmul.f32 %v7611_v36, %v3108_v44  ;;  %v3571_v30 = vadd.f32 %v7457_v39, %v3570_v49  ;;  %v3749_v44 = vand.u32 2147483648, %v7429_v52  ;;  %v1966_v46 = vadd.f32 %v1965_v53, %v1963_v34  ;;  %s8148_s21 = sld [smem:[#allocation39_spill]] }
 0x3fb   : > { %v3636_v49 = vor.u32 1.1754944e-38, %v3635_v7  ;;  %s8149_s17 = sld [smem:[#allocation25_spill]] }
 0x3fc   : > { %v3110_v31 = vadd.f32 %v7611_v36, %v3109_v38  ;;  %v3575_v45 = vsel %vm7702_vm4, %v7457_v39, %v3571_v30  ;;  %v3689_v39 = vsel %vm7718_vm7, %v7465_v23, %v3685_v13  ;;  %v1967_v23 = vmax.f32 %v1966_v46, 0.0  ;;  %s8159_s28 = sld [smem:[#allocation23_spill]] }
 0x3fd   : > { %v7750_v17 = vsel %vm3577_vm9, %v3579_v12, %v3575_v45  ;;  %v7757_v53 = vsel %vm3634_vm11, %v3636_v49, %v3632_v40  ;;  %v7759_v5 = vsel %vm3691_vm12, %v3693_v1, %v3689_v39  ;;  %v8151_v32 = vstv %s8146_s19  ;;  %s8161_s13 = sld [smem:[#allocation40_spill]] }
 0x3fe   : > { %v3114_v52 = vsel %vm7695_vm2, %v7611_v36, %v3110_v31  ;;  %v3750_v36 = vor.u32 1.1754944e-38, %v3749_v44  ;;  %v1997_v55 = vmul.f32 %v1996_v16, %v1967_v23  ;;  %v2042_v19 = vmul.f32 %v2041_v59, %v1967_v23  ;;  %s8168_s25 = sld [smem:[#allocation24_spill]] }
 0x3ff   : > { %v7755_v51 = vsel %vm7682_vm13, %v7652_v33, %v3114_v52  ;;  %v2087_v30 = vmul.f32 %v2086_v25, %v1967_v23  ;;  %v2132_v48 = vmul.f32 %v2131_v14, %v1967_v23  ;;  %v2177_v33 = vmul.f32 %v2176_v27, %v1967_v23  ;;  %s8169_s20 = sld [smem:[#allocation26_spill]] }
 0x400   : > { %v7761_v38 = vsel %vm3748_vm14, %v3750_v36, %v3746_v57  ;;  %v2222_v11 = vmul.f32 %v2221_v62, %v1967_v23  ;;  %v2267_v28 = vmul.f32 %v2266_v63, %v1967_v23  ;;  %v2312_v16 = vmul.f32 %v2311_v21, %v1967_v23  ;;  %s8181_s0 = sld [smem:[#allocation13_spill]] }
 0x401   : > { %v1998_v59 = vadd.f32 %v1997_v55, %v6832_v9  ;;  %v2043_v25 = vadd.f32 %v2042_v19, %v6839_v4  ;;  %v2088_v14 = vadd.f32 %v2087_v30, %v6844_v42  ;;  %v2133_v27 = vadd.f32 %v2132_v48, %v6846_v2  ;;  %s8188_s8 = sld [smem:[#allocation16_spill]] }
 0x402   : > { %v2178_v62 = vadd.f32 %v2177_v33, %v6848_v60  ;;  %v2223_v63 = vadd.f32 %v2222_v11, %v6850_v41  ;;  %v2268_v21 = vadd.f32 %v2267_v28, %v6854_v37  ;;  %v2313_v9 = vadd.f32 %v2312_v16, %v6859_v22  ;;  %s8189_s16 = sld [smem:[#allocation21_spill]] }
 0x403   : > { %v2001_v4 = vmul.f32 %v2000_v58, %v1998_v59  ;;  %v2046_v42 = vmul.f32 %v8150_v29, %v2043_v25  ;;  %v2091_v20 = vmul.f32 %v8151_v32, %v2088_v14  ;;  %v8152_v2 = vstv %s7431_s30  ;;  %s8190_s2 = sld [smem:[#allocation47_spill]] }
 0x404   : > { %v2136_v31 = vmul.f32 %v8152_v2, %v2133_v27  ;;  %v2181_v60 = vmul.f32 %v8153_v47, %v2178_v62  ;;  %v2226_v35 = vmul.f32 %v8154_v18, %v2223_v63  ;;  %v8155_v41 = vstv %s8122_s24 }
 0x405   : > { %v2271_v26 = vmul.f32 %v8155_v41, %v2268_v21  ;;  %v8156_v13 = vstv %s7544_s9  ;;  %v8157_v10 = vstv %s8147_s14  ;;  %v8158_v22 = vstv %s8148_s21  ;;  %s8167_s9 = sld [smem:[#allocation38_spill]] }
 0x406   : > { %v2316_v37 = vmul.f32 %v8156_v13, %v2313_v9  ;;  %v2004_v43 = vadd.f32 %v8157_v10, %v2001_v4  ;;  %v2049_v50 = vadd.f32 %v8158_v22, %v2046_v42  ;;  %v8160_v58 = vstv %s8149_s17 }
 0x407   : > { %v2094_v7 = vadd.f32 %v8160_v58, %v2091_v20  ;;  %v2139_v44 = vadd.f32 %v8162_v15, %v2136_v31  ;;  %v2184_v6 = vadd.f32 %v8163_v56, %v2181_v60  ;;  %v2229_v34 = vadd.f32 %v8164_v61, %v2226_v35 }
 0x408   : > { %v8165_v45 = vstv %s8123_s26  ;;  %v8166_v40 = vstv %s7550_s23  ;;  %v2005_v52 = vmax.f32 %v2004_v43, 0.0  ;;  %v2050_v39 = vmax.f32 %v2049_v50, 0.0  ;;  %s8171_s23 = sld [smem:[#allocation42_spill]] }
 0x409   : > { %v2274_v12 = vadd.f32 %v8165_v45, %v2271_v26  ;;  %v2319_v8 = vadd.f32 %v8166_v40, %v2316_v37  ;;  %v2095_v57 = vmax.f32 %v2094_v7, 0.0  ;;  %v2140_v46 = vmax.f32 %v2139_v44, 0.0 }
 0x40a   : > { %v2185_v49 = vmax.f32 %v2184_v6, 0.0  ;;  %v2230_v1 = vmax.f32 %v2229_v34, 0.0  ;;  %v8170_v55 = vstv %s8159_s28  ;;  %v8172_v30 = vstv %s8161_s13 }
 0x40b   : > { %v2275_v36 = vmax.f32 %v2274_v12, 0.0  ;;  %v2320_v23 = vmax.f32 %v2319_v8, 0.0  ;;  %v2008_v19 = vmul.f32 %v8170_v55, %v2005_v52  ;;  %v2053_v48 = vmul.f32 %v8172_v30, %v2050_v39 }
 0x40c   : > { %v8173_v33 = vstv %s7416_s5  ;;  %v8174_v28 = vstv %s7437_s7  ;;  %v8175_v59 = vstv %s7459_s4  ;;  %v8176_v14 = vstv %s7496_s3  ;;  %s4560_s5 = sshll.u32 %s8188_s8, 6 }
 0x40d   : > { %v2098_v11 = vmul.f32 %v8173_v33, %v2095_v57  ;;  %v2143_v16 = vmul.f32 %v8174_v28, %v2140_v46  ;;  %v2188_v25 = vmul.f32 %v8175_v59, %v2185_v49  ;;  %v2233_v27 = vmul.f32 %v8176_v14, %v2230_v1  ;;  %s3812_s7 = scalar_lea.hbm %s8190_s2, %s4560_s5  ;;  %v4685_v59 = vld [vmem:[%s8189_s16 + $0x20] sm:$0xff]  ;;  %v4686_v14 = vld [vmem:[%s8189_s16 + $0x28] sm:$0xff] }
 0x40e   : > { %v8177_v62 = vstv %s7528_s12  ;;  %v8178_v21 = vstv %s7556_s18  ;;  %v8179_v4 = vstv %s8167_s9  ;;  %v8180_v42 = vstv %s8168_s25  ;;  %s242_s18 = sand.u32 1, %s8181_s0   ;;  %s3815_s15 = sshll.u32 %s3812_s7, 4  ;;  %s3816_s15 = int_to_ptr.hbm [resolvable:$true] %s3815_s15 }
 0x40f   : > { %v2278_v63 = vmul.f32 %v8177_v62, %v2275_v36  ;;  %v2323_v9 = vmul.f32 %v8178_v21, %v2320_v23  ;;  %v2011_v29 = vadd.f32 %v8179_v4, %v2008_v19  ;;  %v2056_v32 = vadd.f32 %v8180_v42, %v2053_v48  ;;  %s3918_s24 = sshll.u32 %s242_s18, 6  ;;  %v4681_v48 = vld [vmem:[%s8189_s16] sm:$0xff]  ;;  %v4687_v62 = vld [vmem:[%s8189_s16 + $0x30] sm:$0xff]  ;;  %v4688_v21 = vld [vmem:[%s8189_s16 + $0x38] sm:$0xff]  ;;  %s3801_s4 = scalar_lea.sflag [#allocation9], %s242_s18 }
 0x410   : > { %v8182_v20 = vstv %s8169_s20  ;;  %v8183_v31 = vstv %s7442_s10  ;;  %v8184_v60 = vstv %s7463_s11  ;;  %v8185_v35 = vstv %s7510_s27  ;;  %s244_s10 = scalar_lea.vmem [#allocation8], %s3918_s24  ;;  %s4715_s11 = sshra.s32 %s3816_s15, 4  ;;  %s4716_s11 = int_to_ptr.hbm [resolvable:$true] %s4715_s11 }
 0x411   : > { %v2101_v2 = vadd.f32 %v8182_v20, %v2098_v11  ;;  %v2146_v47 = vadd.f32 %v8183_v31, %v2143_v16  ;;  %v2191_v18 = vadd.f32 %v8184_v60, %v2188_v25  ;;  %v2236_v41 = vadd.f32 %v8185_v35, %v2233_v27  ;;  %s3813_s6 = sshll.u32 %s244_s10, 4  ;;  %s4721_s12 = scalar_lea.hbm %s8190_s2, 128  ;;  %s3814_s6 = int_to_ptr.vmem [resolvable:$true] %s3813_s6 }
 0x412   : > { %v8186_v26 = vstv %s7532_s22  ;;  %v8187_v37 = vstv %s8171_s23  ;;  %v2012_v43 = vmax.f32 %v2011_v29, 0.0  ;;  %v2057_v22 = vmax.f32 %v2056_v32, 0.0  ;;  %s4717_s22 = scalar_lea.hbm %s4716_s11, 64  ;;  %p4722_p0 = scmp.lt.s32.totalorder %s4716_s11, %s8190_s2 }
 0x413   : > { %v2281_v13 = vadd.f32 %v8186_v26, %v2278_v63  ;;  %v2326_v10 = vadd.f32 %v8187_v37, %v2323_v9  ;;  %v2102_v50 = vmax.f32 %v2101_v2, 0.0  ;;  %v2147_v58 = vmax.f32 %v2146_v47, 0.0  ;;  %p4718_p11 = scmp.ne.s32.totalorder %s4716_s11, %s4717_s22  ;;  %p4723_p1 = scmp.lt.s32.totalorder %s4721_s12, %s4717_s22 }
 0x414   : > { %v2192_v7 = vmax.f32 %v2191_v18, 0.0  ;;  %v2237_v15 = vmax.f32 %v2236_v41, 0.0  ;;  %v3753_v6 = vmul.f32 %v7755_v51, %v2012_v43  ;;  %v3754_v61 = vmul.f32 %v7656_v3, %v2012_v43 }
 0x415   : > { %v2282_v44 = vmax.f32 %v2281_v13, 0.0  ;;  %v2327_v56 = vmax.f32 %v2326_v10, 0.0  ;;  %v3758_v34 = vmul.f32 %v7755_v51, %v2057_v22  ;;  %v3759_v45 = vmul.f32 %v7661_v54, %v2057_v22  ;;  %p4719_p12 = pnand %p4718_p11, %p4850_p5  ;;  %p4724_p2 = por %p4723_p1, %p4722_p0 }
 0x416   : > { %v3764_v12 = vmul.f32 %v7755_v51, %v2102_v50  ;;  %v3765_v40 = vmul.f32 %v7669_v24, %v2102_v50  ;;  %v3770_v8 = vmul.f32 %v7755_v51, %v2147_v58  ;;  %v3771_v52 = vmul.f32 %v7675_v0, %v2147_v58 }
 0x417   : > { %v3776_v39 = vmul.f32 %v7755_v51, %v2192_v7  ;;  %v3777_v57 = vmul.f32 %v7750_v17, %v2192_v7  ;;  %v3782_v46 = vmul.f32 %v7755_v51, %v2237_v15  ;;  %v3783_v3 = vmul.f32 %v7757_v53, %v2237_v15  ;;  %p4720_p13 = pneg %p4719_p12 }
 0x418   : > { %v3788_v54 = vmul.f32 %v7755_v51, %v2282_v44  ;;  %v3789_v24 = vmul.f32 %v7759_v5, %v2282_v44  ;;  %v3794_v49 = vmul.f32 %v7755_v51, %v2327_v56  ;;  %v3795_v0 = vmul.f32 %v7761_v38, %v2327_v56  ;;  %v4682_v5 = vld [vmem:[%s8189_s16 + $0x8] sm:$0xff]  ;;  %v4683_v51 = vld [vmem:[%s8189_s16 + $0x10] sm:$0xff]  ;;  %v4684_v38 = vld [vmem:[%s8189_s16 + $0x18] sm:$0xff] }
 0x419   : > { %v3755_v1 = vadd.f32 %v3754_v61, %v3753_v6  ;;  %v3760_v17 = vadd.f32 %v3759_v45, %v3758_v34  ;;  %v3766_v36 = vadd.f32 %v3765_v40, %v3764_v12  ;;  %v3772_v23 = vadd.f32 %v3771_v52, %v3770_v8  ;;  %p4725_p3 = pnand %p4724_p2, %p4720_p13 }
 0x41a   : > { %v3778_v53 = vadd.f32 %v3777_v57, %v3776_v39  ;;  %v3784_v55 = vadd.f32 %v3783_v3, %v3782_v46  ;;  %v3790_v19 = vadd.f32 %v3789_v24, %v3788_v54  ;;  %v3796_v30 = vadd.f32 %v3795_v0, %v3794_v49 }
 0x41b   : > { %v3756_v33 = vadd.f32 %v4681_v48, %v3755_v1  ;;  %v3761_v11 = vadd.f32 %v4682_v5, %v3760_v17  ;;  %v3767_v28 = vadd.f32 %v4683_v51, %v3766_v36  ;;  %v3773_v16 = vadd.f32 %v4684_v38, %v3772_v23 }
 0x41c   : > { %v3779_v25 = vadd.f32 %v4685_v59, %v3778_v53  ;;  %v3785_v27 = vadd.f32 %v4686_v14, %v3784_v55  ;;  %v3791_v63 = vadd.f32 %v4687_v62, %v3790_v19  ;;  %v3797_v9 = vadd.f32 %v4688_v21, %v3796_v30 }
 0x41d   : > { %3757 = vst.msk [vmem:[%s244_s10] sm:$0xff] %vm265_vm0, %v3756_v33 }
 0x41e   : > { %4544 = vst.msk [vmem:[%s244_s10 + $0x8] sm:$0xff] %vm265_vm0, %v3761_v11 }
 0x41f   : > { %4545 = vst.msk [vmem:[%s244_s10 + $0x10] sm:$0xff] %vm265_vm0, %v3767_v28 }
 0x420   : > { %4546 = vst.msk [vmem:[%s244_s10 + $0x18] sm:$0xff] %vm265_vm0, %v3773_v16 }
 0x421   : > { %4547 = vst.msk [vmem:[%s244_s10 + $0x20] sm:$0xff] %vm265_vm0, %v3779_v25 }
 0x422   : > { %4548 = vst.msk [vmem:[%s244_s10 + $0x28] sm:$0xff] %vm265_vm0, %v3785_v27 }
 0x423   : > { %4549 = vst.msk [vmem:[%s244_s10 + $0x30] sm:$0xff] %vm265_vm0, %v3791_v63 }
 0x424   : > { %4550 = vst.msk [vmem:[%s244_s10 + $0x38] sm:$0xff] %vm265_vm0, %v3797_v9 }
 0x425   : > { %4728 = shalt.err (!%p4725_p3)
}
 0x426   : > { %s4777_s14 = smov 128   ;;  %s4778_s21 = smov 8  }
 0x427   : > { %4577 = dma.vmem_to_hbm [thread:$0]  (%p4850_p5), %s3814_s6, 1024, %s3816_s15, %s3801_s4, %s4777_s14, %s4777_s14, %s4778_s21  }
 0x428 PF: > { %s8192_s17 = sld [smem:[#allocation15_spill]] }
 0x429   : > { %s8193_s28 = sld [smem:[#allocation12_spill]] }
 0x42e   : > { %p4583_p4 = scmp.ge.s32.totalorder %s8192_s17, 2 }
 0x42f   : > { %s3830_s9 = sand.u32 1, %s8193_s28  }
 0x430   : > { %p4580_p7 = pnand %p4583_p4, %p4854_p6  ;;  %s3831_s25 = scalar_lea.sflag [#allocation9], %s3830_s9 }
 0x432   : > { %p4581_p8 = pneg %p4580_p7 }
 0x434   : > { %4748 = dma.done.wait (%p4581_p8), %s3831_s25, 1024  }
 0x435   : > { %4750 = vsyncadd (%p4581_p8), %s3831_s25, 4294966272  ;;  %s8195_s25 = sld [smem:[#allocation17_spill]] }
 0x436   : > { %s8196_s22 = sld [smem:[#allocation13_spill]] }
 0x437   : > { %s8197_s23 = sld [smem:[#allocation14_spill]] }
 0x438   : > { %s8198_s24 = sld [smem:[#allocation18_spill]] }
 0x43b   : > { %p23_p9 = scmp.ge.s32.totalorder %s8195_s25, 4  }
 0x43d   :  { %25 = sbr.rel (!%p23_p9) target bundleno = 13 (0xd), region = 109 }
 0x442   :  { %3837 = vsyncpa [#allocation9], 1 }
 0x443   :  { %3839 = vsyncpa [#allocation9 + $0x1], 1 }

</bundles_post_ra>
